<compile_context>
chip_gen: v7x
topology: tpu7x:2x2x1
jax: 0.10.0
libtpu: 0.0.40
codegen_flags: <defaults>
</compile_context>

<pallas_src>
import functools

import numpy as np
import jax
import jax.numpy as jnp
from jax.experimental import pallas as pl
from jax.experimental.pallas import tpu as pltpu


# ----------------------------------------------------------------------------
# In-kernel stage: conv3x3(+bias)(+ReLU) -> bilinear 2x upsample, all in VMEM.
# ----------------------------------------------------------------------------
def _conv_up_stage(frame_ref, w_ref, b_ref, cs_ref, uw_ref, dst_ref, *,
                   cin, cout, h, w, relu, dst_is_frame):
    """frame_ref: (cin, >=(h+2)*(w+2)+2) flattened zero-padded input frame.
    w_ref:     (9*cout, cin) BN-folded weights, index (ky*3+kx)*cout + co along rows.
    b_ref:     (cout, 1) folded BN shift, or None (conv3 has no bias/BN).
    cs_ref:    (cout, h*(w+2)) conv-output scratch (2 junk pad cols per row).
    uw_ref:    (w+2, out_cols) width-upsample matrix; junk rows are zero; when the
               destination is the next frame it also emits the zero border columns.
    dst_ref:   next-stage frame scratch or the (cout, 2h*2w) output ref.
    """
    wp = w + 2
    nw = h * wp

    # ---- conv3x3 (padding=1): 9 shifted-tap MXU matmuls, f32 accumulation ----
    acc = jnp.zeros((cout, nw), jnp.float32)
    for k in range(9):                                   # 9 static taps
        ky, kx = divmod(k, 3)
        off = ky * wp + kx
        xk = frame_ref[:, off:off + nw]                  # (cin, nw) lane window
        wk = w_ref[k * cout:(k + 1) * cout, :]           # (cout, cin)
        acc = acc + jnp.dot(wk, xk, preferred_element_type=jnp.float32)
    if b_ref is not None:
        acc = acc + b_ref[...]                           # (cout,1) broadcast over lanes
    if relu:
        acc = jnp.maximum(acc, 0.0)
    cs_ref[...] = acc                                    # bound the live range in VMEM

    # ---- bilinear 2x upsample (PyTorch align_corners=False) ----
    uw = uw_ref[...]
    out_cols = uw.shape[1]
    if dst_is_frame:
        # Zero the next frame (borders / trailing pad); interior rows (including their
        # zero border columns, emitted by uw) are fully overwritten below.
        dst_ref[...] = jnp.zeros(dst_ref.shape, jnp.float32)

    # H direction: exact 2-tap stencil on row slices. W direction: one tiny matmul
    # per output row, batched over all channels.
    # TODO(synk): use a fori_loop / banded row groups for production-sized H.
    for ip in range(2 * h):
        src = max(0.5 * ip - 0.25, 0.0)                  # source row coord (static)
        r0 = int(src)
        frac = src - r0
        r1 = min(r0 + 1, h - 1)
        row = cs_ref[:, r0 * wp:(r0 + 1) * wp]           # (cout, wp)
        if frac > 0.0:
            row = (1.0 - frac) * row + frac * cs_ref[:, r1 * wp:(r1 + 1) * wp]
        up_row = jnp.dot(row, uw, preferred_element_type=jnp.float32)  # (cout, out_cols)
        if dst_is_frame:
            dst_ref[:, (ip + 1) * out_cols:(ip + 2) * out_cols] = up_row
        else:
            dst_ref[:, ip * out_cols:(ip + 1) * out_cols] = up_row


def _boundary_kernel(x_ref, w1_ref, b1_ref, w2_ref, b2_ref, w3_ref,
                     uw1_ref, uw2_ref, uw3_ref, o_ref,
                     f1_ref, f2_ref, f3_ref, cs1_ref, cs2_ref, cs3_ref,
                     *, c0, c1, c2, c3, h, w):
    wp = w + 2
    # Build the zero-padded, flattened input frame for stage 1 (in VMEM).
    f1_ref[...] = jnp.zeros(f1_ref.shape, jnp.float32)
    for i in range(h):
        f1_ref[:, (i + 1) * wp + 1:(i + 1) * wp + 1 + w] = x_ref[:, i * w:(i + 1) * w]

    _conv_up_stage(f1_ref, w1_ref, b1_ref, cs1_ref, uw1_ref, f2_ref,
                   cin=c0, cout=c1, h=h, w=w, relu=True, dst_is_frame=True)
    _conv_up_stage(f2_ref, w2_ref, b2_ref, cs2_ref, uw2_ref, f3_ref,
                   cin=c1, cout=c2, h=2 * h, w=2 * w, relu=True, dst_is_frame=True)
    _conv_up_stage(f3_ref, w3_ref, None, cs3_ref, uw3_ref, o_ref,
                   cin=c2, cout=c3, h=4 * h, w=4 * w, relu=False, dst_is_frame=False)


# ----------------------------------------------------------------------------
# Host-side helpers
# ----------------------------------------------------------------------------
def _up2_col_matrix(w_in, pad_out):
    """(w_in+2, out_cols) matrix: padded conv-output row -> 2x bilinear row.

    Matches PyTorch Upsample(scale_factor=2, mode='bilinear', align_corners=False)
    along width (source-index clamp + right-edge clamp).  The last two rows (junk pad
    columns of the flattened conv output) are zero; with pad_out the result also
    carries the zero border columns of the next stage's padded frame.
    """
    w_out = 2 * w_in
    off = 1 if pad_out else 0
    m = np.zeros((w_in + 2, w_out + 2 * off), np.float32)
    for jp in range(w_out):
        src = max((jp + 0.5) * 0.5 - 0.5, 0.0)
        j0 = int(np.floor(src))
        frac = src - j0
        j1 = min(j0 + 1, w_in - 1)
        m[j0, jp + off] += 1.0 - frac
        m[j1, jp + off] += frac
    return jnp.asarray(m)


def _pack_conv_w(w_oihw):
    """(Cout, Cin, 3, 3) torch layout -> (9*Cout, Cin), tap-major (ky*3+kx)."""
    cout, cin = w_oihw.shape[0], w_oihw.shape[1]
    return jnp.transpose(w_oihw, (2, 3, 0, 1)).reshape(9 * cout, cin)


def _fold_bn(w_oihw, gamma, beta, mean, var, eps=1e-5):
    scale = gamma / jnp.sqrt(var + eps)
    return w_oihw * scale[:, None, None, None], beta - mean * scale


def init_params(key, num_input, num_output):
    c1, c2 = num_input // 2, num_input // 4
    ks = jax.random.split(key, 11)
    w1 = 0.1 * jax.random.normal(ks[0], (c1, num_input, 3, 3), jnp.float32)
    w1, b1 = _fold_bn(
        w1,
        1.0 + 0.1 * jax.random.normal(ks[1], (c1,), jnp.float32),
        0.1 * jax.random.normal(ks[2], (c1,), jnp.float32),
        0.1 * jax.random.normal(ks[3], (c1,), jnp.float32),
        jax.random.uniform(ks[4], (c1,), jnp.float32, 0.5, 1.5))
    w2 = 0.1 * jax.random.normal(ks[5], (c2, c1, 3, 3), jnp.float32)
    w2, b2 = _fold_bn(
        w2,
        1.0 + 0.1 * jax.random.normal(ks[6], (c2,), jnp.float32),
        0.1 * jax.random.normal(ks[7], (c2,), jnp.float32),
        0.1 * jax.random.normal(ks[8], (c2,), jnp.float32),
        jax.random.uniform(ks[9], (c2,), jnp.float32, 0.5, 1.5))
    w3 = 0.1 * jax.random.normal(ks[10], (num_output, c2, 3, 3), jnp.float32)
    return {
        "w1": _pack_conv_w(w1), "b1": b1[:, None],
        "w2": _pack_conv_w(w2), "b2": b2[:, None],
        "w3": _pack_conv_w(w3),        # conv3: bias=False, no BN (matches the spec)
    }


def boundary_mapping3(x_nchw, params):
    x = x_nchw.astype(jnp.float32)
    n, c0, h, w = x.shape
    c1 = params["b1"].shape[0]
    c2 = params["b2"].shape[0]
    c3 = params["w3"].shape[0] // 9

    # Width-upsample matrices (tiny, O(W^2)); the H direction is a 2-tap stencil.
    uw1 = _up2_col_matrix(w, pad_out=True)
    uw2 = _up2_col_matrix(2 * w, pad_out=True)
    uw3 = _up2_col_matrix(4 * w, pad_out=False)

    x_flat = x.reshape(n, c0, h * w)              # free row-major flatten (lane-dense)
    oh, ow = 8 * h, 8 * w

    kernel = functools.partial(_boundary_kernel, c0=c0, c1=c1, c2=c2, c3=c3, h=h, w=w)
    const = lambda b: (0, 0)

    out_flat = pl.pallas_call(
        kernel,
        out_shape=jax.ShapeDtypeStruct((n, c3, oh * ow), jnp.float32),
        grid=(n,),
        in_specs=[
            pl.BlockSpec((pl.Squeezed(), c0, h * w), lambda b: (b, 0, 0)),  # x
            pl.BlockSpec((9 * c1, c0), const),                              # w1 (VMEM)
            pl.BlockSpec((c1, 1), const),                                   # b1
            pl.BlockSpec((9 * c2, c1), const),                              # w2
            pl.BlockSpec((c2, 1), const),                                   # b2
            pl.BlockSpec((9 * c3, c2), const),                              # w3
            pl.BlockSpec(tuple(uw1.shape), const),                          # U_w stage 1
            pl.BlockSpec(tuple(uw2.shape), const),                          # U_w stage 2
            pl.BlockSpec(tuple(uw3.shape), const),                          # U_w stage 3
        ],
        out_specs=pl.BlockSpec((pl.Squeezed(), c3, oh * ow), lambda b: (b, 0, 0)),
        scratch_shapes=[
            pltpu.VMEM((c0, (h + 3) * (w + 2)), jnp.float32),               # frame 1
            pltpu.VMEM((c1, (2 * h + 3) * (2 * w + 2)), jnp.float32),       # frame 2
            pltpu.VMEM((c2, (4 * h + 3) * (4 * w + 2)), jnp.float32),       # frame 3
            pltpu.VMEM((c1, h * (w + 2)), jnp.float32),                     # conv1 out
            pltpu.VMEM((c2, 2 * h * (2 * w + 2)), jnp.float32),             # conv2 out
            pltpu.VMEM((c3, 4 * h * (4 * w + 2)), jnp.float32),             # conv3 out
        ],
        compiler_params=pltpu.CompilerParams(
            dimension_semantics=("parallel",),      # one image per TensorCore
            vmem_limit_bytes=48 * 1024 * 1024),
    )(x_flat, params["w1"], params["b1"], params["w2"], params["b2"], params["w3"],
      uw1, uw2, uw3)
    return out_flat.reshape(n, c3, oh, ow)


if __name__ == "__main__":
    key = jax.random.PRNGKey(0)
    kx, kp = jax.random.split(key)

    N, C, H, W = 2, 8, 8, 8           # num_input=8 -> C/2=4, C/4=2
    num_output = 1
    x = jax.random.normal(kx, (N, C, H, W), jnp.float32)
    params = init_params(kp, C, num_output)

    fwd = jax.jit(boundary_mapping3)
    out = jax.block_until_ready(fwd(x, params))
    assert out.shape == (N, num_output, 8 * H, 8 * W), out.shape
    assert bool(jnp.isfinite(out).all())
    print("KERNEL_OK")
</pallas_src>

<mosaic_0001>
module attributes {stable_mosaic.version = 11 : i64} {
  func.func @_boundary_kernel(%arg0: i32, %arg1: memref<1x8x64xf32, #tpu.memory_space<vmem>>, %arg2: memref<36x8xf32, #tpu.memory_space<vmem>>, %arg3: memref<4x1xf32, #tpu.memory_space<vmem>>, %arg4: memref<18x4xf32, #tpu.memory_space<vmem>>, %arg5: memref<2x1xf32, #tpu.memory_space<vmem>>, %arg6: memref<9x2xf32, #tpu.memory_space<vmem>>, %arg7: memref<10x18xf32, #tpu.memory_space<vmem>>, %arg8: memref<18x34xf32, #tpu.memory_space<vmem>>, %arg9: memref<34x64xf32, #tpu.memory_space<vmem>>, %arg10: memref<1x1x4096xf32, #tpu.memory_space<vmem>>, %arg11: memref<8x110xf32, #tpu.memory_space<vmem>>, %arg12: memref<4x342xf32, #tpu.memory_space<vmem>>, %arg13: memref<2x1190xf32, #tpu.memory_space<vmem>>, %arg14: memref<4x80xf32, #tpu.memory_space<vmem>>, %arg15: memref<2x288xf32, #tpu.memory_space<vmem>>, %arg16: memref<1x1088xf32, #tpu.memory_space<vmem>>) attributes {dimension_semantics = [#tpu.dimension_semantics<parallel>], iteration_bounds = array<i64: 2>, scalar_prefetch = 0 : i64, scratch_operands = 6 : i64, tpu.core_type = #tpu.core_type<tc>, window_params = [{transform_indices = @transform_0, window_bounds = array<i64: 1, 8, 64>}, {pipeline_mode = #tpu.pipeline_mode<synchronous>, transform_indices = @transform_1, window_bounds = array<i64: 36, 8>}, {pipeline_mode = #tpu.pipeline_mode<synchronous>, transform_indices = @transform_2, window_bounds = array<i64: 4, 1>}, {pipeline_mode = #tpu.pipeline_mode<synchronous>, transform_indices = @transform_3, window_bounds = array<i64: 18, 4>}, {pipeline_mode = #tpu.pipeline_mode<synchronous>, transform_indices = @transform_4, window_bounds = array<i64: 2, 1>}, {pipeline_mode = #tpu.pipeline_mode<synchronous>, transform_indices = @transform_5, window_bounds = array<i64: 9, 2>}, {pipeline_mode = #tpu.pipeline_mode<synchronous>, transform_indices = @transform_6, window_bounds = array<i64: 10, 18>}, {pipeline_mode = #tpu.pipeline_mode<synchronous>, transform_indices = @transform_7, window_bounds = array<i64: 18, 34>}, {pipeline_mode = #tpu.pipeline_mode<synchronous>, transform_indices = @transform_8, window_bounds = array<i64: 34, 64>}, {transform_indices = @transform_9, window_bounds = array<i64: 1, 1, 4096>}]} {
    %cst = arith.constant 0.000000e+00 : f32
    %0 = vector.broadcast %cst : f32 to vector<8x110xf32>
    %c0 = arith.constant 0 : index
    %c0_0 = arith.constant 0 : index
    %1 = vector.load %arg11[%c0, %c0_0] : memref<8x110xf32, #tpu.memory_space<vmem>>, vector<8x110xf32>
    tpu.vector_store %arg11[%c0, %c0_0], %0 {strides = array<i32>} : memref<8x110xf32, #tpu.memory_space<vmem>>, vector<8x110xf32>,
    %c0_1 = arith.constant 0 : index
    %c0_2 = arith.constant 0 : index
    %c0_3 = arith.constant 0 : index
    %2 = vector.load %arg1[%c0_1, %c0_2, %c0_3] : memref<1x8x64xf32, #tpu.memory_space<vmem>>, vector<1x8x8xf32>
    %3 = vector.shape_cast %2 : vector<1x8x8xf32> to vector<8x8xf32>
    %c0_4 = arith.constant 0 : index
    %c11 = arith.constant 11 : index
    %4 = vector.load %arg11[%c0_4, %c11] : memref<8x110xf32, #tpu.memory_space<vmem>>, vector<8x8xf32>
    tpu.vector_store %arg11[%c0_4, %c11], %3 {strides = array<i32>} : memref<8x110xf32, #tpu.memory_space<vmem>>, vector<8x8xf32>,
    %c0_5 = arith.constant 0 : index
    %c0_6 = arith.constant 0 : index
    %c8 = arith.constant 8 : index
    %5 = vector.load %arg1[%c0_5, %c0_6, %c8] : memref<1x8x64xf32, #tpu.memory_space<vmem>>, vector<1x8x8xf32>
    %6 = vector.shape_cast %5 : vector<1x8x8xf32> to vector<8x8xf32>
    %c0_7 = arith.constant 0 : index
    %c21 = arith.constant 21 : index
    %7 = vector.load %arg11[%c0_7, %c21] : memref<8x110xf32, #tpu.memory_space<vmem>>, vector<8x8xf32>
    tpu.vector_store %arg11[%c0_7, %c21], %6 {strides = array<i32>} : memref<8x110xf32, #tpu.memory_space<vmem>>, vector<8x8xf32>,
    %c0_8 = arith.constant 0 : index
    %c0_9 = arith.constant 0 : index
    %c16 = arith.constant 16 : index
    %8 = vector.load %arg1[%c0_8, %c0_9, %c16] : memref<1x8x64xf32, #tpu.memory_space<vmem>>, vector<1x8x8xf32>
    %9 = vector.shape_cast %8 : vector<1x8x8xf32> to vector<8x8xf32>
    %c0_10 = arith.constant 0 : index
    %c31 = arith.constant 31 : index
    %10 = vector.load %arg11[%c0_10, %c31] : memref<8x110xf32, #tpu.memory_space<vmem>>, vector<8x8xf32>
    tpu.vector_store %arg11[%c0_10, %c31], %9 {strides = array<i32>} : memref<8x110xf32, #tpu.memory_space<vmem>>, vector<8x8xf32>,
    %c0_11 = arith.constant 0 : index
    %c0_12 = arith.constant 0 : index
    %c24 = arith.constant 24 : index
    %11 = vector.load %arg1[%c0_11, %c0_12, %c24] : memref<1x8x64xf32, #tpu.memory_space<vmem>>, vector<1x8x8xf32>
    %12 = vector.shape_cast %11 : vector<1x8x8xf32> to vector<8x8xf32>
    %c0_13 = arith.constant 0 : index
    %c41 = arith.constant 41 : index
    %13 = vector.load %arg11[%c0_13, %c41] : memref<8x110xf32, #tpu.memory_space<vmem>>, vector<8x8xf32>
    tpu.vector_store %arg11[%c0_13, %c41], %12 {strides = array<i32>} : memref<8x110xf32, #tpu.memory_space<vmem>>, vector<8x8xf32>,
    %c0_14 = arith.constant 0 : index
    %c0_15 = arith.constant 0 : index
    %c32 = arith.constant 32 : index
    %14 = vector.load %arg1[%c0_14, %c0_15, %c32] : memref<1x8x64xf32, #tpu.memory_space<vmem>>, vector<1x8x8xf32>
    %15 = vector.shape_cast %14 : vector<1x8x8xf32> to vector<8x8xf32>
    %c0_16 = arith.constant 0 : index
    %c51 = arith.constant 51 : index
    %16 = vector.load %arg11[%c0_16, %c51] : memref<8x110xf32, #tpu.memory_space<vmem>>, vector<8x8xf32>
    tpu.vector_store %arg11[%c0_16, %c51], %15 {strides = array<i32>} : memref<8x110xf32, #tpu.memory_space<vmem>>, vector<8x8xf32>,
    %c0_17 = arith.constant 0 : index
    %c0_18 = arith.constant 0 : index
    %c40 = arith.constant 40 : index
    %17 = vector.load %arg1[%c0_17, %c0_18, %c40] : memref<1x8x64xf32, #tpu.memory_space<vmem>>, vector<1x8x8xf32>
    %18 = vector.shape_cast %17 : vector<1x8x8xf32> to vector<8x8xf32>
    %c0_19 = arith.constant 0 : index
    %c61 = arith.constant 61 : index
    %19 = vector.load %arg11[%c0_19, %c61] : memref<8x110xf32, #tpu.memory_space<vmem>>, vector<8x8xf32>
    tpu.vector_store %arg11[%c0_19, %c61], %18 {strides = array<i32>} : memref<8x110xf32, #tpu.memory_space<vmem>>, vector<8x8xf32>,
    %c0_20 = arith.constant 0 : index
    %c0_21 = arith.constant 0 : index
    %c48 = arith.constant 48 : index
    %20 = vector.load %arg1[%c0_20, %c0_21, %c48] : memref<1x8x64xf32, #tpu.memory_space<vmem>>, vector<1x8x8xf32>
    %21 = vector.shape_cast %20 : vector<1x8x8xf32> to vector<8x8xf32>
    %c0_22 = arith.constant 0 : index
    %c71 = arith.constant 71 : index
    %22 = vector.load %arg11[%c0_22, %c71] : memref<8x110xf32, #tpu.memory_space<vmem>>, vector<8x8xf32>
    tpu.vector_store %arg11[%c0_22, %c71], %21 {strides = array<i32>} : memref<8x110xf32, #tpu.memory_space<vmem>>, vector<8x8xf32>,
    %c0_23 = arith.constant 0 : index
    %c0_24 = arith.constant 0 : index
    %c56 = arith.constant 56 : index
    %23 = vector.load %arg1[%c0_23, %c0_24, %c56] : memref<1x8x64xf32, #tpu.memory_space<vmem>>, vector<1x8x8xf32>
    %24 = vector.shape_cast %23 : vector<1x8x8xf32> to vector<8x8xf32>
    %c0_25 = arith.constant 0 : index
    %c81 = arith.constant 81 : index
    %25 = vector.load %arg11[%c0_25, %c81] : memref<8x110xf32, #tpu.memory_space<vmem>>, vector<8x8xf32>
    tpu.vector_store %arg11[%c0_25, %c81], %24 {strides = array<i32>} : memref<8x110xf32, #tpu.memory_space<vmem>>, vector<8x8xf32>,
    %cst_26 = arith.constant 0.000000e+00 : f32
    %26 = vector.broadcast %cst_26 : f32 to vector<4x80xf32>
    %c0_27 = arith.constant 0 : index
    %c0_28 = arith.constant 0 : index
    %27 = vector.load %arg11[%c0_27, %c0_28] : memref<8x110xf32, #tpu.memory_space<vmem>>, vector<8x80xf32>
    %c0_29 = arith.constant 0 : index
    %c0_30 = arith.constant 0 : index
    %28 = vector.load %arg2[%c0_29, %c0_30] : memref<36x8xf32, #tpu.memory_space<vmem>>, vector<4x8xf32>
    %cst_31 = arith.constant dense<0.000000e+00> : vector<4x80xf32>
    %29 = tpu.matmul %28, %27, %cst_31 {dimension_numbers = #tpu.dot_dimension_numbers<[1], [0], [0], [1], [0, 0, 1, 1], [], []>} : vector<4x8xf32>, vector<8x80xf32>, vector<4x80xf32> -> vector<4x80xf32>
    %30 = arith.addf %26, %29 : vector<4x80xf32>
    %c0_32 = arith.constant 0 : index
    %c1 = arith.constant 1 : index
    %31 = vector.load %arg11[%c0_32, %c1] : memref<8x110xf32, #tpu.memory_space<vmem>>, vector<8x80xf32>
    %c4 = arith.constant 4 : index
    %c0_33 = arith.constant 0 : index
    %32 = vector.load %arg2[%c4, %c0_33] : memref<36x8xf32, #tpu.memory_space<vmem>>, vector<4x8xf32>
    %cst_34 = arith.constant dense<0.000000e+00> : vector<4x80xf32>
    %33 = tpu.matmul %32, %31, %cst_34 {dimension_numbers = #tpu.dot_dimension_numbers<[1], [0], [0], [1], [0, 0, 1, 1], [], []>} : vector<4x8xf32>, vector<8x80xf32>, vector<4x80xf32> -> vector<4x80xf32>
    %34 = arith.addf %30, %33 : vector<4x80xf32>
    %c0_35 = arith.constant 0 : index
    %c2 = arith.constant 2 : index
    %35 = vector.load %arg11[%c0_35, %c2] : memref<8x110xf32, #tpu.memory_space<vmem>>, vector<8x80xf32>
    %c8_36 = arith.constant 8 : index
    %c0_37 = arith.constant 0 : index
    %36 = vector.load %arg2[%c8_36, %c0_37] : memref<36x8xf32, #tpu.memory_space<vmem>>, vector<4x8xf32>
    %cst_38 = arith.constant dense<0.000000e+00> : vector<4x80xf32>
    %37 = tpu.matmul %36, %35, %cst_38 {dimension_numbers = #tpu.dot_dimension_numbers<[1], [0], [0], [1], [0, 0, 1, 1], [], []>} : vector<4x8xf32>, vector<8x80xf32>, vector<4x80xf32> -> vector<4x80xf32>
    %38 = arith.addf %34, %37 : vector<4x80xf32>
    %c0_39 = arith.constant 0 : index
    %c10 = arith.constant 10 : index
    %39 = vector.load %arg11[%c0_39, %c10] : memref<8x110xf32, #tpu.memory_space<vmem>>, vector<8x80xf32>
    %c12 = arith.constant 12 : index
    %c0_40 = arith.constant 0 : index
    %40 = vector.load %arg2[%c12, %c0_40] : memref<36x8xf32, #tpu.memory_space<vmem>>, vector<4x8xf32>
    %cst_41 = arith.constant dense<0.000000e+00> : vector<4x80xf32>
    %41 = tpu.matmul %40, %39, %cst_41 {dimension_numbers = #tpu.dot_dimension_numbers<[1], [0], [0], [1], [0, 0, 1, 1], [], []>} : vector<4x8xf32>, vector<8x80xf32>, vector<4x80xf32> -> vector<4x80xf32>
    %42 = arith.addf %38, %41 : vector<4x80xf32>
    %c0_42 = arith.constant 0 : index
    %c11_43 = arith.constant 11 : index
    %43 = vector.load %arg11[%c0_42, %c11_43] : memref<8x110xf32, #tpu.memory_space<vmem>>, vector<8x80xf32>
    %c16_44 = arith.constant 16 : index
    %c0_45 = arith.constant 0 : index
    %44 = vector.load %arg2[%c16_44, %c0_45] : memref<36x8xf32, #tpu.memory_space<vmem>>, vector<4x8xf32>
    %cst_46 = arith.constant dense<0.000000e+00> : vector<4x80xf32>
    %45 = tpu.matmul %44, %43, %cst_46 {dimension_numbers = #tpu.dot_dimension_numbers<[1], [0], [0], [1], [0, 0, 1, 1], [], []>} : vector<4x8xf32>, vector<8x80xf32>, vector<4x80xf32> -> vector<4x80xf32>
    %46 = arith.addf %42, %45 : vector<4x80xf32>
    %c0_47 = arith.constant 0 : index
    %c12_48 = arith.constant 12 : index
    %47 = vector.load %arg11[%c0_47, %c12_48] : memref<8x110xf32, #tpu.memory_space<vmem>>, vector<8x80xf32>
    %c20 = arith.constant 20 : index
    %c0_49 = arith.constant 0 : index
    %48 = vector.load %arg2[%c20, %c0_49] : memref<36x8xf32, #tpu.memory_space<vmem>>, vector<4x8xf32>
    %cst_50 = arith.constant dense<0.000000e+00> : vector<4x80xf32>
    %49 = tpu.matmul %48, %47, %cst_50 {dimension_numbers = #tpu.dot_dimension_numbers<[1], [0], [0], [1], [0, 0, 1, 1], [], []>} : vector<4x8xf32>, vector<8x80xf32>, vector<4x80xf32> -> vector<4x80xf32>
    %50 = arith.addf %46, %49 : vector<4x80xf32>
    %c0_51 = arith.constant 0 : index
    %c20_52 = arith.constant 20 : index
    %51 = vector.load %arg11[%c0_51, %c20_52] : memref<8x110xf32, #tpu.memory_space<vmem>>, vector<8x80xf32>
    %c24_53 = arith.constant 24 : index
    %c0_54 = arith.constant 0 : index
    %52 = vector.load %arg2[%c24_53, %c0_54] : memref<36x8xf32, #tpu.memory_space<vmem>>, vector<4x8xf32>
    %cst_55 = arith.constant dense<0.000000e+00> : vector<4x80xf32>
    %53 = tpu.matmul %52, %51, %cst_55 {dimension_numbers = #tpu.dot_dimension_numbers<[1], [0], [0], [1], [0, 0, 1, 1], [], []>} : vector<4x8xf32>, vector<8x80xf32>, vector<4x80xf32> -> vector<4x80xf32>
    %54 = arith.addf %50, %53 : vector<4x80xf32>
    %c0_56 = arith.constant 0 : index
    %c21_57 = arith.constant 21 : index
    %55 = vector.load %arg11[%c0_56, %c21_57] : memref<8x110xf32, #tpu.memory_space<vmem>>, vector<8x80xf32>
    %c28 = arith.constant 28 : index
    %c0_58 = arith.constant 0 : index
    %56 = vector.load %arg2[%c28, %c0_58] : memref<36x8xf32, #tpu.memory_space<vmem>>, vector<4x8xf32>
    %cst_59 = arith.constant dense<0.000000e+00> : vector<4x80xf32>
    %57 = tpu.matmul %56, %55, %cst_59 {dimension_numbers = #tpu.dot_dimension_numbers<[1], [0], [0], [1], [0, 0, 1, 1], [], []>} : vector<4x8xf32>, vector<8x80xf32>, vector<4x80xf32> -> vector<4x80xf32>
    %58 = arith.addf %54, %57 : vector<4x80xf32>
    %c0_60 = arith.constant 0 : index
    %c22 = arith.constant 22 : index
    %59 = vector.load %arg11[%c0_60, %c22] : memref<8x110xf32, #tpu.memory_space<vmem>>, vector<8x80xf32>
    %c32_61 = arith.constant 32 : index
    %c0_62 = arith.constant 0 : index
    %60 = vector.load %arg2[%c32_61, %c0_62] : memref<36x8xf32, #tpu.memory_space<vmem>>, vector<4x8xf32>
    %cst_63 = arith.constant dense<0.000000e+00> : vector<4x80xf32>
    %61 = tpu.matmul %60, %59, %cst_63 {dimension_numbers = #tpu.dot_dimension_numbers<[1], [0], [0], [1], [0, 0, 1, 1], [], []>} : vector<4x8xf32>, vector<8x80xf32>, vector<4x80xf32> -> vector<4x80xf32>
    %62 = arith.addf %58, %61 : vector<4x80xf32>
    %c0_64 = arith.constant 0 : index
    %c0_65 = arith.constant 0 : index
    %63 = vector.load %arg3[%c0_64, %c0_65] : memref<4x1xf32, #tpu.memory_space<vmem>>, vector<4x1xf32>
    %64 = vector.broadcast %63 : vector<4x1xf32> to vector<4x80xf32>
    %65 = arith.addf %62, %64 : vector<4x80xf32>
    %cst_66 = arith.constant 0.000000e+00 : f32
    %66 = vector.broadcast %cst_66 : f32 to vector<4x80xf32>
    %67 = arith.maximumf %65, %66 : vector<4x80xf32>
    %c0_67 = arith.constant 0 : index
    %c0_68 = arith.constant 0 : index
    %68 = vector.load %arg14[%c0_67, %c0_68] : memref<4x80xf32, #tpu.memory_space<vmem>>, vector<4x80xf32>
    tpu.vector_store %arg14[%c0_67, %c0_68], %67 {strides = array<i32>} : memref<4x80xf32, #tpu.memory_space<vmem>>, vector<4x80xf32>,
    %c0_69 = arith.constant 0 : index
    %c0_70 = arith.constant 0 : index
    %69 = vector.load %arg7[%c0_69, %c0_70] : memref<10x18xf32, #tpu.memory_space<vmem>>, vector<10x18xf32>
    %cst_71 = arith.constant 0.000000e+00 : f32
    %70 = vector.broadcast %cst_71 : f32 to vector<4x342xf32>
    %c0_72 = arith.constant 0 : index
    %c0_73 = arith.constant 0 : index
    %71 = vector.load %arg12[%c0_72, %c0_73] : memref<4x342xf32, #tpu.memory_space<vmem>>, vector<4x342xf32>
    tpu.vector_store %arg12[%c0_72, %c0_73], %70 {strides = array<i32>} : memref<4x342xf32, #tpu.memory_space<vmem>>, vector<4x342xf32>,
    %c0_74 = arith.constant 0 : index
    %c0_75 = arith.constant 0 : index
    %72 = vector.load %arg14[%c0_74, %c0_75] : memref<4x80xf32, #tpu.memory_space<vmem>>, vector<4x10xf32>
    %cst_76 = arith.constant dense<0.000000e+00> : vector<4x18xf32>
    %73 = tpu.matmul %72, %69, %cst_76 {dimension_numbers = #tpu.dot_dimension_numbers<[1], [0], [0], [1], [0, 0, 1, 1], [], []>} : vector<4x10xf32>, vector<10x18xf32>, vector<4x18xf32> -> vector<4x18xf32>
    %c0_77 = arith.constant 0 : index
    %c18 = arith.constant 18 : index
    %74 = vector.load %arg12[%c0_77, %c18] : memref<4x342xf32, #tpu.memory_space<vmem>>, vector<4x18xf32>
    tpu.vector_store %arg12[%c0_77, %c18], %73 {strides = array<i32>} : memref<4x342xf32, #tpu.memory_space<vmem>>, vector<4x18xf32>,
    %c0_78 = arith.constant 0 : index
    %c0_79 = arith.constant 0 : index
    %75 = vector.load %arg14[%c0_78, %c0_79] : memref<4x80xf32, #tpu.memory_space<vmem>>, vector<4x10xf32>
    %cst_80 = arith.constant 7.500000e-01 : f32
    %76 = vector.broadcast %cst_80 : f32 to vector<4x10xf32>
    %77 = arith.mulf %76, %75 : vector<4x10xf32>
    %c0_81 = arith.constant 0 : index
    %c10_82 = arith.constant 10 : index
    %78 = vector.load %arg14[%c0_81, %c10_82] : memref<4x80xf32, #tpu.memory_space<vmem>>, vector<4x10xf32>
    %cst_83 = arith.constant 2.500000e-01 : f32
    %79 = vector.broadcast %cst_83 : f32 to vector<4x10xf32>
    %80 = arith.mulf %79, %78 : vector<4x10xf32>
    %81 = arith.addf %77, %80 : vector<4x10xf32>
    %cst_84 = arith.constant dense<0.000000e+00> : vector<4x18xf32>
    %82 = tpu.matmul %81, %69, %cst_84 {dimension_numbers = #tpu.dot_dimension_numbers<[1], [0], [0], [1], [0, 0, 1, 1], [], []>} : vector<4x10xf32>, vector<10x18xf32>, vector<4x18xf32> -> vector<4x18xf32>
    %c0_85 = arith.constant 0 : index
    %c36 = arith.constant 36 : index
    %83 = vector.load %arg12[%c0_85, %c36] : memref<4x342xf32, #tpu.memory_space<vmem>>, vector<4x18xf32>
    tpu.vector_store %arg12[%c0_85, %c36], %82 {strides = array<i32>} : memref<4x342xf32, #tpu.memory_space<vmem>>, vector<4x18xf32>,
    %c0_86 = arith.constant 0 : index
    %c0_87 = arith.constant 0 : index
    %84 = vector.load %arg14[%c0_86, %c0_87] : memref<4x80xf32, #tpu.memory_space<vmem>>, vector<4x10xf32>
    %cst_88 = arith.constant 2.500000e-01 : f32
    %85 = vector.broadcast %cst_88 : f32 to vector<4x10xf32>
    %86 = arith.mulf %85, %84 : vector<4x10xf32>
    %c0_89 = arith.constant 0 : index
    %c10_90 = arith.constant 10 : index
    %87 = vector.load %arg14[%c0_89, %c10_90] : memref<4x80xf32, #tpu.memory_space<vmem>>, vector<4x10xf32>
    %cst_91 = arith.constant 7.500000e-01 : f32
    %88 = vector.broadcast %cst_91 : f32 to vector<4x10xf32>
    %89 = arith.mulf %88, %87 : vector<4x10xf32>
    %90 = arith.addf %86, %89 : vector<4x10xf32>
    %cst_92 = arith.constant dense<0.000000e+00> : vector<4x18xf32>
    %91 = tpu.matmul %90, %69, %cst_92 {dimension_numbers = #tpu.dot_dimension_numbers<[1], [0], [0], [1], [0, 0, 1, 1], [], []>} : vector<4x10xf32>, vector<10x18xf32>, vector<4x18xf32> -> vector<4x18xf32>
    %c0_93 = arith.constant 0 : index
    %c54 = arith.constant 54 : index
    %92 = vector.load %arg12[%c0_93, %c54] : memref<4x342xf32, #tpu.memory_space<vmem>>, vector<4x18xf32>
    tpu.vector_store %arg12[%c0_93, %c54], %91 {strides = array<i32>} : memref<4x342xf32, #tpu.memory_space<vmem>>, vector<4x18xf32>,
    %c0_94 = arith.constant 0 : index
    %c10_95 = arith.constant 10 : index
    %93 = vector.load %arg14[%c0_94, %c10_95] : memref<4x80xf32, #tpu.memory_space<vmem>>, vector<4x10xf32>
    %cst_96 = arith.constant 7.500000e-01 : f32
    %94 = vector.broadcast %cst_96 : f32 to vector<4x10xf32>
    %95 = arith.mulf %94, %93 : vector<4x10xf32>
    %c0_97 = arith.constant 0 : index
    %c20_98 = arith.constant 20 : index
    %96 = vector.load %arg14[%c0_97, %c20_98] : memref<4x80xf32, #tpu.memory_space<vmem>>, vector<4x10xf32>
    %cst_99 = arith.constant 2.500000e-01 : f32
    %97 = vector.broadcast %cst_99 : f32 to vector<4x10xf32>
    %98 = arith.mulf %97, %96 : vector<4x10xf32>
    %99 = arith.addf %95, %98 : vector<4x10xf32>
    %cst_100 = arith.constant dense<0.000000e+00> : vector<4x18xf32>
    %100 = tpu.matmul %99, %69, %cst_100 {dimension_numbers = #tpu.dot_dimension_numbers<[1], [0], [0], [1], [0, 0, 1, 1], [], []>} : vector<4x10xf32>, vector<10x18xf32>, vector<4x18xf32> -> vector<4x18xf32>
    %c0_101 = arith.constant 0 : index
    %c72 = arith.constant 72 : index
    %101 = vector.load %arg12[%c0_101, %c72] : memref<4x342xf32, #tpu.memory_space<vmem>>, vector<4x18xf32>
    tpu.vector_store %arg12[%c0_101, %c72], %100 {strides = array<i32>} : memref<4x342xf32, #tpu.memory_space<vmem>>, vector<4x18xf32>,
    %c0_102 = arith.constant 0 : index
    %c10_103 = arith.constant 10 : index
    %102 = vector.load %arg14[%c0_102, %c10_103] : memref<4x80xf32, #tpu.memory_space<vmem>>, vector<4x10xf32>
    %cst_104 = arith.constant 2.500000e-01 : f32
    %103 = vector.broadcast %cst_104 : f32 to vector<4x10xf32>
    %104 = arith.mulf %103, %102 : vector<4x10xf32>
    %c0_105 = arith.constant 0 : index
    %c20_106 = arith.constant 20 : index
    %105 = vector.load %arg14[%c0_105, %c20_106] : memref<4x80xf32, #tpu.memory_space<vmem>>, vector<4x10xf32>
    %cst_107 = arith.constant 7.500000e-01 : f32
    %106 = vector.broadcast %cst_107 : f32 to vector<4x10xf32>
    %107 = arith.mulf %106, %105 : vector<4x10xf32>
    %108 = arith.addf %104, %107 : vector<4x10xf32>
    %cst_108 = arith.constant dense<0.000000e+00> : vector<4x18xf32>
    %109 = tpu.matmul %108, %69, %cst_108 {dimension_numbers = #tpu.dot_dimension_numbers<[1], [0], [0], [1], [0, 0, 1, 1], [], []>} : vector<4x10xf32>, vector<10x18xf32>, vector<4x18xf32> -> vector<4x18xf32>
    %c0_109 = arith.constant 0 : index
    %c90 = arith.constant 90 : index
    %110 = vector.load %arg12[%c0_109, %c90] : memref<4x342xf32, #tpu.memory_space<vmem>>, vector<4x18xf32>
    tpu.vector_store %arg12[%c0_109, %c90], %109 {strides = array<i32>} : memref<4x342xf32, #tpu.memory_space<vmem>>, vector<4x18xf32>,
    %c0_110 = arith.constant 0 : index
    %c20_111 = arith.constant 20 : index
    %111 = vector.load %arg14[%c0_110, %c20_111] : memref<4x80xf32, #tpu.memory_space<vmem>>, vector<4x10xf32>
    %cst_112 = arith.constant 7.500000e-01 : f32
    %112 = vector.broadcast %cst_112 : f32 to vector<4x10xf32>
    %113 = arith.mulf %112, %111 : vector<4x10xf32>
    %c0_113 = arith.constant 0 : index
    %c30 = arith.constant 30 : index
    %114 = vector.load %arg14[%c0_113, %c30] : memref<4x80xf32, #tpu.memory_space<vmem>>, vector<4x10xf32>
    %cst_114 = arith.constant 2.500000e-01 : f32
    %115 = vector.broadcast %cst_114 : f32 to vector<4x10xf32>
    %116 = arith.mulf %115, %114 : vector<4x10xf32>
    %117 = arith.addf %113, %116 : vector<4x10xf32>
    %cst_115 = arith.constant dense<0.000000e+00> : vector<4x18xf32>
    %118 = tpu.matmul %117, %69, %cst_115 {dimension_numbers = #tpu.dot_dimension_numbers<[1], [0], [0], [1], [0, 0, 1, 1], [], []>} : vector<4x10xf32>, vector<10x18xf32>, vector<4x18xf32> -> vector<4x18xf32>
    %c0_116 = arith.constant 0 : index
    %c108 = arith.constant 108 : index
    %119 = vector.load %arg12[%c0_116, %c108] : memref<4x342xf32, #tpu.memory_space<vmem>>, vector<4x18xf32>
    tpu.vector_store %arg12[%c0_116, %c108], %118 {strides = array<i32>} : memref<4x342xf32, #tpu.memory_space<vmem>>, vector<4x18xf32>,
    %c0_117 = arith.constant 0 : index
    %c20_118 = arith.constant 20 : index
    %120 = vector.load %arg14[%c0_117, %c20_118] : memref<4x80xf32, #tpu.memory_space<vmem>>, vector<4x10xf32>
    %cst_119 = arith.constant 2.500000e-01 : f32
    %121 = vector.broadcast %cst_119 : f32 to vector<4x10xf32>
    %122 = arith.mulf %121, %120 : vector<4x10xf32>
    %c0_120 = arith.constant 0 : index
    %c30_121 = arith.constant 30 : index
    %123 = vector.load %arg14[%c0_120, %c30_121] : memref<4x80xf32, #tpu.memory_space<vmem>>, vector<4x10xf32>
    %cst_122 = arith.constant 7.500000e-01 : f32
    %124 = vector.broadcast %cst_122 : f32 to vector<4x10xf32>
    %125 = arith.mulf %124, %123 : vector<4x10xf32>
    %126 = arith.addf %122, %125 : vector<4x10xf32>
    %cst_123 = arith.constant dense<0.000000e+00> : vector<4x18xf32>
    %127 = tpu.matmul %126, %69, %cst_123 {dimension_numbers = #tpu.dot_dimension_numbers<[1], [0], [0], [1], [0, 0, 1, 1], [], []>} : vector<4x10xf32>, vector<10x18xf32>, vector<4x18xf32> -> vector<4x18xf32>
    %c0_124 = arith.constant 0 : index
    %c126 = arith.constant 126 : index
    %128 = vector.load %arg12[%c0_124, %c126] : memref<4x342xf32, #tpu.memory_space<vmem>>, vector<4x18xf32>
    tpu.vector_store %arg12[%c0_124, %c126], %127 {strides = array<i32>} : memref<4x342xf32, #tpu.memory_space<vmem>>, vector<4x18xf32>,
    %c0_125 = arith.constant 0 : index
    %c30_126 = arith.constant 30 : index
    %129 = vector.load %arg14[%c0_125, %c30_126] : memref<4x80xf32, #tpu.memory_space<vmem>>, vector<4x10xf32>
    %cst_127 = arith.constant 7.500000e-01 : f32
    %130 = vector.broadcast %cst_127 : f32 to vector<4x10xf32>
    %131 = arith.mulf %130, %129 : vector<4x10xf32>
    %c0_128 = arith.constant 0 : index
    %c40_129 = arith.constant 40 : index
    %132 = vector.load %arg14[%c0_128, %c40_129] : memref<4x80xf32, #tpu.memory_space<vmem>>, vector<4x10xf32>
    %cst_130 = arith.constant 2.500000e-01 : f32
    %133 = vector.broadcast %cst_130 : f32 to vector<4x10xf32>
    %134 = arith.mulf %133, %132 : vector<4x10xf32>
    %135 = arith.addf %131, %134 : vector<4x10xf32>
    %cst_131 = arith.constant dense<0.000000e+00> : vector<4x18xf32>
    %136 = tpu.matmul %135, %69, %cst_131 {dimension_numbers = #tpu.dot_dimension_numbers<[1], [0], [0], [1], [0, 0, 1, 1], [], []>} : vector<4x10xf32>, vector<10x18xf32>, vector<4x18xf32> -> vector<4x18xf32>
    %c0_132 = arith.constant 0 : index
    %c144 = arith.constant 144 : index
    %137 = vector.load %arg12[%c0_132, %c144] : memref<4x342xf32, #tpu.memory_space<vmem>>, vector<4x18xf32>
    tpu.vector_store %arg12[%c0_132, %c144], %136 {strides = array<i32>} : memref<4x342xf32, #tpu.memory_space<vmem>>, vector<4x18xf32>,
    %c0_133 = arith.constant 0 : index
    %c30_134 = arith.constant 30 : index
    %138 = vector.load %arg14[%c0_133, %c30_134] : memref<4x80xf32, #tpu.memory_space<vmem>>, vector<4x10xf32>
    %cst_135 = arith.constant 2.500000e-01 : f32
    %139 = vector.broadcast %cst_135 : f32 to vector<4x10xf32>
    %140 = arith.mulf %139, %138 : vector<4x10xf32>
    %c0_136 = arith.constant 0 : index
    %c40_137 = arith.constant 40 : index
    %141 = vector.load %arg14[%c0_136, %c40_137] : memref<4x80xf32, #tpu.memory_space<vmem>>, vector<4x10xf32>
    %cst_138 = arith.constant 7.500000e-01 : f32
    %142 = vector.broadcast %cst_138 : f32 to vector<4x10xf32>
    %143 = arith.mulf %142, %141 : vector<4x10xf32>
    %144 = arith.addf %140, %143 : vector<4x10xf32>
    %cst_139 = arith.constant dense<0.000000e+00> : vector<4x18xf32>
    %145 = tpu.matmul %144, %69, %cst_139 {dimension_numbers = #tpu.dot_dimension_numbers<[1], [0], [0], [1], [0, 0, 1, 1], [], []>} : vector<4x10xf32>, vector<10x18xf32>, vector<4x18xf32> -> vector<4x18xf32>
    %c0_140 = arith.constant 0 : index
    %c162 = arith.constant 162 : index
    %146 = vector.load %arg12[%c0_140, %c162] : memref<4x342xf32, #tpu.memory_space<vmem>>, vector<4x18xf32>
    tpu.vector_store %arg12[%c0_140, %c162], %145 {strides = array<i32>} : memref<4x342xf32, #tpu.memory_space<vmem>>, vector<4x18xf32>,
    %c0_141 = arith.constant 0 : index
    %c40_142 = arith.constant 40 : index
    %147 = vector.load %arg14[%c0_141, %c40_142] : memref<4x80xf32, #tpu.memory_space<vmem>>, vector<4x10xf32>
    %cst_143 = arith.constant 7.500000e-01 : f32
    %148 = vector.broadcast %cst_143 : f32 to vector<4x10xf32>
    %149 = arith.mulf %148, %147 : vector<4x10xf32>
    %c0_144 = arith.constant 0 : index
    %c50 = arith.constant 50 : index
    %150 = vector.load %arg14[%c0_144, %c50] : memref<4x80xf32, #tpu.memory_space<vmem>>, vector<4x10xf32>
    %cst_145 = arith.constant 2.500000e-01 : f32
    %151 = vector.broadcast %cst_145 : f32 to vector<4x10xf32>
    %152 = arith.mulf %151, %150 : vector<4x10xf32>
    %153 = arith.addf %149, %152 : vector<4x10xf32>
    %cst_146 = arith.constant dense<0.000000e+00> : vector<4x18xf32>
    %154 = tpu.matmul %153, %69, %cst_146 {dimension_numbers = #tpu.dot_dimension_numbers<[1], [0], [0], [1], [0, 0, 1, 1], [], []>} : vector<4x10xf32>, vector<10x18xf32>, vector<4x18xf32> -> vector<4x18xf32>
    %c0_147 = arith.constant 0 : index
    %c180 = arith.constant 180 : index
    %155 = vector.load %arg12[%c0_147, %c180] : memref<4x342xf32, #tpu.memory_space<vmem>>, vector<4x18xf32>
    tpu.vector_store %arg12[%c0_147, %c180], %154 {strides = array<i32>} : memref<4x342xf32, #tpu.memory_space<vmem>>, vector<4x18xf32>,
    %c0_148 = arith.constant 0 : index
    %c40_149 = arith.constant 40 : index
    %156 = vector.load %arg14[%c0_148, %c40_149] : memref<4x80xf32, #tpu.memory_space<vmem>>, vector<4x10xf32>
    %cst_150 = arith.constant 2.500000e-01 : f32
    %157 = vector.broadcast %cst_150 : f32 to vector<4x10xf32>
    %158 = arith.mulf %157, %156 : vector<4x10xf32>
    %c0_151 = arith.constant 0 : index
    %c50_152 = arith.constant 50 : index
    %159 = vector.load %arg14[%c0_151, %c50_152] : memref<4x80xf32, #tpu.memory_space<vmem>>, vector<4x10xf32>
    %cst_153 = arith.constant 7.500000e-01 : f32
    %160 = vector.broadcast %cst_153 : f32 to vector<4x10xf32>
    %161 = arith.mulf %160, %159 : vector<4x10xf32>
    %162 = arith.addf %158, %161 : vector<4x10xf32>
    %cst_154 = arith.constant dense<0.000000e+00> : vector<4x18xf32>
    %163 = tpu.matmul %162, %69, %cst_154 {dimension_numbers = #tpu.dot_dimension_numbers<[1], [0], [0], [1], [0, 0, 1, 1], [], []>} : vector<4x10xf32>, vector<10x18xf32>, vector<4x18xf32> -> vector<4x18xf32>
    %c0_155 = arith.constant 0 : index
    %c198 = arith.constant 198 : index
    %164 = vector.load %arg12[%c0_155, %c198] : memref<4x342xf32, #tpu.memory_space<vmem>>, vector<4x18xf32>
    tpu.vector_store %arg12[%c0_155, %c198], %163 {strides = array<i32>} : memref<4x342xf32, #tpu.memory_space<vmem>>, vector<4x18xf32>,
    %c0_156 = arith.constant 0 : index
    %c50_157 = arith.constant 50 : index
    %165 = vector.load %arg14[%c0_156, %c50_157] : memref<4x80xf32, #tpu.memory_space<vmem>>, vector<4x10xf32>
    %cst_158 = arith.constant 7.500000e-01 : f32
    %166 = vector.broadcast %cst_158 : f32 to vector<4x10xf32>
    %167 = arith.mulf %166, %165 : vector<4x10xf32>
    %c0_159 = arith.constant 0 : index
    %c60 = arith.constant 60 : index
    %168 = vector.load %arg14[%c0_159, %c60] : memref<4x80xf32, #tpu.memory_space<vmem>>, vector<4x10xf32>
    %cst_160 = arith.constant 2.500000e-01 : f32
    %169 = vector.broadcast %cst_160 : f32 to vector<4x10xf32>
    %170 = arith.mulf %169, %168 : vector<4x10xf32>
    %171 = arith.addf %167, %170 : vector<4x10xf32>
    %cst_161 = arith.constant dense<0.000000e+00> : vector<4x18xf32>
    %172 = tpu.matmul %171, %69, %cst_161 {dimension_numbers = #tpu.dot_dimension_numbers<[1], [0], [0], [1], [0, 0, 1, 1], [], []>} : vector<4x10xf32>, vector<10x18xf32>, vector<4x18xf32> -> vector<4x18xf32>
    %c0_162 = arith.constant 0 : index
    %c216 = arith.constant 216 : index
    %173 = vector.load %arg12[%c0_162, %c216] : memref<4x342xf32, #tpu.memory_space<vmem>>, vector<4x18xf32>
    tpu.vector_store %arg12[%c0_162, %c216], %172 {strides = array<i32>} : memref<4x342xf32, #tpu.memory_space<vmem>>, vector<4x18xf32>,
    %c0_163 = arith.constant 0 : index
    %c50_164 = arith.constant 50 : index
    %174 = vector.load %arg14[%c0_163, %c50_164] : memref<4x80xf32, #tpu.memory_space<vmem>>, vector<4x10xf32>
    %cst_165 = arith.constant 2.500000e-01 : f32
    %175 = vector.broadcast %cst_165 : f32 to vector<4x10xf32>
    %176 = arith.mulf %175, %174 : vector<4x10xf32>
    %c0_166 = arith.constant 0 : index
    %c60_167 = arith.constant 60 : index
    %177 = vector.load %arg14[%c0_166, %c60_167] : memref<4x80xf32, #tpu.memory_space<vmem>>, vector<4x10xf32>
    %cst_168 = arith.constant 7.500000e-01 : f32
    %178 = vector.broadcast %cst_168 : f32 to vector<4x10xf32>
    %179 = arith.mulf %178, %177 : vector<4x10xf32>
    %180 = arith.addf %176, %179 : vector<4x10xf32>
    %cst_169 = arith.constant dense<0.000000e+00> : vector<4x18xf32>
    %181 = tpu.matmul %180, %69, %cst_169 {dimension_numbers = #tpu.dot_dimension_numbers<[1], [0], [0], [1], [0, 0, 1, 1], [], []>} : vector<4x10xf32>, vector<10x18xf32>, vector<4x18xf32> -> vector<4x18xf32>
    %c0_170 = arith.constant 0 : index
    %c234 = arith.constant 234 : index
    %182 = vector.load %arg12[%c0_170, %c234] : memref<4x342xf32, #tpu.memory_space<vmem>>, vector<4x18xf32>
    tpu.vector_store %arg12[%c0_170, %c234], %181 {strides = array<i32>} : memref<4x342xf32, #tpu.memory_space<vmem>>, vector<4x18xf32>,
    %c0_171 = arith.constant 0 : index
    %c60_172 = arith.constant 60 : index
    %183 = vector.load %arg14[%c0_171, %c60_172] : memref<4x80xf32, #tpu.memory_space<vmem>>, vector<4x10xf32>
    %cst_173 = arith.constant 7.500000e-01 : f32
    %184 = vector.broadcast %cst_173 : f32 to vector<4x10xf32>
    %185 = arith.mulf %184, %183 : vector<4x10xf32>
    %c0_174 = arith.constant 0 : index
    %c70 = arith.constant 70 : index
    %186 = vector.load %arg14[%c0_174, %c70] : memref<4x80xf32, #tpu.memory_space<vmem>>, vector<4x10xf32>
    %cst_175 = arith.constant 2.500000e-01 : f32
    %187 = vector.broadcast %cst_175 : f32 to vector<4x10xf32>
    %188 = arith.mulf %187, %186 : vector<4x10xf32>
    %189 = arith.addf %185, %188 : vector<4x10xf32>
    %cst_176 = arith.constant dense<0.000000e+00> : vector<4x18xf32>
    %190 = tpu.matmul %189, %69, %cst_176 {dimension_numbers = #tpu.dot_dimension_numbers<[1], [0], [0], [1], [0, 0, 1, 1], [], []>} : vector<4x10xf32>, vector<10x18xf32>, vector<4x18xf32> -> vector<4x18xf32>
    %c0_177 = arith.constant 0 : index
    %c252 = arith.constant 252 : index
    %191 = vector.load %arg12[%c0_177, %c252] : memref<4x342xf32, #tpu.memory_space<vmem>>, vector<4x18xf32>
    tpu.vector_store %arg12[%c0_177, %c252], %190 {strides = array<i32>} : memref<4x342xf32, #tpu.memory_space<vmem>>, vector<4x18xf32>,
    %c0_178 = arith.constant 0 : index
    %c60_179 = arith.constant 60 : index
    %192 = vector.load %arg14[%c0_178, %c60_179] : memref<4x80xf32, #tpu.memory_space<vmem>>, vector<4x10xf32>
    %cst_180 = arith.constant 2.500000e-01 : f32
    %193 = vector.broadcast %cst_180 : f32 to vector<4x10xf32>
    %194 = arith.mulf %193, %192 : vector<4x10xf32>
    %c0_181 = arith.constant 0 : index
    %c70_182 = arith.constant 70 : index
    %195 = vector.load %arg14[%c0_181, %c70_182] : memref<4x80xf32, #tpu.memory_space<vmem>>, vector<4x10xf32>
    %cst_183 = arith.constant 7.500000e-01 : f32
    %196 = vector.broadcast %cst_183 : f32 to vector<4x10xf32>
    %197 = arith.mulf %196, %195 : vector<4x10xf32>
    %198 = arith.addf %194, %197 : vector<4x10xf32>
    %cst_184 = arith.constant dense<0.000000e+00> : vector<4x18xf32>
    %199 = tpu.matmul %198, %69, %cst_184 {dimension_numbers = #tpu.dot_dimension_numbers<[1], [0], [0], [1], [0, 0, 1, 1], [], []>} : vector<4x10xf32>, vector<10x18xf32>, vector<4x18xf32> -> vector<4x18xf32>
    %c0_185 = arith.constant 0 : index
    %c270 = arith.constant 270 : index
    %200 = vector.load %arg12[%c0_185, %c270] : memref<4x342xf32, #tpu.memory_space<vmem>>, vector<4x18xf32>
    tpu.vector_store %arg12[%c0_185, %c270], %199 {strides = array<i32>} : memref<4x342xf32, #tpu.memory_space<vmem>>, vector<4x18xf32>,
    %c0_186 = arith.constant 0 : index
    %c70_187 = arith.constant 70 : index
    %201 = vector.load %arg14[%c0_186, %c70_187] : memref<4x80xf32, #tpu.memory_space<vmem>>, vector<4x10xf32>
    %cst_188 = arith.constant 7.500000e-01 : f32
    %202 = vector.broadcast %cst_188 : f32 to vector<4x10xf32>
    %203 = arith.mulf %202, %201 : vector<4x10xf32>
    %c0_189 = arith.constant 0 : index
    %c70_190 = arith.constant 70 : index
    %204 = vector.load %arg14[%c0_189, %c70_190] : memref<4x80xf32, #tpu.memory_space<vmem>>, vector<4x10xf32>
    %cst_191 = arith.constant 2.500000e-01 : f32
    %205 = vector.broadcast %cst_191 : f32 to vector<4x10xf32>
    %206 = arith.mulf %205, %204 : vector<4x10xf32>
    %207 = arith.addf %203, %206 : vector<4x10xf32>
    %cst_192 = arith.constant dense<0.000000e+00> : vector<4x18xf32>
    %208 = tpu.matmul %207, %69, %cst_192 {dimension_numbers = #tpu.dot_dimension_numbers<[1], [0], [0], [1], [0, 0, 1, 1], [], []>} : vector<4x10xf32>, vector<10x18xf32>, vector<4x18xf32> -> vector<4x18xf32>
    %c0_193 = arith.constant 0 : index
    %c288 = arith.constant 288 : index
    %209 = vector.load %arg12[%c0_193, %c288] : memref<4x342xf32, #tpu.memory_space<vmem>>, vector<4x18xf32>
    tpu.vector_store %arg12[%c0_193, %c288], %208 {strides = array<i32>} : memref<4x342xf32, #tpu.memory_space<vmem>>, vector<4x18xf32>,
    %cst_194 = arith.constant 0.000000e+00 : f32
    %210 = vector.broadcast %cst_194 : f32 to vector<2x288xf32>
    %c0_195 = arith.constant 0 : index
    %c0_196 = arith.constant 0 : index
    %211 = vector.load %arg12[%c0_195, %c0_196] : memref<4x342xf32, #tpu.memory_space<vmem>>, vector<4x288xf32>
    %c0_197 = arith.constant 0 : index
    %c0_198 = arith.constant 0 : index
    %212 = vector.load %arg4[%c0_197, %c0_198] : memref<18x4xf32, #tpu.memory_space<vmem>>, vector<2x4xf32>
    %cst_199 = arith.constant dense<0.000000e+00> : vector<2x288xf32>
    %213 = tpu.matmul %212, %211, %cst_199 {dimension_numbers = #tpu.dot_dimension_numbers<[1], [0], [0], [1], [0, 0, 1, 1], [], []>} : vector<2x4xf32>, vector<4x288xf32>, vector<2x288xf32> -> vector<2x288xf32>
    %214 = arith.addf %210, %213 : vector<2x288xf32>
    %c0_200 = arith.constant 0 : index
    %c1_201 = arith.constant 1 : index
    %215 = vector.load %arg12[%c0_200, %c1_201] : memref<4x342xf32, #tpu.memory_space<vmem>>, vector<4x288xf32>
    %c2_202 = arith.constant 2 : index
    %c0_203 = arith.constant 0 : index
    %216 = vector.load %arg4[%c2_202, %c0_203] : memref<18x4xf32, #tpu.memory_space<vmem>>, vector<2x4xf32>
    %cst_204 = arith.constant dense<0.000000e+00> : vector<2x288xf32>
    %217 = tpu.matmul %216, %215, %cst_204 {dimension_numbers = #tpu.dot_dimension_numbers<[1], [0], [0], [1], [0, 0, 1, 1], [], []>} : vector<2x4xf32>, vector<4x288xf32>, vector<2x288xf32> -> vector<2x288xf32>
    %218 = arith.addf %214, %217 : vector<2x288xf32>
    %c0_205 = arith.constant 0 : index
    %c2_206 = arith.constant 2 : index
    %219 = vector.load %arg12[%c0_205, %c2_206] : memref<4x342xf32, #tpu.memory_space<vmem>>, vector<4x288xf32>
    %c4_207 = arith.constant 4 : index
    %c0_208 = arith.constant 0 : index
    %220 = vector.load %arg4[%c4_207, %c0_208] : memref<18x4xf32, #tpu.memory_space<vmem>>, vector<2x4xf32>
    %cst_209 = arith.constant dense<0.000000e+00> : vector<2x288xf32>
    %221 = tpu.matmul %220, %219, %cst_209 {dimension_numbers = #tpu.dot_dimension_numbers<[1], [0], [0], [1], [0, 0, 1, 1], [], []>} : vector<2x4xf32>, vector<4x288xf32>, vector<2x288xf32> -> vector<2x288xf32>
    %222 = arith.addf %218, %221 : vector<2x288xf32>
    %c0_210 = arith.constant 0 : index
    %c18_211 = arith.constant 18 : index
    %223 = vector.load %arg12[%c0_210, %c18_211] : memref<4x342xf32, #tpu.memory_space<vmem>>, vector<4x288xf32>
    %c6 = arith.constant 6 : index
    %c0_212 = arith.constant 0 : index
    %224 = vector.load %arg4[%c6, %c0_212] : memref<18x4xf32, #tpu.memory_space<vmem>>, vector<2x4xf32>
    %cst_213 = arith.constant dense<0.000000e+00> : vector<2x288xf32>
    %225 = tpu.matmul %224, %223, %cst_213 {dimension_numbers = #tpu.dot_dimension_numbers<[1], [0], [0], [1], [0, 0, 1, 1], [], []>} : vector<2x4xf32>, vector<4x288xf32>, vector<2x288xf32> -> vector<2x288xf32>
    %226 = arith.addf %222, %225 : vector<2x288xf32>
    %c0_214 = arith.constant 0 : index
    %c19 = arith.constant 19 : index
    %227 = vector.load %arg12[%c0_214, %c19] : memref<4x342xf32, #tpu.memory_space<vmem>>, vector<4x288xf32>
    %c8_215 = arith.constant 8 : index
    %c0_216 = arith.constant 0 : index
    %228 = vector.load %arg4[%c8_215, %c0_216] : memref<18x4xf32, #tpu.memory_space<vmem>>, vector<2x4xf32>
    %cst_217 = arith.constant dense<0.000000e+00> : vector<2x288xf32>
    %229 = tpu.matmul %228, %227, %cst_217 {dimension_numbers = #tpu.dot_dimension_numbers<[1], [0], [0], [1], [0, 0, 1, 1], [], []>} : vector<2x4xf32>, vector<4x288xf32>, vector<2x288xf32> -> vector<2x288xf32>
    %230 = arith.addf %226, %229 : vector<2x288xf32>
    %c0_218 = arith.constant 0 : index
    %c20_219 = arith.constant 20 : index
    %231 = vector.load %arg12[%c0_218, %c20_219] : memref<4x342xf32, #tpu.memory_space<vmem>>, vector<4x288xf32>
    %c10_220 = arith.constant 10 : index
    %c0_221 = arith.constant 0 : index
    %232 = vector.load %arg4[%c10_220, %c0_221] : memref<18x4xf32, #tpu.memory_space<vmem>>, vector<2x4xf32>
    %cst_222 = arith.constant dense<0.000000e+00> : vector<2x288xf32>
    %233 = tpu.matmul %232, %231, %cst_222 {dimension_numbers = #tpu.dot_dimension_numbers<[1], [0], [0], [1], [0, 0, 1, 1], [], []>} : vector<2x4xf32>, vector<4x288xf32>, vector<2x288xf32> -> vector<2x288xf32>
    %234 = arith.addf %230, %233 : vector<2x288xf32>
    %c0_223 = arith.constant 0 : index
    %c36_224 = arith.constant 36 : index
    %235 = vector.load %arg12[%c0_223, %c36_224] : memref<4x342xf32, #tpu.memory_space<vmem>>, vector<4x288xf32>
    %c12_225 = arith.constant 12 : index
    %c0_226 = arith.constant 0 : index
    %236 = vector.load %arg4[%c12_225, %c0_226] : memref<18x4xf32, #tpu.memory_space<vmem>>, vector<2x4xf32>
    %cst_227 = arith.constant dense<0.000000e+00> : vector<2x288xf32>
    %237 = tpu.matmul %236, %235, %cst_227 {dimension_numbers = #tpu.dot_dimension_numbers<[1], [0], [0], [1], [0, 0, 1, 1], [], []>} : vector<2x4xf32>, vector<4x288xf32>, vector<2x288xf32> -> vector<2x288xf32>
    %238 = arith.addf %234, %237 : vector<2x288xf32>
    %c0_228 = arith.constant 0 : index
    %c37 = arith.constant 37 : index
    %239 = vector.load %arg12[%c0_228, %c37] : memref<4x342xf32, #tpu.memory_space<vmem>>, vector<4x288xf32>
    %c14 = arith.constant 14 : index
    %c0_229 = arith.constant 0 : index
    %240 = vector.load %arg4[%c14, %c0_229] : memref<18x4xf32, #tpu.memory_space<vmem>>, vector<2x4xf32>
    %cst_230 = arith.constant dense<0.000000e+00> : vector<2x288xf32>
    %241 = tpu.matmul %240, %239, %cst_230 {dimension_numbers = #tpu.dot_dimension_numbers<[1], [0], [0], [1], [0, 0, 1, 1], [], []>} : vector<2x4xf32>, vector<4x288xf32>, vector<2x288xf32> -> vector<2x288xf32>
    %242 = arith.addf %238, %241 : vector<2x288xf32>
    %c0_231 = arith.constant 0 : index
    %c38 = arith.constant 38 : index
    %243 = vector.load %arg12[%c0_231, %c38] : memref<4x342xf32, #tpu.memory_space<vmem>>, vector<4x288xf32>
    %c16_232 = arith.constant 16 : index
    %c0_233 = arith.constant 0 : index
    %244 = vector.load %arg4[%c16_232, %c0_233] : memref<18x4xf32, #tpu.memory_space<vmem>>, vector<2x4xf32>
    %cst_234 = arith.constant dense<0.000000e+00> : vector<2x288xf32>
    %245 = tpu.matmul %244, %243, %cst_234 {dimension_numbers = #tpu.dot_dimension_numbers<[1], [0], [0], [1], [0, 0, 1, 1], [], []>} : vector<2x4xf32>, vector<4x288xf32>, vector<2x288xf32> -> vector<2x288xf32>
    %246 = arith.addf %242, %245 : vector<2x288xf32>
    %c0_235 = arith.constant 0 : index
    %c0_236 = arith.constant 0 : index
    %247 = vector.load %arg5[%c0_235, %c0_236] : memref<2x1xf32, #tpu.memory_space<vmem>>, vector<2x1xf32>
    %248 = vector.broadcast %247 : vector<2x1xf32> to vector<2x288xf32>
    %249 = arith.addf %246, %248 : vector<2x288xf32>
    %cst_237 = arith.constant 0.000000e+00 : f32
    %250 = vector.broadcast %cst_237 : f32 to vector<2x288xf32>
    %251 = arith.maximumf %249, %250 : vector<2x288xf32>
    %c0_238 = arith.constant 0 : index
    %c0_239 = arith.constant 0 : index
    %252 = vector.load %arg15[%c0_238, %c0_239] : memref<2x288xf32, #tpu.memory_space<vmem>>, vector<2x288xf32>
    tpu.vector_store %arg15[%c0_238, %c0_239], %251 {strides = array<i32>} : memref<2x288xf32, #tpu.memory_space<vmem>>, vector<2x288xf32>,
    %c0_240 = arith.constant 0 : index
    %c0_241 = arith.constant 0 : index
    %253 = vector.load %arg8[%c0_240, %c0_241] : memref<18x34xf32, #tpu.memory_space<vmem>>, vector<18x34xf32>
    %cst_242 = arith.constant 0.000000e+00 : f32
    %254 = vector.broadcast %cst_242 : f32 to vector<2x1190xf32>
    %c0_243 = arith.constant 0 : index
    %c0_244 = arith.constant 0 : index
    %255 = vector.load %arg13[%c0_243, %c0_244] : memref<2x1190xf32, #tpu.memory_space<vmem>>, vector<2x1190xf32>
    tpu.vector_store %arg13[%c0_243, %c0_244], %254 {strides = array<i32>} : memref<2x1190xf32, #tpu.memory_space<vmem>>, vector<2x1190xf32>,
    %c0_245 = arith.constant 0 : index
    %c0_246 = arith.constant 0 : index
    %256 = vector.load %arg15[%c0_245, %c0_246] : memref<2x288xf32, #tpu.memory_space<vmem>>, vector<2x18xf32>
    %cst_247 = arith.constant dense<0.000000e+00> : vector<2x34xf32>
    %257 = tpu.matmul %256, %253, %cst_247 {dimension_numbers = #tpu.dot_dimension_numbers<[1], [0], [0], [1], [0, 0, 1, 1], [], []>} : vector<2x18xf32>, vector<18x34xf32>, vector<2x34xf32> -> vector<2x34xf32>
    %c0_248 = arith.constant 0 : index
    %c34 = arith.constant 34 : index
    %258 = vector.load %arg13[%c0_248, %c34] : memref<2x1190xf32, #tpu.memory_space<vmem>>, vector<2x34xf32>
    tpu.vector_store %arg13[%c0_248, %c34], %257 {strides = array<i32>} : memref<2x1190xf32, #tpu.memory_space<vmem>>, vector<2x34xf32>,
    %c0_249 = arith.constant 0 : index
    %c0_250 = arith.constant 0 : index
    %259 = vector.load %arg15[%c0_249, %c0_250] : memref<2x288xf32, #tpu.memory_space<vmem>>, vector<2x18xf32>
    %cst_251 = arith.constant 7.500000e-01 : f32
    %260 = vector.broadcast %cst_251 : f32 to vector<2x18xf32>
    %261 = arith.mulf %260, %259 : vector<2x18xf32>
    %c0_252 = arith.constant 0 : index
    %c18_253 = arith.constant 18 : index
    %262 = vector.load %arg15[%c0_252, %c18_253] : memref<2x288xf32, #tpu.memory_space<vmem>>, vector<2x18xf32>
    %cst_254 = arith.constant 2.500000e-01 : f32
    %263 = vector.broadcast %cst_254 : f32 to vector<2x18xf32>
    %264 = arith.mulf %263, %262 : vector<2x18xf32>
    %265 = arith.addf %261, %264 : vector<2x18xf32>
    %cst_255 = arith.constant dense<0.000000e+00> : vector<2x34xf32>
    %266 = tpu.matmul %265, %253, %cst_255 {dimension_numbers = #tpu.dot_dimension_numbers<[1], [0], [0], [1], [0, 0, 1, 1], [], []>} : vector<2x18xf32>, vector<18x34xf32>, vector<2x34xf32> -> vector<2x34xf32>
    %c0_256 = arith.constant 0 : index
    %c68 = arith.constant 68 : index
    %267 = vector.load %arg13[%c0_256, %c68] : memref<2x1190xf32, #tpu.memory_space<vmem>>, vector<2x34xf32>
    tpu.vector_store %arg13[%c0_256, %c68], %266 {strides = array<i32>} : memref<2x1190xf32, #tpu.memory_space<vmem>>, vector<2x34xf32>,
    %c0_257 = arith.constant 0 : index
    %c0_258 = arith.constant 0 : index
    %268 = vector.load %arg15[%c0_257, %c0_258] : memref<2x288xf32, #tpu.memory_space<vmem>>, vector<2x18xf32>
    %cst_259 = arith.constant 2.500000e-01 : f32
    %269 = vector.broadcast %cst_259 : f32 to vector<2x18xf32>
    %270 = arith.mulf %269, %268 : vector<2x18xf32>
    %c0_260 = arith.constant 0 : index
    %c18_261 = arith.constant 18 : index
    %271 = vector.load %arg15[%c0_260, %c18_261] : memref<2x288xf32, #tpu.memory_space<vmem>>, vector<2x18xf32>
    %cst_262 = arith.constant 7.500000e-01 : f32
    %272 = vector.broadcast %cst_262 : f32 to vector<2x18xf32>
    %273 = arith.mulf %272, %271 : vector<2x18xf32>
    %274 = arith.addf %270, %273 : vector<2x18xf32>
    %cst_263 = arith.constant dense<0.000000e+00> : vector<2x34xf32>
    %275 = tpu.matmul %274, %253, %cst_263 {dimension_numbers = #tpu.dot_dimension_numbers<[1], [0], [0], [1], [0, 0, 1, 1], [], []>} : vector<2x18xf32>, vector<18x34xf32>, vector<2x34xf32> -> vector<2x34xf32>
    %c0_264 = arith.constant 0 : index
    %c102 = arith.constant 102 : index
    %276 = vector.load %arg13[%c0_264, %c102] : memref<2x1190xf32, #tpu.memory_space<vmem>>, vector<2x34xf32>
    tpu.vector_store %arg13[%c0_264, %c102], %275 {strides = array<i32>} : memref<2x1190xf32, #tpu.memory_space<vmem>>, vector<2x34xf32>,
    %c0_265 = arith.constant 0 : index
    %c18_266 = arith.constant 18 : index
    %277 = vector.load %arg15[%c0_265, %c18_266] : memref<2x288xf32, #tpu.memory_space<vmem>>, vector<2x18xf32>
    %cst_267 = arith.constant 7.500000e-01 : f32
    %278 = vector.broadcast %cst_267 : f32 to vector<2x18xf32>
    %279 = arith.mulf %278, %277 : vector<2x18xf32>
    %c0_268 = arith.constant 0 : index
    %c36_269 = arith.constant 36 : index
    %280 = vector.load %arg15[%c0_268, %c36_269] : memref<2x288xf32, #tpu.memory_space<vmem>>, vector<2x18xf32>
    %cst_270 = arith.constant 2.500000e-01 : f32
    %281 = vector.broadcast %cst_270 : f32 to vector<2x18xf32>
    %282 = arith.mulf %281, %280 : vector<2x18xf32>
    %283 = arith.addf %279, %282 : vector<2x18xf32>
    %cst_271 = arith.constant dense<0.000000e+00> : vector<2x34xf32>
    %284 = tpu.matmul %283, %253, %cst_271 {dimension_numbers = #tpu.dot_dimension_numbers<[1], [0], [0], [1], [0, 0, 1, 1], [], []>} : vector<2x18xf32>, vector<18x34xf32>, vector<2x34xf32> -> vector<2x34xf32>
    %c0_272 = arith.constant 0 : index
    %c136 = arith.constant 136 : index
    %285 = vector.load %arg13[%c0_272, %c136] : memref<2x1190xf32, #tpu.memory_space<vmem>>, vector<2x34xf32>
    tpu.vector_store %arg13[%c0_272, %c136], %284 {strides = array<i32>} : memref<2x1190xf32, #tpu.memory_space<vmem>>, vector<2x34xf32>,
    %c0_273 = arith.constant 0 : index
    %c18_274 = arith.constant 18 : index
    %286 = vector.load %arg15[%c0_273, %c18_274] : memref<2x288xf32, #tpu.memory_space<vmem>>, vector<2x18xf32>
    %cst_275 = arith.constant 2.500000e-01 : f32
    %287 = vector.broadcast %cst_275 : f32 to vector<2x18xf32>
    %288 = arith.mulf %287, %286 : vector<2x18xf32>
    %c0_276 = arith.constant 0 : index
    %c36_277 = arith.constant 36 : index
    %289 = vector.load %arg15[%c0_276, %c36_277] : memref<2x288xf32, #tpu.memory_space<vmem>>, vector<2x18xf32>
    %cst_278 = arith.constant 7.500000e-01 : f32
    %290 = vector.broadcast %cst_278 : f32 to vector<2x18xf32>
    %291 = arith.mulf %290, %289 : vector<2x18xf32>
    %292 = arith.addf %288, %291 : vector<2x18xf32>
    %cst_279 = arith.constant dense<0.000000e+00> : vector<2x34xf32>
    %293 = tpu.matmul %292, %253, %cst_279 {dimension_numbers = #tpu.dot_dimension_numbers<[1], [0], [0], [1], [0, 0, 1, 1], [], []>} : vector<2x18xf32>, vector<18x34xf32>, vector<2x34xf32> -> vector<2x34xf32>
    %c0_280 = arith.constant 0 : index
    %c170 = arith.constant 170 : index
    %294 = vector.load %arg13[%c0_280, %c170] : memref<2x1190xf32, #tpu.memory_space<vmem>>, vector<2x34xf32>
    tpu.vector_store %arg13[%c0_280, %c170], %293 {strides = array<i32>} : memref<2x1190xf32, #tpu.memory_space<vmem>>, vector<2x34xf32>,
    %c0_281 = arith.constant 0 : index
    %c36_282 = arith.constant 36 : index
    %295 = vector.load %arg15[%c0_281, %c36_282] : memref<2x288xf32, #tpu.memory_space<vmem>>, vector<2x18xf32>
    %cst_283 = arith.constant 7.500000e-01 : f32
    %296 = vector.broadcast %cst_283 : f32 to vector<2x18xf32>
    %297 = arith.mulf %296, %295 : vector<2x18xf32>
    %c0_284 = arith.constant 0 : index
    %c54_285 = arith.constant 54 : index
    %298 = vector.load %arg15[%c0_284, %c54_285] : memref<2x288xf32, #tpu.memory_space<vmem>>, vector<2x18xf32>
    %cst_286 = arith.constant 2.500000e-01 : f32
    %299 = vector.broadcast %cst_286 : f32 to vector<2x18xf32>
    %300 = arith.mulf %299, %298 : vector<2x18xf32>
    %301 = arith.addf %297, %300 : vector<2x18xf32>
    %cst_287 = arith.constant dense<0.000000e+00> : vector<2x34xf32>
    %302 = tpu.matmul %301, %253, %cst_287 {dimension_numbers = #tpu.dot_dimension_numbers<[1], [0], [0], [1], [0, 0, 1, 1], [], []>} : vector<2x18xf32>, vector<18x34xf32>, vector<2x34xf32> -> vector<2x34xf32>
    %c0_288 = arith.constant 0 : index
    %c204 = arith.constant 204 : index
    %303 = vector.load %arg13[%c0_288, %c204] : memref<2x1190xf32, #tpu.memory_space<vmem>>, vector<2x34xf32>
    tpu.vector_store %arg13[%c0_288, %c204], %302 {strides = array<i32>} : memref<2x1190xf32, #tpu.memory_space<vmem>>, vector<2x34xf32>,
    %c0_289 = arith.constant 0 : index
    %c36_290 = arith.constant 36 : index
    %304 = vector.load %arg15[%c0_289, %c36_290] : memref<2x288xf32, #tpu.memory_space<vmem>>, vector<2x18xf32>
    %cst_291 = arith.constant 2.500000e-01 : f32
    %305 = vector.broadcast %cst_291 : f32 to vector<2x18xf32>
    %306 = arith.mulf %305, %304 : vector<2x18xf32>
    %c0_292 = arith.constant 0 : index
    %c54_293 = arith.constant 54 : index
    %307 = vector.load %arg15[%c0_292, %c54_293] : memref<2x288xf32, #tpu.memory_space<vmem>>, vector<2x18xf32>
    %cst_294 = arith.constant 7.500000e-01 : f32
    %308 = vector.broadcast %cst_294 : f32 to vector<2x18xf32>
    %309 = arith.mulf %308, %307 : vector<2x18xf32>
    %310 = arith.addf %306, %309 : vector<2x18xf32>
    %cst_295 = arith.constant dense<0.000000e+00> : vector<2x34xf32>
    %311 = tpu.matmul %310, %253, %cst_295 {dimension_numbers = #tpu.dot_dimension_numbers<[1], [0], [0], [1], [0, 0, 1, 1], [], []>} : vector<2x18xf32>, vector<18x34xf32>, vector<2x34xf32> -> vector<2x34xf32>
    %c0_296 = arith.constant 0 : index
    %c238 = arith.constant 238 : index
    %312 = vector.load %arg13[%c0_296, %c238] : memref<2x1190xf32, #tpu.memory_space<vmem>>, vector<2x34xf32>
    tpu.vector_store %arg13[%c0_296, %c238], %311 {strides = array<i32>} : memref<2x1190xf32, #tpu.memory_space<vmem>>, vector<2x34xf32>,
    %c0_297 = arith.constant 0 : index
    %c54_298 = arith.constant 54 : index
    %313 = vector.load %arg15[%c0_297, %c54_298] : memref<2x288xf32, #tpu.memory_space<vmem>>, vector<2x18xf32>
    %cst_299 = arith.constant 7.500000e-01 : f32
    %314 = vector.broadcast %cst_299 : f32 to vector<2x18xf32>
    %315 = arith.mulf %314, %313 : vector<2x18xf32>
    %c0_300 = arith.constant 0 : index
    %c72_301 = arith.constant 72 : index
    %316 = vector.load %arg15[%c0_300, %c72_301] : memref<2x288xf32, #tpu.memory_space<vmem>>, vector<2x18xf32>
    %cst_302 = arith.constant 2.500000e-01 : f32
    %317 = vector.broadcast %cst_302 : f32 to vector<2x18xf32>
    %318 = arith.mulf %317, %316 : vector<2x18xf32>
    %319 = arith.addf %315, %318 : vector<2x18xf32>
    %cst_303 = arith.constant dense<0.000000e+00> : vector<2x34xf32>
    %320 = tpu.matmul %319, %253, %cst_303 {dimension_numbers = #tpu.dot_dimension_numbers<[1], [0], [0], [1], [0, 0, 1, 1], [], []>} : vector<2x18xf32>, vector<18x34xf32>, vector<2x34xf32> -> vector<2x34xf32>
    %c0_304 = arith.constant 0 : index
    %c272 = arith.constant 272 : index
    %321 = vector.load %arg13[%c0_304, %c272] : memref<2x1190xf32, #tpu.memory_space<vmem>>, vector<2x34xf32>
    tpu.vector_store %arg13[%c0_304, %c272], %320 {strides = array<i32>} : memref<2x1190xf32, #tpu.memory_space<vmem>>, vector<2x34xf32>,
    %c0_305 = arith.constant 0 : index
    %c54_306 = arith.constant 54 : index
    %322 = vector.load %arg15[%c0_305, %c54_306] : memref<2x288xf32, #tpu.memory_space<vmem>>, vector<2x18xf32>
    %cst_307 = arith.constant 2.500000e-01 : f32
    %323 = vector.broadcast %cst_307 : f32 to vector<2x18xf32>
    %324 = arith.mulf %323, %322 : vector<2x18xf32>
    %c0_308 = arith.constant 0 : index
    %c72_309 = arith.constant 72 : index
    %325 = vector.load %arg15[%c0_308, %c72_309] : memref<2x288xf32, #tpu.memory_space<vmem>>, vector<2x18xf32>
    %cst_310 = arith.constant 7.500000e-01 : f32
    %326 = vector.broadcast %cst_310 : f32 to vector<2x18xf32>
    %327 = arith.mulf %326, %325 : vector<2x18xf32>
    %328 = arith.addf %324, %327 : vector<2x18xf32>
    %cst_311 = arith.constant dense<0.000000e+00> : vector<2x34xf32>
    %329 = tpu.matmul %328, %253, %cst_311 {dimension_numbers = #tpu.dot_dimension_numbers<[1], [0], [0], [1], [0, 0, 1, 1], [], []>} : vector<2x18xf32>, vector<18x34xf32>, vector<2x34xf32> -> vector<2x34xf32>
    %c0_312 = arith.constant 0 : index
    %c306 = arith.constant 306 : index
    %330 = vector.load %arg13[%c0_312, %c306] : memref<2x1190xf32, #tpu.memory_space<vmem>>, vector<2x34xf32>
    tpu.vector_store %arg13[%c0_312, %c306], %329 {strides = array<i32>} : memref<2x1190xf32, #tpu.memory_space<vmem>>, vector<2x34xf32>,
    %c0_313 = arith.constant 0 : index
    %c72_314 = arith.constant 72 : index
    %331 = vector.load %arg15[%c0_313, %c72_314] : memref<2x288xf32, #tpu.memory_space<vmem>>, vector<2x18xf32>
    %cst_315 = arith.constant 7.500000e-01 : f32
    %332 = vector.broadcast %cst_315 : f32 to vector<2x18xf32>
    %333 = arith.mulf %332, %331 : vector<2x18xf32>
    %c0_316 = arith.constant 0 : index
    %c90_317 = arith.constant 90 : index
    %334 = vector.load %arg15[%c0_316, %c90_317] : memref<2x288xf32, #tpu.memory_space<vmem>>, vector<2x18xf32>
    %cst_318 = arith.constant 2.500000e-01 : f32
    %335 = vector.broadcast %cst_318 : f32 to vector<2x18xf32>
    %336 = arith.mulf %335, %334 : vector<2x18xf32>
    %337 = arith.addf %333, %336 : vector<2x18xf32>
    %cst_319 = arith.constant dense<0.000000e+00> : vector<2x34xf32>
    %338 = tpu.matmul %337, %253, %cst_319 {dimension_numbers = #tpu.dot_dimension_numbers<[1], [0], [0], [1], [0, 0, 1, 1], [], []>} : vector<2x18xf32>, vector<18x34xf32>, vector<2x34xf32> -> vector<2x34xf32>
    %c0_320 = arith.constant 0 : index
    %c340 = arith.constant 340 : index
    %339 = vector.load %arg13[%c0_320, %c340] : memref<2x1190xf32, #tpu.memory_space<vmem>>, vector<2x34xf32>
    tpu.vector_store %arg13[%c0_320, %c340], %338 {strides = array<i32>} : memref<2x1190xf32, #tpu.memory_space<vmem>>, vector<2x34xf32>,
    %c0_321 = arith.constant 0 : index
    %c72_322 = arith.constant 72 : index
    %340 = vector.load %arg15[%c0_321, %c72_322] : memref<2x288xf32, #tpu.memory_space<vmem>>, vector<2x18xf32>
    %cst_323 = arith.constant 2.500000e-01 : f32
    %341 = vector.broadcast %cst_323 : f32 to vector<2x18xf32>
    %342 = arith.mulf %341, %340 : vector<2x18xf32>
    %c0_324 = arith.constant 0 : index
    %c90_325 = arith.constant 90 : index
    %343 = vector.load %arg15[%c0_324, %c90_325] : memref<2x288xf32, #tpu.memory_space<vmem>>, vector<2x18xf32>
    %cst_326 = arith.constant 7.500000e-01 : f32
    %344 = vector.broadcast %cst_326 : f32 to vector<2x18xf32>
    %345 = arith.mulf %344, %343 : vector<2x18xf32>
    %346 = arith.addf %342, %345 : vector<2x18xf32>
    %cst_327 = arith.constant dense<0.000000e+00> : vector<2x34xf32>
    %347 = tpu.matmul %346, %253, %cst_327 {dimension_numbers = #tpu.dot_dimension_numbers<[1], [0], [0], [1], [0, 0, 1, 1], [], []>} : vector<2x18xf32>, vector<18x34xf32>, vector<2x34xf32> -> vector<2x34xf32>
    %c0_328 = arith.constant 0 : index
    %c374 = arith.constant 374 : index
    %348 = vector.load %arg13[%c0_328, %c374] : memref<2x1190xf32, #tpu.memory_space<vmem>>, vector<2x34xf32>
    tpu.vector_store %arg13[%c0_328, %c374], %347 {strides = array<i32>} : memref<2x1190xf32, #tpu.memory_space<vmem>>, vector<2x34xf32>,
    %c0_329 = arith.constant 0 : index
    %c90_330 = arith.constant 90 : index
    %349 = vector.load %arg15[%c0_329, %c90_330] : memref<2x288xf32, #tpu.memory_space<vmem>>, vector<2x18xf32>
    %cst_331 = arith.constant 7.500000e-01 : f32
    %350 = vector.broadcast %cst_331 : f32 to vector<2x18xf32>
    %351 = arith.mulf %350, %349 : vector<2x18xf32>
    %c0_332 = arith.constant 0 : index
    %c108_333 = arith.constant 108 : index
    %352 = vector.load %arg15[%c0_332, %c108_333] : memref<2x288xf32, #tpu.memory_space<vmem>>, vector<2x18xf32>
    %cst_334 = arith.constant 2.500000e-01 : f32
    %353 = vector.broadcast %cst_334 : f32 to vector<2x18xf32>
    %354 = arith.mulf %353, %352 : vector<2x18xf32>
    %355 = arith.addf %351, %354 : vector<2x18xf32>
    %cst_335 = arith.constant dense<0.000000e+00> : vector<2x34xf32>
    %356 = tpu.matmul %355, %253, %cst_335 {dimension_numbers = #tpu.dot_dimension_numbers<[1], [0], [0], [1], [0, 0, 1, 1], [], []>} : vector<2x18xf32>, vector<18x34xf32>, vector<2x34xf32> -> vector<2x34xf32>
    %c0_336 = arith.constant 0 : index
    %c408 = arith.constant 408 : index
    %357 = vector.load %arg13[%c0_336, %c408] : memref<2x1190xf32, #tpu.memory_space<vmem>>, vector<2x34xf32>
    tpu.vector_store %arg13[%c0_336, %c408], %356 {strides = array<i32>} : memref<2x1190xf32, #tpu.memory_space<vmem>>, vector<2x34xf32>,
    %c0_337 = arith.constant 0 : index
    %c90_338 = arith.constant 90 : index
    %358 = vector.load %arg15[%c0_337, %c90_338] : memref<2x288xf32, #tpu.memory_space<vmem>>, vector<2x18xf32>
    %cst_339 = arith.constant 2.500000e-01 : f32
    %359 = vector.broadcast %cst_339 : f32 to vector<2x18xf32>
    %360 = arith.mulf %359, %358 : vector<2x18xf32>
    %c0_340 = arith.constant 0 : index
    %c108_341 = arith.constant 108 : index
    %361 = vector.load %arg15[%c0_340, %c108_341] : memref<2x288xf32, #tpu.memory_space<vmem>>, vector<2x18xf32>
    %cst_342 = arith.constant 7.500000e-01 : f32
    %362 = vector.broadcast %cst_342 : f32 to vector<2x18xf32>
    %363 = arith.mulf %362, %361 : vector<2x18xf32>
    %364 = arith.addf %360, %363 : vector<2x18xf32>
    %cst_343 = arith.constant dense<0.000000e+00> : vector<2x34xf32>
    %365 = tpu.matmul %364, %253, %cst_343 {dimension_numbers = #tpu.dot_dimension_numbers<[1], [0], [0], [1], [0, 0, 1, 1], [], []>} : vector<2x18xf32>, vector<18x34xf32>, vector<2x34xf32> -> vector<2x34xf32>
    %c0_344 = arith.constant 0 : index
    %c442 = arith.constant 442 : index
    %366 = vector.load %arg13[%c0_344, %c442] : memref<2x1190xf32, #tpu.memory_space<vmem>>, vector<2x34xf32>
    tpu.vector_store %arg13[%c0_344, %c442], %365 {strides = array<i32>} : memref<2x1190xf32, #tpu.memory_space<vmem>>, vector<2x34xf32>,
    %c0_345 = arith.constant 0 : index
    %c108_346 = arith.constant 108 : index
    %367 = vector.load %arg15[%c0_345, %c108_346] : memref<2x288xf32, #tpu.memory_space<vmem>>, vector<2x18xf32>
    %cst_347 = arith.constant 7.500000e-01 : f32
    %368 = vector.broadcast %cst_347 : f32 to vector<2x18xf32>
    %369 = arith.mulf %368, %367 : vector<2x18xf32>
    %c0_348 = arith.constant 0 : index
    %c126_349 = arith.constant 126 : index
    %370 = vector.load %arg15[%c0_348, %c126_349] : memref<2x288xf32, #tpu.memory_space<vmem>>, vector<2x18xf32>
    %cst_350 = arith.constant 2.500000e-01 : f32
    %371 = vector.broadcast %cst_350 : f32 to vector<2x18xf32>
    %372 = arith.mulf %371, %370 : vector<2x18xf32>
    %373 = arith.addf %369, %372 : vector<2x18xf32>
    %cst_351 = arith.constant dense<0.000000e+00> : vector<2x34xf32>
    %374 = tpu.matmul %373, %253, %cst_351 {dimension_numbers = #tpu.dot_dimension_numbers<[1], [0], [0], [1], [0, 0, 1, 1], [], []>} : vector<2x18xf32>, vector<18x34xf32>, vector<2x34xf32> -> vector<2x34xf32>
    %c0_352 = arith.constant 0 : index
    %c476 = arith.constant 476 : index
    %375 = vector.load %arg13[%c0_352, %c476] : memref<2x1190xf32, #tpu.memory_space<vmem>>, vector<2x34xf32>
    tpu.vector_store %arg13[%c0_352, %c476], %374 {strides = array<i32>} : memref<2x1190xf32, #tpu.memory_space<vmem>>, vector<2x34xf32>,
    %c0_353 = arith.constant 0 : index
    %c108_354 = arith.constant 108 : index
    %376 = vector.load %arg15[%c0_353, %c108_354] : memref<2x288xf32, #tpu.memory_space<vmem>>, vector<2x18xf32>
    %cst_355 = arith.constant 2.500000e-01 : f32
    %377 = vector.broadcast %cst_355 : f32 to vector<2x18xf32>
    %378 = arith.mulf %377, %376 : vector<2x18xf32>
    %c0_356 = arith.constant 0 : index
    %c126_357 = arith.constant 126 : index
    %379 = vector.load %arg15[%c0_356, %c126_357] : memref<2x288xf32, #tpu.memory_space<vmem>>, vector<2x18xf32>
    %cst_358 = arith.constant 7.500000e-01 : f32
    %380 = vector.broadcast %cst_358 : f32 to vector<2x18xf32>
    %381 = arith.mulf %380, %379 : vector<2x18xf32>
    %382 = arith.addf %378, %381 : vector<2x18xf32>
    %cst_359 = arith.constant dense<0.000000e+00> : vector<2x34xf32>
    %383 = tpu.matmul %382, %253, %cst_359 {dimension_numbers = #tpu.dot_dimension_numbers<[1], [0], [0], [1], [0, 0, 1, 1], [], []>} : vector<2x18xf32>, vector<18x34xf32>, vector<2x34xf32> -> vector<2x34xf32>
    %c0_360 = arith.constant 0 : index
    %c510 = arith.constant 510 : index
    %384 = vector.load %arg13[%c0_360, %c510] : memref<2x1190xf32, #tpu.memory_space<vmem>>, vector<2x34xf32>
    tpu.vector_store %arg13[%c0_360, %c510], %383 {strides = array<i32>} : memref<2x1190xf32, #tpu.memory_space<vmem>>, vector<2x34xf32>,
    %c0_361 = arith.constant 0 : index
    %c126_362 = arith.constant 126 : index
    %385 = vector.load %arg15[%c0_361, %c126_362] : memref<2x288xf32, #tpu.memory_space<vmem>>, vector<2x18xf32>
    %cst_363 = arith.constant 7.500000e-01 : f32
    %386 = vector.broadcast %cst_363 : f32 to vector<2x18xf32>
    %387 = arith.mulf %386, %385 : vector<2x18xf32>
    %c0_364 = arith.constant 0 : index
    %c144_365 = arith.constant 144 : index
    %388 = vector.load %arg15[%c0_364, %c144_365] : memref<2x288xf32, #tpu.memory_space<vmem>>, vector<2x18xf32>
    %cst_366 = arith.constant 2.500000e-01 : f32
    %389 = vector.broadcast %cst_366 : f32 to vector<2x18xf32>
    %390 = arith.mulf %389, %388 : vector<2x18xf32>
    %391 = arith.addf %387, %390 : vector<2x18xf32>
    %cst_367 = arith.constant dense<0.000000e+00> : vector<2x34xf32>
    %392 = tpu.matmul %391, %253, %cst_367 {dimension_numbers = #tpu.dot_dimension_numbers<[1], [0], [0], [1], [0, 0, 1, 1], [], []>} : vector<2x18xf32>, vector<18x34xf32>, vector<2x34xf32> -> vector<2x34xf32>
    %c0_368 = arith.constant 0 : index
    %c544 = arith.constant 544 : index
    %393 = vector.load %arg13[%c0_368, %c544] : memref<2x1190xf32, #tpu.memory_space<vmem>>, vector<2x34xf32>
    tpu.vector_store %arg13[%c0_368, %c544], %392 {strides = array<i32>} : memref<2x1190xf32, #tpu.memory_space<vmem>>, vector<2x34xf32>,
    %c0_369 = arith.constant 0 : index
    %c126_370 = arith.constant 126 : index
    %394 = vector.load %arg15[%c0_369, %c126_370] : memref<2x288xf32, #tpu.memory_space<vmem>>, vector<2x18xf32>
    %cst_371 = arith.constant 2.500000e-01 : f32
    %395 = vector.broadcast %cst_371 : f32 to vector<2x18xf32>
    %396 = arith.mulf %395, %394 : vector<2x18xf32>
    %c0_372 = arith.constant 0 : index
    %c144_373 = arith.constant 144 : index
    %397 = vector.load %arg15[%c0_372, %c144_373] : memref<2x288xf32, #tpu.memory_space<vmem>>, vector<2x18xf32>
    %cst_374 = arith.constant 7.500000e-01 : f32
    %398 = vector.broadcast %cst_374 : f32 to vector<2x18xf32>
    %399 = arith.mulf %398, %397 : vector<2x18xf32>
    %400 = arith.addf %396, %399 : vector<2x18xf32>
    %cst_375 = arith.constant dense<0.000000e+00> : vector<2x34xf32>
    %401 = tpu.matmul %400, %253, %cst_375 {dimension_numbers = #tpu.dot_dimension_numbers<[1], [0], [0], [1], [0, 0, 1, 1], [], []>} : vector<2x18xf32>, vector<18x34xf32>, vector<2x34xf32> -> vector<2x34xf32>
    %c0_376 = arith.constant 0 : index
    %c578 = arith.constant 578 : index
    %402 = vector.load %arg13[%c0_376, %c578] : memref<2x1190xf32, #tpu.memory_space<vmem>>, vector<2x34xf32>
    tpu.vector_store %arg13[%c0_376, %c578], %401 {strides = array<i32>} : memref<2x1190xf32, #tpu.memory_space<vmem>>, vector<2x34xf32>,
    %c0_377 = arith.constant 0 : index
    %c144_378 = arith.constant 144 : index
    %403 = vector.load %arg15[%c0_377, %c144_378] : memref<2x288xf32, #tpu.memory_space<vmem>>, vector<2x18xf32>
    %cst_379 = arith.constant 7.500000e-01 : f32
    %404 = vector.broadcast %cst_379 : f32 to vector<2x18xf32>
    %405 = arith.mulf %404, %403 : vector<2x18xf32>
    %c0_380 = arith.constant 0 : index
    %c162_381 = arith.constant 162 : index
    %406 = vector.load %arg15[%c0_380, %c162_381] : memref<2x288xf32, #tpu.memory_space<vmem>>, vector<2x18xf32>
    %cst_382 = arith.constant 2.500000e-01 : f32
    %407 = vector.broadcast %cst_382 : f32 to vector<2x18xf32>
    %408 = arith.mulf %407, %406 : vector<2x18xf32>
    %409 = arith.addf %405, %408 : vector<2x18xf32>
    %cst_383 = arith.constant dense<0.000000e+00> : vector<2x34xf32>
    %410 = tpu.matmul %409, %253, %cst_383 {dimension_numbers = #tpu.dot_dimension_numbers<[1], [0], [0], [1], [0, 0, 1, 1], [], []>} : vector<2x18xf32>, vector<18x34xf32>, vector<2x34xf32> -> vector<2x34xf32>
    %c0_384 = arith.constant 0 : index
    %c612 = arith.constant 612 : index
    %411 = vector.load %arg13[%c0_384, %c612] : memref<2x1190xf32, #tpu.memory_space<vmem>>, vector<2x34xf32>
    tpu.vector_store %arg13[%c0_384, %c612], %410 {strides = array<i32>} : memref<2x1190xf32, #tpu.memory_space<vmem>>, vector<2x34xf32>,
    %c0_385 = arith.constant 0 : index
    %c144_386 = arith.constant 144 : index
    %412 = vector.load %arg15[%c0_385, %c144_386] : memref<2x288xf32, #tpu.memory_space<vmem>>, vector<2x18xf32>
    %cst_387 = arith.constant 2.500000e-01 : f32
    %413 = vector.broadcast %cst_387 : f32 to vector<2x18xf32>
    %414 = arith.mulf %413, %412 : vector<2x18xf32>
    %c0_388 = arith.constant 0 : index
    %c162_389 = arith.constant 162 : index
    %415 = vector.load %arg15[%c0_388, %c162_389] : memref<2x288xf32, #tpu.memory_space<vmem>>, vector<2x18xf32>
    %cst_390 = arith.constant 7.500000e-01 : f32
    %416 = vector.broadcast %cst_390 : f32 to vector<2x18xf32>
    %417 = arith.mulf %416, %415 : vector<2x18xf32>
    %418 = arith.addf %414, %417 : vector<2x18xf32>
    %cst_391 = arith.constant dense<0.000000e+00> : vector<2x34xf32>
    %419 = tpu.matmul %418, %253, %cst_391 {dimension_numbers = #tpu.dot_dimension_numbers<[1], [0], [0], [1], [0, 0, 1, 1], [], []>} : vector<2x18xf32>, vector<18x34xf32>, vector<2x34xf32> -> vector<2x34xf32>
    %c0_392 = arith.constant 0 : index
    %c646 = arith.constant 646 : index
    %420 = vector.load %arg13[%c0_392, %c646] : memref<2x1190xf32, #tpu.memory_space<vmem>>, vector<2x34xf32>
    tpu.vector_store %arg13[%c0_392, %c646], %419 {strides = array<i32>} : memref<2x1190xf32, #tpu.memory_space<vmem>>, vector<2x34xf32>,
    %c0_393 = arith.constant 0 : index
    %c162_394 = arith.constant 162 : index
    %421 = vector.load %arg15[%c0_393, %c162_394] : memref<2x288xf32, #tpu.memory_space<vmem>>, vector<2x18xf32>
    %cst_395 = arith.constant 7.500000e-01 : f32
    %422 = vector.broadcast %cst_395 : f32 to vector<2x18xf32>
    %423 = arith.mulf %422, %421 : vector<2x18xf32>
    %c0_396 = arith.constant 0 : index
    %c180_397 = arith.constant 180 : index
    %424 = vector.load %arg15[%c0_396, %c180_397] : memref<2x288xf32, #tpu.memory_space<vmem>>, vector<2x18xf32>
    %cst_398 = arith.constant 2.500000e-01 : f32
    %425 = vector.broadcast %cst_398 : f32 to vector<2x18xf32>
    %426 = arith.mulf %425, %424 : vector<2x18xf32>
    %427 = arith.addf %423, %426 : vector<2x18xf32>
    %cst_399 = arith.constant dense<0.000000e+00> : vector<2x34xf32>
    %428 = tpu.matmul %427, %253, %cst_399 {dimension_numbers = #tpu.dot_dimension_numbers<[1], [0], [0], [1], [0, 0, 1, 1], [], []>} : vector<2x18xf32>, vector<18x34xf32>, vector<2x34xf32> -> vector<2x34xf32>
    %c0_400 = arith.constant 0 : index
    %c680 = arith.constant 680 : index
    %429 = vector.load %arg13[%c0_400, %c680] : memref<2x1190xf32, #tpu.memory_space<vmem>>, vector<2x34xf32>
    tpu.vector_store %arg13[%c0_400, %c680], %428 {strides = array<i32>} : memref<2x1190xf32, #tpu.memory_space<vmem>>, vector<2x34xf32>,
    %c0_401 = arith.constant 0 : index
    %c162_402 = arith.constant 162 : index
    %430 = vector.load %arg15[%c0_401, %c162_402] : memref<2x288xf32, #tpu.memory_space<vmem>>, vector<2x18xf32>
    %cst_403 = arith.constant 2.500000e-01 : f32
    %431 = vector.broadcast %cst_403 : f32 to vector<2x18xf32>
    %432 = arith.mulf %431, %430 : vector<2x18xf32>
    %c0_404 = arith.constant 0 : index
    %c180_405 = arith.constant 180 : index
    %433 = vector.load %arg15[%c0_404, %c180_405] : memref<2x288xf32, #tpu.memory_space<vmem>>, vector<2x18xf32>
    %cst_406 = arith.constant 7.500000e-01 : f32
    %434 = vector.broadcast %cst_406 : f32 to vector<2x18xf32>
    %435 = arith.mulf %434, %433 : vector<2x18xf32>
    %436 = arith.addf %432, %435 : vector<2x18xf32>
    %cst_407 = arith.constant dense<0.000000e+00> : vector<2x34xf32>
    %437 = tpu.matmul %436, %253, %cst_407 {dimension_numbers = #tpu.dot_dimension_numbers<[1], [0], [0], [1], [0, 0, 1, 1], [], []>} : vector<2x18xf32>, vector<18x34xf32>, vector<2x34xf32> -> vector<2x34xf32>
    %c0_408 = arith.constant 0 : index
    %c714 = arith.constant 714 : index
    %438 = vector.load %arg13[%c0_408, %c714] : memref<2x1190xf32, #tpu.memory_space<vmem>>, vector<2x34xf32>
    tpu.vector_store %arg13[%c0_408, %c714], %437 {strides = array<i32>} : memref<2x1190xf32, #tpu.memory_space<vmem>>, vector<2x34xf32>,
    %c0_409 = arith.constant 0 : index
    %c180_410 = arith.constant 180 : index
    %439 = vector.load %arg15[%c0_409, %c180_410] : memref<2x288xf32, #tpu.memory_space<vmem>>, vector<2x18xf32>
    %cst_411 = arith.constant 7.500000e-01 : f32
    %440 = vector.broadcast %cst_411 : f32 to vector<2x18xf32>
    %441 = arith.mulf %440, %439 : vector<2x18xf32>
    %c0_412 = arith.constant 0 : index
    %c198_413 = arith.constant 198 : index
    %442 = vector.load %arg15[%c0_412, %c198_413] : memref<2x288xf32, #tpu.memory_space<vmem>>, vector<2x18xf32>
    %cst_414 = arith.constant 2.500000e-01 : f32
    %443 = vector.broadcast %cst_414 : f32 to vector<2x18xf32>
    %444 = arith.mulf %443, %442 : vector<2x18xf32>
    %445 = arith.addf %441, %444 : vector<2x18xf32>
    %cst_415 = arith.constant dense<0.000000e+00> : vector<2x34xf32>
    %446 = tpu.matmul %445, %253, %cst_415 {dimension_numbers = #tpu.dot_dimension_numbers<[1], [0], [0], [1], [0, 0, 1, 1], [], []>} : vector<2x18xf32>, vector<18x34xf32>, vector<2x34xf32> -> vector<2x34xf32>
    %c0_416 = arith.constant 0 : index
    %c748 = arith.constant 748 : index
    %447 = vector.load %arg13[%c0_416, %c748] : memref<2x1190xf32, #tpu.memory_space<vmem>>, vector<2x34xf32>
    tpu.vector_store %arg13[%c0_416, %c748], %446 {strides = array<i32>} : memref<2x1190xf32, #tpu.memory_space<vmem>>, vector<2x34xf32>,
    %c0_417 = arith.constant 0 : index
    %c180_418 = arith.constant 180 : index
    %448 = vector.load %arg15[%c0_417, %c180_418] : memref<2x288xf32, #tpu.memory_space<vmem>>, vector<2x18xf32>
    %cst_419 = arith.constant 2.500000e-01 : f32
    %449 = vector.broadcast %cst_419 : f32 to vector<2x18xf32>
    %450 = arith.mulf %449, %448 : vector<2x18xf32>
    %c0_420 = arith.constant 0 : index
    %c198_421 = arith.constant 198 : index
    %451 = vector.load %arg15[%c0_420, %c198_421] : memref<2x288xf32, #tpu.memory_space<vmem>>, vector<2x18xf32>
    %cst_422 = arith.constant 7.500000e-01 : f32
    %452 = vector.broadcast %cst_422 : f32 to vector<2x18xf32>
    %453 = arith.mulf %452, %451 : vector<2x18xf32>
    %454 = arith.addf %450, %453 : vector<2x18xf32>
    %cst_423 = arith.constant dense<0.000000e+00> : vector<2x34xf32>
    %455 = tpu.matmul %454, %253, %cst_423 {dimension_numbers = #tpu.dot_dimension_numbers<[1], [0], [0], [1], [0, 0, 1, 1], [], []>} : vector<2x18xf32>, vector<18x34xf32>, vector<2x34xf32> -> vector<2x34xf32>
    %c0_424 = arith.constant 0 : index
    %c782 = arith.constant 782 : index
    %456 = vector.load %arg13[%c0_424, %c782] : memref<2x1190xf32, #tpu.memory_space<vmem>>, vector<2x34xf32>
    tpu.vector_store %arg13[%c0_424, %c782], %455 {strides = array<i32>} : memref<2x1190xf32, #tpu.memory_space<vmem>>, vector<2x34xf32>,
    %c0_425 = arith.constant 0 : index
    %c198_426 = arith.constant 198 : index
    %457 = vector.load %arg15[%c0_425, %c198_426] : memref<2x288xf32, #tpu.memory_space<vmem>>, vector<2x18xf32>
    %cst_427 = arith.constant 7.500000e-01 : f32
    %458 = vector.broadcast %cst_427 : f32 to vector<2x18xf32>
    %459 = arith.mulf %458, %457 : vector<2x18xf32>
    %c0_428 = arith.constant 0 : index
    %c216_429 = arith.constant 216 : index
    %460 = vector.load %arg15[%c0_428, %c216_429] : memref<2x288xf32, #tpu.memory_space<vmem>>, vector<2x18xf32>
    %cst_430 = arith.constant 2.500000e-01 : f32
    %461 = vector.broadcast %cst_430 : f32 to vector<2x18xf32>
    %462 = arith.mulf %461, %460 : vector<2x18xf32>
    %463 = arith.addf %459, %462 : vector<2x18xf32>
    %cst_431 = arith.constant dense<0.000000e+00> : vector<2x34xf32>
    %464 = tpu.matmul %463, %253, %cst_431 {dimension_numbers = #tpu.dot_dimension_numbers<[1], [0], [0], [1], [0, 0, 1, 1], [], []>} : vector<2x18xf32>, vector<18x34xf32>, vector<2x34xf32> -> vector<2x34xf32>
    %c0_432 = arith.constant 0 : index
    %c816 = arith.constant 816 : index
    %465 = vector.load %arg13[%c0_432, %c816] : memref<2x1190xf32, #tpu.memory_space<vmem>>, vector<2x34xf32>
    tpu.vector_store %arg13[%c0_432, %c816], %464 {strides = array<i32>} : memref<2x1190xf32, #tpu.memory_space<vmem>>, vector<2x34xf32>,
    %c0_433 = arith.constant 0 : index
    %c198_434 = arith.constant 198 : index
    %466 = vector.load %arg15[%c0_433, %c198_434] : memref<2x288xf32, #tpu.memory_space<vmem>>, vector<2x18xf32>
    %cst_435 = arith.constant 2.500000e-01 : f32
    %467 = vector.broadcast %cst_435 : f32 to vector<2x18xf32>
    %468 = arith.mulf %467, %466 : vector<2x18xf32>
    %c0_436 = arith.constant 0 : index
    %c216_437 = arith.constant 216 : index
    %469 = vector.load %arg15[%c0_436, %c216_437] : memref<2x288xf32, #tpu.memory_space<vmem>>, vector<2x18xf32>
    %cst_438 = arith.constant 7.500000e-01 : f32
    %470 = vector.broadcast %cst_438 : f32 to vector<2x18xf32>
    %471 = arith.mulf %470, %469 : vector<2x18xf32>
    %472 = arith.addf %468, %471 : vector<2x18xf32>
    %cst_439 = arith.constant dense<0.000000e+00> : vector<2x34xf32>
    %473 = tpu.matmul %472, %253, %cst_439 {dimension_numbers = #tpu.dot_dimension_numbers<[1], [0], [0], [1], [0, 0, 1, 1], [], []>} : vector<2x18xf32>, vector<18x34xf32>, vector<2x34xf32> -> vector<2x34xf32>
    %c0_440 = arith.constant 0 : index
    %c850 = arith.constant 850 : index
    %474 = vector.load %arg13[%c0_440, %c850] : memref<2x1190xf32, #tpu.memory_space<vmem>>, vector<2x34xf32>
    tpu.vector_store %arg13[%c0_440, %c850], %473 {strides = array<i32>} : memref<2x1190xf32, #tpu.memory_space<vmem>>, vector<2x34xf32>,
    %c0_441 = arith.constant 0 : index
    %c216_442 = arith.constant 216 : index
    %475 = vector.load %arg15[%c0_441, %c216_442] : memref<2x288xf32, #tpu.memory_space<vmem>>, vector<2x18xf32>
    %cst_443 = arith.constant 7.500000e-01 : f32
    %476 = vector.broadcast %cst_443 : f32 to vector<2x18xf32>
    %477 = arith.mulf %476, %475 : vector<2x18xf32>
    %c0_444 = arith.constant 0 : index
    %c234_445 = arith.constant 234 : index
    %478 = vector.load %arg15[%c0_444, %c234_445] : memref<2x288xf32, #tpu.memory_space<vmem>>, vector<2x18xf32>
    %cst_446 = arith.constant 2.500000e-01 : f32
    %479 = vector.broadcast %cst_446 : f32 to vector<2x18xf32>
    %480 = arith.mulf %479, %478 : vector<2x18xf32>
    %481 = arith.addf %477, %480 : vector<2x18xf32>
    %cst_447 = arith.constant dense<0.000000e+00> : vector<2x34xf32>
    %482 = tpu.matmul %481, %253, %cst_447 {dimension_numbers = #tpu.dot_dimension_numbers<[1], [0], [0], [1], [0, 0, 1, 1], [], []>} : vector<2x18xf32>, vector<18x34xf32>, vector<2x34xf32> -> vector<2x34xf32>
    %c0_448 = arith.constant 0 : index
    %c884 = arith.constant 884 : index
    %483 = vector.load %arg13[%c0_448, %c884] : memref<2x1190xf32, #tpu.memory_space<vmem>>, vector<2x34xf32>
    tpu.vector_store %arg13[%c0_448, %c884], %482 {strides = array<i32>} : memref<2x1190xf32, #tpu.memory_space<vmem>>, vector<2x34xf32>,
    %c0_449 = arith.constant 0 : index
    %c216_450 = arith.constant 216 : index
    %484 = vector.load %arg15[%c0_449, %c216_450] : memref<2x288xf32, #tpu.memory_space<vmem>>, vector<2x18xf32>
    %cst_451 = arith.constant 2.500000e-01 : f32
    %485 = vector.broadcast %cst_451 : f32 to vector<2x18xf32>
    %486 = arith.mulf %485, %484 : vector<2x18xf32>
    %c0_452 = arith.constant 0 : index
    %c234_453 = arith.constant 234 : index
    %487 = vector.load %arg15[%c0_452, %c234_453] : memref<2x288xf32, #tpu.memory_space<vmem>>, vector<2x18xf32>
    %cst_454 = arith.constant 7.500000e-01 : f32
    %488 = vector.broadcast %cst_454 : f32 to vector<2x18xf32>
    %489 = arith.mulf %488, %487 : vector<2x18xf32>
    %490 = arith.addf %486, %489 : vector<2x18xf32>
    %cst_455 = arith.constant dense<0.000000e+00> : vector<2x34xf32>
    %491 = tpu.matmul %490, %253, %cst_455 {dimension_numbers = #tpu.dot_dimension_numbers<[1], [0], [0], [1], [0, 0, 1, 1], [], []>} : vector<2x18xf32>, vector<18x34xf32>, vector<2x34xf32> -> vector<2x34xf32>
    %c0_456 = arith.constant 0 : index
    %c918 = arith.constant 918 : index
    %492 = vector.load %arg13[%c0_456, %c918] : memref<2x1190xf32, #tpu.memory_space<vmem>>, vector<2x34xf32>
    tpu.vector_store %arg13[%c0_456, %c918], %491 {strides = array<i32>} : memref<2x1190xf32, #tpu.memory_space<vmem>>, vector<2x34xf32>,
    %c0_457 = arith.constant 0 : index
    %c234_458 = arith.constant 234 : index
    %493 = vector.load %arg15[%c0_457, %c234_458] : memref<2x288xf32, #tpu.memory_space<vmem>>, vector<2x18xf32>
    %cst_459 = arith.constant 7.500000e-01 : f32
    %494 = vector.broadcast %cst_459 : f32 to vector<2x18xf32>
    %495 = arith.mulf %494, %493 : vector<2x18xf32>
    %c0_460 = arith.constant 0 : index
    %c252_461 = arith.constant 252 : index
    %496 = vector.load %arg15[%c0_460, %c252_461] : memref<2x288xf32, #tpu.memory_space<vmem>>, vector<2x18xf32>
    %cst_462 = arith.constant 2.500000e-01 : f32
    %497 = vector.broadcast %cst_462 : f32 to vector<2x18xf32>
    %498 = arith.mulf %497, %496 : vector<2x18xf32>
    %499 = arith.addf %495, %498 : vector<2x18xf32>
    %cst_463 = arith.constant dense<0.000000e+00> : vector<2x34xf32>
    %500 = tpu.matmul %499, %253, %cst_463 {dimension_numbers = #tpu.dot_dimension_numbers<[1], [0], [0], [1], [0, 0, 1, 1], [], []>} : vector<2x18xf32>, vector<18x34xf32>, vector<2x34xf32> -> vector<2x34xf32>
    %c0_464 = arith.constant 0 : index
    %c952 = arith.constant 952 : index
    %501 = vector.load %arg13[%c0_464, %c952] : memref<2x1190xf32, #tpu.memory_space<vmem>>, vector<2x34xf32>
    tpu.vector_store %arg13[%c0_464, %c952], %500 {strides = array<i32>} : memref<2x1190xf32, #tpu.memory_space<vmem>>, vector<2x34xf32>,
    %c0_465 = arith.constant 0 : index
    %c234_466 = arith.constant 234 : index
    %502 = vector.load %arg15[%c0_465, %c234_466] : memref<2x288xf32, #tpu.memory_space<vmem>>, vector<2x18xf32>
    %cst_467 = arith.constant 2.500000e-01 : f32
    %503 = vector.broadcast %cst_467 : f32 to vector<2x18xf32>
    %504 = arith.mulf %503, %502 : vector<2x18xf32>
    %c0_468 = arith.constant 0 : index
    %c252_469 = arith.constant 252 : index
    %505 = vector.load %arg15[%c0_468, %c252_469] : memref<2x288xf32, #tpu.memory_space<vmem>>, vector<2x18xf32>
    %cst_470 = arith.constant 7.500000e-01 : f32
    %506 = vector.broadcast %cst_470 : f32 to vector<2x18xf32>
    %507 = arith.mulf %506, %505 : vector<2x18xf32>
    %508 = arith.addf %504, %507 : vector<2x18xf32>
    %cst_471 = arith.constant dense<0.000000e+00> : vector<2x34xf32>
    %509 = tpu.matmul %508, %253, %cst_471 {dimension_numbers = #tpu.dot_dimension_numbers<[1], [0], [0], [1], [0, 0, 1, 1], [], []>} : vector<2x18xf32>, vector<18x34xf32>, vector<2x34xf32> -> vector<2x34xf32>
    %c0_472 = arith.constant 0 : index
    %c986 = arith.constant 986 : index
    %510 = vector.load %arg13[%c0_472, %c986] : memref<2x1190xf32, #tpu.memory_space<vmem>>, vector<2x34xf32>
    tpu.vector_store %arg13[%c0_472, %c986], %509 {strides = array<i32>} : memref<2x1190xf32, #tpu.memory_space<vmem>>, vector<2x34xf32>,
    %c0_473 = arith.constant 0 : index
    %c252_474 = arith.constant 252 : index
    %511 = vector.load %arg15[%c0_473, %c252_474] : memref<2x288xf32, #tpu.memory_space<vmem>>, vector<2x18xf32>
    %cst_475 = arith.constant 7.500000e-01 : f32
    %512 = vector.broadcast %cst_475 : f32 to vector<2x18xf32>
    %513 = arith.mulf %512, %511 : vector<2x18xf32>
    %c0_476 = arith.constant 0 : index
    %c270_477 = arith.constant 270 : index
    %514 = vector.load %arg15[%c0_476, %c270_477] : memref<2x288xf32, #tpu.memory_space<vmem>>, vector<2x18xf32>
    %cst_478 = arith.constant 2.500000e-01 : f32
    %515 = vector.broadcast %cst_478 : f32 to vector<2x18xf32>
    %516 = arith.mulf %515, %514 : vector<2x18xf32>
    %517 = arith.addf %513, %516 : vector<2x18xf32>
    %cst_479 = arith.constant dense<0.000000e+00> : vector<2x34xf32>
    %518 = tpu.matmul %517, %253, %cst_479 {dimension_numbers = #tpu.dot_dimension_numbers<[1], [0], [0], [1], [0, 0, 1, 1], [], []>} : vector<2x18xf32>, vector<18x34xf32>, vector<2x34xf32> -> vector<2x34xf32>
    %c0_480 = arith.constant 0 : index
    %c1020 = arith.constant 1020 : index
    %519 = vector.load %arg13[%c0_480, %c1020] : memref<2x1190xf32, #tpu.memory_space<vmem>>, vector<2x34xf32>
    tpu.vector_store %arg13[%c0_480, %c1020], %518 {strides = array<i32>} : memref<2x1190xf32, #tpu.memory_space<vmem>>, vector<2x34xf32>,
    %c0_481 = arith.constant 0 : index
    %c252_482 = arith.constant 252 : index
    %520 = vector.load %arg15[%c0_481, %c252_482] : memref<2x288xf32, #tpu.memory_space<vmem>>, vector<2x18xf32>
    %cst_483 = arith.constant 2.500000e-01 : f32
    %521 = vector.broadcast %cst_483 : f32 to vector<2x18xf32>
    %522 = arith.mulf %521, %520 : vector<2x18xf32>
    %c0_484 = arith.constant 0 : index
    %c270_485 = arith.constant 270 : index
    %523 = vector.load %arg15[%c0_484, %c270_485] : memref<2x288xf32, #tpu.memory_space<vmem>>, vector<2x18xf32>
    %cst_486 = arith.constant 7.500000e-01 : f32
    %524 = vector.broadcast %cst_486 : f32 to vector<2x18xf32>
    %525 = arith.mulf %524, %523 : vector<2x18xf32>
    %526 = arith.addf %522, %525 : vector<2x18xf32>
    %cst_487 = arith.constant dense<0.000000e+00> : vector<2x34xf32>
    %527 = tpu.matmul %526, %253, %cst_487 {dimension_numbers = #tpu.dot_dimension_numbers<[1], [0], [0], [1], [0, 0, 1, 1], [], []>} : vector<2x18xf32>, vector<18x34xf32>, vector<2x34xf32> -> vector<2x34xf32>
    %c0_488 = arith.constant 0 : index
    %c1054 = arith.constant 1054 : index
    %528 = vector.load %arg13[%c0_488, %c1054] : memref<2x1190xf32, #tpu.memory_space<vmem>>, vector<2x34xf32>
    tpu.vector_store %arg13[%c0_488, %c1054], %527 {strides = array<i32>} : memref<2x1190xf32, #tpu.memory_space<vmem>>, vector<2x34xf32>,
    %c0_489 = arith.constant 0 : index
    %c270_490 = arith.constant 270 : index
    %529 = vector.load %arg15[%c0_489, %c270_490] : memref<2x288xf32, #tpu.memory_space<vmem>>, vector<2x18xf32>
    %cst_491 = arith.constant 7.500000e-01 : f32
    %530 = vector.broadcast %cst_491 : f32 to vector<2x18xf32>
    %531 = arith.mulf %530, %529 : vector<2x18xf32>
    %c0_492 = arith.constant 0 : index
    %c270_493 = arith.constant 270 : index
    %532 = vector.load %arg15[%c0_492, %c270_493] : memref<2x288xf32, #tpu.memory_space<vmem>>, vector<2x18xf32>
    %cst_494 = arith.constant 2.500000e-01 : f32
    %533 = vector.broadcast %cst_494 : f32 to vector<2x18xf32>
    %534 = arith.mulf %533, %532 : vector<2x18xf32>
    %535 = arith.addf %531, %534 : vector<2x18xf32>
    %cst_495 = arith.constant dense<0.000000e+00> : vector<2x34xf32>
    %536 = tpu.matmul %535, %253, %cst_495 {dimension_numbers = #tpu.dot_dimension_numbers<[1], [0], [0], [1], [0, 0, 1, 1], [], []>} : vector<2x18xf32>, vector<18x34xf32>, vector<2x34xf32> -> vector<2x34xf32>
    %c0_496 = arith.constant 0 : index
    %c1088 = arith.constant 1088 : index
    %537 = vector.load %arg13[%c0_496, %c1088] : memref<2x1190xf32, #tpu.memory_space<vmem>>, vector<2x34xf32>
    tpu.vector_store %arg13[%c0_496, %c1088], %536 {strides = array<i32>} : memref<2x1190xf32, #tpu.memory_space<vmem>>, vector<2x34xf32>,
    %cst_497 = arith.constant 0.000000e+00 : f32
    %538 = vector.broadcast %cst_497 : f32 to vector<1x1088xf32>
    %c0_498 = arith.constant 0 : index
    %c0_499 = arith.constant 0 : index
    %539 = vector.load %arg13[%c0_498, %c0_499] : memref<2x1190xf32, #tpu.memory_space<vmem>>, vector<2x1088xf32>
    %c0_500 = arith.constant 0 : index
    %c0_501 = arith.constant 0 : index
    %540 = vector.load %arg6[%c0_500, %c0_501] : memref<9x2xf32, #tpu.memory_space<vmem>>, vector<1x2xf32>
    %cst_502 = arith.constant dense<0.000000e+00> : vector<1x1088xf32>
    %541 = tpu.matmul %540, %539, %cst_502 {dimension_numbers = #tpu.dot_dimension_numbers<[1], [0], [0], [1], [0, 0, 1, 1], [], []>} : vector<1x2xf32>, vector<2x1088xf32>, vector<1x1088xf32> -> vector<1x1088xf32>
    %542 = arith.addf %538, %541 : vector<1x1088xf32>
    %c0_503 = arith.constant 0 : index
    %c1_504 = arith.constant 1 : index
    %543 = vector.load %arg13[%c0_503, %c1_504] : memref<2x1190xf32, #tpu.memory_space<vmem>>, vector<2x1088xf32>
    %c1_505 = arith.constant 1 : index
    %c0_506 = arith.constant 0 : index
    %544 = vector.load %arg6[%c1_505, %c0_506] : memref<9x2xf32, #tpu.memory_space<vmem>>, vector<1x2xf32>
    %cst_507 = arith.constant dense<0.000000e+00> : vector<1x1088xf32>
    %545 = tpu.matmul %544, %543, %cst_507 {dimension_numbers = #tpu.dot_dimension_numbers<[1], [0], [0], [1], [0, 0, 1, 1], [], []>} : vector<1x2xf32>, vector<2x1088xf32>, vector<1x1088xf32> -> vector<1x1088xf32>
    %546 = arith.addf %542, %545 : vector<1x1088xf32>
    %c0_508 = arith.constant 0 : index
    %c2_509 = arith.constant 2 : index
    %547 = vector.load %arg13[%c0_508, %c2_509] : memref<2x1190xf32, #tpu.memory_space<vmem>>, vector<2x1088xf32>
    %c2_510 = arith.constant 2 : index
    %c0_511 = arith.constant 0 : index
    %548 = vector.load %arg6[%c2_510, %c0_511] : memref<9x2xf32, #tpu.memory_space<vmem>>, vector<1x2xf32>
    %cst_512 = arith.constant dense<0.000000e+00> : vector<1x1088xf32>
    %549 = tpu.matmul %548, %547, %cst_512 {dimension_numbers = #tpu.dot_dimension_numbers<[1], [0], [0], [1], [0, 0, 1, 1], [], []>} : vector<1x2xf32>, vector<2x1088xf32>, vector<1x1088xf32> -> vector<1x1088xf32>
    %550 = arith.addf %546, %549 : vector<1x1088xf32>
    %c0_513 = arith.constant 0 : index
    %c34_514 = arith.constant 34 : index
    %551 = vector.load %arg13[%c0_513, %c34_514] : memref<2x1190xf32, #tpu.memory_space<vmem>>, vector<2x1088xf32>
    %c3 = arith.constant 3 : index
    %c0_515 = arith.constant 0 : index
    %552 = vector.load %arg6[%c3, %c0_515] : memref<9x2xf32, #tpu.memory_space<vmem>>, vector<1x2xf32>
    %cst_516 = arith.constant dense<0.000000e+00> : vector<1x1088xf32>
    %553 = tpu.matmul %552, %551, %cst_516 {dimension_numbers = #tpu.dot_dimension_numbers<[1], [0], [0], [1], [0, 0, 1, 1], [], []>} : vector<1x2xf32>, vector<2x1088xf32>, vector<1x1088xf32> -> vector<1x1088xf32>
    %554 = arith.addf %550, %553 : vector<1x1088xf32>
    %c0_517 = arith.constant 0 : index
    %c35 = arith.constant 35 : index
    %555 = vector.load %arg13[%c0_517, %c35] : memref<2x1190xf32, #tpu.memory_space<vmem>>, vector<2x1088xf32>
    %c4_518 = arith.constant 4 : index
    %c0_519 = arith.constant 0 : index
    %556 = vector.load %arg6[%c4_518, %c0_519] : memref<9x2xf32, #tpu.memory_space<vmem>>, vector<1x2xf32>
    %cst_520 = arith.constant dense<0.000000e+00> : vector<1x1088xf32>
    %557 = tpu.matmul %556, %555, %cst_520 {dimension_numbers = #tpu.dot_dimension_numbers<[1], [0], [0], [1], [0, 0, 1, 1], [], []>} : vector<1x2xf32>, vector<2x1088xf32>, vector<1x1088xf32> -> vector<1x1088xf32>
    %558 = arith.addf %554, %557 : vector<1x1088xf32>
    %c0_521 = arith.constant 0 : index
    %c36_522 = arith.constant 36 : index
    %559 = vector.load %arg13[%c0_521, %c36_522] : memref<2x1190xf32, #tpu.memory_space<vmem>>, vector<2x1088xf32>
    %c5 = arith.constant 5 : index
    %c0_523 = arith.constant 0 : index
    %560 = vector.load %arg6[%c5, %c0_523] : memref<9x2xf32, #tpu.memory_space<vmem>>, vector<1x2xf32>
    %cst_524 = arith.constant dense<0.000000e+00> : vector<1x1088xf32>
    %561 = tpu.matmul %560, %559, %cst_524 {dimension_numbers = #tpu.dot_dimension_numbers<[1], [0], [0], [1], [0, 0, 1, 1], [], []>} : vector<1x2xf32>, vector<2x1088xf32>, vector<1x1088xf32> -> vector<1x1088xf32>
    %562 = arith.addf %558, %561 : vector<1x1088xf32>
    %c0_525 = arith.constant 0 : index
    %c68_526 = arith.constant 68 : index
    %563 = vector.load %arg13[%c0_525, %c68_526] : memref<2x1190xf32, #tpu.memory_space<vmem>>, vector<2x1088xf32>
    %c6_527 = arith.constant 6 : index
    %c0_528 = arith.constant 0 : index
    %564 = vector.load %arg6[%c6_527, %c0_528] : memref<9x2xf32, #tpu.memory_space<vmem>>, vector<1x2xf32>
    %cst_529 = arith.constant dense<0.000000e+00> : vector<1x1088xf32>
    %565 = tpu.matmul %564, %563, %cst_529 {dimension_numbers = #tpu.dot_dimension_numbers<[1], [0], [0], [1], [0, 0, 1, 1], [], []>} : vector<1x2xf32>, vector<2x1088xf32>, vector<1x1088xf32> -> vector<1x1088xf32>
    %566 = arith.addf %562, %565 : vector<1x1088xf32>
    %c0_530 = arith.constant 0 : index
    %c69 = arith.constant 69 : index
    %567 = vector.load %arg13[%c0_530, %c69] : memref<2x1190xf32, #tpu.memory_space<vmem>>, vector<2x1088xf32>
    %c7 = arith.constant 7 : index
    %c0_531 = arith.constant 0 : index
    %568 = vector.load %arg6[%c7, %c0_531] : memref<9x2xf32, #tpu.memory_space<vmem>>, vector<1x2xf32>
    %cst_532 = arith.constant dense<0.000000e+00> : vector<1x1088xf32>
    %569 = tpu.matmul %568, %567, %cst_532 {dimension_numbers = #tpu.dot_dimension_numbers<[1], [0], [0], [1], [0, 0, 1, 1], [], []>} : vector<1x2xf32>, vector<2x1088xf32>, vector<1x1088xf32> -> vector<1x1088xf32>
    %570 = arith.addf %566, %569 : vector<1x1088xf32>
    %c0_533 = arith.constant 0 : index
    %c70_534 = arith.constant 70 : index
    %571 = vector.load %arg13[%c0_533, %c70_534] : memref<2x1190xf32, #tpu.memory_space<vmem>>, vector<2x1088xf32>
    %c8_535 = arith.constant 8 : index
    %c0_536 = arith.constant 0 : index
    %572 = vector.load %arg6[%c8_535, %c0_536] : memref<9x2xf32, #tpu.memory_space<vmem>>, vector<1x2xf32>
    %cst_537 = arith.constant dense<0.000000e+00> : vector<1x1088xf32>
    %573 = tpu.matmul %572, %571, %cst_537 {dimension_numbers = #tpu.dot_dimension_numbers<[1], [0], [0], [1], [0, 0, 1, 1], [], []>} : vector<1x2xf32>, vector<2x1088xf32>, vector<1x1088xf32> -> vector<1x1088xf32>
    %574 = arith.addf %570, %573 : vector<1x1088xf32>
    %c0_538 = arith.constant 0 : index
    %c0_539 = arith.constant 0 : index
    %575 = vector.load %arg16[%c0_538, %c0_539] : memref<1x1088xf32, #tpu.memory_space<vmem>>, vector<1x1088xf32>
    tpu.vector_store %arg16[%c0_538, %c0_539], %574 {strides = array<i32>} : memref<1x1088xf32, #tpu.memory_space<vmem>>, vector<1x1088xf32>,
    %c0_540 = arith.constant 0 : index
    %c0_541 = arith.constant 0 : index
    %576 = vector.load %arg9[%c0_540, %c0_541] : memref<34x64xf32, #tpu.memory_space<vmem>>, vector<34x64xf32>
    %c0_542 = arith.constant 0 : index
    %c0_543 = arith.constant 0 : index
    %577 = vector.load %arg16[%c0_542, %c0_543] : memref<1x1088xf32, #tpu.memory_space<vmem>>, vector<1x34xf32>
    %cst_544 = arith.constant dense<0.000000e+00> : vector<1x64xf32>
    %578 = tpu.matmul %577, %576, %cst_544 {dimension_numbers = #tpu.dot_dimension_numbers<[1], [0], [0], [1], [0, 0, 1, 1], [], []>} : vector<1x34xf32>, vector<34x64xf32>, vector<1x64xf32> -> vector<1x64xf32>
    %c0_545 = arith.constant 0 : index
    %c0_546 = arith.constant 0 : index
    %c0_547 = arith.constant 0 : index
    %579 = vector.load %arg10[%c0_545, %c0_546, %c0_547] : memref<1x1x4096xf32, #tpu.memory_space<vmem>>, vector<1x1x64xf32>
    %580 = vector.shape_cast %579 : vector<1x1x64xf32> to vector<1x64xf32>
    %581 = vector.shape_cast %578 : vector<1x64xf32> to vector<1x1x64xf32>
    tpu.vector_store %arg10[%c0_545, %c0_546, %c0_547], %581 {strides = array<i32>} : memref<1x1x4096xf32, #tpu.memory_space<vmem>>, vector<1x1x64xf32>,
    %c0_548 = arith.constant 0 : index
    %c0_549 = arith.constant 0 : index
    %582 = vector.load %arg16[%c0_548, %c0_549] : memref<1x1088xf32, #tpu.memory_space<vmem>>, vector<1x34xf32>
    %cst_550 = arith.constant 7.500000e-01 : f32
    %583 = vector.broadcast %cst_550 : f32 to vector<1x34xf32>
    %584 = arith.mulf %583, %582 : vector<1x34xf32>
    %c0_551 = arith.constant 0 : index
    %c34_552 = arith.constant 34 : index
    %585 = vector.load %arg16[%c0_551, %c34_552] : memref<1x1088xf32, #tpu.memory_space<vmem>>, vector<1x34xf32>
    %cst_553 = arith.constant 2.500000e-01 : f32
    %586 = vector.broadcast %cst_553 : f32 to vector<1x34xf32>
    %587 = arith.mulf %586, %585 : vector<1x34xf32>
    %588 = arith.addf %584, %587 : vector<1x34xf32>
    %cst_554 = arith.constant dense<0.000000e+00> : vector<1x64xf32>
    %589 = tpu.matmul %588, %576, %cst_554 {dimension_numbers = #tpu.dot_dimension_numbers<[1], [0], [0], [1], [0, 0, 1, 1], [], []>} : vector<1x34xf32>, vector<34x64xf32>, vector<1x64xf32> -> vector<1x64xf32>
    %c0_555 = arith.constant 0 : index
    %c0_556 = arith.constant 0 : index
    %c64 = arith.constant 64 : index
    %590 = vector.load %arg10[%c0_555, %c0_556, %c64] : memref<1x1x4096xf32, #tpu.memory_space<vmem>>, vector<1x1x64xf32>
    %591 = vector.shape_cast %590 : vector<1x1x64xf32> to vector<1x64xf32>
    %592 = vector.shape_cast %589 : vector<1x64xf32> to vector<1x1x64xf32>
    tpu.vector_store %arg10[%c0_555, %c0_556, %c64], %592 {strides = array<i32>} : memref<1x1x4096xf32, #tpu.memory_space<vmem>>, vector<1x1x64xf32>,
    %c0_557 = arith.constant 0 : index
    %c0_558 = arith.constant 0 : index
    %593 = vector.load %arg16[%c0_557, %c0_558] : memref<1x1088xf32, #tpu.memory_space<vmem>>, vector<1x34xf32>
    %cst_559 = arith.constant 2.500000e-01 : f32
    %594 = vector.broadcast %cst_559 : f32 to vector<1x34xf32>
    %595 = arith.mulf %594, %593 : vector<1x34xf32>
    %c0_560 = arith.constant 0 : index
    %c34_561 = arith.constant 34 : index
    %596 = vector.load %arg16[%c0_560, %c34_561] : memref<1x1088xf32, #tpu.memory_space<vmem>>, vector<1x34xf32>
    %cst_562 = arith.constant 7.500000e-01 : f32
    %597 = vector.broadcast %cst_562 : f32 to vector<1x34xf32>
    %598 = arith.mulf %597, %596 : vector<1x34xf32>
    %599 = arith.addf %595, %598 : vector<1x34xf32>
    %cst_563 = arith.constant dense<0.000000e+00> : vector<1x64xf32>
    %600 = tpu.matmul %599, %576, %cst_563 {dimension_numbers = #tpu.dot_dimension_numbers<[1], [0], [0], [1], [0, 0, 1, 1], [], []>} : vector<1x34xf32>, vector<34x64xf32>, vector<1x64xf32> -> vector<1x64xf32>
    %c0_564 = arith.constant 0 : index
    %c0_565 = arith.constant 0 : index
    %c128 = arith.constant 128 : index
    %601 = vector.load %arg10[%c0_564, %c0_565, %c128] : memref<1x1x4096xf32, #tpu.memory_space<vmem>>, vector<1x1x64xf32>
    %602 = vector.shape_cast %601 : vector<1x1x64xf32> to vector<1x64xf32>
    %603 = vector.shape_cast %600 : vector<1x64xf32> to vector<1x1x64xf32>
    tpu.vector_store %arg10[%c0_564, %c0_565, %c128], %603 {strides = array<i32>} : memref<1x1x4096xf32, #tpu.memory_space<vmem>>, vector<1x1x64xf32>,
    %c0_566 = arith.constant 0 : index
    %c34_567 = arith.constant 34 : index
    %604 = vector.load %arg16[%c0_566, %c34_567] : memref<1x1088xf32, #tpu.memory_space<vmem>>, vector<1x34xf32>
    %cst_568 = arith.constant 7.500000e-01 : f32
    %605 = vector.broadcast %cst_568 : f32 to vector<1x34xf32>
    %606 = arith.mulf %605, %604 : vector<1x34xf32>
    %c0_569 = arith.constant 0 : index
    %c68_570 = arith.constant 68 : index
    %607 = vector.load %arg16[%c0_569, %c68_570] : memref<1x1088xf32, #tpu.memory_space<vmem>>, vector<1x34xf32>
    %cst_571 = arith.constant 2.500000e-01 : f32
    %608 = vector.broadcast %cst_571 : f32 to vector<1x34xf32>
    %609 = arith.mulf %608, %607 : vector<1x34xf32>
    %610 = arith.addf %606, %609 : vector<1x34xf32>
    %cst_572 = arith.constant dense<0.000000e+00> : vector<1x64xf32>
    %611 = tpu.matmul %610, %576, %cst_572 {dimension_numbers = #tpu.dot_dimension_numbers<[1], [0], [0], [1], [0, 0, 1, 1], [], []>} : vector<1x34xf32>, vector<34x64xf32>, vector<1x64xf32> -> vector<1x64xf32>
    %c0_573 = arith.constant 0 : index
    %c0_574 = arith.constant 0 : index
    %c192 = arith.constant 192 : index
    %612 = vector.load %arg10[%c0_573, %c0_574, %c192] : memref<1x1x4096xf32, #tpu.memory_space<vmem>>, vector<1x1x64xf32>
    %613 = vector.shape_cast %612 : vector<1x1x64xf32> to vector<1x64xf32>
    %614 = vector.shape_cast %611 : vector<1x64xf32> to vector<1x1x64xf32>
    tpu.vector_store %arg10[%c0_573, %c0_574, %c192], %614 {strides = array<i32>} : memref<1x1x4096xf32, #tpu.memory_space<vmem>>, vector<1x1x64xf32>,
    %c0_575 = arith.constant 0 : index
    %c34_576 = arith.constant 34 : index
    %615 = vector.load %arg16[%c0_575, %c34_576] : memref<1x1088xf32, #tpu.memory_space<vmem>>, vector<1x34xf32>
    %cst_577 = arith.constant 2.500000e-01 : f32
    %616 = vector.broadcast %cst_577 : f32 to vector<1x34xf32>
    %617 = arith.mulf %616, %615 : vector<1x34xf32>
    %c0_578 = arith.constant 0 : index
    %c68_579 = arith.constant 68 : index
    %618 = vector.load %arg16[%c0_578, %c68_579] : memref<1x1088xf32, #tpu.memory_space<vmem>>, vector<1x34xf32>
    %cst_580 = arith.constant 7.500000e-01 : f32
    %619 = vector.broadcast %cst_580 : f32 to vector<1x34xf32>
    %620 = arith.mulf %619, %618 : vector<1x34xf32>
    %621 = arith.addf %617, %620 : vector<1x34xf32>
    %cst_581 = arith.constant dense<0.000000e+00> : vector<1x64xf32>
    %622 = tpu.matmul %621, %576, %cst_581 {dimension_numbers = #tpu.dot_dimension_numbers<[1], [0], [0], [1], [0, 0, 1, 1], [], []>} : vector<1x34xf32>, vector<34x64xf32>, vector<1x64xf32> -> vector<1x64xf32>
    %c0_582 = arith.constant 0 : index
    %c0_583 = arith.constant 0 : index
    %c256 = arith.constant 256 : index
    %623 = vector.load %arg10[%c0_582, %c0_583, %c256] : memref<1x1x4096xf32, #tpu.memory_space<vmem>>, vector<1x1x64xf32>
    %624 = vector.shape_cast %623 : vector<1x1x64xf32> to vector<1x64xf32>
    %625 = vector.shape_cast %622 : vector<1x64xf32> to vector<1x1x64xf32>
    tpu.vector_store %arg10[%c0_582, %c0_583, %c256], %625 {strides = array<i32>} : memref<1x1x4096xf32, #tpu.memory_space<vmem>>, vector<1x1x64xf32>,
    %c0_584 = arith.constant 0 : index
    %c68_585 = arith.constant 68 : index
    %626 = vector.load %arg16[%c0_584, %c68_585] : memref<1x1088xf32, #tpu.memory_space<vmem>>, vector<1x34xf32>
    %cst_586 = arith.constant 7.500000e-01 : f32
    %627 = vector.broadcast %cst_586 : f32 to vector<1x34xf32>
    %628 = arith.mulf %627, %626 : vector<1x34xf32>
    %c0_587 = arith.constant 0 : index
    %c102_588 = arith.constant 102 : index
    %629 = vector.load %arg16[%c0_587, %c102_588] : memref<1x1088xf32, #tpu.memory_space<vmem>>, vector<1x34xf32>
    %cst_589 = arith.constant 2.500000e-01 : f32
    %630 = vector.broadcast %cst_589 : f32 to vector<1x34xf32>
    %631 = arith.mulf %630, %629 : vector<1x34xf32>
    %632 = arith.addf %628, %631 : vector<1x34xf32>
    %cst_590 = arith.constant dense<0.000000e+00> : vector<1x64xf32>
    %633 = tpu.matmul %632, %576, %cst_590 {dimension_numbers = #tpu.dot_dimension_numbers<[1], [0], [0], [1], [0, 0, 1, 1], [], []>} : vector<1x34xf32>, vector<34x64xf32>, vector<1x64xf32> -> vector<1x64xf32>
    %c0_591 = arith.constant 0 : index
    %c0_592 = arith.constant 0 : index
    %c320 = arith.constant 320 : index
    %634 = vector.load %arg10[%c0_591, %c0_592, %c320] : memref<1x1x4096xf32, #tpu.memory_space<vmem>>, vector<1x1x64xf32>
    %635 = vector.shape_cast %634 : vector<1x1x64xf32> to vector<1x64xf32>
    %636 = vector.shape_cast %633 : vector<1x64xf32> to vector<1x1x64xf32>
    tpu.vector_store %arg10[%c0_591, %c0_592, %c320], %636 {strides = array<i32>} : memref<1x1x4096xf32, #tpu.memory_space<vmem>>, vector<1x1x64xf32>,
    %c0_593 = arith.constant 0 : index
    %c68_594 = arith.constant 68 : index
    %637 = vector.load %arg16[%c0_593, %c68_594] : memref<1x1088xf32, #tpu.memory_space<vmem>>, vector<1x34xf32>
    %cst_595 = arith.constant 2.500000e-01 : f32
    %638 = vector.broadcast %cst_595 : f32 to vector<1x34xf32>
    %639 = arith.mulf %638, %637 : vector<1x34xf32>
    %c0_596 = arith.constant 0 : index
    %c102_597 = arith.constant 102 : index
    %640 = vector.load %arg16[%c0_596, %c102_597] : memref<1x1088xf32, #tpu.memory_space<vmem>>, vector<1x34xf32>
    %cst_598 = arith.constant 7.500000e-01 : f32
    %641 = vector.broadcast %cst_598 : f32 to vector<1x34xf32>
    %642 = arith.mulf %641, %640 : vector<1x34xf32>
    %643 = arith.addf %639, %642 : vector<1x34xf32>
    %cst_599 = arith.constant dense<0.000000e+00> : vector<1x64xf32>
    %644 = tpu.matmul %643, %576, %cst_599 {dimension_numbers = #tpu.dot_dimension_numbers<[1], [0], [0], [1], [0, 0, 1, 1], [], []>} : vector<1x34xf32>, vector<34x64xf32>, vector<1x64xf32> -> vector<1x64xf32>
    %c0_600 = arith.constant 0 : index
    %c0_601 = arith.constant 0 : index
    %c384 = arith.constant 384 : index
    %645 = vector.load %arg10[%c0_600, %c0_601, %c384] : memref<1x1x4096xf32, #tpu.memory_space<vmem>>, vector<1x1x64xf32>
    %646 = vector.shape_cast %645 : vector<1x1x64xf32> to vector<1x64xf32>
    %647 = vector.shape_cast %644 : vector<1x64xf32> to vector<1x1x64xf32>
    tpu.vector_store %arg10[%c0_600, %c0_601, %c384], %647 {strides = array<i32>} : memref<1x1x4096xf32, #tpu.memory_space<vmem>>, vector<1x1x64xf32>,
    %c0_602 = arith.constant 0 : index
    %c102_603 = arith.constant 102 : index
    %648 = vector.load %arg16[%c0_602, %c102_603] : memref<1x1088xf32, #tpu.memory_space<vmem>>, vector<1x34xf32>
    %cst_604 = arith.constant 7.500000e-01 : f32
    %649 = vector.broadcast %cst_604 : f32 to vector<1x34xf32>
    %650 = arith.mulf %649, %648 : vector<1x34xf32>
    %c0_605 = arith.constant 0 : index
    %c136_606 = arith.constant 136 : index
    %651 = vector.load %arg16[%c0_605, %c136_606] : memref<1x1088xf32, #tpu.memory_space<vmem>>, vector<1x34xf32>
    %cst_607 = arith.constant 2.500000e-01 : f32
    %652 = vector.broadcast %cst_607 : f32 to vector<1x34xf32>
    %653 = arith.mulf %652, %651 : vector<1x34xf32>
    %654 = arith.addf %650, %653 : vector<1x34xf32>
    %cst_608 = arith.constant dense<0.000000e+00> : vector<1x64xf32>
    %655 = tpu.matmul %654, %576, %cst_608 {dimension_numbers = #tpu.dot_dimension_numbers<[1], [0], [0], [1], [0, 0, 1, 1], [], []>} : vector<1x34xf32>, vector<34x64xf32>, vector<1x64xf32> -> vector<1x64xf32>
    %c0_609 = arith.constant 0 : index
    %c0_610 = arith.constant 0 : index
    %c448 = arith.constant 448 : index
    %656 = vector.load %arg10[%c0_609, %c0_610, %c448] : memref<1x1x4096xf32, #tpu.memory_space<vmem>>, vector<1x1x64xf32>
    %657 = vector.shape_cast %656 : vector<1x1x64xf32> to vector<1x64xf32>
    %658 = vector.shape_cast %655 : vector<1x64xf32> to vector<1x1x64xf32>
    tpu.vector_store %arg10[%c0_609, %c0_610, %c448], %658 {strides = array<i32>} : memref<1x1x4096xf32, #tpu.memory_space<vmem>>, vector<1x1x64xf32>,
    %c0_611 = arith.constant 0 : index
    %c102_612 = arith.constant 102 : index
    %659 = vector.load %arg16[%c0_611, %c102_612] : memref<1x1088xf32, #tpu.memory_space<vmem>>, vector<1x34xf32>
    %cst_613 = arith.constant 2.500000e-01 : f32
    %660 = vector.broadcast %cst_613 : f32 to vector<1x34xf32>
    %661 = arith.mulf %660, %659 : vector<1x34xf32>
    %c0_614 = arith.constant 0 : index
    %c136_615 = arith.constant 136 : index
    %662 = vector.load %arg16[%c0_614, %c136_615] : memref<1x1088xf32, #tpu.memory_space<vmem>>, vector<1x34xf32>
    %cst_616 = arith.constant 7.500000e-01 : f32
    %663 = vector.broadcast %cst_616 : f32 to vector<1x34xf32>
    %664 = arith.mulf %663, %662 : vector<1x34xf32>
    %665 = arith.addf %661, %664 : vector<1x34xf32>
    %cst_617 = arith.constant dense<0.000000e+00> : vector<1x64xf32>
    %666 = tpu.matmul %665, %576, %cst_617 {dimension_numbers = #tpu.dot_dimension_numbers<[1], [0], [0], [1], [0, 0, 1, 1], [], []>} : vector<1x34xf32>, vector<34x64xf32>, vector<1x64xf32> -> vector<1x64xf32>
    %c0_618 = arith.constant 0 : index
    %c0_619 = arith.constant 0 : index
    %c512 = arith.constant 512 : index
    %667 = vector.load %arg10[%c0_618, %c0_619, %c512] : memref<1x1x4096xf32, #tpu.memory_space<vmem>>, vector<1x1x64xf32>
    %668 = vector.shape_cast %667 : vector<1x1x64xf32> to vector<1x64xf32>
    %669 = vector.shape_cast %666 : vector<1x64xf32> to vector<1x1x64xf32>
    tpu.vector_store %arg10[%c0_618, %c0_619, %c512], %669 {strides = array<i32>} : memref<1x1x4096xf32, #tpu.memory_space<vmem>>, vector<1x1x64xf32>,
    %c0_620 = arith.constant 0 : index
    %c136_621 = arith.constant 136 : index
    %670 = vector.load %arg16[%c0_620, %c136_621] : memref<1x1088xf32, #tpu.memory_space<vmem>>, vector<1x34xf32>
    %cst_622 = arith.constant 7.500000e-01 : f32
    %671 = vector.broadcast %cst_622 : f32 to vector<1x34xf32>
    %672 = arith.mulf %671, %670 : vector<1x34xf32>
    %c0_623 = arith.constant 0 : index
    %c170_624 = arith.constant 170 : index
    %673 = vector.load %arg16[%c0_623, %c170_624] : memref<1x1088xf32, #tpu.memory_space<vmem>>, vector<1x34xf32>
    %cst_625 = arith.constant 2.500000e-01 : f32
    %674 = vector.broadcast %cst_625 : f32 to vector<1x34xf32>
    %675 = arith.mulf %674, %673 : vector<1x34xf32>
    %676 = arith.addf %672, %675 : vector<1x34xf32>
    %cst_626 = arith.constant dense<0.000000e+00> : vector<1x64xf32>
    %677 = tpu.matmul %676, %576, %cst_626 {dimension_numbers = #tpu.dot_dimension_numbers<[1], [0], [0], [1], [0, 0, 1, 1], [], []>} : vector<1x34xf32>, vector<34x64xf32>, vector<1x64xf32> -> vector<1x64xf32>
    %c0_627 = arith.constant 0 : index
    %c0_628 = arith.constant 0 : index
    %c576 = arith.constant 576 : index
    %678 = vector.load %arg10[%c0_627, %c0_628, %c576] : memref<1x1x4096xf32, #tpu.memory_space<vmem>>, vector<1x1x64xf32>
    %679 = vector.shape_cast %678 : vector<1x1x64xf32> to vector<1x64xf32>
    %680 = vector.shape_cast %677 : vector<1x64xf32> to vector<1x1x64xf32>
    tpu.vector_store %arg10[%c0_627, %c0_628, %c576], %680 {strides = array<i32>} : memref<1x1x4096xf32, #tpu.memory_space<vmem>>, vector<1x1x64xf32>,
    %c0_629 = arith.constant 0 : index
    %c136_630 = arith.constant 136 : index
    %681 = vector.load %arg16[%c0_629, %c136_630] : memref<1x1088xf32, #tpu.memory_space<vmem>>, vector<1x34xf32>
    %cst_631 = arith.constant 2.500000e-01 : f32
    %682 = vector.broadcast %cst_631 : f32 to vector<1x34xf32>
    %683 = arith.mulf %682, %681 : vector<1x34xf32>
    %c0_632 = arith.constant 0 : index
    %c170_633 = arith.constant 170 : index
    %684 = vector.load %arg16[%c0_632, %c170_633] : memref<1x1088xf32, #tpu.memory_space<vmem>>, vector<1x34xf32>
    %cst_634 = arith.constant 7.500000e-01 : f32
    %685 = vector.broadcast %cst_634 : f32 to vector<1x34xf32>
    %686 = arith.mulf %685, %684 : vector<1x34xf32>
    %687 = arith.addf %683, %686 : vector<1x34xf32>
    %cst_635 = arith.constant dense<0.000000e+00> : vector<1x64xf32>
    %688 = tpu.matmul %687, %576, %cst_635 {dimension_numbers = #tpu.dot_dimension_numbers<[1], [0], [0], [1], [0, 0, 1, 1], [], []>} : vector<1x34xf32>, vector<34x64xf32>, vector<1x64xf32> -> vector<1x64xf32>
    %c0_636 = arith.constant 0 : index
    %c0_637 = arith.constant 0 : index
    %c640 = arith.constant 640 : index
    %689 = vector.load %arg10[%c0_636, %c0_637, %c640] : memref<1x1x4096xf32, #tpu.memory_space<vmem>>, vector<1x1x64xf32>
    %690 = vector.shape_cast %689 : vector<1x1x64xf32> to vector<1x64xf32>
    %691 = vector.shape_cast %688 : vector<1x64xf32> to vector<1x1x64xf32>
    tpu.vector_store %arg10[%c0_636, %c0_637, %c640], %691 {strides = array<i32>} : memref<1x1x4096xf32, #tpu.memory_space<vmem>>, vector<1x1x64xf32>,
    %c0_638 = arith.constant 0 : index
    %c170_639 = arith.constant 170 : index
    %692 = vector.load %arg16[%c0_638, %c170_639] : memref<1x1088xf32, #tpu.memory_space<vmem>>, vector<1x34xf32>
    %cst_640 = arith.constant 7.500000e-01 : f32
    %693 = vector.broadcast %cst_640 : f32 to vector<1x34xf32>
    %694 = arith.mulf %693, %692 : vector<1x34xf32>
    %c0_641 = arith.constant 0 : index
    %c204_642 = arith.constant 204 : index
    %695 = vector.load %arg16[%c0_641, %c204_642] : memref<1x1088xf32, #tpu.memory_space<vmem>>, vector<1x34xf32>
    %cst_643 = arith.constant 2.500000e-01 : f32
    %696 = vector.broadcast %cst_643 : f32 to vector<1x34xf32>
    %697 = arith.mulf %696, %695 : vector<1x34xf32>
    %698 = arith.addf %694, %697 : vector<1x34xf32>
    %cst_644 = arith.constant dense<0.000000e+00> : vector<1x64xf32>
    %699 = tpu.matmul %698, %576, %cst_644 {dimension_numbers = #tpu.dot_dimension_numbers<[1], [0], [0], [1], [0, 0, 1, 1], [], []>} : vector<1x34xf32>, vector<34x64xf32>, vector<1x64xf32> -> vector<1x64xf32>
    %c0_645 = arith.constant 0 : index
    %c0_646 = arith.constant 0 : index
    %c704 = arith.constant 704 : index
    %700 = vector.load %arg10[%c0_645, %c0_646, %c704] : memref<1x1x4096xf32, #tpu.memory_space<vmem>>, vector<1x1x64xf32>
    %701 = vector.shape_cast %700 : vector<1x1x64xf32> to vector<1x64xf32>
    %702 = vector.shape_cast %699 : vector<1x64xf32> to vector<1x1x64xf32>
    tpu.vector_store %arg10[%c0_645, %c0_646, %c704], %702 {strides = array<i32>} : memref<1x1x4096xf32, #tpu.memory_space<vmem>>, vector<1x1x64xf32>,
    %c0_647 = arith.constant 0 : index
    %c170_648 = arith.constant 170 : index
    %703 = vector.load %arg16[%c0_647, %c170_648] : memref<1x1088xf32, #tpu.memory_space<vmem>>, vector<1x34xf32>
    %cst_649 = arith.constant 2.500000e-01 : f32
    %704 = vector.broadcast %cst_649 : f32 to vector<1x34xf32>
    %705 = arith.mulf %704, %703 : vector<1x34xf32>
    %c0_650 = arith.constant 0 : index
    %c204_651 = arith.constant 204 : index
    %706 = vector.load %arg16[%c0_650, %c204_651] : memref<1x1088xf32, #tpu.memory_space<vmem>>, vector<1x34xf32>
    %cst_652 = arith.constant 7.500000e-01 : f32
    %707 = vector.broadcast %cst_652 : f32 to vector<1x34xf32>
    %708 = arith.mulf %707, %706 : vector<1x34xf32>
    %709 = arith.addf %705, %708 : vector<1x34xf32>
    %cst_653 = arith.constant dense<0.000000e+00> : vector<1x64xf32>
    %710 = tpu.matmul %709, %576, %cst_653 {dimension_numbers = #tpu.dot_dimension_numbers<[1], [0], [0], [1], [0, 0, 1, 1], [], []>} : vector<1x34xf32>, vector<34x64xf32>, vector<1x64xf32> -> vector<1x64xf32>
    %c0_654 = arith.constant 0 : index
    %c0_655 = arith.constant 0 : index
    %c768 = arith.constant 768 : index
    %711 = vector.load %arg10[%c0_654, %c0_655, %c768] : memref<1x1x4096xf32, #tpu.memory_space<vmem>>, vector<1x1x64xf32>
    %712 = vector.shape_cast %711 : vector<1x1x64xf32> to vector<1x64xf32>
    %713 = vector.shape_cast %710 : vector<1x64xf32> to vector<1x1x64xf32>
    tpu.vector_store %arg10[%c0_654, %c0_655, %c768], %713 {strides = array<i32>} : memref<1x1x4096xf32, #tpu.memory_space<vmem>>, vector<1x1x64xf32>,
    %c0_656 = arith.constant 0 : index
    %c204_657 = arith.constant 204 : index
    %714 = vector.load %arg16[%c0_656, %c204_657] : memref<1x1088xf32, #tpu.memory_space<vmem>>, vector<1x34xf32>
    %cst_658 = arith.constant 7.500000e-01 : f32
    %715 = vector.broadcast %cst_658 : f32 to vector<1x34xf32>
    %716 = arith.mulf %715, %714 : vector<1x34xf32>
    %c0_659 = arith.constant 0 : index
    %c238_660 = arith.constant 238 : index
    %717 = vector.load %arg16[%c0_659, %c238_660] : memref<1x1088xf32, #tpu.memory_space<vmem>>, vector<1x34xf32>
    %cst_661 = arith.constant 2.500000e-01 : f32
    %718 = vector.broadcast %cst_661 : f32 to vector<1x34xf32>
    %719 = arith.mulf %718, %717 : vector<1x34xf32>
    %720 = arith.addf %716, %719 : vector<1x34xf32>
    %cst_662 = arith.constant dense<0.000000e+00> : vector<1x64xf32>
    %721 = tpu.matmul %720, %576, %cst_662 {dimension_numbers = #tpu.dot_dimension_numbers<[1], [0], [0], [1], [0, 0, 1, 1], [], []>} : vector<1x34xf32>, vector<34x64xf32>, vector<1x64xf32> -> vector<1x64xf32>
    %c0_663 = arith.constant 0 : index
    %c0_664 = arith.constant 0 : index
    %c832 = arith.constant 832 : index
    %722 = vector.load %arg10[%c0_663, %c0_664, %c832] : memref<1x1x4096xf32, #tpu.memory_space<vmem>>, vector<1x1x64xf32>
    %723 = vector.shape_cast %722 : vector<1x1x64xf32> to vector<1x64xf32>
    %724 = vector.shape_cast %721 : vector<1x64xf32> to vector<1x1x64xf32>
    tpu.vector_store %arg10[%c0_663, %c0_664, %c832], %724 {strides = array<i32>} : memref<1x1x4096xf32, #tpu.memory_space<vmem>>, vector<1x1x64xf32>,
    %c0_665 = arith.constant 0 : index
    %c204_666 = arith.constant 204 : index
    %725 = vector.load %arg16[%c0_665, %c204_666] : memref<1x1088xf32, #tpu.memory_space<vmem>>, vector<1x34xf32>
    %cst_667 = arith.constant 2.500000e-01 : f32
    %726 = vector.broadcast %cst_667 : f32 to vector<1x34xf32>
    %727 = arith.mulf %726, %725 : vector<1x34xf32>
    %c0_668 = arith.constant 0 : index
    %c238_669 = arith.constant 238 : index
    %728 = vector.load %arg16[%c0_668, %c238_669] : memref<1x1088xf32, #tpu.memory_space<vmem>>, vector<1x34xf32>
    %cst_670 = arith.constant 7.500000e-01 : f32
    %729 = vector.broadcast %cst_670 : f32 to vector<1x34xf32>
    %730 = arith.mulf %729, %728 : vector<1x34xf32>
    %731 = arith.addf %727, %730 : vector<1x34xf32>
    %cst_671 = arith.constant dense<0.000000e+00> : vector<1x64xf32>
    %732 = tpu.matmul %731, %576, %cst_671 {dimension_numbers = #tpu.dot_dimension_numbers<[1], [0], [0], [1], [0, 0, 1, 1], [], []>} : vector<1x34xf32>, vector<34x64xf32>, vector<1x64xf32> -> vector<1x64xf32>
    %c0_672 = arith.constant 0 : index
    %c0_673 = arith.constant 0 : index
    %c896 = arith.constant 896 : index
    %733 = vector.load %arg10[%c0_672, %c0_673, %c896] : memref<1x1x4096xf32, #tpu.memory_space<vmem>>, vector<1x1x64xf32>
    %734 = vector.shape_cast %733 : vector<1x1x64xf32> to vector<1x64xf32>
    %735 = vector.shape_cast %732 : vector<1x64xf32> to vector<1x1x64xf32>
    tpu.vector_store %arg10[%c0_672, %c0_673, %c896], %735 {strides = array<i32>} : memref<1x1x4096xf32, #tpu.memory_space<vmem>>, vector<1x1x64xf32>,
    %c0_674 = arith.constant 0 : index
    %c238_675 = arith.constant 238 : index
    %736 = vector.load %arg16[%c0_674, %c238_675] : memref<1x1088xf32, #tpu.memory_space<vmem>>, vector<1x34xf32>
    %cst_676 = arith.constant 7.500000e-01 : f32
    %737 = vector.broadcast %cst_676 : f32 to vector<1x34xf32>
    %738 = arith.mulf %737, %736 : vector<1x34xf32>
    %c0_677 = arith.constant 0 : index
    %c272_678 = arith.constant 272 : index
    %739 = vector.load %arg16[%c0_677, %c272_678] : memref<1x1088xf32, #tpu.memory_space<vmem>>, vector<1x34xf32>
    %cst_679 = arith.constant 2.500000e-01 : f32
    %740 = vector.broadcast %cst_679 : f32 to vector<1x34xf32>
    %741 = arith.mulf %740, %739 : vector<1x34xf32>
    %742 = arith.addf %738, %741 : vector<1x34xf32>
    %cst_680 = arith.constant dense<0.000000e+00> : vector<1x64xf32>
    %743 = tpu.matmul %742, %576, %cst_680 {dimension_numbers = #tpu.dot_dimension_numbers<[1], [0], [0], [1], [0, 0, 1, 1], [], []>} : vector<1x34xf32>, vector<34x64xf32>, vector<1x64xf32> -> vector<1x64xf32>
    %c0_681 = arith.constant 0 : index
    %c0_682 = arith.constant 0 : index
    %c960 = arith.constant 960 : index
    %744 = vector.load %arg10[%c0_681, %c0_682, %c960] : memref<1x1x4096xf32, #tpu.memory_space<vmem>>, vector<1x1x64xf32>
    %745 = vector.shape_cast %744 : vector<1x1x64xf32> to vector<1x64xf32>
    %746 = vector.shape_cast %743 : vector<1x64xf32> to vector<1x1x64xf32>
    tpu.vector_store %arg10[%c0_681, %c0_682, %c960], %746 {strides = array<i32>} : memref<1x1x4096xf32, #tpu.memory_space<vmem>>, vector<1x1x64xf32>,
    %c0_683 = arith.constant 0 : index
    %c238_684 = arith.constant 238 : index
    %747 = vector.load %arg16[%c0_683, %c238_684] : memref<1x1088xf32, #tpu.memory_space<vmem>>, vector<1x34xf32>
    %cst_685 = arith.constant 2.500000e-01 : f32
    %748 = vector.broadcast %cst_685 : f32 to vector<1x34xf32>
    %749 = arith.mulf %748, %747 : vector<1x34xf32>
    %c0_686 = arith.constant 0 : index
    %c272_687 = arith.constant 272 : index
    %750 = vector.load %arg16[%c0_686, %c272_687] : memref<1x1088xf32, #tpu.memory_space<vmem>>, vector<1x34xf32>
    %cst_688 = arith.constant 7.500000e-01 : f32
    %751 = vector.broadcast %cst_688 : f32 to vector<1x34xf32>
    %752 = arith.mulf %751, %750 : vector<1x34xf32>
    %753 = arith.addf %749, %752 : vector<1x34xf32>
    %cst_689 = arith.constant dense<0.000000e+00> : vector<1x64xf32>
    %754 = tpu.matmul %753, %576, %cst_689 {dimension_numbers = #tpu.dot_dimension_numbers<[1], [0], [0], [1], [0, 0, 1, 1], [], []>} : vector<1x34xf32>, vector<34x64xf32>, vector<1x64xf32> -> vector<1x64xf32>
    %c0_690 = arith.constant 0 : index
    %c0_691 = arith.constant 0 : index
    %c1024 = arith.constant 1024 : index
    %755 = vector.load %arg10[%c0_690, %c0_691, %c1024] : memref<1x1x4096xf32, #tpu.memory_space<vmem>>, vector<1x1x64xf32>
    %756 = vector.shape_cast %755 : vector<1x1x64xf32> to vector<1x64xf32>
    %757 = vector.shape_cast %754 : vector<1x64xf32> to vector<1x1x64xf32>
    tpu.vector_store %arg10[%c0_690, %c0_691, %c1024], %757 {strides = array<i32>} : memref<1x1x4096xf32, #tpu.memory_space<vmem>>, vector<1x1x64xf32>,
    %c0_692 = arith.constant 0 : index
    %c272_693 = arith.constant 272 : index
    %758 = vector.load %arg16[%c0_692, %c272_693] : memref<1x1088xf32, #tpu.memory_space<vmem>>, vector<1x34xf32>
    %cst_694 = arith.constant 7.500000e-01 : f32
    %759 = vector.broadcast %cst_694 : f32 to vector<1x34xf32>
    %760 = arith.mulf %759, %758 : vector<1x34xf32>
    %c0_695 = arith.constant 0 : index
    %c306_696 = arith.constant 306 : index
    %761 = vector.load %arg16[%c0_695, %c306_696] : memref<1x1088xf32, #tpu.memory_space<vmem>>, vector<1x34xf32>
    %cst_697 = arith.constant 2.500000e-01 : f32
    %762 = vector.broadcast %cst_697 : f32 to vector<1x34xf32>
    %763 = arith.mulf %762, %761 : vector<1x34xf32>
    %764 = arith.addf %760, %763 : vector<1x34xf32>
    %cst_698 = arith.constant dense<0.000000e+00> : vector<1x64xf32>
    %765 = tpu.matmul %764, %576, %cst_698 {dimension_numbers = #tpu.dot_dimension_numbers<[1], [0], [0], [1], [0, 0, 1, 1], [], []>} : vector<1x34xf32>, vector<34x64xf32>, vector<1x64xf32> -> vector<1x64xf32>
    %c0_699 = arith.constant 0 : index
    %c0_700 = arith.constant 0 : index
    %c1088_701 = arith.constant 1088 : index
    %766 = vector.load %arg10[%c0_699, %c0_700, %c1088_701] : memref<1x1x4096xf32, #tpu.memory_space<vmem>>, vector<1x1x64xf32>
    %767 = vector.shape_cast %766 : vector<1x1x64xf32> to vector<1x64xf32>
    %768 = vector.shape_cast %765 : vector<1x64xf32> to vector<1x1x64xf32>
    tpu.vector_store %arg10[%c0_699, %c0_700, %c1088_701], %768 {strides = array<i32>} : memref<1x1x4096xf32, #tpu.memory_space<vmem>>, vector<1x1x64xf32>,
    %c0_702 = arith.constant 0 : index
    %c272_703 = arith.constant 272 : index
    %769 = vector.load %arg16[%c0_702, %c272_703] : memref<1x1088xf32, #tpu.memory_space<vmem>>, vector<1x34xf32>
    %cst_704 = arith.constant 2.500000e-01 : f32
    %770 = vector.broadcast %cst_704 : f32 to vector<1x34xf32>
    %771 = arith.mulf %770, %769 : vector<1x34xf32>
    %c0_705 = arith.constant 0 : index
    %c306_706 = arith.constant 306 : index
    %772 = vector.load %arg16[%c0_705, %c306_706] : memref<1x1088xf32, #tpu.memory_space<vmem>>, vector<1x34xf32>
    %cst_707 = arith.constant 7.500000e-01 : f32
    %773 = vector.broadcast %cst_707 : f32 to vector<1x34xf32>
    %774 = arith.mulf %773, %772 : vector<1x34xf32>
    %775 = arith.addf %771, %774 : vector<1x34xf32>
    %cst_708 = arith.constant dense<0.000000e+00> : vector<1x64xf32>
    %776 = tpu.matmul %775, %576, %cst_708 {dimension_numbers = #tpu.dot_dimension_numbers<[1], [0], [0], [1], [0, 0, 1, 1], [], []>} : vector<1x34xf32>, vector<34x64xf32>, vector<1x64xf32> -> vector<1x64xf32>
    %c0_709 = arith.constant 0 : index
    %c0_710 = arith.constant 0 : index
    %c1152 = arith.constant 1152 : index
    %777 = vector.load %arg10[%c0_709, %c0_710, %c1152] : memref<1x1x4096xf32, #tpu.memory_space<vmem>>, vector<1x1x64xf32>
    %778 = vector.shape_cast %777 : vector<1x1x64xf32> to vector<1x64xf32>
    %779 = vector.shape_cast %776 : vector<1x64xf32> to vector<1x1x64xf32>
    tpu.vector_store %arg10[%c0_709, %c0_710, %c1152], %779 {strides = array<i32>} : memref<1x1x4096xf32, #tpu.memory_space<vmem>>, vector<1x1x64xf32>,
    %c0_711 = arith.constant 0 : index
    %c306_712 = arith.constant 306 : index
    %780 = vector.load %arg16[%c0_711, %c306_712] : memref<1x1088xf32, #tpu.memory_space<vmem>>, vector<1x34xf32>
    %cst_713 = arith.constant 7.500000e-01 : f32
    %781 = vector.broadcast %cst_713 : f32 to vector<1x34xf32>
    %782 = arith.mulf %781, %780 : vector<1x34xf32>
    %c0_714 = arith.constant 0 : index
    %c340_715 = arith.constant 340 : index
    %783 = vector.load %arg16[%c0_714, %c340_715] : memref<1x1088xf32, #tpu.memory_space<vmem>>, vector<1x34xf32>
    %cst_716 = arith.constant 2.500000e-01 : f32
    %784 = vector.broadcast %cst_716 : f32 to vector<1x34xf32>
    %785 = arith.mulf %784, %783 : vector<1x34xf32>
    %786 = arith.addf %782, %785 : vector<1x34xf32>
    %cst_717 = arith.constant dense<0.000000e+00> : vector<1x64xf32>
    %787 = tpu.matmul %786, %576, %cst_717 {dimension_numbers = #tpu.dot_dimension_numbers<[1], [0], [0], [1], [0, 0, 1, 1], [], []>} : vector<1x34xf32>, vector<34x64xf32>, vector<1x64xf32> -> vector<1x64xf32>
    %c0_718 = arith.constant 0 : index
    %c0_719 = arith.constant 0 : index
    %c1216 = arith.constant 1216 : index
    %788 = vector.load %arg10[%c0_718, %c0_719, %c1216] : memref<1x1x4096xf32, #tpu.memory_space<vmem>>, vector<1x1x64xf32>
    %789 = vector.shape_cast %788 : vector<1x1x64xf32> to vector<1x64xf32>
    %790 = vector.shape_cast %787 : vector<1x64xf32> to vector<1x1x64xf32>
    tpu.vector_store %arg10[%c0_718, %c0_719, %c1216], %790 {strides = array<i32>} : memref<1x1x4096xf32, #tpu.memory_space<vmem>>, vector<1x1x64xf32>,
    %c0_720 = arith.constant 0 : index
    %c306_721 = arith.constant 306 : index
    %791 = vector.load %arg16[%c0_720, %c306_721] : memref<1x1088xf32, #tpu.memory_space<vmem>>, vector<1x34xf32>
    %cst_722 = arith.constant 2.500000e-01 : f32
    %792 = vector.broadcast %cst_722 : f32 to vector<1x34xf32>
    %793 = arith.mulf %792, %791 : vector<1x34xf32>
    %c0_723 = arith.constant 0 : index
    %c340_724 = arith.constant 340 : index
    %794 = vector.load %arg16[%c0_723, %c340_724] : memref<1x1088xf32, #tpu.memory_space<vmem>>, vector<1x34xf32>
    %cst_725 = arith.constant 7.500000e-01 : f32
    %795 = vector.broadcast %cst_725 : f32 to vector<1x34xf32>
    %796 = arith.mulf %795, %794 : vector<1x34xf32>
    %797 = arith.addf %793, %796 : vector<1x34xf32>
    %cst_726 = arith.constant dense<0.000000e+00> : vector<1x64xf32>
    %798 = tpu.matmul %797, %576, %cst_726 {dimension_numbers = #tpu.dot_dimension_numbers<[1], [0], [0], [1], [0, 0, 1, 1], [], []>} : vector<1x34xf32>, vector<34x64xf32>, vector<1x64xf32> -> vector<1x64xf32>
    %c0_727 = arith.constant 0 : index
    %c0_728 = arith.constant 0 : index
    %c1280 = arith.constant 1280 : index
    %799 = vector.load %arg10[%c0_727, %c0_728, %c1280] : memref<1x1x4096xf32, #tpu.memory_space<vmem>>, vector<1x1x64xf32>
    %800 = vector.shape_cast %799 : vector<1x1x64xf32> to vector<1x64xf32>
    %801 = vector.shape_cast %798 : vector<1x64xf32> to vector<1x1x64xf32>
    tpu.vector_store %arg10[%c0_727, %c0_728, %c1280], %801 {strides = array<i32>} : memref<1x1x4096xf32, #tpu.memory_space<vmem>>, vector<1x1x64xf32>,
    %c0_729 = arith.constant 0 : index
    %c340_730 = arith.constant 340 : index
    %802 = vector.load %arg16[%c0_729, %c340_730] : memref<1x1088xf32, #tpu.memory_space<vmem>>, vector<1x34xf32>
    %cst_731 = arith.constant 7.500000e-01 : f32
    %803 = vector.broadcast %cst_731 : f32 to vector<1x34xf32>
    %804 = arith.mulf %803, %802 : vector<1x34xf32>
    %c0_732 = arith.constant 0 : index
    %c374_733 = arith.constant 374 : index
    %805 = vector.load %arg16[%c0_732, %c374_733] : memref<1x1088xf32, #tpu.memory_space<vmem>>, vector<1x34xf32>
    %cst_734 = arith.constant 2.500000e-01 : f32
    %806 = vector.broadcast %cst_734 : f32 to vector<1x34xf32>
    %807 = arith.mulf %806, %805 : vector<1x34xf32>
    %808 = arith.addf %804, %807 : vector<1x34xf32>
    %cst_735 = arith.constant dense<0.000000e+00> : vector<1x64xf32>
    %809 = tpu.matmul %808, %576, %cst_735 {dimension_numbers = #tpu.dot_dimension_numbers<[1], [0], [0], [1], [0, 0, 1, 1], [], []>} : vector<1x34xf32>, vector<34x64xf32>, vector<1x64xf32> -> vector<1x64xf32>
    %c0_736 = arith.constant 0 : index
    %c0_737 = arith.constant 0 : index
    %c1344 = arith.constant 1344 : index
    %810 = vector.load %arg10[%c0_736, %c0_737, %c1344] : memref<1x1x4096xf32, #tpu.memory_space<vmem>>, vector<1x1x64xf32>
    %811 = vector.shape_cast %810 : vector<1x1x64xf32> to vector<1x64xf32>
    %812 = vector.shape_cast %809 : vector<1x64xf32> to vector<1x1x64xf32>
    tpu.vector_store %arg10[%c0_736, %c0_737, %c1344], %812 {strides = array<i32>} : memref<1x1x4096xf32, #tpu.memory_space<vmem>>, vector<1x1x64xf32>,
    %c0_738 = arith.constant 0 : index
    %c340_739 = arith.constant 340 : index
    %813 = vector.load %arg16[%c0_738, %c340_739] : memref<1x1088xf32, #tpu.memory_space<vmem>>, vector<1x34xf32>
    %cst_740 = arith.constant 2.500000e-01 : f32
    %814 = vector.broadcast %cst_740 : f32 to vector<1x34xf32>
    %815 = arith.mulf %814, %813 : vector<1x34xf32>
    %c0_741 = arith.constant 0 : index
    %c374_742 = arith.constant 374 : index
    %816 = vector.load %arg16[%c0_741, %c374_742] : memref<1x1088xf32, #tpu.memory_space<vmem>>, vector<1x34xf32>
    %cst_743 = arith.constant 7.500000e-01 : f32
    %817 = vector.broadcast %cst_743 : f32 to vector<1x34xf32>
    %818 = arith.mulf %817, %816 : vector<1x34xf32>
    %819 = arith.addf %815, %818 : vector<1x34xf32>
    %cst_744 = arith.constant dense<0.000000e+00> : vector<1x64xf32>
    %820 = tpu.matmul %819, %576, %cst_744 {dimension_numbers = #tpu.dot_dimension_numbers<[1], [0], [0], [1], [0, 0, 1, 1], [], []>} : vector<1x34xf32>, vector<34x64xf32>, vector<1x64xf32> -> vector<1x64xf32>
    %c0_745 = arith.constant 0 : index
    %c0_746 = arith.constant 0 : index
    %c1408 = arith.constant 1408 : index
    %821 = vector.load %arg10[%c0_745, %c0_746, %c1408] : memref<1x1x4096xf32, #tpu.memory_space<vmem>>, vector<1x1x64xf32>
    %822 = vector.shape_cast %821 : vector<1x1x64xf32> to vector<1x64xf32>
    %823 = vector.shape_cast %820 : vector<1x64xf32> to vector<1x1x64xf32>
    tpu.vector_store %arg10[%c0_745, %c0_746, %c1408], %823 {strides = array<i32>} : memref<1x1x4096xf32, #tpu.memory_space<vmem>>, vector<1x1x64xf32>,
    %c0_747 = arith.constant 0 : index
    %c374_748 = arith.constant 374 : index
    %824 = vector.load %arg16[%c0_747, %c374_748] : memref<1x1088xf32, #tpu.memory_space<vmem>>, vector<1x34xf32>
    %cst_749 = arith.constant 7.500000e-01 : f32
    %825 = vector.broadcast %cst_749 : f32 to vector<1x34xf32>
    %826 = arith.mulf %825, %824 : vector<1x34xf32>
    %c0_750 = arith.constant 0 : index
    %c408_751 = arith.constant 408 : index
    %827 = vector.load %arg16[%c0_750, %c408_751] : memref<1x1088xf32, #tpu.memory_space<vmem>>, vector<1x34xf32>
    %cst_752 = arith.constant 2.500000e-01 : f32
    %828 = vector.broadcast %cst_752 : f32 to vector<1x34xf32>
    %829 = arith.mulf %828, %827 : vector<1x34xf32>
    %830 = arith.addf %826, %829 : vector<1x34xf32>
    %cst_753 = arith.constant dense<0.000000e+00> : vector<1x64xf32>
    %831 = tpu.matmul %830, %576, %cst_753 {dimension_numbers = #tpu.dot_dimension_numbers<[1], [0], [0], [1], [0, 0, 1, 1], [], []>} : vector<1x34xf32>, vector<34x64xf32>, vector<1x64xf32> -> vector<1x64xf32>
    %c0_754 = arith.constant 0 : index
    %c0_755 = arith.constant 0 : index
    %c1472 = arith.constant 1472 : index
    %832 = vector.load %arg10[%c0_754, %c0_755, %c1472] : memref<1x1x4096xf32, #tpu.memory_space<vmem>>, vector<1x1x64xf32>
    %833 = vector.shape_cast %832 : vector<1x1x64xf32> to vector<1x64xf32>
    %834 = vector.shape_cast %831 : vector<1x64xf32> to vector<1x1x64xf32>
    tpu.vector_store %arg10[%c0_754, %c0_755, %c1472], %834 {strides = array<i32>} : memref<1x1x4096xf32, #tpu.memory_space<vmem>>, vector<1x1x64xf32>,
    %c0_756 = arith.constant 0 : index
    %c374_757 = arith.constant 374 : index
    %835 = vector.load %arg16[%c0_756, %c374_757] : memref<1x1088xf32, #tpu.memory_space<vmem>>, vector<1x34xf32>
    %cst_758 = arith.constant 2.500000e-01 : f32
    %836 = vector.broadcast %cst_758 : f32 to vector<1x34xf32>
    %837 = arith.mulf %836, %835 : vector<1x34xf32>
    %c0_759 = arith.constant 0 : index
    %c408_760 = arith.constant 408 : index
    %838 = vector.load %arg16[%c0_759, %c408_760] : memref<1x1088xf32, #tpu.memory_space<vmem>>, vector<1x34xf32>
    %cst_761 = arith.constant 7.500000e-01 : f32
    %839 = vector.broadcast %cst_761 : f32 to vector<1x34xf32>
    %840 = arith.mulf %839, %838 : vector<1x34xf32>
    %841 = arith.addf %837, %840 : vector<1x34xf32>
    %cst_762 = arith.constant dense<0.000000e+00> : vector<1x64xf32>
    %842 = tpu.matmul %841, %576, %cst_762 {dimension_numbers = #tpu.dot_dimension_numbers<[1], [0], [0], [1], [0, 0, 1, 1], [], []>} : vector<1x34xf32>, vector<34x64xf32>, vector<1x64xf32> -> vector<1x64xf32>
    %c0_763 = arith.constant 0 : index
    %c0_764 = arith.constant 0 : index
    %c1536 = arith.constant 1536 : index
    %843 = vector.load %arg10[%c0_763, %c0_764, %c1536] : memref<1x1x4096xf32, #tpu.memory_space<vmem>>, vector<1x1x64xf32>
    %844 = vector.shape_cast %843 : vector<1x1x64xf32> to vector<1x64xf32>
    %845 = vector.shape_cast %842 : vector<1x64xf32> to vector<1x1x64xf32>
    tpu.vector_store %arg10[%c0_763, %c0_764, %c1536], %845 {strides = array<i32>} : memref<1x1x4096xf32, #tpu.memory_space<vmem>>, vector<1x1x64xf32>,
    %c0_765 = arith.constant 0 : index
    %c408_766 = arith.constant 408 : index
    %846 = vector.load %arg16[%c0_765, %c408_766] : memref<1x1088xf32, #tpu.memory_space<vmem>>, vector<1x34xf32>
    %cst_767 = arith.constant 7.500000e-01 : f32
    %847 = vector.broadcast %cst_767 : f32 to vector<1x34xf32>
    %848 = arith.mulf %847, %846 : vector<1x34xf32>
    %c0_768 = arith.constant 0 : index
    %c442_769 = arith.constant 442 : index
    %849 = vector.load %arg16[%c0_768, %c442_769] : memref<1x1088xf32, #tpu.memory_space<vmem>>, vector<1x34xf32>
    %cst_770 = arith.constant 2.500000e-01 : f32
    %850 = vector.broadcast %cst_770 : f32 to vector<1x34xf32>
    %851 = arith.mulf %850, %849 : vector<1x34xf32>
    %852 = arith.addf %848, %851 : vector<1x34xf32>
    %cst_771 = arith.constant dense<0.000000e+00> : vector<1x64xf32>
    %853 = tpu.matmul %852, %576, %cst_771 {dimension_numbers = #tpu.dot_dimension_numbers<[1], [0], [0], [1], [0, 0, 1, 1], [], []>} : vector<1x34xf32>, vector<34x64xf32>, vector<1x64xf32> -> vector<1x64xf32>
    %c0_772 = arith.constant 0 : index
    %c0_773 = arith.constant 0 : index
    %c1600 = arith.constant 1600 : index
    %854 = vector.load %arg10[%c0_772, %c0_773, %c1600] : memref<1x1x4096xf32, #tpu.memory_space<vmem>>, vector<1x1x64xf32>
    %855 = vector.shape_cast %854 : vector<1x1x64xf32> to vector<1x64xf32>
    %856 = vector.shape_cast %853 : vector<1x64xf32> to vector<1x1x64xf32>
    tpu.vector_store %arg10[%c0_772, %c0_773, %c1600], %856 {strides = array<i32>} : memref<1x1x4096xf32, #tpu.memory_space<vmem>>, vector<1x1x64xf32>,
    %c0_774 = arith.constant 0 : index
    %c408_775 = arith.constant 408 : index
    %857 = vector.load %arg16[%c0_774, %c408_775] : memref<1x1088xf32, #tpu.memory_space<vmem>>, vector<1x34xf32>
    %cst_776 = arith.constant 2.500000e-01 : f32
    %858 = vector.broadcast %cst_776 : f32 to vector<1x34xf32>
    %859 = arith.mulf %858, %857 : vector<1x34xf32>
    %c0_777 = arith.constant 0 : index
    %c442_778 = arith.constant 442 : index
    %860 = vector.load %arg16[%c0_777, %c442_778] : memref<1x1088xf32, #tpu.memory_space<vmem>>, vector<1x34xf32>
    %cst_779 = arith.constant 7.500000e-01 : f32
    %861 = vector.broadcast %cst_779 : f32 to vector<1x34xf32>
    %862 = arith.mulf %861, %860 : vector<1x34xf32>
    %863 = arith.addf %859, %862 : vector<1x34xf32>
    %cst_780 = arith.constant dense<0.000000e+00> : vector<1x64xf32>
    %864 = tpu.matmul %863, %576, %cst_780 {dimension_numbers = #tpu.dot_dimension_numbers<[1], [0], [0], [1], [0, 0, 1, 1], [], []>} : vector<1x34xf32>, vector<34x64xf32>, vector<1x64xf32> -> vector<1x64xf32>
    %c0_781 = arith.constant 0 : index
    %c0_782 = arith.constant 0 : index
    %c1664 = arith.constant 1664 : index
    %865 = vector.load %arg10[%c0_781, %c0_782, %c1664] : memref<1x1x4096xf32, #tpu.memory_space<vmem>>, vector<1x1x64xf32>
    %866 = vector.shape_cast %865 : vector<1x1x64xf32> to vector<1x64xf32>
    %867 = vector.shape_cast %864 : vector<1x64xf32> to vector<1x1x64xf32>
    tpu.vector_store %arg10[%c0_781, %c0_782, %c1664], %867 {strides = array<i32>} : memref<1x1x4096xf32, #tpu.memory_space<vmem>>, vector<1x1x64xf32>,
    %c0_783 = arith.constant 0 : index
    %c442_784 = arith.constant 442 : index
    %868 = vector.load %arg16[%c0_783, %c442_784] : memref<1x1088xf32, #tpu.memory_space<vmem>>, vector<1x34xf32>
    %cst_785 = arith.constant 7.500000e-01 : f32
    %869 = vector.broadcast %cst_785 : f32 to vector<1x34xf32>
    %870 = arith.mulf %869, %868 : vector<1x34xf32>
    %c0_786 = arith.constant 0 : index
    %c476_787 = arith.constant 476 : index
    %871 = vector.load %arg16[%c0_786, %c476_787] : memref<1x1088xf32, #tpu.memory_space<vmem>>, vector<1x34xf32>
    %cst_788 = arith.constant 2.500000e-01 : f32
    %872 = vector.broadcast %cst_788 : f32 to vector<1x34xf32>
    %873 = arith.mulf %872, %871 : vector<1x34xf32>
    %874 = arith.addf %870, %873 : vector<1x34xf32>
    %cst_789 = arith.constant dense<0.000000e+00> : vector<1x64xf32>
    %875 = tpu.matmul %874, %576, %cst_789 {dimension_numbers = #tpu.dot_dimension_numbers<[1], [0], [0], [1], [0, 0, 1, 1], [], []>} : vector<1x34xf32>, vector<34x64xf32>, vector<1x64xf32> -> vector<1x64xf32>
    %c0_790 = arith.constant 0 : index
    %c0_791 = arith.constant 0 : index
    %c1728 = arith.constant 1728 : index
    %876 = vector.load %arg10[%c0_790, %c0_791, %c1728] : memref<1x1x4096xf32, #tpu.memory_space<vmem>>, vector<1x1x64xf32>
    %877 = vector.shape_cast %876 : vector<1x1x64xf32> to vector<1x64xf32>
    %878 = vector.shape_cast %875 : vector<1x64xf32> to vector<1x1x64xf32>
    tpu.vector_store %arg10[%c0_790, %c0_791, %c1728], %878 {strides = array<i32>} : memref<1x1x4096xf32, #tpu.memory_space<vmem>>, vector<1x1x64xf32>,
    %c0_792 = arith.constant 0 : index
    %c442_793 = arith.constant 442 : index
    %879 = vector.load %arg16[%c0_792, %c442_793] : memref<1x1088xf32, #tpu.memory_space<vmem>>, vector<1x34xf32>
    %cst_794 = arith.constant 2.500000e-01 : f32
    %880 = vector.broadcast %cst_794 : f32 to vector<1x34xf32>
    %881 = arith.mulf %880, %879 : vector<1x34xf32>
    %c0_795 = arith.constant 0 : index
    %c476_796 = arith.constant 476 : index
    %882 = vector.load %arg16[%c0_795, %c476_796] : memref<1x1088xf32, #tpu.memory_space<vmem>>, vector<1x34xf32>
    %cst_797 = arith.constant 7.500000e-01 : f32
    %883 = vector.broadcast %cst_797 : f32 to vector<1x34xf32>
    %884 = arith.mulf %883, %882 : vector<1x34xf32>
    %885 = arith.addf %881, %884 : vector<1x34xf32>
    %cst_798 = arith.constant dense<0.000000e+00> : vector<1x64xf32>
    %886 = tpu.matmul %885, %576, %cst_798 {dimension_numbers = #tpu.dot_dimension_numbers<[1], [0], [0], [1], [0, 0, 1, 1], [], []>} : vector<1x34xf32>, vector<34x64xf32>, vector<1x64xf32> -> vector<1x64xf32>
    %c0_799 = arith.constant 0 : index
    %c0_800 = arith.constant 0 : index
    %c1792 = arith.constant 1792 : index
    %887 = vector.load %arg10[%c0_799, %c0_800, %c1792] : memref<1x1x4096xf32, #tpu.memory_space<vmem>>, vector<1x1x64xf32>
    %888 = vector.shape_cast %887 : vector<1x1x64xf32> to vector<1x64xf32>
    %889 = vector.shape_cast %886 : vector<1x64xf32> to vector<1x1x64xf32>
    tpu.vector_store %arg10[%c0_799, %c0_800, %c1792], %889 {strides = array<i32>} : memref<1x1x4096xf32, #tpu.memory_space<vmem>>, vector<1x1x64xf32>,
    %c0_801 = arith.constant 0 : index
    %c476_802 = arith.constant 476 : index
    %890 = vector.load %arg16[%c0_801, %c476_802] : memref<1x1088xf32, #tpu.memory_space<vmem>>, vector<1x34xf32>
    %cst_803 = arith.constant 7.500000e-01 : f32
    %891 = vector.broadcast %cst_803 : f32 to vector<1x34xf32>
    %892 = arith.mulf %891, %890 : vector<1x34xf32>
    %c0_804 = arith.constant 0 : index
    %c510_805 = arith.constant 510 : index
    %893 = vector.load %arg16[%c0_804, %c510_805] : memref<1x1088xf32, #tpu.memory_space<vmem>>, vector<1x34xf32>
    %cst_806 = arith.constant 2.500000e-01 : f32
    %894 = vector.broadcast %cst_806 : f32 to vector<1x34xf32>
    %895 = arith.mulf %894, %893 : vector<1x34xf32>
    %896 = arith.addf %892, %895 : vector<1x34xf32>
    %cst_807 = arith.constant dense<0.000000e+00> : vector<1x64xf32>
    %897 = tpu.matmul %896, %576, %cst_807 {dimension_numbers = #tpu.dot_dimension_numbers<[1], [0], [0], [1], [0, 0, 1, 1], [], []>} : vector<1x34xf32>, vector<34x64xf32>, vector<1x64xf32> -> vector<1x64xf32>
    %c0_808 = arith.constant 0 : index
    %c0_809 = arith.constant 0 : index
    %c1856 = arith.constant 1856 : index
    %898 = vector.load %arg10[%c0_808, %c0_809, %c1856] : memref<1x1x4096xf32, #tpu.memory_space<vmem>>, vector<1x1x64xf32>
    %899 = vector.shape_cast %898 : vector<1x1x64xf32> to vector<1x64xf32>
    %900 = vector.shape_cast %897 : vector<1x64xf32> to vector<1x1x64xf32>
    tpu.vector_store %arg10[%c0_808, %c0_809, %c1856], %900 {strides = array<i32>} : memref<1x1x4096xf32, #tpu.memory_space<vmem>>, vector<1x1x64xf32>,
    %c0_810 = arith.constant 0 : index
    %c476_811 = arith.constant 476 : index
    %901 = vector.load %arg16[%c0_810, %c476_811] : memref<1x1088xf32, #tpu.memory_space<vmem>>, vector<1x34xf32>
    %cst_812 = arith.constant 2.500000e-01 : f32
    %902 = vector.broadcast %cst_812 : f32 to vector<1x34xf32>
    %903 = arith.mulf %902, %901 : vector<1x34xf32>
    %c0_813 = arith.constant 0 : index
    %c510_814 = arith.constant 510 : index
    %904 = vector.load %arg16[%c0_813, %c510_814] : memref<1x1088xf32, #tpu.memory_space<vmem>>, vector<1x34xf32>
    %cst_815 = arith.constant 7.500000e-01 : f32
    %905 = vector.broadcast %cst_815 : f32 to vector<1x34xf32>
    %906 = arith.mulf %905, %904 : vector<1x34xf32>
    %907 = arith.addf %903, %906 : vector<1x34xf32>
    %cst_816 = arith.constant dense<0.000000e+00> : vector<1x64xf32>
    %908 = tpu.matmul %907, %576, %cst_816 {dimension_numbers = #tpu.dot_dimension_numbers<[1], [0], [0], [1], [0, 0, 1, 1], [], []>} : vector<1x34xf32>, vector<34x64xf32>, vector<1x64xf32> -> vector<1x64xf32>
    %c0_817 = arith.constant 0 : index
    %c0_818 = arith.constant 0 : index
    %c1920 = arith.constant 1920 : index
    %909 = vector.load %arg10[%c0_817, %c0_818, %c1920] : memref<1x1x4096xf32, #tpu.memory_space<vmem>>, vector<1x1x64xf32>
    %910 = vector.shape_cast %909 : vector<1x1x64xf32> to vector<1x64xf32>
    %911 = vector.shape_cast %908 : vector<1x64xf32> to vector<1x1x64xf32>
    tpu.vector_store %arg10[%c0_817, %c0_818, %c1920], %911 {strides = array<i32>} : memref<1x1x4096xf32, #tpu.memory_space<vmem>>, vector<1x1x64xf32>,
    %c0_819 = arith.constant 0 : index
    %c510_820 = arith.constant 510 : index
    %912 = vector.load %arg16[%c0_819, %c510_820] : memref<1x1088xf32, #tpu.memory_space<vmem>>, vector<1x34xf32>
    %cst_821 = arith.constant 7.500000e-01 : f32
    %913 = vector.broadcast %cst_821 : f32 to vector<1x34xf32>
    %914 = arith.mulf %913, %912 : vector<1x34xf32>
    %c0_822 = arith.constant 0 : index
    %c544_823 = arith.constant 544 : index
    %915 = vector.load %arg16[%c0_822, %c544_823] : memref<1x1088xf32, #tpu.memory_space<vmem>>, vector<1x34xf32>
    %cst_824 = arith.constant 2.500000e-01 : f32
    %916 = vector.broadcast %cst_824 : f32 to vector<1x34xf32>
    %917 = arith.mulf %916, %915 : vector<1x34xf32>
    %918 = arith.addf %914, %917 : vector<1x34xf32>
    %cst_825 = arith.constant dense<0.000000e+00> : vector<1x64xf32>
    %919 = tpu.matmul %918, %576, %cst_825 {dimension_numbers = #tpu.dot_dimension_numbers<[1], [0], [0], [1], [0, 0, 1, 1], [], []>} : vector<1x34xf32>, vector<34x64xf32>, vector<1x64xf32> -> vector<1x64xf32>
    %c0_826 = arith.constant 0 : index
    %c0_827 = arith.constant 0 : index
    %c1984 = arith.constant 1984 : index
    %920 = vector.load %arg10[%c0_826, %c0_827, %c1984] : memref<1x1x4096xf32, #tpu.memory_space<vmem>>, vector<1x1x64xf32>
    %921 = vector.shape_cast %920 : vector<1x1x64xf32> to vector<1x64xf32>
    %922 = vector.shape_cast %919 : vector<1x64xf32> to vector<1x1x64xf32>
    tpu.vector_store %arg10[%c0_826, %c0_827, %c1984], %922 {strides = array<i32>} : memref<1x1x4096xf32, #tpu.memory_space<vmem>>, vector<1x1x64xf32>,
    %c0_828 = arith.constant 0 : index
    %c510_829 = arith.constant 510 : index
    %923 = vector.load %arg16[%c0_828, %c510_829] : memref<1x1088xf32, #tpu.memory_space<vmem>>, vector<1x34xf32>
    %cst_830 = arith.constant 2.500000e-01 : f32
    %924 = vector.broadcast %cst_830 : f32 to vector<1x34xf32>
    %925 = arith.mulf %924, %923 : vector<1x34xf32>
    %c0_831 = arith.constant 0 : index
    %c544_832 = arith.constant 544 : index
    %926 = vector.load %arg16[%c0_831, %c544_832] : memref<1x1088xf32, #tpu.memory_space<vmem>>, vector<1x34xf32>
    %cst_833 = arith.constant 7.500000e-01 : f32
    %927 = vector.broadcast %cst_833 : f32 to vector<1x34xf32>
    %928 = arith.mulf %927, %926 : vector<1x34xf32>
    %929 = arith.addf %925, %928 : vector<1x34xf32>
    %cst_834 = arith.constant dense<0.000000e+00> : vector<1x64xf32>
    %930 = tpu.matmul %929, %576, %cst_834 {dimension_numbers = #tpu.dot_dimension_numbers<[1], [0], [0], [1], [0, 0, 1, 1], [], []>} : vector<1x34xf32>, vector<34x64xf32>, vector<1x64xf32> -> vector<1x64xf32>
    %c0_835 = arith.constant 0 : index
    %c0_836 = arith.constant 0 : index
    %c2048 = arith.constant 2048 : index
    %931 = vector.load %arg10[%c0_835, %c0_836, %c2048] : memref<1x1x4096xf32, #tpu.memory_space<vmem>>, vector<1x1x64xf32>
    %932 = vector.shape_cast %931 : vector<1x1x64xf32> to vector<1x64xf32>
    %933 = vector.shape_cast %930 : vector<1x64xf32> to vector<1x1x64xf32>
    tpu.vector_store %arg10[%c0_835, %c0_836, %c2048], %933 {strides = array<i32>} : memref<1x1x4096xf32, #tpu.memory_space<vmem>>, vector<1x1x64xf32>,
    %c0_837 = arith.constant 0 : index
    %c544_838 = arith.constant 544 : index
    %934 = vector.load %arg16[%c0_837, %c544_838] : memref<1x1088xf32, #tpu.memory_space<vmem>>, vector<1x34xf32>
    %cst_839 = arith.constant 7.500000e-01 : f32
    %935 = vector.broadcast %cst_839 : f32 to vector<1x34xf32>
    %936 = arith.mulf %935, %934 : vector<1x34xf32>
    %c0_840 = arith.constant 0 : index
    %c578_841 = arith.constant 578 : index
    %937 = vector.load %arg16[%c0_840, %c578_841] : memref<1x1088xf32, #tpu.memory_space<vmem>>, vector<1x34xf32>
    %cst_842 = arith.constant 2.500000e-01 : f32
    %938 = vector.broadcast %cst_842 : f32 to vector<1x34xf32>
    %939 = arith.mulf %938, %937 : vector<1x34xf32>
    %940 = arith.addf %936, %939 : vector<1x34xf32>
    %cst_843 = arith.constant dense<0.000000e+00> : vector<1x64xf32>
    %941 = tpu.matmul %940, %576, %cst_843 {dimension_numbers = #tpu.dot_dimension_numbers<[1], [0], [0], [1], [0, 0, 1, 1], [], []>} : vector<1x34xf32>, vector<34x64xf32>, vector<1x64xf32> -> vector<1x64xf32>
    %c0_844 = arith.constant 0 : index
    %c0_845 = arith.constant 0 : index
    %c2112 = arith.constant 2112 : index
    %942 = vector.load %arg10[%c0_844, %c0_845, %c2112] : memref<1x1x4096xf32, #tpu.memory_space<vmem>>, vector<1x1x64xf32>
    %943 = vector.shape_cast %942 : vector<1x1x64xf32> to vector<1x64xf32>
    %944 = vector.shape_cast %941 : vector<1x64xf32> to vector<1x1x64xf32>
    tpu.vector_store %arg10[%c0_844, %c0_845, %c2112], %944 {strides = array<i32>} : memref<1x1x4096xf32, #tpu.memory_space<vmem>>, vector<1x1x64xf32>,
    %c0_846 = arith.constant 0 : index
    %c544_847 = arith.constant 544 : index
    %945 = vector.load %arg16[%c0_846, %c544_847] : memref<1x1088xf32, #tpu.memory_space<vmem>>, vector<1x34xf32>
    %cst_848 = arith.constant 2.500000e-01 : f32
    %946 = vector.broadcast %cst_848 : f32 to vector<1x34xf32>
    %947 = arith.mulf %946, %945 : vector<1x34xf32>
    %c0_849 = arith.constant 0 : index
    %c578_850 = arith.constant 578 : index
    %948 = vector.load %arg16[%c0_849, %c578_850] : memref<1x1088xf32, #tpu.memory_space<vmem>>, vector<1x34xf32>
    %cst_851 = arith.constant 7.500000e-01 : f32
    %949 = vector.broadcast %cst_851 : f32 to vector<1x34xf32>
    %950 = arith.mulf %949, %948 : vector<1x34xf32>
    %951 = arith.addf %947, %950 : vector<1x34xf32>
    %cst_852 = arith.constant dense<0.000000e+00> : vector<1x64xf32>
    %952 = tpu.matmul %951, %576, %cst_852 {dimension_numbers = #tpu.dot_dimension_numbers<[1], [0], [0], [1], [0, 0, 1, 1], [], []>} : vector<1x34xf32>, vector<34x64xf32>, vector<1x64xf32> -> vector<1x64xf32>
    %c0_853 = arith.constant 0 : index
    %c0_854 = arith.constant 0 : index
    %c2176 = arith.constant 2176 : index
    %953 = vector.load %arg10[%c0_853, %c0_854, %c2176] : memref<1x1x4096xf32, #tpu.memory_space<vmem>>, vector<1x1x64xf32>
    %954 = vector.shape_cast %953 : vector<1x1x64xf32> to vector<1x64xf32>
    %955 = vector.shape_cast %952 : vector<1x64xf32> to vector<1x1x64xf32>
    tpu.vector_store %arg10[%c0_853, %c0_854, %c2176], %955 {strides = array<i32>} : memref<1x1x4096xf32, #tpu.memory_space<vmem>>, vector<1x1x64xf32>,
    %c0_855 = arith.constant 0 : index
    %c578_856 = arith.constant 578 : index
    %956 = vector.load %arg16[%c0_855, %c578_856] : memref<1x1088xf32, #tpu.memory_space<vmem>>, vector<1x34xf32>
    %cst_857 = arith.constant 7.500000e-01 : f32
    %957 = vector.broadcast %cst_857 : f32 to vector<1x34xf32>
    %958 = arith.mulf %957, %956 : vector<1x34xf32>
    %c0_858 = arith.constant 0 : index
    %c612_859 = arith.constant 612 : index
    %959 = vector.load %arg16[%c0_858, %c612_859] : memref<1x1088xf32, #tpu.memory_space<vmem>>, vector<1x34xf32>
    %cst_860 = arith.constant 2.500000e-01 : f32
    %960 = vector.broadcast %cst_860 : f32 to vector<1x34xf32>
    %961 = arith.mulf %960, %959 : vector<1x34xf32>
    %962 = arith.addf %958, %961 : vector<1x34xf32>
    %cst_861 = arith.constant dense<0.000000e+00> : vector<1x64xf32>
    %963 = tpu.matmul %962, %576, %cst_861 {dimension_numbers = #tpu.dot_dimension_numbers<[1], [0], [0], [1], [0, 0, 1, 1], [], []>} : vector<1x34xf32>, vector<34x64xf32>, vector<1x64xf32> -> vector<1x64xf32>
    %c0_862 = arith.constant 0 : index
    %c0_863 = arith.constant 0 : index
    %c2240 = arith.constant 2240 : index
    %964 = vector.load %arg10[%c0_862, %c0_863, %c2240] : memref<1x1x4096xf32, #tpu.memory_space<vmem>>, vector<1x1x64xf32>
    %965 = vector.shape_cast %964 : vector<1x1x64xf32> to vector<1x64xf32>
    %966 = vector.shape_cast %963 : vector<1x64xf32> to vector<1x1x64xf32>
    tpu.vector_store %arg10[%c0_862, %c0_863, %c2240], %966 {strides = array<i32>} : memref<1x1x4096xf32, #tpu.memory_space<vmem>>, vector<1x1x64xf32>,
    %c0_864 = arith.constant 0 : index
    %c578_865 = arith.constant 578 : index
    %967 = vector.load %arg16[%c0_864, %c578_865] : memref<1x1088xf32, #tpu.memory_space<vmem>>, vector<1x34xf32>
    %cst_866 = arith.constant 2.500000e-01 : f32
    %968 = vector.broadcast %cst_866 : f32 to vector<1x34xf32>
    %969 = arith.mulf %968, %967 : vector<1x34xf32>
    %c0_867 = arith.constant 0 : index
    %c612_868 = arith.constant 612 : index
    %970 = vector.load %arg16[%c0_867, %c612_868] : memref<1x1088xf32, #tpu.memory_space<vmem>>, vector<1x34xf32>
    %cst_869 = arith.constant 7.500000e-01 : f32
    %971 = vector.broadcast %cst_869 : f32 to vector<1x34xf32>
    %972 = arith.mulf %971, %970 : vector<1x34xf32>
    %973 = arith.addf %969, %972 : vector<1x34xf32>
    %cst_870 = arith.constant dense<0.000000e+00> : vector<1x64xf32>
    %974 = tpu.matmul %973, %576, %cst_870 {dimension_numbers = #tpu.dot_dimension_numbers<[1], [0], [0], [1], [0, 0, 1, 1], [], []>} : vector<1x34xf32>, vector<34x64xf32>, vector<1x64xf32> -> vector<1x64xf32>
    %c0_871 = arith.constant 0 : index
    %c0_872 = arith.constant 0 : index
    %c2304 = arith.constant 2304 : index
    %975 = vector.load %arg10[%c0_871, %c0_872, %c2304] : memref<1x1x4096xf32, #tpu.memory_space<vmem>>, vector<1x1x64xf32>
    %976 = vector.shape_cast %975 : vector<1x1x64xf32> to vector<1x64xf32>
    %977 = vector.shape_cast %974 : vector<1x64xf32> to vector<1x1x64xf32>
    tpu.vector_store %arg10[%c0_871, %c0_872, %c2304], %977 {strides = array<i32>} : memref<1x1x4096xf32, #tpu.memory_space<vmem>>, vector<1x1x64xf32>,
    %c0_873 = arith.constant 0 : index
    %c612_874 = arith.constant 612 : index
    %978 = vector.load %arg16[%c0_873, %c612_874] : memref<1x1088xf32, #tpu.memory_space<vmem>>, vector<1x34xf32>
    %cst_875 = arith.constant 7.500000e-01 : f32
    %979 = vector.broadcast %cst_875 : f32 to vector<1x34xf32>
    %980 = arith.mulf %979, %978 : vector<1x34xf32>
    %c0_876 = arith.constant 0 : index
    %c646_877 = arith.constant 646 : index
    %981 = vector.load %arg16[%c0_876, %c646_877] : memref<1x1088xf32, #tpu.memory_space<vmem>>, vector<1x34xf32>
    %cst_878 = arith.constant 2.500000e-01 : f32
    %982 = vector.broadcast %cst_878 : f32 to vector<1x34xf32>
    %983 = arith.mulf %982, %981 : vector<1x34xf32>
    %984 = arith.addf %980, %983 : vector<1x34xf32>
    %cst_879 = arith.constant dense<0.000000e+00> : vector<1x64xf32>
    %985 = tpu.matmul %984, %576, %cst_879 {dimension_numbers = #tpu.dot_dimension_numbers<[1], [0], [0], [1], [0, 0, 1, 1], [], []>} : vector<1x34xf32>, vector<34x64xf32>, vector<1x64xf32> -> vector<1x64xf32>
    %c0_880 = arith.constant 0 : index
    %c0_881 = arith.constant 0 : index
    %c2368 = arith.constant 2368 : index
    %986 = vector.load %arg10[%c0_880, %c0_881, %c2368] : memref<1x1x4096xf32, #tpu.memory_space<vmem>>, vector<1x1x64xf32>
    %987 = vector.shape_cast %986 : vector<1x1x64xf32> to vector<1x64xf32>
    %988 = vector.shape_cast %985 : vector<1x64xf32> to vector<1x1x64xf32>
    tpu.vector_store %arg10[%c0_880, %c0_881, %c2368], %988 {strides = array<i32>} : memref<1x1x4096xf32, #tpu.memory_space<vmem>>, vector<1x1x64xf32>,
    %c0_882 = arith.constant 0 : index
    %c612_883 = arith.constant 612 : index
    %989 = vector.load %arg16[%c0_882, %c612_883] : memref<1x1088xf32, #tpu.memory_space<vmem>>, vector<1x34xf32>
    %cst_884 = arith.constant 2.500000e-01 : f32
    %990 = vector.broadcast %cst_884 : f32 to vector<1x34xf32>
    %991 = arith.mulf %990, %989 : vector<1x34xf32>
    %c0_885 = arith.constant 0 : index
    %c646_886 = arith.constant 646 : index
    %992 = vector.load %arg16[%c0_885, %c646_886] : memref<1x1088xf32, #tpu.memory_space<vmem>>, vector<1x34xf32>
    %cst_887 = arith.constant 7.500000e-01 : f32
    %993 = vector.broadcast %cst_887 : f32 to vector<1x34xf32>
    %994 = arith.mulf %993, %992 : vector<1x34xf32>
    %995 = arith.addf %991, %994 : vector<1x34xf32>
    %cst_888 = arith.constant dense<0.000000e+00> : vector<1x64xf32>
    %996 = tpu.matmul %995, %576, %cst_888 {dimension_numbers = #tpu.dot_dimension_numbers<[1], [0], [0], [1], [0, 0, 1, 1], [], []>} : vector<1x34xf32>, vector<34x64xf32>, vector<1x64xf32> -> vector<1x64xf32>
    %c0_889 = arith.constant 0 : index
    %c0_890 = arith.constant 0 : index
    %c2432 = arith.constant 2432 : index
    %997 = vector.load %arg10[%c0_889, %c0_890, %c2432] : memref<1x1x4096xf32, #tpu.memory_space<vmem>>, vector<1x1x64xf32>
    %998 = vector.shape_cast %997 : vector<1x1x64xf32> to vector<1x64xf32>
    %999 = vector.shape_cast %996 : vector<1x64xf32> to vector<1x1x64xf32>
    tpu.vector_store %arg10[%c0_889, %c0_890, %c2432], %999 {strides = array<i32>} : memref<1x1x4096xf32, #tpu.memory_space<vmem>>, vector<1x1x64xf32>,
    %c0_891 = arith.constant 0 : index
    %c646_892 = arith.constant 646 : index
    %1000 = vector.load %arg16[%c0_891, %c646_892] : memref<1x1088xf32, #tpu.memory_space<vmem>>, vector<1x34xf32>
    %cst_893 = arith.constant 7.500000e-01 : f32
    %1001 = vector.broadcast %cst_893 : f32 to vector<1x34xf32>
    %1002 = arith.mulf %1001, %1000 : vector<1x34xf32>
    %c0_894 = arith.constant 0 : index
    %c680_895 = arith.constant 680 : index
    %1003 = vector.load %arg16[%c0_894, %c680_895] : memref<1x1088xf32, #tpu.memory_space<vmem>>, vector<1x34xf32>
    %cst_896 = arith.constant 2.500000e-01 : f32
    %1004 = vector.broadcast %cst_896 : f32 to vector<1x34xf32>
    %1005 = arith.mulf %1004, %1003 : vector<1x34xf32>
    %1006 = arith.addf %1002, %1005 : vector<1x34xf32>
    %cst_897 = arith.constant dense<0.000000e+00> : vector<1x64xf32>
    %1007 = tpu.matmul %1006, %576, %cst_897 {dimension_numbers = #tpu.dot_dimension_numbers<[1], [0], [0], [1], [0, 0, 1, 1], [], []>} : vector<1x34xf32>, vector<34x64xf32>, vector<1x64xf32> -> vector<1x64xf32>
    %c0_898 = arith.constant 0 : index
    %c0_899 = arith.constant 0 : index
    %c2496 = arith.constant 2496 : index
    %1008 = vector.load %arg10[%c0_898, %c0_899, %c2496] : memref<1x1x4096xf32, #tpu.memory_space<vmem>>, vector<1x1x64xf32>
    %1009 = vector.shape_cast %1008 : vector<1x1x64xf32> to vector<1x64xf32>
    %1010 = vector.shape_cast %1007 : vector<1x64xf32> to vector<1x1x64xf32>
    tpu.vector_store %arg10[%c0_898, %c0_899, %c2496], %1010 {strides = array<i32>} : memref<1x1x4096xf32, #tpu.memory_space<vmem>>, vector<1x1x64xf32>,
    %c0_900 = arith.constant 0 : index
    %c646_901 = arith.constant 646 : index
    %1011 = vector.load %arg16[%c0_900, %c646_901] : memref<1x1088xf32, #tpu.memory_space<vmem>>, vector<1x34xf32>
    %cst_902 = arith.constant 2.500000e-01 : f32
    %1012 = vector.broadcast %cst_902 : f32 to vector<1x34xf32>
    %1013 = arith.mulf %1012, %1011 : vector<1x34xf32>
    %c0_903 = arith.constant 0 : index
    %c680_904 = arith.constant 680 : index
    %1014 = vector.load %arg16[%c0_903, %c680_904] : memref<1x1088xf32, #tpu.memory_space<vmem>>, vector<1x34xf32>
    %cst_905 = arith.constant 7.500000e-01 : f32
    %1015 = vector.broadcast %cst_905 : f32 to vector<1x34xf32>
    %1016 = arith.mulf %1015, %1014 : vector<1x34xf32>
    %1017 = arith.addf %1013, %1016 : vector<1x34xf32>
    %cst_906 = arith.constant dense<0.000000e+00> : vector<1x64xf32>
    %1018 = tpu.matmul %1017, %576, %cst_906 {dimension_numbers = #tpu.dot_dimension_numbers<[1], [0], [0], [1], [0, 0, 1, 1], [], []>} : vector<1x34xf32>, vector<34x64xf32>, vector<1x64xf32> -> vector<1x64xf32>
    %c0_907 = arith.constant 0 : index
    %c0_908 = arith.constant 0 : index
    %c2560 = arith.constant 2560 : index
    %1019 = vector.load %arg10[%c0_907, %c0_908, %c2560] : memref<1x1x4096xf32, #tpu.memory_space<vmem>>, vector<1x1x64xf32>
    %1020 = vector.shape_cast %1019 : vector<1x1x64xf32> to vector<1x64xf32>
    %1021 = vector.shape_cast %1018 : vector<1x64xf32> to vector<1x1x64xf32>
    tpu.vector_store %arg10[%c0_907, %c0_908, %c2560], %1021 {strides = array<i32>} : memref<1x1x4096xf32, #tpu.memory_space<vmem>>, vector<1x1x64xf32>,
    %c0_909 = arith.constant 0 : index
    %c680_910 = arith.constant 680 : index
    %1022 = vector.load %arg16[%c0_909, %c680_910] : memref<1x1088xf32, #tpu.memory_space<vmem>>, vector<1x34xf32>
    %cst_911 = arith.constant 7.500000e-01 : f32
    %1023 = vector.broadcast %cst_911 : f32 to vector<1x34xf32>
    %1024 = arith.mulf %1023, %1022 : vector<1x34xf32>
    %c0_912 = arith.constant 0 : index
    %c714_913 = arith.constant 714 : index
    %1025 = vector.load %arg16[%c0_912, %c714_913] : memref<1x1088xf32, #tpu.memory_space<vmem>>, vector<1x34xf32>
    %cst_914 = arith.constant 2.500000e-01 : f32
    %1026 = vector.broadcast %cst_914 : f32 to vector<1x34xf32>
    %1027 = arith.mulf %1026, %1025 : vector<1x34xf32>
    %1028 = arith.addf %1024, %1027 : vector<1x34xf32>
    %cst_915 = arith.constant dense<0.000000e+00> : vector<1x64xf32>
    %1029 = tpu.matmul %1028, %576, %cst_915 {dimension_numbers = #tpu.dot_dimension_numbers<[1], [0], [0], [1], [0, 0, 1, 1], [], []>} : vector<1x34xf32>, vector<34x64xf32>, vector<1x64xf32> -> vector<1x64xf32>
    %c0_916 = arith.constant 0 : index
    %c0_917 = arith.constant 0 : index
    %c2624 = arith.constant 2624 : index
    %1030 = vector.load %arg10[%c0_916, %c0_917, %c2624] : memref<1x1x4096xf32, #tpu.memory_space<vmem>>, vector<1x1x64xf32>
    %1031 = vector.shape_cast %1030 : vector<1x1x64xf32> to vector<1x64xf32>
    %1032 = vector.shape_cast %1029 : vector<1x64xf32> to vector<1x1x64xf32>
    tpu.vector_store %arg10[%c0_916, %c0_917, %c2624], %1032 {strides = array<i32>} : memref<1x1x4096xf32, #tpu.memory_space<vmem>>, vector<1x1x64xf32>,
    %c0_918 = arith.constant 0 : index
    %c680_919 = arith.constant 680 : index
    %1033 = vector.load %arg16[%c0_918, %c680_919] : memref<1x1088xf32, #tpu.memory_space<vmem>>, vector<1x34xf32>
    %cst_920 = arith.constant 2.500000e-01 : f32
    %1034 = vector.broadcast %cst_920 : f32 to vector<1x34xf32>
    %1035 = arith.mulf %1034, %1033 : vector<1x34xf32>
    %c0_921 = arith.constant 0 : index
    %c714_922 = arith.constant 714 : index
    %1036 = vector.load %arg16[%c0_921, %c714_922] : memref<1x1088xf32, #tpu.memory_space<vmem>>, vector<1x34xf32>
    %cst_923 = arith.constant 7.500000e-01 : f32
    %1037 = vector.broadcast %cst_923 : f32 to vector<1x34xf32>
    %1038 = arith.mulf %1037, %1036 : vector<1x34xf32>
    %1039 = arith.addf %1035, %1038 : vector<1x34xf32>
    %cst_924 = arith.constant dense<0.000000e+00> : vector<1x64xf32>
    %1040 = tpu.matmul %1039, %576, %cst_924 {dimension_numbers = #tpu.dot_dimension_numbers<[1], [0], [0], [1], [0, 0, 1, 1], [], []>} : vector<1x34xf32>, vector<34x64xf32>, vector<1x64xf32> -> vector<1x64xf32>
    %c0_925 = arith.constant 0 : index
    %c0_926 = arith.constant 0 : index
    %c2688 = arith.constant 2688 : index
    %1041 = vector.load %arg10[%c0_925, %c0_926, %c2688] : memref<1x1x4096xf32, #tpu.memory_space<vmem>>, vector<1x1x64xf32>
    %1042 = vector.shape_cast %1041 : vector<1x1x64xf32> to vector<1x64xf32>
    %1043 = vector.shape_cast %1040 : vector<1x64xf32> to vector<1x1x64xf32>
    tpu.vector_store %arg10[%c0_925, %c0_926, %c2688], %1043 {strides = array<i32>} : memref<1x1x4096xf32, #tpu.memory_space<vmem>>, vector<1x1x64xf32>,
    %c0_927 = arith.constant 0 : index
    %c714_928 = arith.constant 714 : index
    %1044 = vector.load %arg16[%c0_927, %c714_928] : memref<1x1088xf32, #tpu.memory_space<vmem>>, vector<1x34xf32>
    %cst_929 = arith.constant 7.500000e-01 : f32
    %1045 = vector.broadcast %cst_929 : f32 to vector<1x34xf32>
    %1046 = arith.mulf %1045, %1044 : vector<1x34xf32>
    %c0_930 = arith.constant 0 : index
    %c748_931 = arith.constant 748 : index
    %1047 = vector.load %arg16[%c0_930, %c748_931] : memref<1x1088xf32, #tpu.memory_space<vmem>>, vector<1x34xf32>
    %cst_932 = arith.constant 2.500000e-01 : f32
    %1048 = vector.broadcast %cst_932 : f32 to vector<1x34xf32>
    %1049 = arith.mulf %1048, %1047 : vector<1x34xf32>
    %1050 = arith.addf %1046, %1049 : vector<1x34xf32>
    %cst_933 = arith.constant dense<0.000000e+00> : vector<1x64xf32>
    %1051 = tpu.matmul %1050, %576, %cst_933 {dimension_numbers = #tpu.dot_dimension_numbers<[1], [0], [0], [1], [0, 0, 1, 1], [], []>} : vector<1x34xf32>, vector<34x64xf32>, vector<1x64xf32> -> vector<1x64xf32>
    %c0_934 = arith.constant 0 : index
    %c0_935 = arith.constant 0 : index
    %c2752 = arith.constant 2752 : index
    %1052 = vector.load %arg10[%c0_934, %c0_935, %c2752] : memref<1x1x4096xf32, #tpu.memory_space<vmem>>, vector<1x1x64xf32>
    %1053 = vector.shape_cast %1052 : vector<1x1x64xf32> to vector<1x64xf32>
    %1054 = vector.shape_cast %1051 : vector<1x64xf32> to vector<1x1x64xf32>
    tpu.vector_store %arg10[%c0_934, %c0_935, %c2752], %1054 {strides = array<i32>} : memref<1x1x4096xf32, #tpu.memory_space<vmem>>, vector<1x1x64xf32>,
    %c0_936 = arith.constant 0 : index
    %c714_937 = arith.constant 714 : index
    %1055 = vector.load %arg16[%c0_936, %c714_937] : memref<1x1088xf32, #tpu.memory_space<vmem>>, vector<1x34xf32>
    %cst_938 = arith.constant 2.500000e-01 : f32
    %1056 = vector.broadcast %cst_938 : f32 to vector<1x34xf32>
    %1057 = arith.mulf %1056, %1055 : vector<1x34xf32>
    %c0_939 = arith.constant 0 : index
    %c748_940 = arith.constant 748 : index
    %1058 = vector.load %arg16[%c0_939, %c748_940] : memref<1x1088xf32, #tpu.memory_space<vmem>>, vector<1x34xf32>
    %cst_941 = arith.constant 7.500000e-01 : f32
    %1059 = vector.broadcast %cst_941 : f32 to vector<1x34xf32>
    %1060 = arith.mulf %1059, %1058 : vector<1x34xf32>
    %1061 = arith.addf %1057, %1060 : vector<1x34xf32>
    %cst_942 = arith.constant dense<0.000000e+00> : vector<1x64xf32>
    %1062 = tpu.matmul %1061, %576, %cst_942 {dimension_numbers = #tpu.dot_dimension_numbers<[1], [0], [0], [1], [0, 0, 1, 1], [], []>} : vector<1x34xf32>, vector<34x64xf32>, vector<1x64xf32> -> vector<1x64xf32>
    %c0_943 = arith.constant 0 : index
    %c0_944 = arith.constant 0 : index
    %c2816 = arith.constant 2816 : index
    %1063 = vector.load %arg10[%c0_943, %c0_944, %c2816] : memref<1x1x4096xf32, #tpu.memory_space<vmem>>, vector<1x1x64xf32>
    %1064 = vector.shape_cast %1063 : vector<1x1x64xf32> to vector<1x64xf32>
    %1065 = vector.shape_cast %1062 : vector<1x64xf32> to vector<1x1x64xf32>
    tpu.vector_store %arg10[%c0_943, %c0_944, %c2816], %1065 {strides = array<i32>} : memref<1x1x4096xf32, #tpu.memory_space<vmem>>, vector<1x1x64xf32>,
    %c0_945 = arith.constant 0 : index
    %c748_946 = arith.constant 748 : index
    %1066 = vector.load %arg16[%c0_945, %c748_946] : memref<1x1088xf32, #tpu.memory_space<vmem>>, vector<1x34xf32>
    %cst_947 = arith.constant 7.500000e-01 : f32
    %1067 = vector.broadcast %cst_947 : f32 to vector<1x34xf32>
    %1068 = arith.mulf %1067, %1066 : vector<1x34xf32>
    %c0_948 = arith.constant 0 : index
    %c782_949 = arith.constant 782 : index
    %1069 = vector.load %arg16[%c0_948, %c782_949] : memref<1x1088xf32, #tpu.memory_space<vmem>>, vector<1x34xf32>
    %cst_950 = arith.constant 2.500000e-01 : f32
    %1070 = vector.broadcast %cst_950 : f32 to vector<1x34xf32>
    %1071 = arith.mulf %1070, %1069 : vector<1x34xf32>
    %1072 = arith.addf %1068, %1071 : vector<1x34xf32>
    %cst_951 = arith.constant dense<0.000000e+00> : vector<1x64xf32>
    %1073 = tpu.matmul %1072, %576, %cst_951 {dimension_numbers = #tpu.dot_dimension_numbers<[1], [0], [0], [1], [0, 0, 1, 1], [], []>} : vector<1x34xf32>, vector<34x64xf32>, vector<1x64xf32> -> vector<1x64xf32>
    %c0_952 = arith.constant 0 : index
    %c0_953 = arith.constant 0 : index
    %c2880 = arith.constant 2880 : index
    %1074 = vector.load %arg10[%c0_952, %c0_953, %c2880] : memref<1x1x4096xf32, #tpu.memory_space<vmem>>, vector<1x1x64xf32>
    %1075 = vector.shape_cast %1074 : vector<1x1x64xf32> to vector<1x64xf32>
    %1076 = vector.shape_cast %1073 : vector<1x64xf32> to vector<1x1x64xf32>
    tpu.vector_store %arg10[%c0_952, %c0_953, %c2880], %1076 {strides = array<i32>} : memref<1x1x4096xf32, #tpu.memory_space<vmem>>, vector<1x1x64xf32>,
    %c0_954 = arith.constant 0 : index
    %c748_955 = arith.constant 748 : index
    %1077 = vector.load %arg16[%c0_954, %c748_955] : memref<1x1088xf32, #tpu.memory_space<vmem>>, vector<1x34xf32>
    %cst_956 = arith.constant 2.500000e-01 : f32
    %1078 = vector.broadcast %cst_956 : f32 to vector<1x34xf32>
    %1079 = arith.mulf %1078, %1077 : vector<1x34xf32>
    %c0_957 = arith.constant 0 : index
    %c782_958 = arith.constant 782 : index
    %1080 = vector.load %arg16[%c0_957, %c782_958] : memref<1x1088xf32, #tpu.memory_space<vmem>>, vector<1x34xf32>
    %cst_959 = arith.constant 7.500000e-01 : f32
    %1081 = vector.broadcast %cst_959 : f32 to vector<1x34xf32>
    %1082 = arith.mulf %1081, %1080 : vector<1x34xf32>
    %1083 = arith.addf %1079, %1082 : vector<1x34xf32>
    %cst_960 = arith.constant dense<0.000000e+00> : vector<1x64xf32>
    %1084 = tpu.matmul %1083, %576, %cst_960 {dimension_numbers = #tpu.dot_dimension_numbers<[1], [0], [0], [1], [0, 0, 1, 1], [], []>} : vector<1x34xf32>, vector<34x64xf32>, vector<1x64xf32> -> vector<1x64xf32>
    %c0_961 = arith.constant 0 : index
    %c0_962 = arith.constant 0 : index
    %c2944 = arith.constant 2944 : index
    %1085 = vector.load %arg10[%c0_961, %c0_962, %c2944] : memref<1x1x4096xf32, #tpu.memory_space<vmem>>, vector<1x1x64xf32>
    %1086 = vector.shape_cast %1085 : vector<1x1x64xf32> to vector<1x64xf32>
    %1087 = vector.shape_cast %1084 : vector<1x64xf32> to vector<1x1x64xf32>
    tpu.vector_store %arg10[%c0_961, %c0_962, %c2944], %1087 {strides = array<i32>} : memref<1x1x4096xf32, #tpu.memory_space<vmem>>, vector<1x1x64xf32>,
    %c0_963 = arith.constant 0 : index
    %c782_964 = arith.constant 782 : index
    %1088 = vector.load %arg16[%c0_963, %c782_964] : memref<1x1088xf32, #tpu.memory_space<vmem>>, vector<1x34xf32>
    %cst_965 = arith.constant 7.500000e-01 : f32
    %1089 = vector.broadcast %cst_965 : f32 to vector<1x34xf32>
    %1090 = arith.mulf %1089, %1088 : vector<1x34xf32>
    %c0_966 = arith.constant 0 : index
    %c816_967 = arith.constant 816 : index
    %1091 = vector.load %arg16[%c0_966, %c816_967] : memref<1x1088xf32, #tpu.memory_space<vmem>>, vector<1x34xf32>
    %cst_968 = arith.constant 2.500000e-01 : f32
    %1092 = vector.broadcast %cst_968 : f32 to vector<1x34xf32>
    %1093 = arith.mulf %1092, %1091 : vector<1x34xf32>
    %1094 = arith.addf %1090, %1093 : vector<1x34xf32>
    %cst_969 = arith.constant dense<0.000000e+00> : vector<1x64xf32>
    %1095 = tpu.matmul %1094, %576, %cst_969 {dimension_numbers = #tpu.dot_dimension_numbers<[1], [0], [0], [1], [0, 0, 1, 1], [], []>} : vector<1x34xf32>, vector<34x64xf32>, vector<1x64xf32> -> vector<1x64xf32>
    %c0_970 = arith.constant 0 : index
    %c0_971 = arith.constant 0 : index
    %c3008 = arith.constant 3008 : index
    %1096 = vector.load %arg10[%c0_970, %c0_971, %c3008] : memref<1x1x4096xf32, #tpu.memory_space<vmem>>, vector<1x1x64xf32>
    %1097 = vector.shape_cast %1096 : vector<1x1x64xf32> to vector<1x64xf32>
    %1098 = vector.shape_cast %1095 : vector<1x64xf32> to vector<1x1x64xf32>
    tpu.vector_store %arg10[%c0_970, %c0_971, %c3008], %1098 {strides = array<i32>} : memref<1x1x4096xf32, #tpu.memory_space<vmem>>, vector<1x1x64xf32>,
    %c0_972 = arith.constant 0 : index
    %c782_973 = arith.constant 782 : index
    %1099 = vector.load %arg16[%c0_972, %c782_973] : memref<1x1088xf32, #tpu.memory_space<vmem>>, vector<1x34xf32>
    %cst_974 = arith.constant 2.500000e-01 : f32
    %1100 = vector.broadcast %cst_974 : f32 to vector<1x34xf32>
    %1101 = arith.mulf %1100, %1099 : vector<1x34xf32>
    %c0_975 = arith.constant 0 : index
    %c816_976 = arith.constant 816 : index
    %1102 = vector.load %arg16[%c0_975, %c816_976] : memref<1x1088xf32, #tpu.memory_space<vmem>>, vector<1x34xf32>
    %cst_977 = arith.constant 7.500000e-01 : f32
    %1103 = vector.broadcast %cst_977 : f32 to vector<1x34xf32>
    %1104 = arith.mulf %1103, %1102 : vector<1x34xf32>
    %1105 = arith.addf %1101, %1104 : vector<1x34xf32>
    %cst_978 = arith.constant dense<0.000000e+00> : vector<1x64xf32>
    %1106 = tpu.matmul %1105, %576, %cst_978 {dimension_numbers = #tpu.dot_dimension_numbers<[1], [0], [0], [1], [0, 0, 1, 1], [], []>} : vector<1x34xf32>, vector<34x64xf32>, vector<1x64xf32> -> vector<1x64xf32>
    %c0_979 = arith.constant 0 : index
    %c0_980 = arith.constant 0 : index
    %c3072 = arith.constant 3072 : index
    %1107 = vector.load %arg10[%c0_979, %c0_980, %c3072] : memref<1x1x4096xf32, #tpu.memory_space<vmem>>, vector<1x1x64xf32>
    %1108 = vector.shape_cast %1107 : vector<1x1x64xf32> to vector<1x64xf32>
    %1109 = vector.shape_cast %1106 : vector<1x64xf32> to vector<1x1x64xf32>
    tpu.vector_store %arg10[%c0_979, %c0_980, %c3072], %1109 {strides = array<i32>} : memref<1x1x4096xf32, #tpu.memory_space<vmem>>, vector<1x1x64xf32>,
    %c0_981 = arith.constant 0 : index
    %c816_982 = arith.constant 816 : index
    %1110 = vector.load %arg16[%c0_981, %c816_982] : memref<1x1088xf32, #tpu.memory_space<vmem>>, vector<1x34xf32>
    %cst_983 = arith.constant 7.500000e-01 : f32
    %1111 = vector.broadcast %cst_983 : f32 to vector<1x34xf32>
    %1112 = arith.mulf %1111, %1110 : vector<1x34xf32>
    %c0_984 = arith.constant 0 : index
    %c850_985 = arith.constant 850 : index
    %1113 = vector.load %arg16[%c0_984, %c850_985] : memref<1x1088xf32, #tpu.memory_space<vmem>>, vector<1x34xf32>
    %cst_986 = arith.constant 2.500000e-01 : f32
    %1114 = vector.broadcast %cst_986 : f32 to vector<1x34xf32>
    %1115 = arith.mulf %1114, %1113 : vector<1x34xf32>
    %1116 = arith.addf %1112, %1115 : vector<1x34xf32>
    %cst_987 = arith.constant dense<0.000000e+00> : vector<1x64xf32>
    %1117 = tpu.matmul %1116, %576, %cst_987 {dimension_numbers = #tpu.dot_dimension_numbers<[1], [0], [0], [1], [0, 0, 1, 1], [], []>} : vector<1x34xf32>, vector<34x64xf32>, vector<1x64xf32> -> vector<1x64xf32>
    %c0_988 = arith.constant 0 : index
    %c0_989 = arith.constant 0 : index
    %c3136 = arith.constant 3136 : index
    %1118 = vector.load %arg10[%c0_988, %c0_989, %c3136] : memref<1x1x4096xf32, #tpu.memory_space<vmem>>, vector<1x1x64xf32>
    %1119 = vector.shape_cast %1118 : vector<1x1x64xf32> to vector<1x64xf32>
    %1120 = vector.shape_cast %1117 : vector<1x64xf32> to vector<1x1x64xf32>
    tpu.vector_store %arg10[%c0_988, %c0_989, %c3136], %1120 {strides = array<i32>} : memref<1x1x4096xf32, #tpu.memory_space<vmem>>, vector<1x1x64xf32>,
    %c0_990 = arith.constant 0 : index
    %c816_991 = arith.constant 816 : index
    %1121 = vector.load %arg16[%c0_990, %c816_991] : memref<1x1088xf32, #tpu.memory_space<vmem>>, vector<1x34xf32>
    %cst_992 = arith.constant 2.500000e-01 : f32
    %1122 = vector.broadcast %cst_992 : f32 to vector<1x34xf32>
    %1123 = arith.mulf %1122, %1121 : vector<1x34xf32>
    %c0_993 = arith.constant 0 : index
    %c850_994 = arith.constant 850 : index
    %1124 = vector.load %arg16[%c0_993, %c850_994] : memref<1x1088xf32, #tpu.memory_space<vmem>>, vector<1x34xf32>
    %cst_995 = arith.constant 7.500000e-01 : f32
    %1125 = vector.broadcast %cst_995 : f32 to vector<1x34xf32>
    %1126 = arith.mulf %1125, %1124 : vector<1x34xf32>
    %1127 = arith.addf %1123, %1126 : vector<1x34xf32>
    %cst_996 = arith.constant dense<0.000000e+00> : vector<1x64xf32>
    %1128 = tpu.matmul %1127, %576, %cst_996 {dimension_numbers = #tpu.dot_dimension_numbers<[1], [0], [0], [1], [0, 0, 1, 1], [], []>} : vector<1x34xf32>, vector<34x64xf32>, vector<1x64xf32> -> vector<1x64xf32>
    %c0_997 = arith.constant 0 : index
    %c0_998 = arith.constant 0 : index
    %c3200 = arith.constant 3200 : index
    %1129 = vector.load %arg10[%c0_997, %c0_998, %c3200] : memref<1x1x4096xf32, #tpu.memory_space<vmem>>, vector<1x1x64xf32>
    %1130 = vector.shape_cast %1129 : vector<1x1x64xf32> to vector<1x64xf32>
    %1131 = vector.shape_cast %1128 : vector<1x64xf32> to vector<1x1x64xf32>
    tpu.vector_store %arg10[%c0_997, %c0_998, %c3200], %1131 {strides = array<i32>} : memref<1x1x4096xf32, #tpu.memory_space<vmem>>, vector<1x1x64xf32>,
    %c0_999 = arith.constant 0 : index
    %c850_1000 = arith.constant 850 : index
    %1132 = vector.load %arg16[%c0_999, %c850_1000] : memref<1x1088xf32, #tpu.memory_space<vmem>>, vector<1x34xf32>
    %cst_1001 = arith.constant 7.500000e-01 : f32
    %1133 = vector.broadcast %cst_1001 : f32 to vector<1x34xf32>
    %1134 = arith.mulf %1133, %1132 : vector<1x34xf32>
    %c0_1002 = arith.constant 0 : index
    %c884_1003 = arith.constant 884 : index
    %1135 = vector.load %arg16[%c0_1002, %c884_1003] : memref<1x1088xf32, #tpu.memory_space<vmem>>, vector<1x34xf32>
    %cst_1004 = arith.constant 2.500000e-01 : f32
    %1136 = vector.broadcast %cst_1004 : f32 to vector<1x34xf32>
    %1137 = arith.mulf %1136, %1135 : vector<1x34xf32>
    %1138 = arith.addf %1134, %1137 : vector<1x34xf32>
    %cst_1005 = arith.constant dense<0.000000e+00> : vector<1x64xf32>
    %1139 = tpu.matmul %1138, %576, %cst_1005 {dimension_numbers = #tpu.dot_dimension_numbers<[1], [0], [0], [1], [0, 0, 1, 1], [], []>} : vector<1x34xf32>, vector<34x64xf32>, vector<1x64xf32> -> vector<1x64xf32>
    %c0_1006 = arith.constant 0 : index
    %c0_1007 = arith.constant 0 : index
    %c3264 = arith.constant 3264 : index
    %1140 = vector.load %arg10[%c0_1006, %c0_1007, %c3264] : memref<1x1x4096xf32, #tpu.memory_space<vmem>>, vector<1x1x64xf32>
    %1141 = vector.shape_cast %1140 : vector<1x1x64xf32> to vector<1x64xf32>
    %1142 = vector.shape_cast %1139 : vector<1x64xf32> to vector<1x1x64xf32>
    tpu.vector_store %arg10[%c0_1006, %c0_1007, %c3264], %1142 {strides = array<i32>} : memref<1x1x4096xf32, #tpu.memory_space<vmem>>, vector<1x1x64xf32>,
    %c0_1008 = arith.constant 0 : index
    %c850_1009 = arith.constant 850 : index
    %1143 = vector.load %arg16[%c0_1008, %c850_1009] : memref<1x1088xf32, #tpu.memory_space<vmem>>, vector<1x34xf32>
    %cst_1010 = arith.constant 2.500000e-01 : f32
    %1144 = vector.broadcast %cst_1010 : f32 to vector<1x34xf32>
    %1145 = arith.mulf %1144, %1143 : vector<1x34xf32>
    %c0_1011 = arith.constant 0 : index
    %c884_1012 = arith.constant 884 : index
    %1146 = vector.load %arg16[%c0_1011, %c884_1012] : memref<1x1088xf32, #tpu.memory_space<vmem>>, vector<1x34xf32>
    %cst_1013 = arith.constant 7.500000e-01 : f32
    %1147 = vector.broadcast %cst_1013 : f32 to vector<1x34xf32>
    %1148 = arith.mulf %1147, %1146 : vector<1x34xf32>
    %1149 = arith.addf %1145, %1148 : vector<1x34xf32>
    %cst_1014 = arith.constant dense<0.000000e+00> : vector<1x64xf32>
    %1150 = tpu.matmul %1149, %576, %cst_1014 {dimension_numbers = #tpu.dot_dimension_numbers<[1], [0], [0], [1], [0, 0, 1, 1], [], []>} : vector<1x34xf32>, vector<34x64xf32>, vector<1x64xf32> -> vector<1x64xf32>
    %c0_1015 = arith.constant 0 : index
    %c0_1016 = arith.constant 0 : index
    %c3328 = arith.constant 3328 : index
    %1151 = vector.load %arg10[%c0_1015, %c0_1016, %c3328] : memref<1x1x4096xf32, #tpu.memory_space<vmem>>, vector<1x1x64xf32>
    %1152 = vector.shape_cast %1151 : vector<1x1x64xf32> to vector<1x64xf32>
    %1153 = vector.shape_cast %1150 : vector<1x64xf32> to vector<1x1x64xf32>
    tpu.vector_store %arg10[%c0_1015, %c0_1016, %c3328], %1153 {strides = array<i32>} : memref<1x1x4096xf32, #tpu.memory_space<vmem>>, vector<1x1x64xf32>,
    %c0_1017 = arith.constant 0 : index
    %c884_1018 = arith.constant 884 : index
    %1154 = vector.load %arg16[%c0_1017, %c884_1018] : memref<1x1088xf32, #tpu.memory_space<vmem>>, vector<1x34xf32>
    %cst_1019 = arith.constant 7.500000e-01 : f32
    %1155 = vector.broadcast %cst_1019 : f32 to vector<1x34xf32>
    %1156 = arith.mulf %1155, %1154 : vector<1x34xf32>
    %c0_1020 = arith.constant 0 : index
    %c918_1021 = arith.constant 918 : index
    %1157 = vector.load %arg16[%c0_1020, %c918_1021] : memref<1x1088xf32, #tpu.memory_space<vmem>>, vector<1x34xf32>
    %cst_1022 = arith.constant 2.500000e-01 : f32
    %1158 = vector.broadcast %cst_1022 : f32 to vector<1x34xf32>
    %1159 = arith.mulf %1158, %1157 : vector<1x34xf32>
    %1160 = arith.addf %1156, %1159 : vector<1x34xf32>
    %cst_1023 = arith.constant dense<0.000000e+00> : vector<1x64xf32>
    %1161 = tpu.matmul %1160, %576, %cst_1023 {dimension_numbers = #tpu.dot_dimension_numbers<[1], [0], [0], [1], [0, 0, 1, 1], [], []>} : vector<1x34xf32>, vector<34x64xf32>, vector<1x64xf32> -> vector<1x64xf32>
    %c0_1024 = arith.constant 0 : index
    %c0_1025 = arith.constant 0 : index
    %c3392 = arith.constant 3392 : index
    %1162 = vector.load %arg10[%c0_1024, %c0_1025, %c3392] : memref<1x1x4096xf32, #tpu.memory_space<vmem>>, vector<1x1x64xf32>
    %1163 = vector.shape_cast %1162 : vector<1x1x64xf32> to vector<1x64xf32>
    %1164 = vector.shape_cast %1161 : vector<1x64xf32> to vector<1x1x64xf32>
    tpu.vector_store %arg10[%c0_1024, %c0_1025, %c3392], %1164 {strides = array<i32>} : memref<1x1x4096xf32, #tpu.memory_space<vmem>>, vector<1x1x64xf32>,
    %c0_1026 = arith.constant 0 : index
    %c884_1027 = arith.constant 884 : index
    %1165 = vector.load %arg16[%c0_1026, %c884_1027] : memref<1x1088xf32, #tpu.memory_space<vmem>>, vector<1x34xf32>
    %cst_1028 = arith.constant 2.500000e-01 : f32
    %1166 = vector.broadcast %cst_1028 : f32 to vector<1x34xf32>
    %1167 = arith.mulf %1166, %1165 : vector<1x34xf32>
    %c0_1029 = arith.constant 0 : index
    %c918_1030 = arith.constant 918 : index
    %1168 = vector.load %arg16[%c0_1029, %c918_1030] : memref<1x1088xf32, #tpu.memory_space<vmem>>, vector<1x34xf32>
    %cst_1031 = arith.constant 7.500000e-01 : f32
    %1169 = vector.broadcast %cst_1031 : f32 to vector<1x34xf32>
    %1170 = arith.mulf %1169, %1168 : vector<1x34xf32>
    %1171 = arith.addf %1167, %1170 : vector<1x34xf32>
    %cst_1032 = arith.constant dense<0.000000e+00> : vector<1x64xf32>
    %1172 = tpu.matmul %1171, %576, %cst_1032 {dimension_numbers = #tpu.dot_dimension_numbers<[1], [0], [0], [1], [0, 0, 1, 1], [], []>} : vector<1x34xf32>, vector<34x64xf32>, vector<1x64xf32> -> vector<1x64xf32>
    %c0_1033 = arith.constant 0 : index
    %c0_1034 = arith.constant 0 : index
    %c3456 = arith.constant 3456 : index
    %1173 = vector.load %arg10[%c0_1033, %c0_1034, %c3456] : memref<1x1x4096xf32, #tpu.memory_space<vmem>>, vector<1x1x64xf32>
    %1174 = vector.shape_cast %1173 : vector<1x1x64xf32> to vector<1x64xf32>
    %1175 = vector.shape_cast %1172 : vector<1x64xf32> to vector<1x1x64xf32>
    tpu.vector_store %arg10[%c0_1033, %c0_1034, %c3456], %1175 {strides = array<i32>} : memref<1x1x4096xf32, #tpu.memory_space<vmem>>, vector<1x1x64xf32>,
    %c0_1035 = arith.constant 0 : index
    %c918_1036 = arith.constant 918 : index
    %1176 = vector.load %arg16[%c0_1035, %c918_1036] : memref<1x1088xf32, #tpu.memory_space<vmem>>, vector<1x34xf32>
    %cst_1037 = arith.constant 7.500000e-01 : f32
    %1177 = vector.broadcast %cst_1037 : f32 to vector<1x34xf32>
    %1178 = arith.mulf %1177, %1176 : vector<1x34xf32>
    %c0_1038 = arith.constant 0 : index
    %c952_1039 = arith.constant 952 : index
    %1179 = vector.load %arg16[%c0_1038, %c952_1039] : memref<1x1088xf32, #tpu.memory_space<vmem>>, vector<1x34xf32>
    %cst_1040 = arith.constant 2.500000e-01 : f32
    %1180 = vector.broadcast %cst_1040 : f32 to vector<1x34xf32>
    %1181 = arith.mulf %1180, %1179 : vector<1x34xf32>
    %1182 = arith.addf %1178, %1181 : vector<1x34xf32>
    %cst_1041 = arith.constant dense<0.000000e+00> : vector<1x64xf32>
    %1183 = tpu.matmul %1182, %576, %cst_1041 {dimension_numbers = #tpu.dot_dimension_numbers<[1], [0], [0], [1], [0, 0, 1, 1], [], []>} : vector<1x34xf32>, vector<34x64xf32>, vector<1x64xf32> -> vector<1x64xf32>
    %c0_1042 = arith.constant 0 : index
    %c0_1043 = arith.constant 0 : index
    %c3520 = arith.constant 3520 : index
    %1184 = vector.load %arg10[%c0_1042, %c0_1043, %c3520] : memref<1x1x4096xf32, #tpu.memory_space<vmem>>, vector<1x1x64xf32>
    %1185 = vector.shape_cast %1184 : vector<1x1x64xf32> to vector<1x64xf32>
    %1186 = vector.shape_cast %1183 : vector<1x64xf32> to vector<1x1x64xf32>
    tpu.vector_store %arg10[%c0_1042, %c0_1043, %c3520], %1186 {strides = array<i32>} : memref<1x1x4096xf32, #tpu.memory_space<vmem>>, vector<1x1x64xf32>,
    %c0_1044 = arith.constant 0 : index
    %c918_1045 = arith.constant 918 : index
    %1187 = vector.load %arg16[%c0_1044, %c918_1045] : memref<1x1088xf32, #tpu.memory_space<vmem>>, vector<1x34xf32>
    %cst_1046 = arith.constant 2.500000e-01 : f32
    %1188 = vector.broadcast %cst_1046 : f32 to vector<1x34xf32>
    %1189 = arith.mulf %1188, %1187 : vector<1x34xf32>
    %c0_1047 = arith.constant 0 : index
    %c952_1048 = arith.constant 952 : index
    %1190 = vector.load %arg16[%c0_1047, %c952_1048] : memref<1x1088xf32, #tpu.memory_space<vmem>>, vector<1x34xf32>
    %cst_1049 = arith.constant 7.500000e-01 : f32
    %1191 = vector.broadcast %cst_1049 : f32 to vector<1x34xf32>
    %1192 = arith.mulf %1191, %1190 : vector<1x34xf32>
    %1193 = arith.addf %1189, %1192 : vector<1x34xf32>
    %cst_1050 = arith.constant dense<0.000000e+00> : vector<1x64xf32>
    %1194 = tpu.matmul %1193, %576, %cst_1050 {dimension_numbers = #tpu.dot_dimension_numbers<[1], [0], [0], [1], [0, 0, 1, 1], [], []>} : vector<1x34xf32>, vector<34x64xf32>, vector<1x64xf32> -> vector<1x64xf32>
    %c0_1051 = arith.constant 0 : index
    %c0_1052 = arith.constant 0 : index
    %c3584 = arith.constant 3584 : index
    %1195 = vector.load %arg10[%c0_1051, %c0_1052, %c3584] : memref<1x1x4096xf32, #tpu.memory_space<vmem>>, vector<1x1x64xf32>
    %1196 = vector.shape_cast %1195 : vector<1x1x64xf32> to vector<1x64xf32>
    %1197 = vector.shape_cast %1194 : vector<1x64xf32> to vector<1x1x64xf32>
    tpu.vector_store %arg10[%c0_1051, %c0_1052, %c3584], %1197 {strides = array<i32>} : memref<1x1x4096xf32, #tpu.memory_space<vmem>>, vector<1x1x64xf32>,
    %c0_1053 = arith.constant 0 : index
    %c952_1054 = arith.constant 952 : index
    %1198 = vector.load %arg16[%c0_1053, %c952_1054] : memref<1x1088xf32, #tpu.memory_space<vmem>>, vector<1x34xf32>
    %cst_1055 = arith.constant 7.500000e-01 : f32
    %1199 = vector.broadcast %cst_1055 : f32 to vector<1x34xf32>
    %1200 = arith.mulf %1199, %1198 : vector<1x34xf32>
    %c0_1056 = arith.constant 0 : index
    %c986_1057 = arith.constant 986 : index
    %1201 = vector.load %arg16[%c0_1056, %c986_1057] : memref<1x1088xf32, #tpu.memory_space<vmem>>, vector<1x34xf32>
    %cst_1058 = arith.constant 2.500000e-01 : f32
    %1202 = vector.broadcast %cst_1058 : f32 to vector<1x34xf32>
    %1203 = arith.mulf %1202, %1201 : vector<1x34xf32>
    %1204 = arith.addf %1200, %1203 : vector<1x34xf32>
    %cst_1059 = arith.constant dense<0.000000e+00> : vector<1x64xf32>
    %1205 = tpu.matmul %1204, %576, %cst_1059 {dimension_numbers = #tpu.dot_dimension_numbers<[1], [0], [0], [1], [0, 0, 1, 1], [], []>} : vector<1x34xf32>, vector<34x64xf32>, vector<1x64xf32> -> vector<1x64xf32>
    %c0_1060 = arith.constant 0 : index
    %c0_1061 = arith.constant 0 : index
    %c3648 = arith.constant 3648 : index
    %1206 = vector.load %arg10[%c0_1060, %c0_1061, %c3648] : memref<1x1x4096xf32, #tpu.memory_space<vmem>>, vector<1x1x64xf32>
    %1207 = vector.shape_cast %1206 : vector<1x1x64xf32> to vector<1x64xf32>
    %1208 = vector.shape_cast %1205 : vector<1x64xf32> to vector<1x1x64xf32>
    tpu.vector_store %arg10[%c0_1060, %c0_1061, %c3648], %1208 {strides = array<i32>} : memref<1x1x4096xf32, #tpu.memory_space<vmem>>, vector<1x1x64xf32>,
    %c0_1062 = arith.constant 0 : index
    %c952_1063 = arith.constant 952 : index
    %1209 = vector.load %arg16[%c0_1062, %c952_1063] : memref<1x1088xf32, #tpu.memory_space<vmem>>, vector<1x34xf32>
    %cst_1064 = arith.constant 2.500000e-01 : f32
    %1210 = vector.broadcast %cst_1064 : f32 to vector<1x34xf32>
    %1211 = arith.mulf %1210, %1209 : vector<1x34xf32>
    %c0_1065 = arith.constant 0 : index
    %c986_1066 = arith.constant 986 : index
    %1212 = vector.load %arg16[%c0_1065, %c986_1066] : memref<1x1088xf32, #tpu.memory_space<vmem>>, vector<1x34xf32>
    %cst_1067 = arith.constant 7.500000e-01 : f32
    %1213 = vector.broadcast %cst_1067 : f32 to vector<1x34xf32>
    %1214 = arith.mulf %1213, %1212 : vector<1x34xf32>
    %1215 = arith.addf %1211, %1214 : vector<1x34xf32>
    %cst_1068 = arith.constant dense<0.000000e+00> : vector<1x64xf32>
    %1216 = tpu.matmul %1215, %576, %cst_1068 {dimension_numbers = #tpu.dot_dimension_numbers<[1], [0], [0], [1], [0, 0, 1, 1], [], []>} : vector<1x34xf32>, vector<34x64xf32>, vector<1x64xf32> -> vector<1x64xf32>
    %c0_1069 = arith.constant 0 : index
    %c0_1070 = arith.constant 0 : index
    %c3712 = arith.constant 3712 : index
    %1217 = vector.load %arg10[%c0_1069, %c0_1070, %c3712] : memref<1x1x4096xf32, #tpu.memory_space<vmem>>, vector<1x1x64xf32>
    %1218 = vector.shape_cast %1217 : vector<1x1x64xf32> to vector<1x64xf32>
    %1219 = vector.shape_cast %1216 : vector<1x64xf32> to vector<1x1x64xf32>
    tpu.vector_store %arg10[%c0_1069, %c0_1070, %c3712], %1219 {strides = array<i32>} : memref<1x1x4096xf32, #tpu.memory_space<vmem>>, vector<1x1x64xf32>,
    %c0_1071 = arith.constant 0 : index
    %c986_1072 = arith.constant 986 : index
    %1220 = vector.load %arg16[%c0_1071, %c986_1072] : memref<1x1088xf32, #tpu.memory_space<vmem>>, vector<1x34xf32>
    %cst_1073 = arith.constant 7.500000e-01 : f32
    %1221 = vector.broadcast %cst_1073 : f32 to vector<1x34xf32>
    %1222 = arith.mulf %1221, %1220 : vector<1x34xf32>
    %c0_1074 = arith.constant 0 : index
    %c1020_1075 = arith.constant 1020 : index
    %1223 = vector.load %arg16[%c0_1074, %c1020_1075] : memref<1x1088xf32, #tpu.memory_space<vmem>>, vector<1x34xf32>
    %cst_1076 = arith.constant 2.500000e-01 : f32
    %1224 = vector.broadcast %cst_1076 : f32 to vector<1x34xf32>
    %1225 = arith.mulf %1224, %1223 : vector<1x34xf32>
    %1226 = arith.addf %1222, %1225 : vector<1x34xf32>
    %cst_1077 = arith.constant dense<0.000000e+00> : vector<1x64xf32>
    %1227 = tpu.matmul %1226, %576, %cst_1077 {dimension_numbers = #tpu.dot_dimension_numbers<[1], [0], [0], [1], [0, 0, 1, 1], [], []>} : vector<1x34xf32>, vector<34x64xf32>, vector<1x64xf32> -> vector<1x64xf32>
    %c0_1078 = arith.constant 0 : index
    %c0_1079 = arith.constant 0 : index
    %c3776 = arith.constant 3776 : index
    %1228 = vector.load %arg10[%c0_1078, %c0_1079, %c3776] : memref<1x1x4096xf32, #tpu.memory_space<vmem>>, vector<1x1x64xf32>
    %1229 = vector.shape_cast %1228 : vector<1x1x64xf32> to vector<1x64xf32>
    %1230 = vector.shape_cast %1227 : vector<1x64xf32> to vector<1x1x64xf32>
    tpu.vector_store %arg10[%c0_1078, %c0_1079, %c3776], %1230 {strides = array<i32>} : memref<1x1x4096xf32, #tpu.memory_space<vmem>>, vector<1x1x64xf32>,
    %c0_1080 = arith.constant 0 : index
    %c986_1081 = arith.constant 986 : index
    %1231 = vector.load %arg16[%c0_1080, %c986_1081] : memref<1x1088xf32, #tpu.memory_space<vmem>>, vector<1x34xf32>
    %cst_1082 = arith.constant 2.500000e-01 : f32
    %1232 = vector.broadcast %cst_1082 : f32 to vector<1x34xf32>
    %1233 = arith.mulf %1232, %1231 : vector<1x34xf32>
    %c0_1083 = arith.constant 0 : index
    %c1020_1084 = arith.constant 1020 : index
    %1234 = vector.load %arg16[%c0_1083, %c1020_1084] : memref<1x1088xf32, #tpu.memory_space<vmem>>, vector<1x34xf32>
    %cst_1085 = arith.constant 7.500000e-01 : f32
    %1235 = vector.broadcast %cst_1085 : f32 to vector<1x34xf32>
    %1236 = arith.mulf %1235, %1234 : vector<1x34xf32>
    %1237 = arith.addf %1233, %1236 : vector<1x34xf32>
    %cst_1086 = arith.constant dense<0.000000e+00> : vector<1x64xf32>
    %1238 = tpu.matmul %1237, %576, %cst_1086 {dimension_numbers = #tpu.dot_dimension_numbers<[1], [0], [0], [1], [0, 0, 1, 1], [], []>} : vector<1x34xf32>, vector<34x64xf32>, vector<1x64xf32> -> vector<1x64xf32>
    %c0_1087 = arith.constant 0 : index
    %c0_1088 = arith.constant 0 : index
    %c3840 = arith.constant 3840 : index
    %1239 = vector.load %arg10[%c0_1087, %c0_1088, %c3840] : memref<1x1x4096xf32, #tpu.memory_space<vmem>>, vector<1x1x64xf32>
    %1240 = vector.shape_cast %1239 : vector<1x1x64xf32> to vector<1x64xf32>
    %1241 = vector.shape_cast %1238 : vector<1x64xf32> to vector<1x1x64xf32>
    tpu.vector_store %arg10[%c0_1087, %c0_1088, %c3840], %1241 {strides = array<i32>} : memref<1x1x4096xf32, #tpu.memory_space<vmem>>, vector<1x1x64xf32>,
    %c0_1089 = arith.constant 0 : index
    %c1020_1090 = arith.constant 1020 : index
    %1242 = vector.load %arg16[%c0_1089, %c1020_1090] : memref<1x1088xf32, #tpu.memory_space<vmem>>, vector<1x34xf32>
    %cst_1091 = arith.constant 7.500000e-01 : f32
    %1243 = vector.broadcast %cst_1091 : f32 to vector<1x34xf32>
    %1244 = arith.mulf %1243, %1242 : vector<1x34xf32>
    %c0_1092 = arith.constant 0 : index
    %c1054_1093 = arith.constant 1054 : index
    %1245 = vector.load %arg16[%c0_1092, %c1054_1093] : memref<1x1088xf32, #tpu.memory_space<vmem>>, vector<1x34xf32>
    %cst_1094 = arith.constant 2.500000e-01 : f32
    %1246 = vector.broadcast %cst_1094 : f32 to vector<1x34xf32>
    %1247 = arith.mulf %1246, %1245 : vector<1x34xf32>
    %1248 = arith.addf %1244, %1247 : vector<1x34xf32>
    %cst_1095 = arith.constant dense<0.000000e+00> : vector<1x64xf32>
    %1249 = tpu.matmul %1248, %576, %cst_1095 {dimension_numbers = #tpu.dot_dimension_numbers<[1], [0], [0], [1], [0, 0, 1, 1], [], []>} : vector<1x34xf32>, vector<34x64xf32>, vector<1x64xf32> -> vector<1x64xf32>
    %c0_1096 = arith.constant 0 : index
    %c0_1097 = arith.constant 0 : index
    %c3904 = arith.constant 3904 : index
    %1250 = vector.load %arg10[%c0_1096, %c0_1097, %c3904] : memref<1x1x4096xf32, #tpu.memory_space<vmem>>, vector<1x1x64xf32>
    %1251 = vector.shape_cast %1250 : vector<1x1x64xf32> to vector<1x64xf32>
    %1252 = vector.shape_cast %1249 : vector<1x64xf32> to vector<1x1x64xf32>
    tpu.vector_store %arg10[%c0_1096, %c0_1097, %c3904], %1252 {strides = array<i32>} : memref<1x1x4096xf32, #tpu.memory_space<vmem>>, vector<1x1x64xf32>,
    %c0_1098 = arith.constant 0 : index
    %c1020_1099 = arith.constant 1020 : index
    %1253 = vector.load %arg16[%c0_1098, %c1020_1099] : memref<1x1088xf32, #tpu.memory_space<vmem>>, vector<1x34xf32>
    %cst_1100 = arith.constant 2.500000e-01 : f32
    %1254 = vector.broadcast %cst_1100 : f32 to vector<1x34xf32>
    %1255 = arith.mulf %1254, %1253 : vector<1x34xf32>
    %c0_1101 = arith.constant 0 : index
    %c1054_1102 = arith.constant 1054 : index
    %1256 = vector.load %arg16[%c0_1101, %c1054_1102] : memref<1x1088xf32, #tpu.memory_space<vmem>>, vector<1x34xf32>
    %cst_1103 = arith.constant 7.500000e-01 : f32
    %1257 = vector.broadcast %cst_1103 : f32 to vector<1x34xf32>
    %1258 = arith.mulf %1257, %1256 : vector<1x34xf32>
    %1259 = arith.addf %1255, %1258 : vector<1x34xf32>
    %cst_1104 = arith.constant dense<0.000000e+00> : vector<1x64xf32>
    %1260 = tpu.matmul %1259, %576, %cst_1104 {dimension_numbers = #tpu.dot_dimension_numbers<[1], [0], [0], [1], [0, 0, 1, 1], [], []>} : vector<1x34xf32>, vector<34x64xf32>, vector<1x64xf32> -> vector<1x64xf32>
    %c0_1105 = arith.constant 0 : index
    %c0_1106 = arith.constant 0 : index
    %c3968 = arith.constant 3968 : index
    %1261 = vector.load %arg10[%c0_1105, %c0_1106, %c3968] : memref<1x1x4096xf32, #tpu.memory_space<vmem>>, vector<1x1x64xf32>
    %1262 = vector.shape_cast %1261 : vector<1x1x64xf32> to vector<1x64xf32>
    %1263 = vector.shape_cast %1260 : vector<1x64xf32> to vector<1x1x64xf32>
    tpu.vector_store %arg10[%c0_1105, %c0_1106, %c3968], %1263 {strides = array<i32>} : memref<1x1x4096xf32, #tpu.memory_space<vmem>>, vector<1x1x64xf32>,
    %c0_1107 = arith.constant 0 : index
    %c1054_1108 = arith.constant 1054 : index
    %1264 = vector.load %arg16[%c0_1107, %c1054_1108] : memref<1x1088xf32, #tpu.memory_space<vmem>>, vector<1x34xf32>
    %cst_1109 = arith.constant 7.500000e-01 : f32
    %1265 = vector.broadcast %cst_1109 : f32 to vector<1x34xf32>
    %1266 = arith.mulf %1265, %1264 : vector<1x34xf32>
    %c0_1110 = arith.constant 0 : index
    %c1054_1111 = arith.constant 1054 : index
    %1267 = vector.load %arg16[%c0_1110, %c1054_1111] : memref<1x1088xf32, #tpu.memory_space<vmem>>, vector<1x34xf32>
    %cst_1112 = arith.constant 2.500000e-01 : f32
    %1268 = vector.broadcast %cst_1112 : f32 to vector<1x34xf32>
    %1269 = arith.mulf %1268, %1267 : vector<1x34xf32>
    %1270 = arith.addf %1266, %1269 : vector<1x34xf32>
    %cst_1113 = arith.constant dense<0.000000e+00> : vector<1x64xf32>
    %1271 = tpu.matmul %1270, %576, %cst_1113 {dimension_numbers = #tpu.dot_dimension_numbers<[1], [0], [0], [1], [0, 0, 1, 1], [], []>} : vector<1x34xf32>, vector<34x64xf32>, vector<1x64xf32> -> vector<1x64xf32>
    %c0_1114 = arith.constant 0 : index
    %c0_1115 = arith.constant 0 : index
    %c4032 = arith.constant 4032 : index
    %1272 = vector.load %arg10[%c0_1114, %c0_1115, %c4032] : memref<1x1x4096xf32, #tpu.memory_space<vmem>>, vector<1x1x64xf32>
    %1273 = vector.shape_cast %1272 : vector<1x1x64xf32> to vector<1x64xf32>
    %1274 = vector.shape_cast %1271 : vector<1x64xf32> to vector<1x1x64xf32>
    tpu.vector_store %arg10[%c0_1114, %c0_1115, %c4032], %1274 {strides = array<i32>} : memref<1x1x4096xf32, #tpu.memory_space<vmem>>, vector<1x1x64xf32>,
    return
  }
  func.func @transform_0(%arg0: i32) -> (i32, i32, i32) {
    %c0_i32 = arith.constant 0 : i32
    %c0_i32_0 = arith.constant 0 : i32
    %c0_i32_1 = arith.constant 0 : i32
    return %arg0, %c0_i32, %c0_i32_0 : i32, i32, i32
  }
  func.func @transform_1(%arg0: i32) -> (i32, i32) {
    %c0_i32 = arith.constant 0 : i32
    %c0_i32_0 = arith.constant 0 : i32
    %c0_i32_1 = arith.constant 0 : i32
    return %c0_i32, %c0_i32_0 : i32, i32
  }
  func.func @transform_2(%arg0: i32) -> (i32, i32) {
    %c0_i32 = arith.constant 0 : i32
    %c0_i32_0 = arith.constant 0 : i32
    %c0_i32_1 = arith.constant 0 : i32
    return %c0_i32, %c0_i32_0 : i32, i32
  }
  func.func @transform_3(%arg0: i32) -> (i32, i32) {
    %c0_i32 = arith.constant 0 : i32
    %c0_i32_0 = arith.constant 0 : i32
    %c0_i32_1 = arith.constant 0 : i32
    return %c0_i32, %c0_i32_0 : i32, i32
  }
  func.func @transform_4(%arg0: i32) -> (i32, i32) {
    %c0_i32 = arith.constant 0 : i32
    %c0_i32_0 = arith.constant 0 : i32
    %c0_i32_1 = arith.constant 0 : i32
    return %c0_i32, %c0_i32_0 : i32, i32
  }
  func.func @transform_5(%arg0: i32) -> (i32, i32) {
    %c0_i32 = arith.constant 0 : i32
    %c0_i32_0 = arith.constant 0 : i32
    %c0_i32_1 = arith.constant 0 : i32
    return %c0_i32, %c0_i32_0 : i32, i32
  }
  func.func @transform_6(%arg0: i32) -> (i32, i32) {
    %c0_i32 = arith.constant 0 : i32
    %c0_i32_0 = arith.constant 0 : i32
    %c0_i32_1 = arith.constant 0 : i32
    return %c0_i32, %c0_i32_0 : i32, i32
  }
  func.func @transform_7(%arg0: i32) -> (i32, i32) {
    %c0_i32 = arith.constant 0 : i32
    %c0_i32_0 = arith.constant 0 : i32
    %c0_i32_1 = arith.constant 0 : i32
    return %c0_i32, %c0_i32_0 : i32, i32
  }
  func.func @transform_8(%arg0: i32) -> (i32, i32) {
    %c0_i32 = arith.constant 0 : i32
    %c0_i32_0 = arith.constant 0 : i32
    %c0_i32_1 = arith.constant 0 : i32
    return %c0_i32, %c0_i32_0 : i32, i32
  }
  func.func @transform_9(%arg0: i32) -> (i32, i32, i32) {
    %c0_i32 = arith.constant 0 : i32
    %c0_i32_0 = arith.constant 0 : i32
    %c0_i32_1 = arith.constant 0 : i32
    return %arg0, %c0_i32, %c0_i32_0 : i32, i32, i32
  }
}

</mosaic_0001>

<bundles_post_ra>
// kernel: boundary_mapping3.1
= control target key start
LH: loop header
LB: loop body
LE: loop exit
PB: predicated region body
PF: predicated region fallthrough
CT: control target
= control target key end

     0   :  { %s21269_s30 = smov 0   ;;  %s24326_s0 = inlined_call_operand.vmem [shape: f32[2,8,64], index: 0, kind: input, shape index: {}]   ;;  %s24327_s1 = inlined_call_operand.vmem [shape: f32[36,8], index: 1, kind: input, shape index: {}]   ;;  %s24328_s2 = inlined_call_operand.vmem [shape: f32[4,1], index: 2, kind: input, shape index: {}]   ;;  %s24329_s3 = inlined_call_operand.vmem [shape: f32[18,4], index: 3, kind: input, shape index: {}]   ;;  %s24330_s4 = inlined_call_operand.vmem [shape: f32[2,1], index: 4, kind: input, shape index: {}]   ;;  %s24331_s5 = inlined_call_operand.vmem [shape: f32[9,2], index: 5, kind: input, shape index: {}]   ;;  %s24332_s6 = inlined_call_operand.vmem [shape: f32[10,18], index: 6, kind: input, shape index: {}]   ;;  %s24333_s7 = inlined_call_operand.vmem [shape: f32[18,34], index: 7, kind: input, shape index: {}]   ;;  %s24334_s8 = inlined_call_operand.vmem [shape: f32[34,64], index: 8, kind: input, shape index: {}]   ;;  %s24335_s9 = inlined_call_operand.vmem [shape: f32[2,1,4096], index: 9, kind: output, shape index: {}]  }
   0x1 LB: > { %s17983_s10 = sadd.s32 4294967295, %s21132_s30   ;;  %p17987_p0 = scmp.ge.s32.totalorder %s21132_s30, 1  ;;  %s21132_s30 = sphi %s21269_s30, %s19_s30  }
   0x2   : > { %p286_p1 = scmp.lt.s32.totalorder %s21132_s30, 3 }
   0x4   : > { %p287_p2 = pnand %p17987_p0, %p286_p1 }
   0x5   : > { %p320_p3 = scmp.lt.s32.totalorder (!%p287_p2), %s17983_s10, 1  ;;  %vm328_vm0 = vcmask (!%p287_p2), 900096   ;;  %v21134_v0 = vmov (!%p287_p2), 0.0   ;;  %s21135_s15 = smov (!%p287_p2), 11   ;;  %vm335_vm1 = vcmask (!%p287_p2), 154712   ;;  %vm342_vm2 = vcmask (!%p287_p2), 236712  }
   0x6   : > { %290 = sbr.rel (%p287_p2) target bundleno = 3806 (0xede), region = 56  ;;  %329 = vst.msk [vmem:[#allocation2] sm:$0xff] (!%p287_p2), %vm328_vm0, %v21134_v0  ;;  %1098 = vst [vmem:[#allocation3] sm:$0xff] (!%p287_p2), %v21134_v0  ;;  %19018 = vmatprep.subr.mxu1 (!%p287_p2), %v21134_v0  ;;  %19028 = vmatprep.subr.mxu0 (!%p287_p2), %v21134_v0  ;;  %s21136_s16 = smov (!%p287_p2), 15   ;;  %vm349_vm3 = vcmask (!%p287_p2), 318712   ;;  %vm356_vm4 = vcmask (!%p287_p2), 400712  }
   0x7   : > { %4055 = vst [vmem:[#allocation4] sm:$0xff] (!%p287_p2), %v21134_v0  ;;  %4056 = vst [vmem:[#allocation4 + $0x8] sm:$0xff] (!%p287_p2), %v21134_v0  ;;  %s21137_s17 = smov (!%p287_p2), 13   ;;  %s21138_s18 = smov (!%p287_p2), 17   ;;  %vm363_vm5 = vcmask (!%p287_p2), 482712   ;;  %vm370_vm6 = vcmask (!%p287_p2), 564712  }
   0x8   : > { %s21139_s19 = smov (!%p287_p2), 19   ;;  %s21140_s20 = smov (!%p287_p2), 21   ;;  %vm24375_vm7 = vmmov (!%p287_p2), 0   ;;  %vm377_vm8 = vcmask (!%p287_p2), 646712   ;;  %vm384_vm9 = vcmask (!%p287_p2), 728712   ;;  %v21148_v11 = vmov (!%p287_p2), 0  }
   0x9   : > { %s21141_s21 = smov (!%p287_p2), 23   ;;  %s21142_s22 = smov (!%p287_p2), 25   ;;  %19020 = vmatprep.mubr.msk.f32.mxu1 (!%p287_p2), %vm24375_vm7, %v21134_v0  ;;  %19030 = vmatprep.mubr.msk.f32.mxu0 (!%p287_p2), %vm24375_vm7, %v21134_v0  ;;  %v1086_v12 = vld [vmem:[%s24328_s2] sm:$0xf] (!%p287_p2)  ;;  %v388_v13 = vld [vmem:[%s24327_s1 + $0x4] sm:$0xf] (!%p287_p2) }
   0xa   : > { %s21144_s23 = smov (!%p287_p2), 126   ;;  %s24355_s24 = smov (!%p287_p2), 127   ;;  %21118 = vset.pattern.permute.xlu0 (!%p287_p2), %v21148_v11  ;;  %21119 = vset.pattern.permute.xlu1 (!%p287_p2), %v21148_v11  ;;  %vm393_vm10 = vcmask (!%p287_p2), 64512   ;;  %v540_v16 = vld [vmem:[%s24327_s1 + $0x8] sm:$0xf] (!%p287_p2)  ;;  %v1096_v30 = vld [vmem:[%s24332_s6] sm:$0xff] (!%p287_p2) }
   0xb   : > { %s21146_s25 = smov (!%p287_p2), 117   ;;  %s21147_s26 = smov (!%p287_p2), 118   ;;  %v387_v17 = vld [vmem:[%s24327_s1] sm:$0xf] (!%p287_p2)  ;;  %v696_v20 = vld [vmem:[%s24327_s1 + $0x10] sm:$0xf] (!%p287_p2) }
   0xc   : > { %s21149_s27 = smov (!%p287_p2), 108   ;;  %s21150_s28 = smov (!%p287_p2), 116   ;;  %v618_v21 = vld [vmem:[%s24327_s1 + $0xc] sm:$0xf] (!%p287_p2)  ;;  %v852_v24 = vld [vmem:[%s24327_s1 + $0x18] sm:$0xf] (!%p287_p2) }
   0xd   : > { %s24461_s10 = smov (!%p320_p3, %s17983_s10), 1  ;;  %s24343_s29 = smov 106   ;;  %v774_v25 = vld [vmem:[%s24327_s1 + $0x14] sm:$0xf]  ;;  %v1008_v28 = vld [vmem:[%s24327_s1 + $0x20] sm:$0xf] }
   0xe   : > { %s17988_s11 = sshll.u32 %s24461_s10, 3  ;;  %v930_v29 = vld [vmem:[%s24327_s1 + $0x1c] sm:$0xf]  ;;  %v1097_v31 = vld [vmem:[%s24332_s6 + $0x8] sm:$0x3]  ;;  %vm1106_vm11 = vcmask 1041408  }
   0xf   : > { %s323_s14 = scalar_lea.vmem %s24326_s0, %s17988_s11  ;;  %s21152_s11 = smov 107   ;;  %v21153_v32 = vmov 0.0|0.0   ;;  %v21371_v33 = vpack.c.bf16 %v1097_v31, %v1096_v30  ;;  %vm21154_vm12 = vmmov 1   ;;  %vm1094_vm14 = vcmask 650240  }
  0x10   : > { %v330_v1 = vld [vmem:[%s323_s14] sm:$0xff]  ;;  %vm21374_vm13 = vmpackc.low %vm1106_vm11, %vm21154_vm12  ;;  %vm24372_vm15 = vcmask 80896   ;;  %s24349_s12 = smov 78   ;;  %s21158_s13 = smov 68   ;;  %vm1625_vm12 = vcmask 1027936  }
  0x11   : > { %332 = vrot.lane.b32.xlu0 %v330_v1, %s21135_s15  ;;  %346 = vrot.lane.b32.xlu1 %v330_v1, %s21136_s16  ;;  %s21159_s14 = smov 58   ;;  %s24351_s15 = smov 18  }
  0x12   : > { %s24341_s16 = smov 36  }
  0x15   : > { %339 = vrot.lane.b32.xlu0 %v330_v1, %s21137_s17  ;;  %353 = vrot.lane.b32.xlu1 %v330_v1, %s21138_s18  ;;  %s24339_s17 = smov 54   ;;  %s24337_s18 = smov 72  }
  0x19   : > { %360 = vrot.lane.b32.xlu0 %v330_v1, %s21139_s19  ;;  %367 = vrot.lane.b32.xlu1 %v330_v1, %s21140_s20  ;;  %s24357_s19 = smov 90   ;;  %s21165_s20 = smov 16  }
  0x1d   : > { %374 = vrot.lane.b32.xlu0 %v330_v1, %s21141_s21  ;;  %381 = vrot.lane.b32.xlu1 %v330_v1, %s21142_s22  ;;  %s24353_s21 = smov 52   ;;  %s21167_s22 = smov 34  }
  0x83   : > { %v333_v2 = vpop.permute.xlu0 %332  ;;  %v347_v3 = vpop.permute.xlu1 %346 }
  0x84   : > { %336 = vst.msk [vmem:[#allocation2] sm:$0xff] %vm335_vm1, %v333_v2  ;;  %vm1184_vm1 = vcmask 289936  }
  0x87   : > { %v340_v4 = vpop.permute.xlu0 %339  ;;  %v354_v5 = vpop.permute.xlu1 %353 }
  0x88   : > { %343 = vst.msk [vmem:[#allocation2] sm:$0xff] %vm342_vm2, %v340_v4  ;;  %vm1099_vm2 = vcmask 699392  }
  0x89   : > { %350 = vst.msk [vmem:[#allocation2] sm:$0xff] %vm349_vm3, %v347_v3  ;;  %vm1271_vm3 = vcmask 437536  }
  0x8a   : > { %357 = vst.msk [vmem:[#allocation2] sm:$0xff] %vm356_vm4, %v354_v5  ;;  %vm1358_vm4 = vcmask 585136  }
  0x8b   : > { %v361_v6 = vpop.permute.xlu0 %360  ;;  %v368_v7 = vpop.permute.xlu1 %367  ;;  %1100 = vst.msk [vmem:[#allocation3 + $0x8] sm:$0xf] %vm1099_vm2, %v21134_v0  ;;  %vm1986_vm2 = vcmask 568736  }
  0x8c   : > { %364 = vst.msk [vmem:[#allocation2] sm:$0xff] %vm363_vm5, %v361_v6  ;;  %vm1447_vm5 = vcmask 732736  }
  0x8d   : > { %371 = vst.msk [vmem:[#allocation2] sm:$0xff] %vm370_vm6, %v368_v7  ;;  %vm1536_vm6 = vcmask 880336  }
  0x8f   : > { %v375_v8 = vpop.permute.xlu0 %374  ;;  %v382_v9 = vpop.permute.xlu1 %381 }
  0x90   : > { %378 = vst.msk [vmem:[#allocation2] sm:$0xff] %vm377_vm8, %v375_v8  ;;  %vm1717_vm8 = vcmask 1044464  }
  0x91   : > { %385 = vst.msk [vmem:[#allocation2] sm:$0xff] %vm384_vm9, %v382_v9  ;;  %vm1718_vm9 = vcmask 130052  }
  0x98   : > { %v386_v10 = vld [vmem:[#allocation2] sm:$0xff] }
  0x99   : > { %541 = vrot.lane.b32.xlu1 %v386_v10, %s21144_s23  ;;  %390 = vrot.lane.b32.xlu0 %v386_v10, %s24355_s24 }
  0x9d   : > { %697 = vrot.lane.b32.xlu1 %v386_v10, %s21146_s25  ;;  %619 = vrot.lane.b32.xlu0 %v386_v10, %s21147_s26  ;;  %s24336_s25 = smov 98  }
  0xa1   : > { %853 = vrot.lane.b32.xlu1 %v386_v10, %s21149_s27  ;;  %775 = vrot.lane.b32.xlu0 %v386_v10, %s21150_s28 }
  0xa5   : > { %1009 = vrot.lane.b32.xlu1 %v386_v10, %s24343_s29  ;;  %931 = vrot.lane.b32.xlu0 %v386_v10, %s21152_s11  ;;  %s24345_s11 = smov 88  }
  0xa9   : > { %1089 = vperm.xlu0 %21118, %v1086_v12  }
 0x10b   : > { %v542_v14 = vpop.permute.xlu1 %541  ;;  %v391_v15 = vpop.permute.xlu0 %390 }
 0x10c   : > { %19019 = vmatpush3.msra.mxu1 %v391_v15  ;;  %19029 = vmatpush3.msra.mxu0 %v542_v14 }
 0x10d   : > { %19021 = vmatmul.mubr.msk.f32.vlgmr.msra.gmra.mrb[0].mxu1 %vm393_vm10, %v388_v13  ;;  %19023 = vmatprep.subr.mxu1 %v21134_v0 }
 0x10e   : > { %19024 = vmatpush3.msra.mxu1 %v386_v10  ;;  %19038 = vmatprep.subr.mxu0 %v21134_v0 }
 0x10f   : > { %v698_v18 = vpop.permute.xlu1 %697  ;;  %v620_v19 = vpop.permute.xlu0 %619  ;;  %19025 = vmatprep.mubr.msk.f32.mxu1 %vm24375_vm7, %v21134_v0  ;;  %19031 = vmatmul.mubr.msk.f32.vlgmr.msra.gmra.mrb[0].mxu0 %vm393_vm10, %v540_v16 }
 0x110   : > { %19033 = vmatprep.subr.mxu1 %v21134_v0  ;;  %19039 = vmatpush3.msra.mxu0 %v698_v18 }
 0x111   : > { %19026 = vmatmul.mubr.msk.f32.vlgmr.msra.gmra.mrb[2].mxu1 %vm393_vm10, %v387_v17  ;;  %19040 = vmatprep.mubr.msk.f32.mxu0 %vm24375_vm7, %v21134_v0 }
 0x112   : > { %19034 = vmatpush3.msra.mxu1 %v620_v19  ;;  %19048 = vmatprep.subr.mxu0 %v21134_v0 }
 0x113   : > { %v854_v22 = vpop.permute.xlu1 %853  ;;  %v776_v23 = vpop.permute.xlu0 %775  ;;  %19035 = vmatprep.mubr.msk.f32.mxu1 %vm24375_vm7, %v21134_v0  ;;  %19041 = vmatmul.mubr.msk.f32.vlgmr.msra.gmra.mrb[2].mxu0 %vm393_vm10, %v696_v20 }
 0x114   : > { %19043 = vmatprep.subr.mxu1 %v21134_v0  ;;  %19049 = vmatpush3.msra.mxu0 %v854_v22 }
 0x115   : > { %19036 = vmatmul.mubr.msk.f32.vlgmr.msra.gmra.mrb[4].mxu1 %vm393_vm10, %v618_v21  ;;  %19050 = vmatprep.mubr.msk.f32.mxu0 %vm24375_vm7, %v21134_v0 }
 0x116   : > { %19044 = vmatpush3.msra.mxu1 %v776_v23  ;;  %19058 = vmatprep.subr.mxu0 %v21134_v0 }
 0x117   : > { %v1010_v26 = vpop.permute.xlu1 %1009  ;;  %v932_v27 = vpop.permute.xlu0 %931  ;;  %19045 = vmatprep.mubr.msk.f32.mxu1 %vm24375_vm7, %v21134_v0  ;;  %19051 = vmatmul.mubr.msk.f32.vlgmr.msra.gmra.mrb[4].mxu0 %vm393_vm10, %v852_v24 }
 0x118   : > { %19053 = vmatprep.subr.mxu1 %v21134_v0  ;;  %19059 = vmatpush3.msra.mxu0 %v1010_v26 }
 0x119   : > { %19046 = vmatmul.mubr.msk.f32.vlgmr.msra.gmra.mrb[6].mxu1 %vm393_vm10, %v774_v25  ;;  %19060 = vmatprep.mubr.msk.f32.mxu0 %vm24375_vm7, %v21134_v0 }
 0x11a   : > { %19054 = vmatpush3.msra.mxu1 %v932_v27  ;;  %19055 = vmatprep.mubr.msk.f32.mxu1 %vm24375_vm7, %v21134_v0 }
 0x11b   : > { %19061 = vmatmul.mubr.msk.f32.vlgmr.msra.gmra.mrb[6].mxu0 %vm393_vm10, %v1008_v28  ;;  %20385 = vmatprep.subr.bf16.mxu1 %v21153_v32 }
 0x11c   : > { %19074 = vmatprep.mubr.msk.f32.mxu0 %vm24375_vm7, %v21134_v0  ;;  %20389 = vmatprep.subr.bf16.mxu0 %v21153_v32 }
 0x11d   : > { %19056 = vmatmul.mubr.msk.f32.vlgmr.msra.gmra.mrb[8].mxu1 %vm393_vm10, %v930_v29  ;;  %20392 = vmatpush3.bf16.msk.msra.mxu0 %vm21374_vm13, %v21371_v33  ;;  %vm1714_vm10 = vcmask 1031168  }
 0x11e   : > { %19067 = vmatprep.mubr.msk.f32.mxu1 %vm24375_vm7, %v21134_v0  ;;  %20388 = vmatpush3.bf16.msk.msra.mxu1 %vm21374_vm13, %v21371_v33 }
 0x11f   : > { %20393 = vmatprep.subr.bf16.mxu1 %v21153_v32  ;;  %20397 = vmatprep.subr.bf16.mxu0 %v21153_v32 }
 0x128   : > { %v1090_v60 = vpop.permute.xlu0 %1089 }
 0x1e0   : > { %v463_v35 = vpop.f32.mrb[0].mxu1 }
 0x1e1   : > { %v19022_v36 = vpop.f32.mrb[1].mxu1 }
 0x1e2   : > { %v613_v37 = vpop.f32.mrb[0].mxu0 }
 0x1e3   : > { %v19032_v38 = vpop.f32.mrb[1].mxu0 }
 0x1e4   : > { %v536_v39 = vpop.f32.mrb[2].mxu1 }
 0x1e5   : > { %v537_v40 = vadd.f32 %v536_v39, %v463_v35  ;;  %v19027_v41 = vpop.f32.mrb[3].mxu1 }
 0x1e6   : > { %v769_v42 = vpop.f32.mrb[2].mxu0 }
 0x1e7   : > { %v617_v43 = vadd.f32 %v613_v37, %v537_v40  ;;  %v19042_v44 = vpop.f32.mrb[3].mxu0 }
 0x1e8   : > { %v691_v45 = vpop.f32.mrb[4].mxu1 }
 0x1e9   : > { %v695_v46 = vadd.f32 %v691_v45, %v617_v43  ;;  %v19037_v47 = vpop.f32.mrb[5].mxu1 }
 0x1ea   : > { %v925_v48 = vpop.f32.mrb[4].mxu0 }
 0x1eb   : > { %v773_v49 = vadd.f32 %v769_v42, %v695_v46  ;;  %v19052_v50 = vpop.f32.mrb[5].mxu0 }
 0x1ec   : > { %v847_v51 = vpop.f32.mrb[6].mxu1 }
 0x1ed   : > { %v851_v52 = vadd.f32 %v847_v51, %v773_v49  ;;  %v19047_v53 = vpop.f32.mrb[7].mxu1 }
 0x1ee   : > { %v1081_v54 = vpop.f32.mrb[6].mxu0 }
 0x1ef   : > { %v929_v55 = vadd.f32 %v925_v48, %v851_v52  ;;  %v19062_v56 = vpop.f32.mrb[7].mxu0 }
 0x1f0   : > { %v1003_v57 = vpop.f32.mrb[8].mxu1 }
 0x1f1   : > { %v1007_v58 = vadd.f32 %v1003_v57, %v929_v55  ;;  %v19057_v59 = vpop.f32.mrb[9].mxu1 }
 0x1f3   : > { %v1085_v61 = vadd.f32 %v1081_v54, %v1007_v58 }
 0x1f5   : > { %v1092_v62 = vadd.f32 %v1090_v60, %v1085_v61 }
 0x1f7   : > { %v1093_v63 = vmax.f32 %v1092_v62, 0.0 }
 0x1f9   : > { %1095 = vst.msk [vmem:[#allocation5] sm:$0xf] %vm1094_vm14, %v1093_v63  ;;  %vm1808_vm14 = vcmask 273536  }
 0x200   : > { %v1101_v1 = vld [vmem:[#allocation5] sm:$0xf] }
 0x201   : > { %v1538_v2 = vld [vmem:[#allocation5] sm:$0xf]  ;;  %19068 = vmatmul.mubr.msk.f32.vlgmr.msra.gmra.mrb[10].mxu1 %vm24372_vm15, %v1101_v1 }
 0x202   : > { %v1360_v3 = vld [vmem:[#allocation5] sm:$0xf]  ;;  %v1540_v4 = vmul.f32 0.25, %v1538_v2  ;;  %20396 = vmatpush3.bf16.msk.msra.mxu1 %vm21374_vm13, %v21371_v33  ;;  %19081 = vmatprep.mubr.msk.f32.mxu1 %vm24375_vm7, %v21134_v0  ;;  %v1539_v37 = vmul.f32 0.75, %v1538_v2 }
 0x203   : > { %v1362_v5 = vmul.f32 0.25, %v1360_v3  ;;  %v1721_v6 = vld [vmem:[#allocation5] sm:$0xf]  ;;  %20401 = vmatprep.subr.bf16.mxu1 %v21153_v32  ;;  %v1361_v30 = vmul.f32 0.75, %v1360_v3 }
 0x204   : > { %v1449_v7 = vld [vmem:[#allocation5] sm:$0xf]  ;;  %1542 = vrot.lane.b32.xlu0 %v1540_v4, %s21147_s26  ;;  %v1723_v8 = vmul.f32 0.25, %v1721_v6  ;;  %v1722_v43 = vmul.f32 0.75, %v1721_v6 }
 0x205   : > { %1364 = vrot.lane.b32.xlu1 %v1362_v5, %s21147_s26  ;;  %v1451_v9 = vmul.f32 0.75, %v1449_v7  ;;  %v1899_v10 = vld [vmem:[#allocation5] sm:$0xf]  ;;  %v1450_v38 = vmul.f32 0.25, %v1449_v7 }
 0x206   : > { %v1627_v11 = vld [vmem:[#allocation5] sm:$0xf]  ;;  %v1901_v12 = vmul.f32 0.25, %v1899_v10  ;;  %v1900_v49 = vmul.f32 0.75, %v1899_v10 }
 0x207   : > { %v1629_v13 = vmul.f32 0.75, %v1627_v11  ;;  %v2077_v14 = vld [vmem:[#allocation5] sm:$0xf]  ;;  %v1628_v44 = vmul.f32 0.25, %v1627_v11 }
 0x208   : > { %1725 = vrot.lane.b32.xlu0 %v1723_v8, %s21147_s26  ;;  %v1810_v15 = vld [vmem:[#allocation5] sm:$0xf]  ;;  %v2079_v16 = vmul.f32 0.25, %v2077_v14  ;;  %v2078_v55 = vmul.f32 0.75, %v2077_v14 }
 0x209   : > { %1453 = vrot.lane.b32.xlu1 %v1451_v9, %s21147_s26  ;;  %v1812_v17 = vmul.f32 0.75, %v1810_v15  ;;  %v2255_v18 = vld [vmem:[#allocation5] sm:$0xf]  ;;  %v1811_v50 = vmul.f32 0.25, %v1810_v15 }
 0x20a   : > { %v1988_v19 = vld [vmem:[#allocation5] sm:$0xf]  ;;  %v2257_v20 = vmul.f32 0.25, %v2255_v18  ;;  %v2256_v62 = vmul.f32 0.75, %v2255_v18 }
 0x20b   : > { %v1990_v21 = vmul.f32 0.75, %v1988_v19  ;;  %v2166_v22 = vld [vmem:[#allocation5] sm:$0xf]  ;;  %v1989_v56 = vmul.f32 0.25, %v1988_v19 }
 0x20c   : > { %1903 = vrot.lane.b32.xlu0 %v1901_v12, %s21147_s26  ;;  %v1186_v23 = vld [vmem:[#allocation5] sm:$0xf]  ;;  %v2168_v24 = vmul.f32 0.75, %v2166_v22  ;;  %v2167_v63 = vmul.f32 0.25, %v2166_v22 }
 0x20d   : > { %1631 = vrot.lane.b32.xlu1 %v1629_v13, %s21147_s26  ;;  %v1188_v25 = vmul.f32 0.25, %v1186_v23  ;;  %v2349_v26 = vld [vmem:[#allocation5] sm:$0xf]  ;;  %v1187_v1 = vmul.f32 0.75, %v1186_v23 }
 0x20e   : > { %v2351_v27 = vmul.f32 0.75, %v2349_v26  ;;  %v21406_v28 = vld [vmem:[#allocation5] sm:$0xf]  ;;  %v2350_v9 = vmul.f32 0.25, %v2349_v26 }
 0x20f   : > { %v1275_v29 = vmul.f32 0.75, %v21406_v28  ;;  %v2438_v61 = vld [vmem:[#allocation5] sm:$0xf]  ;;  %v1274_v13 = vmul.f32 0.25, %v21406_v28 }
 0x210   : > { %2081 = vrot.lane.b32.xlu0 %v2079_v16, %s21147_s26  ;;  %v2439_v4 = vmul.f32 0.75, %v2438_v61  ;;  %v2440_v8 = vmul.f32 0.25, %v2438_v61 }
 0x211   : > { %1814 = vrot.lane.b32.xlu1 %v1812_v17, %s21147_s26 }
 0x212   : > { %v2441_v12 = vadd.f32 %v2440_v8, %v2439_v4 }
 0x214   : > { %2259 = vrot.lane.b32.xlu0 %v2257_v20, %s21147_s26 }
 0x215   : > { %1992 = vrot.lane.b32.xlu1 %v1990_v21, %s21147_s26 }
 0x218   : > { %1190 = vrot.lane.b32.xlu0 %v1188_v25, %s21147_s26 }
 0x219   : > { %2170 = vrot.lane.b32.xlu1 %v2168_v24, %s21147_s26 }
 0x21d   : > { %2353 = vrot.lane.b32.xlu1 %v2351_v27, %s21147_s26 }
 0x221   : > { %1277 = vrot.lane.b32.xlu1 %v1275_v29, %s21147_s26 }
 0x276   : > { %v1543_v31 = vpop.permute.xlu0 %1542 }
 0x277   : > { %v1365_v35 = vpop.permute.xlu1 %1364  ;;  %v1545_v41 = vadd.f32 %v1543_v31, %v1539_v37 }
 0x278   : > { %v1367_v36 = vadd.f32 %v1365_v35, %v1361_v30 }
 0x27a   : > { %1369 = vrot.lane.b32.xlu0 %v1367_v36, %s21147_s26  ;;  %v1726_v39 = vpop.permute.xlu0 %1725 }
 0x27b   : > { %v1454_v40 = vpop.permute.xlu1 %1453  ;;  %v1728_v47 = vadd.f32 %v1726_v39, %v1722_v43 }
 0x27c   : > { %v1456_v42 = vadd.f32 %v1454_v40, %v1450_v38 }
 0x27e   : > { %1458 = vrot.lane.b32.xlu1 %v1456_v42, %s21147_s26  ;;  %1547 = vrot.lane.b32.xlu0 %v1545_v41, %s21149_s27  ;;  %v1904_v45 = vpop.permute.xlu0 %1903 }
 0x27f   : > { %v1632_v46 = vpop.permute.xlu1 %1631  ;;  %v1906_v53 = vadd.f32 %v1904_v45, %v1900_v49 }
 0x280   : > { %v1634_v48 = vadd.f32 %v1632_v46, %v1628_v44 }
 0x282   : > { %1636 = vrot.lane.b32.xlu1 %v1634_v48, %s21149_s27  ;;  %1730 = vrot.lane.b32.xlu0 %v1728_v47, %s24336_s25  ;;  %v2082_v51 = vpop.permute.xlu0 %2081 }
 0x283   : > { %v1815_v52 = vpop.permute.xlu1 %1814  ;;  %v2084_v59 = vadd.f32 %v2082_v51, %v2078_v55 }
 0x284   : > { %v1817_v54 = vadd.f32 %v1815_v52, %v1811_v50 }
 0x286   : > { %1819 = vrot.lane.b32.xlu1 %v1817_v54, %s24336_s25  ;;  %1908 = vrot.lane.b32.xlu0 %v1906_v53, %s24345_s11  ;;  %v2260_v57 = vpop.permute.xlu0 %2259  ;;  %s21168_s25 = smov 124  }
 0x287   : > { %v1993_v58 = vpop.permute.xlu1 %1992  ;;  %v2262_v5 = vadd.f32 %v2260_v57, %v2256_v62 }
 0x288   : > { %v1995_v60 = vadd.f32 %v1993_v58, %v1989_v56 }
 0x28a   : > { %1997 = vrot.lane.b32.xlu1 %v1995_v60, %s24345_s11  ;;  %2086 = vrot.lane.b32.xlu0 %v2084_v59, %s24349_s12  ;;  %v1191_v3 = vpop.permute.xlu0 %1190 }
 0x28b   : > { %v2171_v2 = vpop.permute.xlu1 %2170  ;;  %v1193_v7 = vadd.f32 %v1191_v3, %v1187_v1 }
 0x28c   : > { %v2173_v6 = vadd.f32 %v2171_v2, %v2167_v63 }
 0x28d   : > { %19075 = vmatmul.mubr.msk.f32.vlgmr.msra.gmra.mrb[8].mxu0 %vm24372_vm15, %v1193_v7 }
 0x28e   : > { %2175 = vrot.lane.b32.xlu1 %v2173_v6, %s24349_s12  ;;  %2264 = vrot.lane.b32.xlu0 %v2262_v5, %s21158_s13  ;;  %s21175_s12 = smov 91  }
 0x28f   : > { %v2354_v10 = vpop.permute.xlu1 %2353  ;;  %20400 = vmatpush3.bf16.msk.msra.mxu0 %vm21374_vm13, %v21371_v33  ;;  %19088 = vmatprep.mubr.msk.f32.mxu0 %vm24375_vm7, %v21134_v0 }
 0x290   : > { %v2356_v11 = vadd.f32 %v2354_v10, %v2350_v9  ;;  %20405 = vmatprep.subr.bf16.mxu0 %v21153_v32 }
 0x292   : > { %2358 = vrot.lane.b32.xlu1 %v2356_v11, %s21158_s13  ;;  %2443 = vrot.lane.b32.xlu0 %v2441_v12, %s21159_s14 }
 0x293   : > { %v1278_v14 = vpop.permute.xlu1 %1277 }
 0x294   : > { %v1280_v15 = vadd.f32 %v1278_v14, %v1274_v13 }
 0x296   : > { %19082 = vmatmul.mubr.msk.f32.vlgmr.msra.gmra.mrb[12].mxu1 %vm24372_vm15, %v1280_v15 }
 0x297   : > { %20404 = vmatpush3.bf16.msk.msra.mxu1 %vm21374_vm13, %v21371_v33  ;;  %19095 = vmatprep.mubr.msk.f32.mxu1 %vm24375_vm7, %v21134_v0 }
 0x298   : > { %20409 = vmatprep.subr.bf16.mxu1 %v21153_v32 }
 0x2d4   : > { %v1176_v16 = vpop.f32.mrb[10].mxu1 }
 0x2d5   : > { %1181 = vrot.lane.b32.xlu1 %v1176_v16, %s24351_s15  ;;  %v19069_v17 = vpop.f32.mrb[11].mxu1  ;;  %s24364_s15 = smov 56  }
 0x2ec   : > { %v1370_v18 = vpop.permute.xlu0 %1369 }
 0x2ed   : > { %19089 = vmatmul.mubr.msk.f32.vlgmr.msra.gmra.mrb[10].mxu0 %vm24372_vm15, %v1370_v18 }
 0x2ee   : > { %20408 = vmatpush3.bf16.msk.msra.mxu0 %vm21374_vm13, %v21371_v33  ;;  %19102 = vmatprep.mubr.msk.f32.mxu0 %vm24375_vm7, %v21134_v0 }
 0x2ef   : > { %20413 = vmatprep.subr.bf16.mxu0 %v21153_v32 }
 0x2f0   : > { %v1459_v19 = vpop.permute.xlu1 %1458  ;;  %v1548_v20 = vpop.permute.xlu0 %1547 }
 0x2f1   : > { %19096 = vmatmul.mubr.msk.f32.vlgmr.msra.gmra.mrb[14].mxu1 %vm24372_vm15, %v1459_v19  ;;  %19103 = vmatmul.mubr.msk.f32.vlgmr.msra.gmra.mrb[12].mxu0 %vm24372_vm15, %v1548_v20 }
 0x2f2   : > { %20412 = vmatpush3.bf16.msk.msra.mxu1 %vm21374_vm13, %v21371_v33  ;;  %20416 = vmatpush3.bf16.msk.msra.mxu0 %vm21374_vm13, %v21371_v33 }
 0x2f3   : > { %19109 = vmatprep.mubr.msk.f32.mxu1 %vm24375_vm7, %v21134_v0  ;;  %19116 = vmatprep.mubr.msk.f32.mxu0 %vm24375_vm7, %v21134_v0 }
 0x2f4   : > { %v1637_v21 = vpop.permute.xlu1 %1636  ;;  %v1731_v22 = vpop.permute.xlu0 %1730  ;;  %20417 = vmatprep.subr.bf16.mxu1 %v21153_v32  ;;  %20421 = vmatprep.subr.bf16.mxu0 %v21153_v32 }
 0x2f5   : > { %19110 = vmatmul.mubr.msk.f32.vlgmr.msra.gmra.mrb[16].mxu1 %vm24372_vm15, %v1637_v21  ;;  %19117 = vmatmul.mubr.msk.f32.vlgmr.msra.gmra.mrb[14].mxu0 %vm24372_vm15, %v1731_v22 }
 0x2f6   : > { %20420 = vmatpush3.bf16.msk.msra.mxu1 %vm21374_vm13, %v21371_v33  ;;  %20424 = vmatpush3.bf16.msk.msra.mxu0 %vm21374_vm13, %v21371_v33 }
 0x2f7   : > { %19123 = vmatprep.mubr.msk.f32.mxu1 %vm24375_vm7, %v21134_v0  ;;  %19130 = vmatprep.mubr.msk.f32.mxu0 %vm24375_vm7, %v21134_v0 }
 0x2f8   : > { %v1820_v23 = vpop.permute.xlu1 %1819  ;;  %v1909_v24 = vpop.permute.xlu0 %1908  ;;  %20425 = vmatprep.subr.bf16.mxu1 %v21153_v32  ;;  %20429 = vmatprep.subr.bf16.mxu0 %v21153_v32 }
 0x2f9   : > { %19124 = vmatmul.mubr.msk.f32.vlgmr.msra.gmra.mrb[18].mxu1 %vm24372_vm15, %v1820_v23  ;;  %19131 = vmatmul.mubr.msk.f32.vlgmr.msra.gmra.mrb[16].mxu0 %vm24372_vm15, %v1909_v24 }
 0x2fa   : > { %20428 = vmatpush3.bf16.msk.msra.mxu1 %vm21374_vm13, %v21371_v33  ;;  %20432 = vmatpush3.bf16.msk.msra.mxu0 %vm21374_vm13, %v21371_v33 }
 0x2fb   : > { %19137 = vmatprep.mubr.msk.f32.mxu1 %vm24375_vm7, %v21134_v0  ;;  %19144 = vmatprep.mubr.msk.f32.mxu0 %vm24375_vm7, %v21134_v0 }
 0x2fc   : > { %v1998_v25 = vpop.permute.xlu1 %1997  ;;  %v2087_v26 = vpop.permute.xlu0 %2086  ;;  %20433 = vmatprep.subr.bf16.mxu1 %v21153_v32  ;;  %20437 = vmatprep.subr.bf16.mxu0 %v21153_v32 }
 0x2fd   : > { %19138 = vmatmul.mubr.msk.f32.vlgmr.msra.gmra.mrb[20].mxu1 %vm24372_vm15, %v1998_v25  ;;  %19145 = vmatmul.mubr.msk.f32.vlgmr.msra.gmra.mrb[18].mxu0 %vm24372_vm15, %v2087_v26 }
 0x2fe   : > { %20436 = vmatpush3.bf16.msk.msra.mxu1 %vm21374_vm13, %v21371_v33  ;;  %20440 = vmatpush3.bf16.msk.msra.mxu0 %vm21374_vm13, %v21371_v33 }
 0x2ff   : > { %19151 = vmatprep.mubr.msk.f32.mxu1 %vm24375_vm7, %v21134_v0  ;;  %19158 = vmatprep.mubr.msk.f32.mxu0 %vm24375_vm7, %v21134_v0 }
 0x300   : > { %v2176_v27 = vpop.permute.xlu1 %2175  ;;  %v2265_v28 = vpop.permute.xlu0 %2264  ;;  %20441 = vmatprep.subr.bf16.mxu1 %v21153_v32  ;;  %20445 = vmatprep.subr.bf16.mxu0 %v21153_v32 }
 0x301   : > { %19152 = vmatmul.mubr.msk.f32.vlgmr.msra.gmra.mrb[22].mxu1 %vm24372_vm15, %v2176_v27  ;;  %19159 = vmatmul.mubr.msk.f32.vlgmr.msra.gmra.mrb[20].mxu0 %vm24372_vm15, %v2265_v28  ;;  %v4015_v28 = vld [vmem:[%s24330_s4] sm:$0x3] }
 0x302   : > { %20444 = vmatpush3.bf16.msk.msra.mxu1 %vm21374_vm13, %v21371_v33  ;;  %20448 = vmatpush3.bf16.msk.msra.mxu0 %vm21374_vm13, %v21371_v33  ;;  %vm1719_vm13 = vmor %vm1718_vm9, %vm1717_vm8  ;;  %vm2342_vm8 = vcmask 1014784   ;;  %vm2253_vm9 = vcmask 1011536  }
 0x303   : > { %19165 = vmatprep.mubr.msk.f32.mxu1 %vm24375_vm7, %v21134_v0  ;;  %19172 = vmatprep.mubr.msk.f32.mxu0 %vm24375_vm7, %v21134_v0 }
 0x304   : > { %v2359_v29 = vpop.permute.xlu1 %2358  ;;  %v2444_v30 = vpop.permute.xlu0 %2443  ;;  %19175 = vmatprep.subr.mxu0 %v21134_v0 }
 0x305   : > { %19166 = vmatmul.mubr.msk.f32.vlgmr.msra.gmra.mrb[24].mxu1 %vm24372_vm15, %v2359_v29  ;;  %19173 = vmatmul.mubr.msk.f32.vlgmr.msra.gmra.mrb[22].mxu0 %vm24372_vm15, %v2444_v30  ;;  %vm4964_vm15 = vcmask 681360  }
 0x306   : > { %19177 = vmatprep.mubr.msk.f32.mxu0 %vm24375_vm7, %v21134_v0  ;;  %2614 = vmatprep.mubr.f32.mxu1 %v21134_v0 }
 0x347   : > { %v1182_v33 = vpop.permute.xlu1 %1181 }
 0x348   : > { %1185 = vst.msk [vmem:[#allocation3] sm:$0xf] %vm1184_vm1, %v1182_v33  ;;  %vm1897_vm1 = vcmask 421136   ;;  %v2526_v33 = vld [vmem:[%s24329_s3 + $0x2] sm:$0x3] }
 0x360   : > { %v1263_v34 = vpop.f32.mrb[8].mxu0 }
 0x361   : > { %1268 = vrot.lane.b32.xlu0 %v1263_v34, %s24341_s16  ;;  %v19076_v31 = vpop.f32.mrb[9].mxu0  ;;  %s21171_s16 = smov 14  }
 0x362   : > { %v21566_v31 = vld [vmem:[#allocation4] sm:$0xff] }
 0x369   : > { %v1350_v35 = vpop.f32.mrb[12].mxu1 }
 0x36a   : > { %1355 = vrot.lane.b32.xlu1 %v1350_v35, %s24339_s17  ;;  %v19083_v36 = vpop.f32.mrb[13].mxu1  ;;  %s21170_s17 = smov 32  }
 0x3c0   : > { %v1439_v37 = vpop.f32.mrb[10].mxu0 }
 0x3c1   : > { %1444 = vrot.lane.b32.xlu0 %v1439_v37, %s24337_s18  ;;  %v19090_v38 = vpop.f32.mrb[11].mxu0  ;;  %s24347_s18 = smov 70  }
 0x3c2   : > { %v2525_v38 = vld [vmem:[%s24329_s3] sm:$0x3] }
 0x3c4   : > { %v1528_v39 = vpop.f32.mrb[14].mxu1  ;;  %v1617_v40 = vpop.f32.mrb[12].mxu0 }
 0x3c5   : > { %v19104_v41 = vpop.f32.mrb[13].mxu0  ;;  %1533 = vrot.lane.b32.xlu0 %v1528_v39, %s24357_s19  ;;  %v19097_v42 = vpop.f32.mrb[15].mxu1 }
 0x3c6   : > { %v2843_v42 = vld [vmem:[%s24329_s3 + $0x4] sm:$0x3] }
 0x3c8   : > { %v1706_v43 = vpop.f32.mrb[16].mxu1  ;;  %v1800_v44 = vpop.f32.mrb[14].mxu0 }
 0x3c9   : > { %v19118_v45 = vpop.f32.mrb[15].mxu0  ;;  %1805 = vrot.lane.b32.xlu0 %v1800_v44, %s21165_s20  ;;  %1711 = vrot.lane.b32.xlu1 %v1706_v43, %s21144_s23  ;;  %v19111_v46 = vpop.f32.mrb[17].mxu1 }
 0x3ca   : > { %v3010_v45 = vld [vmem:[%s24329_s3 + $0x6] sm:$0x3] }
 0x3cc   : > { %v1889_v47 = vpop.f32.mrb[18].mxu1  ;;  %v1978_v48 = vpop.f32.mrb[16].mxu0 }
 0x3cd   : > { %v19132_v49 = vpop.f32.mrb[17].mxu0  ;;  %1983 = vrot.lane.b32.xlu0 %v1978_v48, %s24353_s21  ;;  %1622 = vrot.lane.b32.xlu1 %v1617_v40, %s21149_s27  ;;  %v19125_v50 = vpop.f32.mrb[19].mxu1  ;;  %s24360_s21 = smov 20  }
 0x3ce   : > { %v3177_v50 = vld [vmem:[%s24329_s3 + $0x8] sm:$0x3] }
 0x3d0   : > { %v2067_v51 = vpop.f32.mrb[20].mxu1  ;;  %v2156_v52 = vpop.f32.mrb[18].mxu0 }
 0x3d1   : > { %v19146_v53 = vpop.f32.mrb[19].mxu0  ;;  %1894 = vrot.lane.b32.xlu1 %v1889_v47, %s21167_s22  ;;  %v19139_v54 = vpop.f32.mrb[21].mxu1 }
 0x3d3   : > { %v1269_v57 = vpop.permute.xlu0 %1268 }
 0x3d4   : > { %v2245_v55 = vpop.f32.mrb[22].mxu1  ;;  %v2334_v56 = vpop.f32.mrb[20].mxu0  ;;  %1272 = vst.msk [vmem:[#allocation3] sm:$0xf] %vm1271_vm3, %v1269_v57  ;;  %vm2075_vm3 = vcmask 716336  }
 0x3d5   : > { %v19160_v58 = vpop.f32.mrb[21].mxu0  ;;  %2339 = vrot.lane.b32.xlu0 %v2334_v56, %s21168_s25  ;;  %2072 = vrot.lane.b32.xlu1 %v2067_v51, %s24347_s18  ;;  %v19153_v0 = vpop.f32.mrb[23].mxu1  ;;  %s21174_s18 = smov 92   ;;  %v3345_v56 = vld [vmem:[%s24329_s3 + $0xa] sm:$0x3] }
 0x3d8   : > { %v2428_v59 = vpop.f32.mrb[24].mxu1  ;;  %v2513_v60 = vpop.f32.mrb[22].mxu0 }
 0x3d9   : > { %v19174_v61 = vpop.f32.mrb[23].mxu0  ;;  %2161 = vrot.lane.b32.xlu1 %v2156_v52, %s24345_s11  ;;  %2250 = vrot.lane.b32.xlu0 %v2245_v55, %s24343_s29  ;;  %v19167_v62 = vpop.f32.mrb[25].mxu1  ;;  %s21172_s29 = smov 110   ;;  %s21173_s11 = smov 109  }
 0x3dc   : > { %v1356_v63 = vpop.permute.xlu1 %1355 }
 0x3dd   : > { %1359 = vst.msk [vmem:[#allocation3] sm:$0xf] %vm1358_vm4, %v1356_v63  ;;  %2518 = vrot.lane.b32.xlu0 %v2513_v60, %s21170_s17  ;;  %2433 = vrot.lane.b32.xlu1 %v2428_v59, %s21171_s16  ;;  %vm2345_vm4 = vcmask 1044448   ;;  %v3513_v60 = vld [vmem:[%s24329_s3 + $0xc] sm:$0x3] }
 0x433   : > { %v1445_v1 = vpop.permute.xlu0 %1444 }
 0x434   : > { %1448 = vst.msk [vmem:[#allocation3] sm:$0xf] %vm1447_vm5, %v1445_v1  ;;  %vm2346_vm5 = vcmask 113668  }
 0x437   : > { %v1534_v2 = vpop.permute.xlu0 %1533 }
 0x438   : > { %1537 = vst.msk [vmem:[#allocation3] sm:$0xf] %vm1536_vm6, %v1534_v2  ;;  %vm2164_vm6 = vcmask 863936  }
 0x43b   : > { %v1712_v3 = vpop.permute.xlu1 %1711  ;;  %v1806_v5 = vpop.permute.xlu0 %1805 }
 0x43c   : > { %v1713_v4 = vrot.slane %v1712_v3, 4 }
 0x43e   : > { %v1715_v7 = vsel %vm1714_vm10, %v1713_v4, %v1712_v3  ;;  %v3681_v3 = vld [vmem:[%s24329_s3 + $0xe] sm:$0x3] }
 0x43f   : > { %v1623_v6 = vpop.permute.xlu1 %1622  ;;  %v1984_v8 = vpop.permute.xlu0 %1983 }
 0x440   : > { %1626 = vst.msk [vmem:[#allocation3] sm:$0xf] %vm1625_vm12, %v1623_v6  ;;  %vm2347_vm12 = vmor %vm2346_vm5, %vm2345_vm4  ;;  %vm3187_vm4 = vcmask 891904   ;;  %vm3355_vm5 = vcmask 883712  }
 0x441   : > { %1720 = vst.msk [vmem:[#allocation3] sm:$0xff] %vm1719_vm13, %v1715_v7  ;;  %vm2436_vm13 = vcmask 257136   ;;  %v3849_v7 = vld [vmem:[%s24329_s3 + $0x10] sm:$0x3] }
 0x442   : > { %1809 = vst.msk [vmem:[#allocation3 + $0x4] sm:$0xf] %vm1808_vm14, %v1806_v5  ;;  %vm2521_vm14 = vcmask 404736  }
 0x443   : > { %v1895_v9 = vpop.permute.xlu1 %1894 }
 0x444   : > { %1898 = vst.msk [vmem:[#allocation3 + $0x4] sm:$0xf] %vm1897_vm1, %v1895_v9  ;;  %vm2543_vm1 = vcmask 1043456  }
 0x445   : > { %1987 = vst.msk [vmem:[#allocation3 + $0x4] sm:$0xf] %vm1986_vm2, %v1984_v8  ;;  %vm2536_vm2 = vcmask 1039360  }
 0x447   : > { %v2340_v10 = vpop.permute.xlu0 %2339  ;;  %v2073_v11 = vpop.permute.xlu1 %2072 }
 0x448   : > { %2076 = vst.msk [vmem:[#allocation3 + $0x4] sm:$0xf] %vm2075_vm3, %v2073_v11  ;;  %v2341_v12 = vrot.slane %v2340_v10, 4  ;;  %vm24371_vm3 = vcmask 31744  }
 0x44a   : > { %v2343_v15 = vsel %vm2342_vm8, %v2341_v12, %v2340_v10 }
 0x44b   : > { %v2162_v13 = vpop.permute.xlu1 %2161  ;;  %v2251_v14 = vpop.permute.xlu0 %2250 }
 0x44c   : > { %2165 = vst.msk [vmem:[#allocation3 + $0x4] sm:$0xf] %vm2164_vm6, %v2162_v13  ;;  %vm24374_vm6 = vcmask 752640  }
 0x44d   : > { %2254 = vst.msk [vmem:[#allocation3 + $0x4] sm:$0xf] %vm2253_vm9, %v2251_v14  ;;  %vm3691_vm9 = vcmask 744448  }
 0x44e   : > { %2348 = vst.msk [vmem:[#allocation3 + $0x4] sm:$0xff] %vm2347_vm12, %v2343_v15  ;;  %vm3859_vm12 = vcmask 736256  }
 0x44f   : > { %v2519_v16 = vpop.permute.xlu0 %2518  ;;  %v2434_v17 = vpop.permute.xlu1 %2433 }
 0x450   : > { %2437 = vst.msk [vmem:[#allocation3 + $0x8] sm:$0xf] %vm2436_vm13, %v2434_v17  ;;  %v4053_v17 = vld [vmem:[%s24333_s7 + $0x8] sm:$0xff]  ;;  %vm4047_vm13 = vcmask 1043458  }
 0x451   : > { %2522 = vst.msk [vmem:[#allocation3 + $0x8] sm:$0xf] %vm2521_vm14, %v2519_v16  ;;  %v4052_v16 = vld [vmem:[%s24333_s7] sm:$0xff]  ;;  %vm4048_vm14 = vmor %vm4047_vm13, %vm1106_vm11  ;;  %vm4149_vm13 = vcmask 550160  }
 0x455   : > { %v2523_v18 = vld [vmem:[#allocation3] sm:$0xff] }
 0x456   : > { %v2529_v19 = vcombine.high %v2523_v18, %v2523_v18 }
 0x458   : > { %2532 = vrot.lane.b32.xlu1 %v2529_v19, %s24355_s24  ;;  %v2524_v20 = vld [vmem:[#allocation3 + $0x8] sm:$0xf] }
 0x459   : > { %2534 = vrot.lane.b32.xlu0 %v2524_v20, %s24355_s24  ;;  %v2842_v21 = vld [vmem:[#allocation3 + $0x8] sm:$0xf] }
 0x45a   : > { %v3009_v22 = vld [vmem:[#allocation3 + $0x8] sm:$0xf] }
 0x45b   : > { %v3176_v23 = vld [vmem:[#allocation3 + $0x8] sm:$0xf] }
 0x45c   : > { %2530 = vrot.lane.b32.xlu1 %v2523_v18, %s24355_s24  ;;  %v3344_v24 = vld [vmem:[#allocation3 + $0x8] sm:$0xf]  ;;  %s24367_s24 = smov 94  }
 0x45d   : > { %2849 = vrot.lane.b32.xlu0 %v2529_v19, %s21144_s23  ;;  %v3512_v25 = vld [vmem:[#allocation3 + $0x8] sm:$0xf] }
 0x45e   : > { %v3680_v26 = vld [vmem:[#allocation3 + $0x8] sm:$0xf] }
 0x45f   : > { %v3848_v27 = vld [vmem:[#allocation3 + $0x8] sm:$0xf] }
 0x460   : > { %2851 = vrot.lane.b32.xlu1 %v2842_v21, %s21144_s23 }
 0x461   : > { %2847 = vrot.lane.b32.xlu0 %v2523_v18, %s21144_s23 }
 0x464   : > { %3016 = vrot.lane.b32.xlu1 %v2529_v19, %s21172_s29 }
 0x465   : > { %3018 = vrot.lane.b32.xlu0 %v3009_v22, %s21172_s29 }
 0x468   : > { %3014 = vrot.lane.b32.xlu1 %v2523_v18, %s21172_s29 }
 0x469   : > { %3183 = vrot.lane.b32.xlu0 %v2529_v19, %s21173_s11 }
 0x46c   : > { %3185 = vrot.lane.b32.xlu1 %v3176_v23, %s21173_s11 }
 0x46d   : > { %3181 = vrot.lane.b32.xlu0 %v2523_v18, %s21173_s11  ;;  %s24362_s11 = smov 2  }
 0x470   : > { %3351 = vrot.lane.b32.xlu1 %v2529_v19, %s21149_s27 }
 0x471   : > { %3353 = vrot.lane.b32.xlu0 %v3344_v24, %s21149_s27 }
 0x474   : > { %3349 = vrot.lane.b32.xlu1 %v2523_v18, %s21149_s27 }
 0x475   : > { %3519 = vrot.lane.b32.xlu0 %v2529_v19, %s21174_s18 }
 0x478   : > { %3521 = vrot.lane.b32.xlu1 %v3512_v25, %s21174_s18 }
 0x479   : > { %3517 = vrot.lane.b32.xlu0 %v2523_v18, %s21174_s18 }
 0x47c   : > { %3687 = vrot.lane.b32.xlu1 %v2529_v19, %s21175_s12 }
 0x47d   : > { %3689 = vrot.lane.b32.xlu0 %v3680_v26, %s21175_s12 }
 0x480   : > { %3685 = vrot.lane.b32.xlu1 %v2523_v18, %s21175_s12  ;;  %s24358_s12 = smov 38  }
 0x481   : > { %3855 = vrot.lane.b32.xlu0 %v2529_v19, %s24357_s19 }
 0x484   : > { %3857 = vrot.lane.b32.xlu1 %v3848_v27, %s24357_s19 }
 0x485   : > { %3853 = vrot.lane.b32.xlu0 %v2523_v18, %s24357_s19  ;;  %s21177_s19 = smov 74  }
 0x488   : > { %4018 = vperm.xlu1 %21119, %v4015_v28  }
 0x4ca   : > { %v2533_v29 = vpop.permute.xlu1 %2532 }
 0x4cb   : > { %v2535_v30 = vpop.permute.xlu0 %2534 }
 0x4cc   : > { %19176 = vmatpush3.msk.msra.mxu0 %vm2543_vm1, %v2535_v30  ;;  %v2538_v34 = vsel %vm2536_vm2, %v2533_v29, %v2535_v30 }
 0x4cd   : > { %18031 = vmatprep.subr.msk.mxu1 %vm2543_vm1, %v2538_v34  ;;  %19180 = vmatprep.subr.mxu0 %v21566_v31 }
 0x4ce   : > { %19178 = vmatmul.mubr.msk.f32.vlgmr.msra.gmra.mrb[24].mxu0 %vm24371_vm3, %v2526_v33  ;;  %v2531_v35 = vpop.permute.xlu1 %2530 }
 0x4cf   : > { %19181 = vmatpush3.msk.msra.mxu0 %vm2543_vm1, %v2524_v20  ;;  %v2537_v36 = vsel %vm2536_vm2, %v2531_v35, %v2533_v29  ;;  %v2850_v37 = vpop.permute.xlu0 %2849  ;;  %19182 = vmatprep.mubr.msk.f32.mxu0 %vm24375_vm7, %v21566_v31 }
 0x4d0   : > { %18032 = vmatpush1.msk.msra.mxu1 %vm2543_vm1, %v2537_v36  ;;  %19185 = vmatprep.subr.mxu0 %v21566_v31 }
 0x4d1   : > { %18033 = vmatmul.mubr.msk.f32.vlgmr.msra.gmra.mrb[26].mxu1 %vm24371_vm3, %v2526_v33  ;;  %18036 = vmatprep.subr.msk.mxu1 %vm2543_vm1, %v2529_v19  ;;  %v21698_v19 = vld [vmem:[%s24333_s7 + $0x10] sm:$0x3] }
 0x4d2   : > { %18037 = vmatpush1.msk.msra.mxu1 %vm2543_vm1, %v2523_v18  ;;  %v2852_v39 = vpop.permute.xlu1 %2851  ;;  %19183 = vmatmul.mubr.msk.f32.vlgmr.msra.gmra.mrb[26].mxu0 %vm24371_vm3, %v2525_v38  ;;  %v21690_v18 = vpack.c.bf16 %v4053_v17, %v4052_v16 }
 0x4d3   : > { %v2848_v40 = vpop.permute.xlu0 %2847  ;;  %19186 = vmatpush3.msk.msra.mxu0 %vm2543_vm1, %v2852_v39  ;;  %v2854_v41 = vsel %vm1714_vm10, %v2850_v37, %v2852_v39  ;;  %19187 = vmatprep.mubr.msk.f32.mxu0 %vm24375_vm7, %v21566_v31 }
 0x4d4   : > { %18041 = vmatprep.subr.msk.mxu1 %vm2543_vm1, %v2854_v41  ;;  %19190 = vmatprep.subr.mxu0 %v21566_v31  ;;  %v2853_v47 = vsel %vm1714_vm10, %v2848_v40, %v2850_v37 }
 0x4d5   : > { %2764 = vmatprep.mubr.f32.mxu1 %v21566_v31 }
 0x4d6   : > { %v3017_v43 = vpop.permute.xlu1 %3016  ;;  %19188 = vmatmul.mubr.msk.f32.vlgmr.msra.gmra.mrb[28].mxu0 %vm24371_vm3, %v2843_v42 }
 0x4d7   : > { %v3019_v44 = vpop.permute.xlu0 %3018  ;;  %19192 = vmatprep.mubr.msk.f32.mxu0 %vm24375_vm7, %v21566_v31 }
 0x4d8   : > { %19191 = vmatpush3.msk.msra.mxu0 %vm2543_vm1, %v3019_v44  ;;  %v3021_v46 = vsel %vm328_vm0, %v3017_v43, %v3019_v44 }
 0x4d9   : > { %18038 = vmatmul.mubr.msk.f32.vlgmr.msra.gmra.mrb[26].mxu1 %vm24371_vm3, %v2525_v38  ;;  %19195 = vmatprep.subr.mxu0 %v21566_v31 }
 0x4da   : > { %18042 = vmatpush1.msk.msra.mxu1 %vm2543_vm1, %v2853_v47  ;;  %v3015_v48 = vpop.permute.xlu1 %3014  ;;  %19193 = vmatmul.mubr.msk.f32.vlgmr.msra.gmra.mrb[30].mxu0 %vm24371_vm3, %v3010_v45 }
 0x4db   : > { %18046 = vmatprep.subr.msk.mxu1 %vm2543_vm1, %v3021_v46  ;;  %v3184_v49 = vpop.permute.xlu0 %3183  ;;  %2928 = vmatprep.mubr.f32.mxu1 %v21566_v31  ;;  %v3020_v53 = vsel %vm328_vm0, %v3015_v48, %v3017_v43  ;;  %v21176_v48 = vmov 1983009808  }
 0x4dc   : > { %19197 = vmatprep.mubr.msk.f32.mxu0 %vm24375_vm7, %v21566_v31 }
 0x4de   : > { %v3186_v51 = vpop.permute.xlu1 %3185 }
 0x4df   : > { %v3182_v52 = vpop.permute.xlu0 %3181  ;;  %19196 = vmatpush3.msk.msra.mxu0 %vm2543_vm1, %v3186_v51  ;;  %v3189_v54 = vsel %vm3187_vm4, %v3184_v49, %v3186_v51 }
 0x4e0   : > { %19200 = vmatprep.subr.mxu0 %v21566_v31  ;;  %19198 = vmatmul.mubr.msk.f32.vlgmr.msra.gmra.mrb[32].mxu0 %vm24371_vm3, %v3177_v50  ;;  %v3188_v59 = vsel %vm3187_vm4, %v3182_v52, %v3184_v49  ;;  %v4032_v49 = vunpack.c.l.s4 %v21176_v48 }
 0x4e1   : > { %18043 = vmatmul.mubr.msk.f32.vlgmr.msra.gmra.mrb[26].mxu1 %vm24371_vm3, %v2843_v42  ;;  %19202 = vmatprep.mubr.msk.f32.mxu0 %vm24375_vm7, %v21566_v31 }
 0x4e2   : > { %18047 = vmatpush1.msk.msra.mxu1 %vm2543_vm1, %v3020_v53  ;;  %v3352_v55 = vpop.permute.xlu1 %3351  ;;  %3095 = vmatprep.mubr.f32.mxu1 %v21566_v31  ;;  %v4033_v52 = vunpack.c.0.s8 %v4032_v49 }
 0x4e3   : > { %18051 = vmatprep.subr.msk.mxu1 %vm2543_vm1, %v3189_v54  ;;  %v3354_v57 = vpop.permute.xlu0 %3353 }
 0x4e4   : > { %19201 = vmatpush3.msk.msra.mxu0 %vm2543_vm1, %v3354_v57  ;;  %v3357_v61 = vsel %vm3355_vm5, %v3352_v55, %v3354_v57 }
 0x4e5   : > { %19205 = vmatprep.subr.mxu0 %v21566_v31  ;;  %19203 = vmatmul.mubr.msk.f32.vlgmr.msra.gmra.mrb[34].mxu0 %vm24371_vm3, %v3345_v56 }
 0x4e6   : > { %v3350_v58 = vpop.permute.xlu1 %3349  ;;  %19207 = vmatprep.mubr.msk.f32.mxu0 %vm24375_vm7, %v21566_v31 }
 0x4e7   : > { %v3520_v0 = vpop.permute.xlu0 %3519  ;;  %v3356_v4 = vsel %vm3355_vm5, %v3350_v58, %v3352_v55 }
 0x4e9   : > { %18048 = vmatmul.mubr.msk.f32.vlgmr.msra.gmra.mrb[26].mxu1 %vm24371_vm3, %v3010_v45 }
 0x4ea   : > { %18052 = vmatpush1.msk.msra.mxu1 %vm2543_vm1, %v3188_v59  ;;  %v3522_v62 = vpop.permute.xlu1 %3521  ;;  %3263 = vmatprep.mubr.f32.mxu1 %v21566_v31 }
 0x4eb   : > { %18056 = vmatprep.subr.msk.mxu1 %vm2543_vm1, %v3357_v61  ;;  %v3518_v63 = vpop.permute.xlu0 %3517  ;;  %19206 = vmatpush3.msk.msra.mxu0 %vm2543_vm1, %v3522_v62  ;;  %v3525_v5 = vsel %vm24374_vm6, %v3520_v0, %v3522_v62 }
 0x4ec   : > { %19210 = vmatprep.subr.mxu0 %v21566_v31  ;;  %19208 = vmatmul.mubr.msk.f32.vlgmr.msra.gmra.mrb[36].mxu0 %vm24371_vm3, %v3513_v60  ;;  %v3524_v9 = vsel %vm24374_vm6, %v3518_v63, %v3520_v0  ;;  %vm5174_vm6 = vcmask 191490  }
 0x4ed   : > { %19212 = vmatprep.mubr.msk.f32.mxu0 %vm24375_vm7, %v21566_v31 }
 0x4ee   : > { %v3688_v1 = vpop.permute.xlu1 %3687 }
 0x4ef   : > { %v3690_v2 = vpop.permute.xlu0 %3689 }
 0x4f0   : > { %19211 = vmatpush3.msk.msra.mxu0 %vm2543_vm1, %v3690_v2  ;;  %v3693_v10 = vsel %vm3691_vm9, %v3688_v1, %v3690_v2 }
 0x4f1   : > { %18053 = vmatmul.mubr.msk.f32.vlgmr.msra.gmra.mrb[26].mxu1 %vm24371_vm3, %v3177_v50  ;;  %19215 = vmatprep.subr.mxu0 %v21566_v31  ;;  %v4034_v50 = vlaneseq }
 0x4f2   : > { %18057 = vmatpush1.msk.msra.mxu1 %vm2543_vm1, %v3356_v4  ;;  %v3686_v6 = vpop.permute.xlu1 %3685  ;;  %19213 = vmatmul.mubr.msk.f32.vlgmr.msra.gmra.mrb[38].mxu0 %vm24371_vm3, %v3681_v3 }
 0x4f3   : > { %18061 = vmatprep.subr.msk.mxu1 %vm2543_vm1, %v3525_v5  ;;  %3431 = vmatprep.mubr.f32.mxu1 %v21566_v31  ;;  %v3856_v11 = vpop.permute.xlu0 %3855  ;;  %v3692_v12 = vsel %vm3691_vm9, %v3686_v6, %v3688_v1  ;;  %v21708_v53 = vshrl.u32 %v4034_v50, 7  ;;  %vm24373_vm9 = vcmask 146432  }
 0x4f4   : > { %19217 = vmatprep.mubr.msk.f32.mxu0 %vm24375_vm7, %v21566_v31 }
 0x4f5   : > { %v21711_v59 = vsub.s32 %v4033_v52, %v21708_v53 }
 0x4f6   : > { %v3858_v8 = vpop.permute.xlu1 %3857 }
 0x4f7   : > { %19216 = vmatpush3.msk.msra.mxu0 %vm2543_vm1, %v3858_v8  ;;  %v3861_v13 = vsel %vm3859_vm12, %v3856_v11, %v3858_v8  ;;  %v3854_v14 = vpop.permute.xlu0 %3853 }
 0x4f8   : > { %19218 = vmatmul.mubr.msk.f32.vlgmr.msra.gmra.mrb[40].mxu0 %vm24371_vm3, %v3849_v7  ;;  %20452 = vmatprep.subr.bf16.mxu0 %v21153_v32  ;;  %v3860_v15 = vsel %vm3859_vm12, %v3854_v14, %v3856_v11  ;;  %vm24377_vm12 = vcmask 15360  }
 0x4f9   : > { %18058 = vmatmul.mubr.msk.f32.vlgmr.msra.gmra.mrb[26].mxu1 %vm24371_vm3, %v3345_v56  ;;  %19235 = vmatprep.mubr.msk.f32.mxu0 %vm24375_vm7, %v21566_v31 }
 0x4fa   : > { %18062 = vmatpush1.msk.msra.mxu1 %vm2543_vm1, %v3524_v9  ;;  %3599 = vmatprep.mubr.f32.mxu1 %v21566_v31 }
 0x4fb   : > { %18066 = vmatprep.subr.msk.mxu1 %vm2543_vm1, %v3693_v10  ;;  %20454 = vmatpush3.bf16.msra.mxu0 %v21690_v18 }
 0x4fc   : > { %19233 = vmatprep.subr.mxu0 %v21566_v31 }
 0x4ff   : > { %19234 = vmatpush3.msk.msra.mxu0 %vm1106_vm11, %v21698_v19 }
 0x500   : > { %20458 = vmatprep.subr.bf16.mxu0 %v21153_v32 }
 0x501   : > { %18063 = vmatmul.mubr.msk.f32.vlgmr.msra.gmra.mrb[26].mxu1 %vm24371_vm3, %v3513_v60 }
 0x502   : > { %18067 = vmatpush1.msk.msra.mxu1 %vm2543_vm1, %v3692_v12  ;;  %3767 = vmatprep.mubr.f32.mxu1 %v21566_v31 }
 0x503   : > { %18071 = vmatprep.subr.msk.mxu1 %vm2543_vm1, %v3861_v13 }
 0x507   : > { %v4019_v51 = vpop.permute.xlu1 %4018 }
 0x509   : > { %18068 = vmatmul.mubr.msk.f32.vlgmr.msra.gmra.mrb[26].mxu1 %vm24371_vm3, %v3681_v3 }
 0x50a   : > { %18072 = vmatpush1.msk.msra.mxu1 %vm2543_vm1, %v3860_v15  ;;  %3935 = vmatprep.mubr.f32.mxu1 %v21566_v31  ;;  %vm4049_vm1 = vcmask 259076  }
 0x50b   : > { %20449 = vmatprep.subr.bf16.mxu1 %v21153_v32  ;;  %vm4050_vm4 = vmor %vm4049_vm1, %vm4048_vm14  ;;  %vm4340_vm14 = vcmask 1042224   ;;  %vm4341_vm1 = vcmask 60418  }
 0x511   : > { %18073 = vmatmul.mubr.msk.f32.vlgmr.msra.gmra.mrb[26].mxu1 %vm24371_vm3, %v3849_v7 }
 0x512   : > { %19226 = vmatprep.mubr.msk.f32.mxu1 %vm24375_vm7, %v21566_v31  ;;  %20451 = vmatpush3.bf16.msra.mxu1 %v21690_v18 }
 0x513   : > { %19224 = vmatprep.subr.mxu1 %v21566_v31 }
 0x516   : > { %19225 = vmatpush3.msk.msra.mxu1 %vm1106_vm11, %v21698_v19 }
 0x517   : > { %20455 = vmatprep.subr.bf16.mxu1 %v21153_v32 }
 0x5a1   : > { %v2687_v20 = vpop.f32.mrb[24].mxu0 }
 0x5a2   : > { %v19179_v21 = vpop.f32.mrb[25].mxu0 }
 0x5a5   : > { %v2837_v22 = vpop.f32.mrb[26].mxu0 }
 0x5a6   : > { %v2838_v23 = vadd.f32 %v2837_v22, %v2687_v20  ;;  %v19184_v24 = vpop.f32.mrb[27].mxu0 }
 0x5a9   : > { %v3001_v25 = vpop.f32.mrb[28].mxu0 }
 0x5aa   : > { %v3007_v26 = vadd.f32 %v3001_v25, %v2838_v23  ;;  %v19189_v27 = vpop.f32.mrb[29].mxu0 }
 0x5ad   : > { %v3168_v28 = vpop.f32.mrb[30].mxu0 }
 0x5ae   : > { %v3174_v29 = vadd.f32 %v3168_v28, %v3007_v26  ;;  %v19194_v30 = vpop.f32.mrb[31].mxu0 }
 0x5b3   : > { %v3336_v33 = vpop.f32.mrb[32].mxu0 }
 0x5b4   : > { %v3342_v34 = vadd.f32 %v3336_v33, %v3174_v29  ;;  %v19199_v35 = vpop.f32.mrb[33].mxu0 }
 0x5b8   : > { %v3504_v36 = vpop.f32.mrb[34].mxu0 }
 0x5b9   : > { %v3510_v37 = vadd.f32 %v3504_v36, %v3342_v34  ;;  %v19204_v38 = vpop.f32.mrb[35].mxu0 }
 0x5bf   : > { %v3672_v39 = vpop.f32.mrb[36].mxu0 }
 0x5c0   : > { %v3678_v40 = vadd.f32 %v3672_v39, %v3510_v37  ;;  %v19209_v41 = vpop.f32.mrb[37].mxu0 }
 0x5c5   : > { %v3840_v42 = vpop.f32.mrb[38].mxu0 }
 0x5c6   : > { %v3846_v43 = vadd.f32 %v3840_v42, %v3678_v40  ;;  %v19214_v44 = vpop.f32.mrb[39].mxu0 }
 0x5cb   : > { %v4008_v45 = vpop.f32.mrb[40].mxu0 }
 0x5cc   : > { %v4014_v46 = vadd.f32 %v4008_v45, %v3846_v43  ;;  %v19219_v47 = vpop.f32.mrb[41].mxu0 }
 0x5ce   : > { %v4023_v54 = vadd.f32 %v4019_v51, %v4014_v46 }
 0x5d0   : > { %v4026_v60 = vmax.f32 %v4023_v54, 0.0 }
 0x5d2   : > { %v4044_v63 = vrot.slane %v4026_v60, %v21711_v59 }
 0x5e4   : > { %v3937_v55 = vpop.f32.mrb[26].mxu1 }
 0x5e5   : > { %v4021_v56 = vadd.f32 %v4019_v51, %v3937_v55  ;;  %v3939_v57 = vpop.f32.mrb[27].mxu1 }
 0x5e6   : > { %v4022_v58 = vadd.f32 %v4019_v51, %v3939_v57 }
 0x5e7   : > { %v4024_v0 = vmax.f32 %v4021_v56, 0.0 }
 0x5e8   : > { %v4025_v61 = vmax.f32 %v4022_v58, 0.0 }
 0x5ea   : > { %v4030_v62 = vcombine.low %v4024_v0, %v4025_v61 }
 0x5ec   : > { %v4037_v1 = vrot.slane %v4030_v62, %v21711_v59 }
 0x5ee   : > { %v4045_v2 = vcombine.low %v4037_v1, %v4044_v63 }
 0x5f0   : > { %4051 = vst.msk [vmem:[#allocation6] sm:$0x3f] %vm4050_vm4, %v4045_v2  ;;  %vm4337_vm4 = vcmask 834560  }
 0x5f7   : > { %v4060_v3 = vld [vmem:[#allocation6] sm:$0x3]  ;;  %v5601_v27 = vld [vmem:[#allocation6 + $0x2] sm:$0x3]  ;;  %v7078_v60 = vld [vmem:[#allocation6 + $0x4] sm:$0x3] }
 0x5f8   : > { %v21716_v4 = vld [vmem:[#allocation6] sm:$0x3]  ;;  %19227 = vmatmul.mubr.msk.f32.vlgmr.msra.gmra.mrb[28].mxu1 %vm24373_vm9, %v4060_v3  ;;  %v5602_v29 = vmul.f32 0.25, %v5601_v27  ;;  %v5712_v30 = vld [vmem:[#allocation6 + $0x2] sm:$0x3]  ;;  %v7079_v61 = vmul.f32 0.25, %v7078_v60 }
 0x5f9   : > { %v21718_v5 = vld [vmem:[#allocation6] sm:$0x3]  ;;  %v4552_v6 = vmul.f32 0.25, %v21716_v4  ;;  %20457 = vmatpush3.bf16.msra.mxu1 %v21690_v18  ;;  %19244 = vmatprep.mubr.msk.f32.mxu1 %vm24375_vm7, %v21566_v31  ;;  %v5713_v34 = vmul.f32 0.75, %v5712_v30  ;;  %v21766_v36 = vld [vmem:[#allocation6 + $0x2] sm:$0x3] }
 0x5fa   : > { %v4346_v7 = vmul.f32 0.25, %v21718_v5  ;;  %v21723_v8 = vld [vmem:[#allocation6] sm:$0x3]  ;;  %19242 = vmatprep.subr.mxu1 %v21566_v31  ;;  %v21768_v37 = vld [vmem:[#allocation6 + $0x2] sm:$0x3]  ;;  %v6033_v38 = vmul.f32 0.25, %v21766_v36 }
 0x5fb   : > { %v21725_v9 = vld [vmem:[#allocation6] sm:$0x3]  ;;  %4554 = vrot.lane.b32.xlu1 %v4552_v6, %s21172_s29  ;;  %v4762_v10 = vmul.f32 0.25, %v21723_v8  ;;  %v5822_v39 = vmul.f32 0.25, %v21768_v37  ;;  %v21774_v40 = vld [vmem:[#allocation6 + $0x2] sm:$0x3] }
 0x5fc   : > { %4348 = vrot.lane.b32.xlu0 %v4346_v7, %s21172_s29  ;;  %v4449_v11 = vmul.f32 0.75, %v21725_v9  ;;  %v21735_v12 = vld [vmem:[#allocation6] sm:$0x3]  ;;  %v5930_v42 = vmul.f32 0.75, %v21774_v40  ;;  %v21782_v44 = vld [vmem:[#allocation6 + $0x2] sm:$0x3] }
 0x5fd   : > { %v21737_v13 = vld [vmem:[#allocation6] sm:$0x3]  ;;  %19243 = vmatpush3.msk.msra.mxu1 %vm1106_vm11, %v21698_v19  ;;  %v4968_v14 = vmul.f32 0.25, %v21735_v12  ;;  %v21784_v45 = vld [vmem:[#allocation6 + $0x2] sm:$0x3]  ;;  %v6239_v46 = vmul.f32 0.25, %v21782_v44 }
 0x5fe   : > { %20461 = vmatprep.subr.bf16.mxu1 %v21153_v32  ;;  %v4655_v15 = vmul.f32 0.75, %v21737_v13  ;;  %v21746_v16 = vld [vmem:[#allocation6] sm:$0x3]  ;;  %v6136_v47 = vmul.f32 0.75, %v21784_v45  ;;  %v21790_v48 = vld [vmem:[#allocation6 + $0x2] sm:$0x3] }
 0x5ff   : > { %4764 = vrot.lane.b32.xlu1 %v4762_v10, %s21172_s29  ;;  %v21748_v17 = vld [vmem:[#allocation6] sm:$0x3]  ;;  %v5179_v20 = vmul.f32 0.25, %v21746_v16  ;;  %v6449_v51 = vmul.f32 0.25, %v21790_v48  ;;  %v21798_v54 = vld [vmem:[#allocation6 + $0x2] sm:$0x3] }
 0x600   : > { %4451 = vrot.lane.b32.xlu0 %v4449_v11, %s21172_s29  ;;  %v4865_v21 = vmul.f32 0.75, %v21748_v17  ;;  %v5385_v22 = vld [vmem:[#allocation6] sm:$0xf]  ;;  %v6655_v56 = vmul.f32 0.25, %v21798_v54  ;;  %v4551_v62 = vmul.f32 0.75, %v21716_v4  ;;  %v4345_v63 = vmul.f32 0.75, %v21718_v5 }
 0x601   : > { %v21754_v23 = vld [vmem:[#allocation6] sm:$0x3]  ;;  %v5386_v24 = vmul.f32 0.25, %v5385_v22  ;;  %v21800_v55 = vld [vmem:[#allocation6 + $0x2] sm:$0x3]  ;;  %v4864_v30 = vmul.f32 0.25, %v21748_v17 }
 0x602   : > { %v5071_v25 = vmul.f32 0.75, %v21754_v23  ;;  %v21759_v26 = vld [vmem:[#allocation6] sm:$0x3]  ;;  %v6346_v57 = vmul.f32 0.75, %v21800_v55  ;;  %v6866_v58 = vld [vmem:[#allocation6 + $0x2] sm:$0xf] }
 0x603   : > { %4970 = vrot.lane.b32.xlu1 %v4968_v14, %s21172_s29  ;;  %v5282_v28 = vmul.f32 0.75, %v21759_v26  ;;  %v5491_v33 = vld [vmem:[#allocation6] sm:$0xf]  ;;  %v6867_v0 = vmul.f32 0.25, %v6866_v58 }
 0x604   : > { %4657 = vrot.lane.b32.xlu0 %v4655_v15, %s21172_s29  ;;  %v5492_v35 = vmul.f32 0.75, %v5491_v33  ;;  %v21776_v41 = vld [vmem:[#allocation6] sm:$0x3]  ;;  %v21814_v15 = vld [vmem:[#allocation6 + $0x2] sm:$0x3] }
 0x605   : > { %v4153_v43 = vmul.f32 0.25, %v21776_v41  ;;  %v21792_v49 = vld [vmem:[#allocation6] sm:$0x3]  ;;  %v6552_v5 = vmul.f32 0.75, %v21814_v15  ;;  %v6972_v27 = vld [vmem:[#allocation6 + $0x2] sm:$0xf] }
 0x606   : > { %v4247_v52 = vmul.f32 0.75, %v21792_v49  ;;  %v6973_v33 = vmul.f32 0.75, %v6972_v27  ;;  %v5710_v27 = vld [vmem:[#allocation6] sm:$0xf] }
 0x607   : > { %5181 = vrot.lane.b32.xlu1 %v5179_v20, %s21172_s29  ;;  %v21816_v20 = vld [vmem:[#allocation6 + $0x2] sm:$0x3] }
 0x608   : > { %4867 = vrot.lane.b32.xlu0 %v4865_v21, %s21172_s29  ;;  %v4448_v21 = vmul.f32 0.25, %v21725_v9  ;;  %v6763_v22 = vmul.f32 0.75, %v21816_v20 }
 0x60b   : > { %5388 = vrot.lane.b32.xlu1 %v5386_v24, %s21172_s29 }
 0x60c   : > { %5073 = vrot.lane.b32.xlu0 %v5071_v25, %s21172_s29 }
 0x60f   : > { %5284 = vrot.lane.b32.xlu1 %v5282_v28, %s21172_s29  ;;  %v4761_v28 = vmul.f32 0.75, %v21723_v8 }
 0x610   : > { %5604 = vrot.lane.b32.xlu0 %v5602_v29, %s21172_s29 }
 0x613   : > { %5715 = vrot.lane.b32.xlu1 %v5713_v34, %s21172_s29 }
 0x614   : > { %5494 = vrot.lane.b32.xlu0 %v5492_v35, %s21172_s29 }
 0x617   : > { %6035 = vrot.lane.b32.xlu1 %v6033_v38, %s21172_s29  ;;  %v4654_v38 = vmul.f32 0.25, %v21737_v13 }
 0x618   : > { %5824 = vrot.lane.b32.xlu0 %v5822_v39, %s21172_s29  ;;  %v5178_v39 = vmul.f32 0.75, %v21746_v16 }
 0x61b   : > { %4155 = vrot.lane.b32.xlu1 %v4153_v43, %s21172_s29 }
 0x61c   : > { %5932 = vrot.lane.b32.xlu0 %v5930_v42, %s21172_s29 }
 0x61f   : > { %6138 = vrot.lane.b32.xlu1 %v6136_v47, %s21172_s29 }
 0x620   : > { %6241 = vrot.lane.b32.xlu0 %v6239_v46, %s21172_s29 }
 0x623   : > { %4249 = vrot.lane.b32.xlu1 %v4247_v52, %s21172_s29 }
 0x624   : > { %6451 = vrot.lane.b32.xlu0 %v6449_v51, %s21172_s29  ;;  %v5383_v51 = vld [vmem:[#allocation6] sm:$0x3] }
 0x625   : > { %v5384_v13 = vmul.f32 0.75, %v5383_v51 }
 0x627   : > { %6348 = vrot.lane.b32.xlu1 %v6346_v57, %s21172_s29 }
 0x628   : > { %6657 = vrot.lane.b32.xlu0 %v6655_v56, %s21172_s29  ;;  %v4967_v56 = vmul.f32 0.75, %v21735_v12 }
 0x62b   : > { %6869 = vrot.lane.b32.xlu1 %v6867_v0, %s21172_s29 }
 0x62f   : > { %7081 = vrot.lane.b32.xlu1 %v7079_v61, %s21172_s29  ;;  %v5599_v61 = vld [vmem:[#allocation6] sm:$0xf] }
 0x66d   : > { %v4555_v1 = vpop.permute.xlu1 %4554 }
 0x66e   : > { %v4349_v2 = vpop.permute.xlu0 %4348  ;;  %v4557_v3 = vadd.f32 %v4555_v1, %v4551_v62 }
 0x66f   : > { %v4351_v6 = vadd.f32 %v4349_v2, %v4345_v63 }
 0x670   : > { %v4565_v7 = vrot.slane %v4557_v3, %v21711_v59  ;;  %v5600_v3 = vmul.f32 0.75, %v5599_v61 }
 0x671   : > { %v4359_v10 = vrot.slane %v4351_v6, %v21711_v59  ;;  %v4765_v11 = vpop.permute.xlu1 %4764 }
 0x672   : > { %v4452_v14 = vpop.permute.xlu0 %4451  ;;  %4566 = vrot.lane.b32.xlu1 %v4565_v7, %s21174_s18  ;;  %v4767_v29 = vadd.f32 %v4765_v11, %v4761_v28 }
 0x673   : > { %4360 = vrot.lane.b32.xlu0 %v4359_v10, %s21172_s29  ;;  %v4454_v4 = vadd.f32 %v4452_v14, %v4448_v21  ;;  %v5489_v10 = vld [vmem:[#allocation6] sm:$0x3] }
 0x674   : > { %v4775_v8 = vrot.slane %v4767_v29, %v21711_v59  ;;  %v5490_v28 = vmul.f32 0.25, %v5489_v10  ;;  %v6654_v10 = vmul.f32 0.75, %v21798_v54 }
 0x675   : > { %v4971_v24 = vpop.permute.xlu1 %4970  ;;  %v4462_v9 = vrot.slane %v4454_v4, %v21711_v59  ;;  %v7192_v4 = vld [vmem:[#allocation6 + $0x4] sm:$0x3] }
 0x676   : > { %v4658_v25 = vpop.permute.xlu0 %4657  ;;  %6765 = vrot.lane.b32.xlu1 %v6763_v22, %s21172_s29  ;;  %v4973_v16 = vadd.f32 %v4971_v24, %v4967_v56 }
 0x677   : > { %6554 = vrot.lane.b32.xlu0 %v6552_v5, %s21172_s29  ;;  %v4660_v43 = vadd.f32 %v4658_v25, %v4654_v38  ;;  %v5070_v5 = vmul.f32 0.25, %v21754_v23  ;;  %v5281_v38 = vmul.f32 0.25, %v21759_v26 }
 0x678   : > { %v4981_v6 = vrot.slane %v4973_v16, %v21711_v59 }
 0x679   : > { %v5182_v34 = vpop.permute.xlu1 %5181  ;;  %v4668_v58 = vrot.slane %v4660_v43, %v21711_v59 }
 0x67a   : > { %v4868_v35 = vpop.permute.xlu0 %4867  ;;  %6975 = vrot.lane.b32.xlu1 %v6973_v33, %s21172_s29  ;;  %v5184_v46 = vadd.f32 %v5182_v34, %v5178_v39  ;;  %v5711_v39 = vmul.f32 0.25, %v5710_v27 }
 0x67b   : > { %v4870_v42 = vadd.f32 %v4868_v35, %v4864_v30  ;;  %4463 = vrot.lane.b32.xlu0 %v4462_v9, %s21172_s29  ;;  %v7193_v30 = vmul.f32 0.75, %v7192_v4  ;;  %v6864_v4 = vld [vmem:[#allocation6 + $0x2] sm:$0x3] }
 0x67c   : > { %v5192_v0 = vrot.slane %v5184_v46, %v21711_v59 }
 0x67d   : > { %v4878_v47 = vrot.slane %v4870_v42, %v21711_v59  ;;  %v5389_v17 = vpop.permute.xlu1 %5388 }
 0x67e   : > { %v5074_v52 = vpop.permute.xlu0 %5073  ;;  %v5390_v57 = vrot.slane %v5389_v17, 2 }
 0x67f   : > { %4776 = vrot.lane.b32.xlu0 %v4775_v8, %s21177_s19  ;;  %4879 = vrot.lane.b32.xlu1 %v4878_v47, %s21177_s19  ;;  %v5076_v29 = vadd.f32 %v5074_v52, %v5070_v5  ;;  %v4152_v47 = vmul.f32 0.75, %v21776_v41  ;;  %v6032_v52 = vmul.f32 0.75, %v21766_v36  ;;  %v5821_v36 = vmul.f32 0.75, %v21768_v37 }
 0x680   : > { %v5391_v60 = vsel %vm328_vm0, %v5389_v17, %v5390_v57  ;;  %v6238_v41 = vmul.f32 0.75, %v21782_v44  ;;  %v6448_v37 = vmul.f32 0.75, %v21790_v48  ;;  %v5929_v48 = vmul.f32 0.25, %v21774_v40 }
 0x681   : > { %v5393_v62 = vadd.f32 %v5391_v60, %v5384_v13  ;;  %v5285_v63 = vpop.permute.xlu1 %5284  ;;  %v5084_v8 = vrot.slane %v5076_v29, %v21711_v59  ;;  %v6135_v40 = vmul.f32 0.25, %v21784_v45  ;;  %v6345_v45 = vmul.f32 0.25, %v21800_v55 }
 0x682   : > { %v5605_v1 = vpop.permute.xlu0 %5604  ;;  %v5287_v43 = vadd.f32 %v5285_v63, %v5281_v38 }
 0x683   : > { %v5606_v2 = vrot.slane %v5605_v1, 6  ;;  %4669 = vrot.lane.b32.xlu0 %v4668_v58, %s21174_s18  ;;  %5193 = vrot.lane.b32.xlu1 %v5192_v0, %s24358_s12  ;;  %v5401_v12 = vrot.slane %v5393_v62, %v21711_v59  ;;  %v4246_v0 = vmul.f32 0.25, %v21792_v49 }
 0x684   : > { %v5295_v26 = vrot.slane %v5287_v43, %v21711_v59 }
 0x685   : > { %v5607_v7 = vsel %vm328_vm0, %v5606_v2, %v5605_v1  ;;  %v5716_v14 = vpop.permute.xlu1 %5715 }
 0x686   : > { %v5609_v11 = vadd.f32 %v5607_v7, %v5600_v3  ;;  %v5495_v21 = vpop.permute.xlu0 %5494  ;;  %v5717_v22 = vrot.slane %v5716_v14, 6 }
 0x687   : > { %v5496_v24 = vrot.slane %v5495_v21, 2  ;;  %4982 = vrot.lane.b32.xlu0 %v4981_v6, %s24364_s15  ;;  %5402 = vrot.lane.b32.xlu1 %v5401_v12, %s24360_s21 }
 0x688   : > { %v5617_v25 = vrot.slane %v5609_v11, %v21711_v59  ;;  %v5718_v33 = vsel %vm328_vm0, %v5717_v22, %v5716_v14 }
 0x689   : > { %v5497_v9 = vsel %vm328_vm0, %v5495_v21, %v5496_v24  ;;  %v6036_v23 = vpop.permute.xlu1 %6035  ;;  %v5720_v46 = vadd.f32 %v5718_v33, %v5711_v39  ;;  %v6865_v24 = vmul.f32 0.75, %v6864_v4 }
 0x68a   : > { %v5499_v34 = vadd.f32 %v5497_v9, %v5490_v28  ;;  %v5825_v35 = vpop.permute.xlu0 %5824  ;;  %v6038_v13 = vadd.f32 %v6036_v23, %v6032_v52  ;;  %v5618_v63 = vcombine.high %v5617_v25, %v5617_v25  ;;  %v7076_v9 = vld [vmem:[#allocation6 + $0x2] sm:$0xf]  ;;  %v6551_v52 = vmul.f32 0.25, %v21814_v15 }
 0x68b   : > { %7195 = vrot.lane.b32.xlu0 %v7193_v30, %s21172_s29  ;;  %5619 = vrot.lane.b32.xlu1 %v5617_v25, %s24362_s11  ;;  %v5728_v57 = vrot.slane %v5720_v46, %v21711_v59  ;;  %v5827_v61 = vadd.f32 %v5825_v35, %v5821_v36  ;;  %v7077_v35 = vmul.f32 0.75, %v7076_v9  ;;  %v6970_v36 = vld [vmem:[#allocation6 + $0x2] sm:$0x3] }
 0x68c   : > { %v5507_v42 = vrot.slane %v5499_v34, %v21711_v59  ;;  %v6046_v60 = vrot.slane %v6038_v13, %v21711_v59  ;;  %v6762_v13 = vmul.f32 0.25, %v21816_v20  ;;  %v6971_v20 = vmul.f32 0.25, %v6970_v36 }
 0x68d   : > { %v4156_v17 = vpop.permute.xlu1 %4155  ;;  %v5835_v49 = vrot.slane %v5827_v61, %v21711_v59  ;;  %v5729_v5 = vcombine.high %v5728_v57, %v5728_v57 }
 0x68e   : > { %v5933_v51 = vpop.permute.xlu0 %5932  ;;  %v4158_v56 = vadd.f32 %v4156_v17, %v4152_v47 }
 0x68f   : > { %5085 = vrot.lane.b32.xlu0 %v5084_v8, %s24364_s15  ;;  %5508 = vrot.lane.b32.xlu1 %v5507_v42, %s24360_s21  ;;  %s21184_s21 = smov 76   ;;  %v5935_v11 = vadd.f32 %v5933_v51, %v5929_v48  ;;  %s21186_s15 = smov 22  }
 0x690   : > { %19236 = vmatmul.mubr.msk.f32.vlgmr.msra.gmra.mrb[42].mxu0 %vm24373_vm9, %v4158_v56 }
 0x691   : > { %v6139_v58 = vpop.permute.xlu1 %6138  ;;  %20460 = vmatpush3.bf16.msra.mxu0 %v21690_v18  ;;  %19253 = vmatprep.mubr.msk.f32.mxu0 %vm24375_vm7, %v21566_v31  ;;  %v5943_v25 = vrot.slane %v5935_v11, %v21711_v59 }
 0x692   : > { %v6242_v16 = vpop.permute.xlu0 %6241  ;;  %19251 = vmatprep.subr.mxu0 %v21566_v31  ;;  %v6141_v27 = vadd.f32 %v6139_v58, %v6135_v40 }
 0x693   : > { %5296 = vrot.lane.b32.xlu0 %v5295_v26, %s24358_s12  ;;  %5730 = vrot.lane.b32.xlu1 %v5728_v57, %s24362_s11  ;;  %v6244_v62 = vadd.f32 %v6242_v16, %v6238_v41  ;;  %s24365_s12 = smov 112  }
 0x694   : > { %v6149_v38 = vrot.slane %v6141_v27, %v21711_v59 }
 0x695   : > { %v4250_v2 = vpop.permute.xlu1 %4249  ;;  %19252 = vmatpush3.msk.msra.mxu0 %vm1106_vm11, %v21698_v19  ;;  %v6252_v12 = vrot.slane %v6244_v62, %v21711_v59 }
 0x696   : > { %v6452_v1 = vpop.permute.xlu0 %6451  ;;  %v4252_v44 = vadd.f32 %v4250_v2, %v4246_v0  ;;  %20464 = vmatprep.subr.bf16.mxu0 %v21153_v32 }
 0x697   : > { %5621 = vrot.lane.b32.xlu0 %v5618_v63, %s24362_s11  ;;  %6047 = vrot.lane.b32.xlu1 %v6046_v60, %s24367_s24  ;;  %v6454_v3 = vadd.f32 %v6452_v1, %v6448_v37 }
 0x698   : > { %19245 = vmatmul.mubr.msk.f32.vlgmr.msra.gmra.mrb[30].mxu1 %vm24373_vm9, %v4252_v44 }
 0x699   : > { %v6349_v7 = vpop.permute.xlu1 %6348  ;;  %20463 = vmatpush3.bf16.msra.mxu1 %v21690_v18  ;;  %19262 = vmatprep.mubr.msk.f32.mxu1 %vm24375_vm7, %v21566_v31  ;;  %v6462_v14 = vrot.slane %v6454_v3, %v21711_v59  ;;  %v7190_v3 = vld [vmem:[#allocation6 + $0x2] sm:$0xf] }
 0x69a   : > { %v6658_v6 = vpop.permute.xlu0 %6657  ;;  %19260 = vmatprep.subr.mxu1 %v21566_v31  ;;  %v6351_v39 = vadd.f32 %v6349_v7, %v6345_v45  ;;  %v21968_v7 = vld [vmem:[#allocation4] sm:$0xff] }
 0x69b   : > { %5836 = vrot.lane.b32.xlu0 %v5835_v49, %s24365_s12  ;;  %6253 = vrot.lane.b32.xlu1 %v6252_v12, %s21184_s21  ;;  %v6660_v21 = vadd.f32 %v6658_v6, %v6654_v10  ;;  %v7191_v10 = vmul.f32 0.25, %v7190_v3 }
 0x69c   : > { %v6359_v43 = vrot.slane %v6351_v39, %v21711_v59 }
 0x69d   : > { %v6870_v22 = vpop.permute.xlu1 %6869  ;;  %19261 = vmatpush3.msk.msra.mxu1 %vm1106_vm11, %v21698_v19  ;;  %v6668_v28 = vrot.slane %v6660_v21, %v21711_v59 }
 0x69e   : > { %v6871_v54 = vrot.slane %v6870_v22, 2  ;;  %20467 = vmatprep.subr.bf16.mxu1 %v21153_v32 }
 0x69f   : > { %5732 = vrot.lane.b32.xlu0 %v5729_v5, %s24362_s11  ;;  %6463 = vrot.lane.b32.xlu1 %v6462_v14, %s21159_s14  ;;  %s21185_s11 = smov 40  }
 0x6a0   : > { %v6872_v29 = vsel %vm328_vm0, %v6870_v22, %v6871_v54 }
 0x6a1   : > { %v6874_v30 = vadd.f32 %v6872_v29, %v6865_v24  ;;  %v7082_v33 = vpop.permute.xlu1 %7081 }
 0x6a2   : > { %v7083_v34 = vrot.slane %v7082_v33, 6 }
 0x6a3   : > { %5944 = vrot.lane.b32.xlu0 %v5943_v25, %s24365_s12  ;;  %6669 = vrot.lane.b32.xlu1 %v6668_v28, %s21185_s11  ;;  %v6882_v23 = vrot.slane %v6874_v30, %v21711_v59  ;;  %s24369_s12 = smov 4  }
 0x6a4   : > { %v7084_v42 = vsel %vm328_vm0, %v7083_v34, %v7082_v33 }
 0x6a5   : > { %v7086_v8 = vadd.f32 %v7084_v42, %v7077_v35 }
 0x6a7   : > { %6150 = vrot.lane.b32.xlu0 %v6149_v38, %s24367_s24  ;;  %6883 = vrot.lane.b32.xlu1 %v6882_v23, %s21186_s15  ;;  %v7094_v55 = vrot.slane %v7086_v8, %v21711_v59  ;;  %s21188_s24 = smov 114  }
 0x6a9   : > { %v7095_v37 = vcombine.high %v7094_v55, %v7094_v55 }
 0x6ab   : > { %6360 = vrot.lane.b32.xlu0 %v6359_v43, %s21184_s21  ;;  %7096 = vrot.lane.b32.xlu1 %v7094_v55, %s24369_s12 }
 0x6cb   : > { %v21912_v46 = vpop.f32.mrb[28].mxu1 }
 0x6cc   : > { %v19228_v47 = vpop.f32.mrb[29].mxu1  ;;  %v4145_v45 = vrot.slane %v21912_v46, %v21711_v59 }
 0x6e4   : > { %v4567_v17 = vpop.permute.xlu1 %4566 }
 0x6e5   : > { %v4361_v51 = vpop.permute.xlu0 %4360 }
 0x6e6   : > { %19254 = vmatmul.mubr.msk.f32.vlgmr.msra.gmra.mrb[44].mxu0 %vm24373_vm9, %v4361_v51 }
 0x6e7   : > { %20466 = vmatpush3.bf16.msra.mxu0 %v21690_v18  ;;  %19271 = vmatprep.mubr.msk.f32.mxu0 %vm24375_vm7, %v21566_v31 }
 0x6e8   : > { %19269 = vmatprep.subr.mxu0 %v21566_v31  ;;  %v6766_v26 = vpop.permute.xlu1 %6765 }
 0x6e9   : > { %v6555_v56 = vpop.permute.xlu0 %6554  ;;  %v6768_v58 = vadd.f32 %v6766_v26, %v6762_v13 }
 0x6ea   : > { %v6557_v57 = vadd.f32 %v6555_v56, %v6551_v52 }
 0x6eb   : > { %19270 = vmatpush3.msk.msra.mxu0 %vm1106_vm11, %v21698_v19  ;;  %v6776_v60 = vrot.slane %v6768_v58, %v21711_v59 }
 0x6ec   : > { %v6565_v16 = vrot.slane %v6557_v57, %v21711_v59  ;;  %19272 = vmatmul.mubr.msk.f32.vlgmr.msra.gmra.mrb[46].mxu0 %vm24373_vm9, %v4567_v17  ;;  %20470 = vmatprep.subr.bf16.mxu0 %v21153_v32  ;;  %v6976_v15 = vpop.permute.xlu1 %6975 }
 0x6ed   : > { %v4464_v41 = vpop.permute.xlu0 %4463  ;;  %20472 = vmatpush3.bf16.msra.mxu0 %v21690_v18  ;;  %19289 = vmatprep.mubr.msk.f32.mxu0 %vm24375_vm7, %v21566_v31  ;;  %v6977_v0 = vrot.slane %v6976_v15, 2 }
 0x6ee   : > { %6566 = vrot.lane.b32.xlu0 %v6565_v16, %s21159_s14  ;;  %19263 = vmatmul.mubr.msk.f32.vlgmr.msra.gmra.mrb[32].mxu1 %vm24373_vm9, %v4464_v41 }
 0x6ef   : > { %20469 = vmatpush3.bf16.msra.mxu1 %v21690_v18  ;;  %19287 = vmatprep.subr.mxu0 %v21566_v31  ;;  %v6978_v61 = vsel %vm328_vm0, %v6976_v15, %v6977_v0 }
 0x6f0   : > { %19278 = vmatprep.subr.mxu1 %v21566_v31  ;;  %19280 = vmatprep.mubr.msk.f32.mxu1 %vm24375_vm7, %v21566_v31  ;;  %v6980_v62 = vadd.f32 %v6978_v61, %v6971_v20 }
 0x6f1   : > { %v4777_v63 = vpop.permute.xlu0 %4776  ;;  %19288 = vmatpush3.msk.msra.mxu0 %vm1106_vm11, %v21698_v19  ;;  %v4880_v2 = vpop.permute.xlu1 %4879 }
 0x6f2   : > { %6777 = vrot.lane.b32.xlu0 %v6776_v60, %s21185_s11  ;;  %19290 = vmatmul.mubr.msk.f32.vlgmr.msra.gmra.mrb[48].mxu0 %vm24373_vm9, %v4777_v63  ;;  %v6988_v1 = vrot.slane %v6980_v62, %v21711_v59 }
 0x6f3   : > { %20476 = vmatprep.subr.bf16.mxu0 %v21153_v32  ;;  %19279 = vmatpush3.msk.msra.mxu1 %vm1106_vm11, %v21698_v19 }
 0x6f4   : > { %20478 = vmatpush3.bf16.msra.mxu0 %v21690_v18  ;;  %20473 = vmatprep.subr.bf16.mxu1 %v21153_v32 }
 0x6f5   : > { %v4670_v44 = vpop.permute.xlu0 %4669  ;;  %6989 = vrot.lane.b32.xlu1 %v6988_v1, %s21186_s15  ;;  %19305 = vmatprep.subr.mxu0 %v21566_v31  ;;  %v5194_v12 = vpop.permute.xlu1 %5193 }
 0x6f6   : > { %7098 = vrot.lane.b32.xlu0 %v7095_v37, %s24369_s12  ;;  %19281 = vmatmul.mubr.msk.f32.vlgmr.msra.gmra.mrb[34].mxu1 %vm24373_vm9, %v4670_v44 }
 0x6f7   : > { %20475 = vmatpush3.bf16.msra.mxu1 %v21690_v18  ;;  %19307 = vmatprep.mubr.msk.f32.mxu0 %vm24375_vm7, %v21566_v31 }
 0x6f8   : > { %19306 = vmatpush3.msk.msra.mxu0 %vm1106_vm11, %v21698_v19  ;;  %19296 = vmatprep.subr.mxu1 %v21566_v31 }
 0x6f9   : > { %v4983_v49 = vpop.permute.xlu0 %4982  ;;  %20482 = vmatprep.subr.bf16.mxu0 %v21153_v32  ;;  %19298 = vmatprep.mubr.msk.f32.mxu1 %vm24375_vm7, %v21566_v31  ;;  %v7300_v31 = vld [vmem:[#allocation6 + $0x4] sm:$0x3]  ;;  %v5403_v11 = vpop.permute.xlu1 %5402 }
 0x6fa   : > { %19308 = vmatmul.mubr.msk.f32.vlgmr.msra.gmra.mrb[50].mxu0 %vm24373_vm9, %v4983_v49  ;;  %v7301_v21 = vmul.f32 0.75, %v7300_v31  ;;  %v7302_v4 = vmul.f32 0.25, %v7300_v31 }
 0x6fb   : > { %19297 = vmatpush3.msk.msra.mxu1 %vm1106_vm11, %v21698_v19  ;;  %20484 = vmatpush3.bf16.msra.mxu0 %v21690_v18 }
 0x6fc   : > { %19299 = vmatmul.mubr.msk.f32.vlgmr.msra.gmra.mrb[36].mxu1 %vm24373_vm9, %v4880_v2  ;;  %20479 = vmatprep.subr.bf16.mxu1 %v21153_v32  ;;  %v7303_v54 = vadd.f32 %v7302_v4, %v7301_v21 }
 0x6fd   : > { %20481 = vmatpush3.bf16.msra.mxu1 %v21690_v18  ;;  %v7196_v6 = vpop.permute.xlu0 %7195  ;;  %19323 = vmatprep.subr.mxu0 %v21968_v7  ;;  %v5620_v27 = vpop.permute.xlu1 %5619 }
 0x6fe   : > { %v7197_v48 = vrot.slane %v7196_v6, 6  ;;  %19325 = vmatprep.mubr.msk.f32.mxu0 %vm24375_vm7, %v21968_v7  ;;  %19314 = vmatprep.subr.mxu1 %v21968_v7  ;;  %v7311_v28 = vrot.slane %v7303_v54, %v21711_v59 }
 0x6ff   : > { %19324 = vmatpush3.msk.msra.mxu0 %vm1106_vm11, %v21698_v19  ;;  %19316 = vmatprep.mubr.msk.f32.mxu1 %vm24375_vm7, %v21968_v7 }
 0x700   : > { %v7198_v14 = vsel %vm328_vm0, %v7197_v48, %v7196_v6  ;;  %19326 = vmatmul.mubr.msk.f32.vlgmr.msra.gmra.mrb[52].mxu0 %vm24373_vm9, %v5194_v12  ;;  %20488 = vmatprep.subr.bf16.mxu0 %v21153_v32 }
 0x701   : > { %v7200_v5 = vadd.f32 %v7198_v14, %v7191_v10  ;;  %19315 = vmatpush3.msk.msra.mxu1 %vm1106_vm11, %v21698_v19  ;;  %20490 = vmatpush3.bf16.msra.mxu0 %v21690_v18  ;;  %v5086_v22 = vpop.permute.xlu0 %5085  ;;  %v5509_v30 = vpop.permute.xlu1 %5508 }
 0x702   : > { %20485 = vmatprep.subr.bf16.mxu1 %v21153_v32  ;;  %19317 = vmatmul.mubr.msk.f32.vlgmr.msra.gmra.mrb[38].mxu1 %vm24373_vm9, %v5086_v22 }
 0x703   : > { %v7208_v40 = vrot.slane %v7200_v5, %v21711_v59  ;;  %20487 = vmatpush3.bf16.msra.mxu1 %v21690_v18  ;;  %19341 = vmatprep.subr.mxu0 %v21968_v7 }
 0x704   : > { %19343 = vmatprep.mubr.msk.f32.mxu0 %vm24375_vm7, %v21968_v7  ;;  %19332 = vmatprep.subr.mxu1 %v21968_v7 }
 0x705   : > { %19342 = vmatpush3.msk.msra.mxu0 %vm1106_vm11, %v21698_v19  ;;  %v5297_v24 = vpop.permute.xlu0 %5296  ;;  %7210 = vrot.lane.b32.xlu0 %v7208_v40, %s24369_s12  ;;  %v7209_v25 = vcombine.high %v7208_v40, %v7208_v40  ;;  %v5731_v23 = vpop.permute.xlu1 %5730 }
 0x706   : > { %19344 = vmatmul.mubr.msk.f32.vlgmr.msra.gmra.mrb[54].mxu0 %vm24373_vm9, %v5403_v11  ;;  %20494 = vmatprep.subr.bf16.mxu0 %v21153_v32 }
 0x707   : > { %19333 = vmatpush3.msk.msra.mxu1 %vm1106_vm11, %v21698_v19  ;;  %19334 = vmatprep.mubr.msk.f32.mxu1 %vm24375_vm7, %v21968_v7 }
 0x708   : > { %20496 = vmatpush3.bf16.msra.mxu0 %v21690_v18  ;;  %7212 = vrot.lane.b32.xlu1 %v7209_v25, %s24369_s12  ;;  %s21189_s12 = smov 102  }
 0x709   : > { %19335 = vmatmul.mubr.msk.f32.vlgmr.msra.gmra.mrb[40].mxu1 %vm24373_vm9, %v5297_v24  ;;  %20491 = vmatprep.subr.bf16.mxu1 %v21153_v32  ;;  %v5622_v29 = vpop.permute.xlu0 %5621  ;;  %v6048_v38 = vpop.permute.xlu1 %6047 }
 0x70a   : > { %20493 = vmatpush3.bf16.msra.mxu1 %v21690_v18  ;;  %v5624_v9 = vsel %vm24377_vm12, %v5620_v27, %v5622_v29  ;;  %7312 = vrot.lane.b32.xlu0 %v7311_v28, %s21188_s24 }
 0x70b   : > { %19359 = vmatprep.subr.mxu0 %v21968_v7  ;;  %19361 = vmatprep.mubr.msk.f32.mxu0 %vm24375_vm7, %v21968_v7 }
 0x70c   : > { %19360 = vmatpush3.msk.msra.mxu0 %vm1106_vm11, %v21698_v19  ;;  %19350 = vmatprep.subr.mxu1 %v21968_v7 }
 0x70d   : > { %19362 = vmatmul.mubr.msk.f32.vlgmr.msra.gmra.mrb[56].mxu0 %vm24373_vm9, %v5624_v9  ;;  %20500 = vmatprep.subr.bf16.mxu0 %v21153_v32  ;;  %v5837_v33 = vpop.permute.xlu0 %5836  ;;  %v6254_v42 = vpop.permute.xlu1 %6253 }
 0x70e   : > { %19351 = vmatpush3.msk.msra.mxu1 %vm1106_vm11, %v21698_v19  ;;  %19352 = vmatprep.mubr.msk.f32.mxu1 %vm24375_vm7, %v21968_v7 }
 0x70f   : > { %20502 = vmatpush3.bf16.msra.mxu0 %v21690_v18  ;;  %19353 = vmatmul.mubr.msk.f32.vlgmr.msra.gmra.mrb[42].mxu1 %vm24373_vm9, %v5509_v30 }
 0x710   : > { %20497 = vmatprep.subr.bf16.mxu1 %v21153_v32  ;;  %4146 = vrot.lane.b32.xlu0 %v4145_v45, %s21167_s22  ;;  %s21191_s22 = smov 42  }
 0x711   : > { %20499 = vmatpush3.bf16.msra.mxu1 %v21690_v18  ;;  %19377 = vmatprep.subr.mxu0 %v21968_v7  ;;  %v5733_v34 = vpop.permute.xlu0 %5732  ;;  %v6464_v55 = vpop.permute.xlu1 %6463 }
 0x712   : > { %19379 = vmatprep.mubr.msk.f32.mxu0 %vm24375_vm7, %v21968_v7  ;;  %19368 = vmatprep.subr.mxu1 %v21968_v7  ;;  %v5734_v35 = vsel %vm24377_vm12, %v5731_v23, %v5733_v34  ;;  %vm5278_vm12 = vcmask 468160  }
 0x713   : > { %19378 = vmatpush3.msk.msra.mxu0 %vm1106_vm11, %v21698_v19  ;;  %19370 = vmatprep.mubr.msk.f32.mxu1 %vm24375_vm7, %v21968_v7 }
 0x714   : > { %19380 = vmatmul.mubr.msk.f32.vlgmr.msra.gmra.mrb[58].mxu0 %vm24373_vm9, %v5837_v33  ;;  %20506 = vmatprep.subr.bf16.mxu0 %v21153_v32 }
 0x715   : > { %19369 = vmatpush3.msk.msra.mxu1 %vm1106_vm11, %v21698_v19  ;;  %20508 = vmatpush3.bf16.msra.mxu0 %v21690_v18  ;;  %v5945_v39 = vpop.permute.xlu0 %5944  ;;  %v6670_v46 = vpop.permute.xlu1 %6669 }
 0x716   : > { %19371 = vmatmul.mubr.msk.f32.vlgmr.msra.gmra.mrb[44].mxu1 %vm24373_vm9, %v5734_v35  ;;  %20503 = vmatprep.subr.bf16.mxu1 %v21153_v32 }
 0x717   : > { %20505 = vmatpush3.bf16.msra.mxu1 %v21690_v18  ;;  %19395 = vmatprep.subr.mxu0 %v21968_v7 }
 0x718   : > { %19397 = vmatprep.mubr.msk.f32.mxu0 %vm24375_vm7, %v21968_v7  ;;  %19386 = vmatprep.subr.mxu1 %v21968_v7 }
 0x719   : > { %19396 = vmatpush3.msk.msra.mxu0 %vm1106_vm11, %v21698_v19  ;;  %19388 = vmatprep.mubr.msk.f32.mxu1 %vm24375_vm7, %v21968_v7  ;;  %v6151_v8 = vpop.permute.xlu0 %6150  ;;  %v6884_v47 = vpop.permute.xlu1 %6883 }
 0x71a   : > { %19398 = vmatmul.mubr.msk.f32.vlgmr.msra.gmra.mrb[60].mxu0 %vm24373_vm9, %v6048_v38  ;;  %20512 = vmatprep.subr.bf16.mxu0 %v21153_v32 }
 0x71b   : > { %19387 = vmatpush3.msk.msra.mxu1 %vm1106_vm11, %v21698_v19  ;;  %20514 = vmatpush3.bf16.msra.mxu0 %v21690_v18 }
 0x71c   : > { %19389 = vmatmul.mubr.msk.f32.vlgmr.msra.gmra.mrb[46].mxu1 %vm24373_vm9, %v5945_v39  ;;  %20509 = vmatprep.subr.bf16.mxu1 %v21153_v32 }
 0x71d   : > { %20511 = vmatpush3.bf16.msra.mxu1 %v21690_v18  ;;  %19413 = vmatprep.subr.mxu0 %v21968_v7  ;;  %v6361_v43 = vpop.permute.xlu0 %6360  ;;  %v7097_v26 = vpop.permute.xlu1 %7096 }
 0x71e   : > { %19415 = vmatprep.mubr.msk.f32.mxu0 %vm24375_vm7, %v21968_v7  ;;  %19404 = vmatprep.subr.mxu1 %v21968_v7 }
 0x71f   : > { %19414 = vmatpush3.msk.msra.mxu0 %vm1106_vm11, %v21698_v19  ;;  %19406 = vmatprep.mubr.msk.f32.mxu1 %vm24375_vm7, %v21968_v7 }
 0x720   : > { %19416 = vmatmul.mubr.msk.f32.vlgmr.msra.gmra.mrb[62].mxu0 %vm24373_vm9, %v6254_v42  ;;  %20518 = vmatprep.subr.bf16.mxu0 %v21153_v32 }
 0x721   : > { %19405 = vmatpush3.msk.msra.mxu1 %vm1106_vm11, %v21698_v19  ;;  %20520 = vmatpush3.bf16.msra.mxu0 %v21690_v18 }
 0x722   : > { %19407 = vmatmul.mubr.msk.f32.vlgmr.msra.gmra.mrb[48].mxu1 %vm24373_vm9, %v6151_v8  ;;  %20515 = vmatprep.subr.bf16.mxu1 %v21153_v32 }
 0x723   : > { %20517 = vmatpush3.bf16.msra.mxu1 %v21690_v18  ;;  %19431 = vmatprep.subr.mxu0 %v21968_v7 }
 0x724   : > { %19433 = vmatprep.mubr.msk.f32.mxu0 %vm24375_vm7, %v21968_v7  ;;  %19422 = vmatprep.subr.mxu1 %v21968_v7 }
 0x725   : > { %19432 = vmatpush3.msk.msra.mxu0 %vm1106_vm11, %v21698_v19  ;;  %19424 = vmatprep.mubr.msk.f32.mxu1 %vm24375_vm7, %v21968_v7 }
 0x726   : > { %19434 = vmatmul.mubr.msk.f32.vlgmr.msra.gmra.mrb[64].mxu0 %vm24373_vm9, %v6464_v55  ;;  %20524 = vmatprep.subr.bf16.mxu0 %v21153_v32 }
 0x727   : > { %19423 = vmatpush3.msk.msra.mxu1 %vm1106_vm11, %v21698_v19  ;;  %20526 = vmatpush3.bf16.msra.mxu0 %v21690_v18  ;;  %v21123_v19 = vld [vmem:[%s24333_s7 + $0x10] sm:$0x3] }
 0x728   : > { %19425 = vmatmul.mubr.msk.f32.vlgmr.msra.gmra.mrb[50].mxu1 %vm24373_vm9, %v6361_v43  ;;  %19449 = vmatprep.subr.mxu0 %v21968_v7 }
 0x729   : > { %19451 = vmatprep.mubr.msk.f32.mxu0 %vm24375_vm7, %v21968_v7  ;;  %20521 = vmatprep.subr.bf16.mxu1 %v21153_v32 }
 0x72a   : > { %20523 = vmatpush3.bf16.msra.mxu1 %v21690_v18  ;;  %19442 = vmatprep.mubr.msk.f32.mxu1 %vm24375_vm7, %v21968_v7 }
 0x72b   : > { %19450 = vmatpush3.msk.msra.mxu0 %vm1106_vm11, %v21123_v19  ;;  %19440 = vmatprep.subr.mxu1 %v21968_v7 }
 0x72c   : > { %19452 = vmatmul.mubr.msk.f32.vlgmr.msra.gmra.mrb[66].mxu0 %vm24373_vm9, %v6670_v46  ;;  %20530 = vmatprep.subr.bf16.mxu0 %v21153_v32 }
 0x72d   : > { %20532 = vmatpush3.bf16.msra.mxu0 %v21690_v18  ;;  %19469 = vmatprep.mubr.msk.f32.mxu0 %vm24375_vm7, %v21968_v7 }
 0x72e   : > { %19467 = vmatprep.subr.mxu0 %v21968_v7  ;;  %19441 = vmatpush3.msk.msra.mxu1 %vm1106_vm11, %v21123_v19 }
 0x72f   : > { %20527 = vmatprep.subr.bf16.mxu1 %v21153_v32 }
 0x731   : > { %19468 = vmatpush3.msk.msra.mxu0 %vm1106_vm11, %v21123_v19 }
 0x732   : > { %19470 = vmatmul.mubr.msk.f32.vlgmr.msra.gmra.mrb[68].mxu0 %vm24373_vm9, %v6884_v47  ;;  %20536 = vmatprep.subr.bf16.mxu0 %v21153_v32 }
 0x733   : > { %20538 = vmatpush3.bf16.msra.mxu0 %v21690_v18  ;;  %19487 = vmatprep.mubr.msk.f32.mxu0 %vm24375_vm7, %v21968_v7 }
 0x734   : > { %19485 = vmatprep.subr.mxu0 %v21968_v7 }
 0x737   : > { %19486 = vmatpush3.msk.msra.mxu0 %vm1106_vm11, %v21123_v19 }
 0x738   : > { %20542 = vmatprep.subr.bf16.mxu0 %v21153_v32 }
 0x760   : > { %v6567_v51 = vpop.permute.xlu0 %6566 }
 0x761   : > { %19443 = vmatmul.mubr.msk.f32.vlgmr.msra.gmra.mrb[52].mxu1 %vm24373_vm9, %v6567_v51 }
 0x762   : > { %20529 = vmatpush3.bf16.msra.mxu1 %v21690_v18  ;;  %19460 = vmatprep.mubr.msk.f32.mxu1 %vm24375_vm7, %v21968_v7 }
 0x763   : > { %19458 = vmatprep.subr.mxu1 %v21968_v7  ;;  %v4228_v52 = vpop.f32.mrb[42].mxu0 }
 0x764   : > { %v6778_v17 = vpop.permute.xlu0 %6777  ;;  %v19237_v56 = vpop.f32.mrb[43].mxu0  ;;  %v4239_v15 = vrot.slane %v4228_v52, %v21711_v59 }
 0x766   : > { %19459 = vmatpush3.msk.msra.mxu1 %vm1106_vm11, %v21123_v19 }
 0x767   : > { %19461 = vmatmul.mubr.msk.f32.vlgmr.msra.gmra.mrb[54].mxu1 %vm24373_vm9, %v6778_v17  ;;  %20533 = vmatprep.subr.bf16.mxu1 %v21153_v32  ;;  %v6990_v16 = vpop.permute.xlu1 %6989 }
 0x768   : > { %20535 = vmatpush3.bf16.msra.mxu1 %v21690_v18  ;;  %v7099_v57 = vpop.permute.xlu0 %7098  ;;  %19478 = vmatprep.mubr.msk.f32.mxu1 %vm24375_vm7, %v21968_v7 }
 0x769   : > { %v7100_v13 = vsel %vm24371_vm3, %v7097_v26, %v7099_v57  ;;  %19476 = vmatprep.subr.mxu1 %v21968_v7 }
 0x76a   : > { %19488 = vmatmul.mubr.msk.f32.vlgmr.msra.gmra.mrb[70].mxu0 %vm24373_vm9, %v7100_v13 }
 0x76b   : > { %20544 = vmatpush3.bf16.msra.mxu0 %v21690_v18  ;;  %19505 = vmatprep.mubr.msk.f32.mxu0 %vm24375_vm7, %v21968_v7  ;;  %v4322_v58 = vpop.f32.mrb[30].mxu1 }
 0x76c   : > { %19477 = vmatpush3.msk.msra.mxu1 %vm1106_vm11, %v21123_v19  ;;  %19503 = vmatprep.subr.mxu0 %v21968_v7  ;;  %v4333_v36 = vrot.slane %v4322_v58, %v21711_v59  ;;  %v19246_v41 = vpop.f32.mrb[31].mxu1 }
 0x76d   : > { %19479 = vmatmul.mubr.msk.f32.vlgmr.msra.gmra.mrb[56].mxu1 %vm24373_vm9, %v6990_v16  ;;  %20539 = vmatprep.subr.bf16.mxu1 %v21153_v32 }
 0x76e   : > { %20541 = vmatpush3.bf16.msra.mxu1 %v21690_v18  ;;  %19496 = vmatprep.mubr.msk.f32.mxu1 %vm24375_vm7, %v21968_v7  ;;  %vm5170_vm7 = vcmask 965632  }
 0x76f   : > { %4334 = vrot.lane.b32.xlu1 %v4333_v36, %s21189_s12  ;;  %19494 = vmatprep.subr.mxu1 %v21968_v7  ;;  %s21192_s12 = smov 50  }
 0x770   : > { %19504 = vmatpush3.msk.msra.mxu0 %vm1106_vm11, %v21123_v19 }
 0x772   : > { %19495 = vmatpush3.msk.msra.mxu1 %vm1106_vm11, %v21123_v19 }
 0x773   : > { %4240 = vrot.lane.b32.xlu1 %v4239_v15, %s21158_s13  ;;  %s21190_s13 = smov 8  }
 0x777   : > { %v7211_v0 = vpop.permute.xlu0 %7210 }
 0x77a   : > { %v7213_v20 = vpop.permute.xlu1 %7212 }
 0x77b   : > { %v7214_v60 = vsel %vm24371_vm3, %v7211_v0, %v7213_v20  ;;  %vm4342_vm3 = vmor %vm4341_vm1, %vm4340_vm14  ;;  %vm4548_vm14 = vcmask 615760   ;;  %vm4057_vm1 = vcmask 306178  }
 0x77c   : > { %v7313_v18 = vpop.permute.xlu0 %7312  ;;  %19497 = vmatmul.mubr.msk.f32.vlgmr.msra.gmra.mrb[58].mxu1 %vm24373_vm9, %v7214_v60 }
 0x77d   : > { %19506 = vmatmul.mubr.msk.f32.vlgmr.msra.gmra.mrb[72].mxu0 %vm24373_vm9, %v7313_v18  ;;  %7559 = vmatprep.mubr.f32.mxu1 %v21968_v7  ;;  %vm5173_vm9 = vcmask 1042352  }
 0x77e   : > { %7630 = vmatprep.mubr.f32.mxu0 %v21968_v7 }
 0x782   : > { %v4147_v61 = vpop.permute.xlu0 %4146 }
 0x783   : > { %4150 = vst.msk [vmem:[#allocation4] sm:$0x3] %vm4149_vm13, %v4147_v61  ;;  %vm4243_vm13 = vcmask 828960  }
 0x7b9   : > { %v4430_v62 = vpop.f32.mrb[44].mxu0 }
 0x7ba   : > { %v4441_v63 = vrot.slane %v4430_v62, %v21711_v59  ;;  %v19255_v1 = vpop.f32.mrb[45].mxu0 }
 0x7bc   : > { %4442 = vrot.lane.b32.xlu0 %v4441_v63, %s21190_s13  ;;  %s21197_s13 = smov 6  }
 0x7bf   : > { %v4636_v2 = vpop.f32.mrb[46].mxu0 }
 0x7c0   : > { %v19273_v37 = vpop.f32.mrb[47].mxu0  ;;  %v4647_v21 = vrot.slane %v4636_v2, %v21711_v59 }
 0x7c1   : > { %v4533_v44 = vpop.f32.mrb[32].mxu1 }
 0x7c2   : > { %v4544_v49 = vrot.slane %v4533_v44, %v21711_v59  ;;  %v19264_v12 = vpop.f32.mrb[33].mxu1 }
 0x7c4   : > { %4545 = vrot.lane.b32.xlu0 %v4544_v49, %s21191_s22  ;;  %s21202_s22 = smov 93  }
 0x7c5   : > { %v4846_v3 = vpop.f32.mrb[48].mxu0 }
 0x7c6   : > { %v4857_v6 = vrot.slane %v4846_v3, %v21711_v59  ;;  %v19291_v31 = vpop.f32.mrb[49].mxu0 }
 0x7c8   : > { %4858 = vrot.lane.b32.xlu0 %v4857_v6, %s21165_s20  ;;  %s21193_s20 = smov 24  }
 0x7c9   : > { %v4739_v48 = vpop.f32.mrb[34].mxu1 }
 0x7ca   : > { %v4750_v10 = vrot.slane %v4739_v48, %v21711_v59  ;;  %v19282_v11 = vpop.f32.mrb[35].mxu1 }
 0x7cc   : > { %4751 = vrot.lane.b32.xlu1 %v4750_v10, %s21172_s29  ;;  %s21194_s29 = smov 84  }
 0x7cd   : > { %v5052_v14 = vpop.f32.mrb[50].mxu0 }
 0x7ce   : > { %v19309_v4 = vpop.f32.mrb[51].mxu0  ;;  %v5063_v30 = vrot.slane %v5052_v14, %v21711_v59 }
 0x7cf   : > { %v4949_v5 = vpop.f32.mrb[36].mxu1 }
 0x7d0   : > { %v4960_v22 = vrot.slane %v4949_v5, %v21711_v59  ;;  %v19300_v40 = vpop.f32.mrb[37].mxu1  ;;  %4648 = vrot.lane.b32.xlu1 %v4647_v21, %s21184_s21  ;;  %s21196_s21 = smov 100  }
 0x7d2   : > { %4961 = vrot.lane.b32.xlu0 %v4960_v22, %s21192_s12  ;;  %s21203_s12 = smov 60  }
 0x7d3   : > { %v5263_v54 = vpop.f32.mrb[52].mxu0 }
 0x7d4   : > { %v5274_v24 = vrot.slane %v5263_v54, %v21711_v59  ;;  %v19327_v25 = vpop.f32.mrb[53].mxu0 }
 0x7d5   : > { %v5155_v27 = vpop.f32.mrb[38].mxu1 }
 0x7d6   : > { %5275 = vrot.lane.b32.xlu0 %v5274_v24, %s21193_s20  ;;  %v5166_v28 = vrot.slane %v5155_v27, %v21711_v59  ;;  %v19318_v29 = vpop.f32.mrb[39].mxu1  ;;  %s21207_s20 = smov 120  }
 0x7d8   : > { %5167 = vrot.lane.b32.xlu1 %v5166_v28, %s21147_s26  ;;  %s21195_s26 = smov 66  }
 0x7d9   : > { %v5472_v9 = vpop.f32.mrb[54].mxu0 }
 0x7da   : > { %v19345_v33 = vpop.f32.mrb[55].mxu0  ;;  %v5483_v47 = vrot.slane %v5472_v9, %v21711_v59 }
 0x7dc   : > { %v5366_v45 = vpop.f32.mrb[40].mxu1  ;;  %5064 = vrot.lane.b32.xlu1 %v5063_v30, %s21194_s29  ;;  %s21208_s29 = smov 86  }
 0x7dd   : > { %v5377_v34 = vrot.slane %v5366_v45, %v21711_v59  ;;  %v19336_v23 = vpop.f32.mrb[41].mxu1 }
 0x7df   : > { %5378 = vrot.lane.b32.xlu0 %v5377_v34, %s21159_s14 }
 0x7e0   : > { %v5693_v35 = vpop.f32.mrb[56].mxu0 }
 0x7e1   : > { %v19363_v38 = vpop.f32.mrb[57].mxu0  ;;  %v4335_v39 = vpop.permute.xlu1 %4334  ;;  %v5704_v57 = vrot.slane %v5693_v35, %v21711_v59 }
 0x7e2   : > { %v5578_v42 = vpop.f32.mrb[42].mxu1  ;;  %v4336_v8 = vrot.slane %v4335_v39, 6 }
 0x7e3   : > { %v5589_v55 = vrot.slane %v5578_v42, %v21711_v59  ;;  %v19354_v43 = vpop.f32.mrb[43].mxu1 }
 0x7e4   : > { %v4338_v19 = vsel %vm4337_vm4, %v4336_v8, %v4335_v39  ;;  %vm4058_vm4 = vmor %vm4057_vm1, %vm1106_vm11 }
 0x7e5   : > { %5590 = vrot.lane.b32.xlu1 %v5589_v55, %s21144_s23  ;;  %v4241_v46 = vpop.permute.xlu1 %4240  ;;  %4059 = vst.msk [vmem:[#allocation4 + $0x10] sm:$0xf] %vm4058_vm4, %v21968_v7  ;;  %vm4861_vm4 = vcmask 402560  }
 0x7e6   : > { %4244 = vst.msk [vmem:[#allocation4] sm:$0x3] %vm4243_vm13, %v4241_v46  ;;  %vm4756_vm13 = vcmask 1042288  }
 0x7e7   : > { %v5906_v51 = vpop.f32.mrb[58].mxu0  ;;  %4343 = vst.msk [vmem:[#allocation4] sm:$0xf] %vm4342_vm3, %v4338_v19  ;;  %vm4445_vm3 = vcmask 336960  }
 0x7e8   : > { %v19381_v17 = vpop.f32.mrb[59].mxu0  ;;  %v5917_v16 = vrot.slane %v5906_v51, %v21711_v59 }
 0x7e9   : > { %v5803_v52 = vpop.f32.mrb[44].mxu1  ;;  %5484 = vrot.lane.b32.xlu1 %v5483_v47, %s21174_s18 }
 0x7ea   : > { %v5814_v56 = vrot.slane %v5803_v52, %v21711_v59  ;;  %v19372_v26 = vpop.f32.mrb[45].mxu1 }
 0x7ec   : > { %5815 = vrot.lane.b32.xlu0 %v5814_v56, %s21195_s26  ;;  %s21204_s26 = smov 59  }
 0x7ed   : > { %v6117_v13 = vpop.f32.mrb[60].mxu0  ;;  %5705 = vrot.lane.b32.xlu1 %v5704_v57, %s21170_s17  ;;  %s21198_s17 = smov 48  }
 0x7ee   : > { %v19399_v58 = vpop.f32.mrb[61].mxu0  ;;  %v6128_v20 = vrot.slane %v6117_v13, %v21711_v59 }
 0x7ef   : > { %v6014_v36 = vpop.f32.mrb[46].mxu1 }
 0x7f0   : > { %v6025_v41 = vrot.slane %v6014_v36, %v21711_v59  ;;  %5918 = vrot.lane.b32.xlu0 %v5917_v16, %s21196_s21  ;;  %v19390_v15 = vpop.f32.mrb[47].mxu1  ;;  %s24446_s21 = smov 54  }
 0x7f2   : > { %6026 = vrot.lane.b32.xlu1 %v6025_v41, %s21197_s13  ;;  %s24448_s13 = smov 20  }
 0x7f3   : > { %v6323_v0 = vpop.f32.mrb[62].mxu0 }
 0x7f4   : > { %v19417_v60 = vpop.f32.mrb[63].mxu0  ;;  %v6334_v1 = vrot.slane %v6323_v0, %v21711_v59 }
 0x7f5   : > { %v6220_v18 = vpop.f32.mrb[48].mxu1 }
 0x7f6   : > { %v6231_v61 = vrot.slane %v6220_v18, %v21711_v59  ;;  %6129 = vrot.lane.b32.xlu1 %v6128_v20, %s21185_s11  ;;  %v19408_v62 = vpop.f32.mrb[49].mxu1  ;;  %s24383_s11 = smov 94  }
 0x7f8   : > { %6232 = vrot.lane.b32.xlu0 %v6231_v61, %s21177_s19  ;;  %s21201_s19 = smov 64  }
 0x7f9   : > { %v6533_v63 = vpop.f32.mrb[64].mxu0 }
 0x7fa   : > { %v19435_v2 = vpop.f32.mrb[65].mxu0  ;;  %v6544_v3 = vrot.slane %v6533_v63, %v21711_v59 }
 0x7fb   : > { %v6430_v37 = vpop.f32.mrb[50].mxu1 }
 0x7fc   : > { %v6441_v44 = vrot.slane %v6430_v37, %v21711_v59  ;;  %6335 = vrot.lane.b32.xlu0 %v6334_v1, %s21149_s27  ;;  %v19426_v49 = vpop.f32.mrb[51].mxu1  ;;  %s21199_s27 = smov 82  }
 0x7fe   : > { %6442 = vrot.lane.b32.xlu1 %v6441_v44, %s21171_s16  ;;  %s24380_s16 = smov 56  }
 0x7ff   : > { %v6739_v12 = vpop.f32.mrb[66].mxu0 }
 0x800   : > { %v19453_v6 = vpop.f32.mrb[67].mxu0  ;;  %v6750_v5 = vrot.slane %v6739_v12, %v21711_v59 }
 0x802   : > { %6545 = vrot.lane.b32.xlu1 %v6544_v3, %s21198_s17 }
 0x805   : > { %v6953_v31 = vpop.f32.mrb[68].mxu0 }
 0x806   : > { %v19471_v48 = vpop.f32.mrb[69].mxu0  ;;  %v6964_v29 = vrot.slane %v6953_v31, %v21711_v59 }
 0x82e   : > { %v4443_v10 = vpop.permute.xlu0 %4442 }
 0x82f   : > { %4446 = vst.msk [vmem:[#allocation4 + $0x2] sm:$0x3] %vm4445_vm3, %v4443_v10  ;;  %vm4757_vm3 = vcmask 125954  }
 0x830   : > { %vm4758_vm1 = vmor %vm4757_vm3, %vm4756_vm13  ;;  %vm5067_vm13 = vcmask 960160  }
 0x831   : > { %vm5175_vm3 = vmor %vm5174_vm6, %vm5173_vm9  ;;  %vm5487_vm6 = vcmask 1025760  }
 0x834   : > { %v6636_v11 = vpop.f32.mrb[52].mxu1 }
 0x835   : > { %v6647_v14 = vrot.slane %v6636_v11, %v21711_v59  ;;  %v19444_v21 = vpop.f32.mrb[53].mxu1 }
 0x836   : > { %v4546_v4 = vpop.permute.xlu0 %4545 }
 0x837   : > { %4549 = vst.msk [vmem:[#allocation4 + $0x2] sm:$0x3] %vm4548_vm14, %v4546_v4  ;;  %6648 = vrot.lane.b32.xlu0 %v6647_v14, %s21199_s27  ;;  %vm4651_vm14 = vcmask 894560   ;;  %s21210_s27 = smov 10  }
 0x83a   : > { %v6847_v22 = vpop.f32.mrb[54].mxu1  ;;  %v4859_v33 = vpop.permute.xlu0 %4858 }
 0x83b   : > { %v6858_v40 = vrot.slane %v6847_v22, %v21711_v59  ;;  %v19462_v54 = vpop.f32.mrb[55].mxu1  ;;  %6751 = vrot.lane.b32.xlu0 %v6750_v5, %s21150_s28  ;;  %s24381_s28 = smov 90  }
 0x83d   : > { %6859 = vrot.lane.b32.xlu1 %v6858_v40, %s21186_s15  ;;  %v7169_v24 = vpop.f32.mrb[70].mxu0  ;;  %s24382_s15 = smov 127  }
 0x83e   : > { %v7180_v25 = vrot.slane %v7169_v24, %v21711_v59  ;;  %v19489_v27 = vpop.f32.mrb[71].mxu0  ;;  %v4752_v28 = vpop.permute.xlu1 %4751 }
 0x83f   : > { %v4753_v9 = vrot.slane %v4752_v28, 6 }
 0x840   : > { %v7059_v30 = vpop.f32.mrb[56].mxu1  ;;  %7181 = vrot.lane.b32.xlu0 %v7180_v25, %s21168_s25  ;;  %s21200_s25 = smov 30  }
 0x841   : > { %6965 = vrot.lane.b32.xlu1 %v6964_v29, %s24380_s16  ;;  %v19480_v45 = vpop.f32.mrb[57].mxu1  ;;  %v7070_v34 = vrot.slane %v7059_v30, %v21711_v59  ;;  %v4754_v35 = vsel %vm328_vm0, %v4753_v9, %v4752_v28  ;;  %vm5381_vm0 = vcmask 746960   ;;  %s21211_s16 = smov 104  }
 0x842   : > { %v4649_v23 = vpop.permute.xlu1 %4648 }
 0x843   : > { %4652 = vst.msk [vmem:[#allocation4 + $0x2] sm:$0x3] %vm4651_vm14, %v4649_v23  ;;  %vm5818_vm14 = vcmask 812560  }
 0x844   : > { %4759 = vst.msk [vmem:[#allocation4 + $0x2] sm:$0xf] %vm4758_vm1, %v4754_v35  ;;  %7071 = vrot.lane.b32.xlu0 %v7070_v34, %s24381_s28  ;;  %v4962_v38 = vpop.permute.xlu0 %4961  ;;  %vm5924_vm1 = vcmask 1042208   ;;  %s24439_s28 = smov 70  }
 0x845   : > { %4862 = vst.msk [vmem:[#allocation4 + $0x4] sm:$0x3] %vm4861_vm4, %v4859_v33  ;;  %vm5925_vm4 = vcmask 44034  }
 0x846   : > { %4965 = vst.msk [vmem:[#allocation4 + $0x4] sm:$0x3] %vm4964_vm15, %v4962_v38  ;;  %vm5596_vm15 = vcmask 257026  }
 0x848   : > { %v5276_v8 = vpop.permute.xlu0 %5275 }
 0x84a   : > { %v5168_v39 = vpop.permute.xlu1 %5167 }
 0x84b   : > { %v5169_v42 = vrot.slane %v5168_v39, 6 }
 0x84d   : > { %v5171_v43 = vsel %vm5170_vm7, %v5169_v42, %v5168_v39  ;;  %vm5595_vm7 = vcmask 1042416   ;;  %v22316_v42 = vld [vmem:[%s24331_s5 + $0x1] sm:$0x1] }
 0x84e   : > { %v5065_v55 = vpop.permute.xlu1 %5064  ;;  %vm5597_vm9 = vmor %vm5596_vm15, %vm5595_vm7  ;;  %vm6132_vm7 = vcmask 599360   ;;  %vm6235_vm15 = vcmask 878160  }
 0x84f   : > { %5068 = vst.msk [vmem:[#allocation4 + $0x4] sm:$0x3] %vm5067_vm13, %v5065_v55  ;;  %v7283_v46 = vpop.f32.mrb[58].mxu1  ;;  %vm5921_vm13 = vcmask 818176  }
 0x850   : > { %5176 = vst.msk [vmem:[#allocation4 + $0x4] sm:$0xf] %vm5175_vm3, %v5171_v43  ;;  %v7294_v19 = vrot.slane %v7283_v46, %v21711_v59  ;;  %v7382_v47 = vpop.f32.mrb[72].mxu0  ;;  %v19498_v51 = vpop.f32.mrb[59].mxu1  ;;  %vm5926_vm3 = vmor %vm5925_vm4, %vm5924_vm1  ;;  %vm6548_vm1 = vcmask 664960   ;;  %vm6757_vm4 = vcmask 1042336  }
 0x851   : > { %v7393_v17 = vrot.slane %v7382_v47, %v21711_v59  ;;  %5279 = vst.msk [vmem:[#allocation4 + $0x6] sm:$0x3] %vm5278_vm12, %v5276_v8  ;;  %v5379_v52 = vpop.permute.xlu0 %5378  ;;  %v19507_v56 = vpop.f32.mrb[73].mxu0  ;;  %vm5708_vm12 = vcmask 533760  }
 0x852   : > { %5382 = vst.msk [vmem:[#allocation4 + $0x6] sm:$0x3] %vm5381_vm0, %v5379_v52  ;;  %7295 = vrot.lane.b32.xlu1 %v7294_v19, %s21200_s25  ;;  %vm6029_vm0 = vcmask 320560   ;;  %s24441_s25 = smov 36  }
 0x853   : > { %7394 = vrot.lane.b32.xlu0 %v7393_v17, %s21201_s19 }
 0x857   : > { %v5591_v26 = vpop.permute.xlu1 %5590 }
 0x858   : > { %v5592_v57 = vrot.slane %v5591_v26, 6 }
 0x85a   : > { %v5593_v16 = vsel %vm1714_vm10, %v5592_v57, %v5591_v26 }
 0x85b   : > { %v5485_v13 = vpop.permute.xlu1 %5484 }
 0x85c   : > { %5488 = vst.msk [vmem:[#allocation4 + $0x6] sm:$0x3] %vm5487_vm6, %v5485_v13  ;;  %vm6340_vm6 = vcmask 1042272  }
 0x85d   : > { %5598 = vst.msk [vmem:[#allocation4 + $0x6] sm:$0xf] %vm5597_vm9, %v5593_v16  ;;  %vm6341_vm9 = vcmask 109570  }
 0x85e   : > { %v5816_v58 = vpop.permute.xlu0 %5815 }
 0x85f   : > { %v5706_v36 = vpop.permute.xlu1 %5705 }
 0x860   : > { %5709 = vst.msk [vmem:[#allocation4 + $0x8] sm:$0x3] %vm5708_vm12, %v5706_v36  ;;  %vm6342_vm12 = vmor %vm6341_vm9, %vm6340_vm6  ;;  %vm7186_vm6 = vcmask 1042400   ;;  %vm7187_vm9 = vcmask 240642  }
 0x861   : > { %5819 = vst.msk [vmem:[#allocation4 + $0x8] sm:$0x3] %vm5818_vm14, %v5816_v58  ;;  %vm6445_vm14 = vcmask 386160  }
 0x862   : > { %v5919_v41 = vpop.permute.xlu0 %5918 }
 0x863   : > { %v5920_v15 = vrot.slane %v5919_v41, 6 }
 0x864   : > { %v6027_v0 = vpop.permute.xlu1 %6026  ;;  %v8224_v20 = vld [vmem:[#allocation4] sm:$0xff] }
 0x865   : > { %v5922_v60 = vsel %vm5921_vm13, %v5920_v15, %v5919_v41  ;;  %v22207_v18 = vrot.slane %v8224_v20, %v21711_v59  ;;  %v7407_v61 = vcombine.high %v8224_v20, %v8224_v20  ;;  %vm6758_vm13 = vcmask 175106  }
 0x866   : > { %5927 = vst.msk [vmem:[#allocation4 + $0x8] sm:$0xf] %vm5926_vm3, %v5922_v60  ;;  %vm6754_vm3 = vcmask 949248  }
 0x867   : > { %6030 = vst.msk [vmem:[#allocation4 + $0xa] sm:$0x3] %vm6029_vm0, %v6027_v0  ;;  %8272 = vrot.lane.b32.xlu0 %v22207_v18, %s21144_s23  ;;  %7448 = vrot.lane.b32.xlu1 %v22207_v18, %s24382_s15  ;;  %v22214_v63 = vrot.slane %v7407_v61, %v21711_v59  ;;  %v22222_v2 = vcombine.high %v22207_v18, %v22207_v18  ;;  %vm6759_vm0 = vmor %vm6758_vm13, %vm6757_vm4 }
 0x868   : > { %v6130_v62 = vpop.permute.xlu1 %6129 }
 0x869   : > { %6133 = vst.msk [vmem:[#allocation4 + $0xa] sm:$0x3] %vm6132_vm7, %v6130_v62  ;;  %v22239_v6 = vcombine.high %v22214_v63, %v22214_v63  ;;  %vm6862_vm7 = vcmask 451760  }
 0x86a   : > { %v6233_v1 = vpop.permute.xlu0 %6232 }
 0x86b   : > { %6236 = vst.msk [vmem:[#allocation4 + $0xa] sm:$0x3] %vm6235_vm15, %v6233_v1  ;;  %7452 = vrot.lane.b32.xlu0 %v22214_v63, %s24382_s15  ;;  %8730 = vrot.lane.b32.xlu1 %v22207_v18, %s24383_s11  ;;  %vm6968_vm15 = vcmask 730560  }
 0x86e   : > { %v6336_v37 = vpop.permute.xlu0 %6335 }
 0x86f   : > { %v6337_v44 = vrot.slane %v6336_v37, 6  ;;  %8274 = vrot.lane.b32.xlu0 %v22222_v2, %s21144_s23  ;;  %9189 = vrot.lane.b32.xlu1 %v22207_v18, %s21202_s22 }
 0x870   : > { %v6443_v49 = vpop.permute.xlu1 %6442 }
 0x871   : > { %v6338_v12 = vsel %vm3355_vm5, %v6337_v44, %v6336_v37  ;;  %vm6651_vm5 = vcmask 943760  }
 0x872   : > { %6343 = vst.msk [vmem:[#allocation4 + $0xa] sm:$0xf] %vm6342_vm12, %v6338_v12  ;;  %vm7074_vm12 = vcmask 1009360  }
 0x873   : > { %6446 = vst.msk [vmem:[#allocation4 + $0xc] sm:$0x3] %vm6445_vm14, %v6443_v49  ;;  %8734 = vrot.lane.b32.xlu0 %v22214_v63, %s24383_s11  ;;  %7450 = vrot.lane.b32.xlu1 %v22222_v2, %s24382_s15  ;;  %vm7188_vm14 = vmor %vm7187_vm9, %vm7186_vm6 }
 0x874   : > { %v6546_v3 = vpop.permute.xlu1 %6545 }
 0x875   : > { %6549 = vst.msk [vmem:[#allocation4 + $0xc] sm:$0x3] %vm6548_vm1, %v6546_v3  ;;  %vm7298_vm1 = vcmask 517360  }
 0x877   : > { %9193 = vrot.lane.b32.xlu0 %v22214_v63, %s21202_s22  ;;  %8276 = vrot.lane.b32.xlu1 %v22214_v63, %s21144_s23 }
 0x87b   : > { %7454 = vrot.lane.b32.xlu0 %v22239_v6, %s24382_s15  ;;  %8732 = vrot.lane.b32.xlu1 %v22222_v2, %s24383_s11 }
 0x87f   : > { %8278 = vrot.lane.b32.xlu0 %v22239_v6, %s21144_s23  ;;  %9191 = vrot.lane.b32.xlu1 %v22222_v2, %s21202_s22 }
 0x883   : > { %8736 = vrot.lane.b32.xlu0 %v22239_v6, %s24383_s11 }
 0x8a9   : > { %v6649_v31 = vpop.permute.xlu0 %6648 }
 0x8aa   : > { %6652 = vst.msk [vmem:[#allocation4 + $0xc] sm:$0x3] %vm6651_vm5, %v6649_v31  ;;  %vm7397_vm5 = vcmask 796160  }
 0x8ad   : > { %v6752_v48 = vpop.permute.xlu0 %6751 }
 0x8ae   : > { %v6753_v10 = vrot.slane %v6752_v48, 6 }
 0x8af   : > { %v6860_v11 = vpop.permute.xlu1 %6859 }
 0x8b0   : > { %v6755_v14 = vsel %vm6754_vm3, %v6753_v10, %v6752_v48  ;;  %vm24387_vm3 = vmmov 0  }
 0x8b1   : > { %6760 = vst.msk [vmem:[#allocation4 + $0xc] sm:$0xf] %vm6759_vm0, %v6755_v14  ;;  %v22473_v14 = vld [vmem:[%s24331_s5] sm:$0x1] }
 0x8b2   : > { %6863 = vst.msk [vmem:[#allocation4 + $0xe] sm:$0x3] %vm6862_vm7, %v6860_v11  ;;  %v7182_v21 = vpop.permute.xlu0 %7181 }
 0x8b3   : > { %v7183_v4 = vrot.slane %v7182_v21, 6  ;;  %v6966_v5 = vpop.permute.xlu1 %6965 }
 0x8b4   : > { %6969 = vst.msk [vmem:[#allocation4 + $0xe] sm:$0x3] %vm6968_vm15, %v6966_v5 }
 0x8b5   : > { %v7184_v40 = vsel %vm2342_vm8, %v7183_v4, %v7182_v21  ;;  %vm24384_vm8 = vcmask 15360  }
 0x8b6   : > { %v7072_v22 = vpop.permute.xlu0 %7071  ;;  %vm24385_vm4 = vmmov %vm24384_vm8 }
 0x8b7   : > { %7075 = vst.msk [vmem:[#allocation4 + $0xe] sm:$0x3] %vm7074_vm12, %v7072_v22  ;;  %vm24386_vm13 = vmmov %vm24385_vm4  ;;  %vm8748_vm12 = vcmask 769024  }
 0x8b8   : > { %7189 = vst.msk [vmem:[#allocation4 + $0xe] sm:$0xf] %vm7188_vm14, %v7184_v40  ;;  %vm24388_vm0 = vmmov %vm24385_vm4 }
 0x8b9   : > { %vm24389_vm7 = vmmov %vm24388_vm0 }
 0x8ba   : > { %vm24390_vm15 = vmmov %vm24388_vm0 }
 0x8bb   : > { %vm24391_vm6 = vmmov %vm24388_vm0 }
 0x8bc   : > { %vm24392_vm9 = vmmov %vm24388_vm0 }
 0x8bd   : > { %vm24393_vm14 = vmmov %vm24388_vm0 }
 0x8bf   : > { %v7400_v54 = vld [vmem:[#allocation4 + $0x8] sm:$0xff] }
 0x8c0   : > { %v22253_v24 = vrot.slane %v7400_v54, %v21711_v59  ;;  %v7424_v9 = vcombine.high %v7400_v54, %v7400_v54 }
 0x8c2   : > { %7456 = vrot.lane.b32.xlu0 %v22253_v24, %s24382_s15  ;;  %8280 = vrot.lane.b32.xlu1 %v22253_v24, %s21144_s23  ;;  %v22265_v28 = vcombine.high %v22253_v24, %v22253_v24  ;;  %v22284_v30 = vrot.slane %v7424_v9, %v21711_v59 }
 0x8c4   : > { %v7296_v25 = vpop.permute.xlu1 %7295  ;;  %v22333_v8 = vcombine.high %v22284_v30, %v22284_v30 }
 0x8c5   : > { %7299 = vst.msk [vmem:[#allocation4 + $0x10] sm:$0x3] %vm7298_vm1, %v7296_v25  ;;  %v7395_v27 = vpop.permute.xlu0 %7394  ;;  %vm24395_vm1 = vmmov %vm24388_vm0 }
 0x8c6   : > { %7398 = vst.msk [vmem:[#allocation4 + $0x10] sm:$0x3] %vm7397_vm5, %v7395_v27  ;;  %8738 = vrot.lane.b32.xlu0 %v22253_v24, %s24383_s11  ;;  %9197 = vrot.lane.b32.xlu1 %v22253_v24, %s21202_s22  ;;  %vm24396_vm5 = vmmov %vm24388_vm0 }
 0x8ca   : > { %7458 = vrot.lane.b32.xlu0 %v22265_v28, %s24382_s15 }
 0x8cd   : > { %v22269_v29 = vld.sshfl [vmem:[#allocation4 + $0x10] sm:$0x3 pattern:$0x76325410] }
 0x8ce   : > { %7464 = vrot.lane.b32.xlu1 %v22269_v29, %s24382_s15  ;;  %9652 = vrot.lane.b32.xlu0 %v22214_v63, %s21174_s18  ;;  %v18229_v55 = vld.sshfl [vmem:[#allocation4 + $0x10] sm:$0x33 pattern:$0x76325410] }
 0x8cf   : > { %v10106_v43 = vcombine.high %v18229_v55, %v18229_v55 }
 0x8d2   : > { %8288 = vrot.lane.b32.xlu1 %v22269_v29, %s21144_s23  ;;  %9195 = vrot.lane.b32.xlu0 %v22239_v6, %s21202_s22 }
 0x8d6   : > { %8746 = vrot.lane.b32.xlu1 %v22269_v29, %s24383_s11  ;;  %9654 = vrot.lane.b32.xlu0 %v22239_v6, %s21174_s18 }
 0x8d9   : > { %v7449_v33 = vpop.permute.xlu1 %7448  ;;  %v22296_v34 = vpop.permute.xlu0 %8272 }
 0x8da   : > { %7460 = vrot.lane.b32.xlu1 %v22284_v30, %s24382_s15  ;;  %10111 = vrot.lane.b32.xlu0 %v22214_v63, %s21203_s12 }
 0x8dd   : > { %v22290_v45 = vpop.permute.xlu1 %8730  ;;  %v22304_v23 = vpop.permute.xlu0 %7452 }
 0x8de   : > { %9205 = vrot.lane.b32.xlu1 %v22269_v29, %s21202_s22  ;;  %8284 = vrot.lane.b32.xlu0 %v22284_v30, %s21144_s23 }
 0x8e1   : > { %v22298_v59 = vpop.permute.xlu1 %9189  ;;  %v22366_v46 = vpop.permute.xlu0 %8274 }
 0x8e2   : > { %9650 = vrot.lane.b32.xlu1 %v22222_v2, %s21174_s18  ;;  %8740 = vrot.lane.b32.xlu0 %v22265_v28, %s24383_s11  ;;  %v8290_v22 = vsel %vm1714_vm10, %v22296_v34, %v22366_v46 }
 0x8e5   : > { %v7451_v35 = vpop.permute.xlu1 %7450  ;;  %v22375_v19 = vpop.permute.xlu0 %8734 }
 0x8e6   : > { %v7466_v38 = vsel %vm2536_vm2, %v7449_v33, %v7451_v35  ;;  %9648 = vrot.lane.b32.xlu1 %v22207_v18, %s21174_s18  ;;  %v7467_v39 = vsel %vm2536_vm2, %v7451_v35, %v22304_v23  ;;  %9201 = vrot.lane.b32.xlu0 %v22284_v30, %s21202_s22 }
 0x8e7   : > { %18141 = vmatprep.subr.msk.mxu1 %vm1106_vm11, %v7467_v39 }
 0x8e8   : > { %18142 = vmatpush1.msk.msra.mxu1 %vm1106_vm11, %v7466_v38 }
 0x8e9   : > { %18143 = vmatmul.mubr.msk.f32.vlgmr.msra.gmra.mrb[60].mxu1 %vm24384_vm8, %v22316_v42  ;;  %v22381_v47 = vpop.permute.xlu0 %9193  ;;  %v22389_v17 = vpop.permute.xlu1 %8276  ;;  %vm24397_vm8 = vmmov %vm24388_vm0 }
 0x8ea   : > { %9656 = vrot.lane.b32.xlu1 %v22253_v24, %s21174_s18  ;;  %9660 = vrot.lane.b32.xlu0 %v22284_v30, %s21174_s18  ;;  %v8291_v5 = vsel %vm1714_vm10, %v22366_v46, %v22389_v17 }
 0x8eb   : > { %7701 = vmatprep.mubr.f32.mxu1 %v21968_v7 }
 0x8ed   : > { %v7455_v51 = vpop.permute.xlu0 %7454  ;;  %v22401_v56 = vpop.permute.xlu1 %8732 }
 0x8ee   : > { %9664 = vrot.lane.b32.xlu1 %v22269_v29, %s21174_s18  ;;  %10119 = vrot.lane.b32.xlu0 %v22284_v30, %s21203_s12  ;;  %v7468_v58 = vsel %vm2536_vm2, %v22304_v23, %v7455_v51  ;;  %v8750_v35 = vsel %vm8748_vm12, %v22401_v56, %v22375_v19 }
 0x8f1   : > { %v22395_v52 = vpop.permute.xlu0 %8278  ;;  %v22409_v57 = vpop.permute.xlu1 %9191 }
 0x8f2   : > { %8282 = vrot.lane.b32.xlu1 %v22265_v28, %s21144_s23  ;;  %7462 = vrot.lane.b32.xlu0 %v22333_v8, %s24382_s15  ;;  %s24442_s15 = smov 2  }
 0x8f5   : > { %v22407_v26 = vpop.permute.xlu0 %8736 }
 0x8f6   : > { %10109 = vrot.lane.b32.xlu1 %v22222_v2, %s21203_s12  ;;  %10113 = vrot.lane.b32.xlu0 %v22239_v6, %s21203_s12 }
 0x8fa   : > { %10107 = vrot.lane.b32.xlu1 %v22207_v18, %s21203_s12  ;;  %10125 = vrot.lane.b32.xlu0 %v10106_v43, %s21203_s12 }
 0x8fe   : > { %8742 = vrot.lane.b32.xlu1 %v22284_v30, %s24383_s11  ;;  %10572 = vrot.lane.b32.xlu0 %v22222_v2, %s21204_s26 }
 0x902   : > { %10115 = vrot.lane.b32.xlu1 %v22253_v24, %s21203_s12  ;;  %8286 = vrot.lane.b32.xlu0 %v22333_v8, %s21144_s23  ;;  %s24436_s23 = smov 18  }
 0x906   : > { %9199 = vrot.lane.b32.xlu1 %v22265_v28, %s21202_s22  ;;  %10570 = vrot.lane.b32.xlu0 %v22207_v18, %s21204_s26 }
 0x90a   : > { %9658 = vrot.lane.b32.xlu1 %v22265_v28, %s21174_s18  ;;  %8744 = vrot.lane.b32.xlu0 %v22333_v8, %s24383_s11 }
 0x90e   : > { %10117 = vrot.lane.b32.xlu1 %v22265_v28, %s21203_s12  ;;  %10578 = vrot.lane.b32.xlu0 %v22253_v24, %s21204_s26 }
 0x912   : > { %10123 = vrot.lane.b32.xlu1 %v18229_v55, %s21203_s12  ;;  %9203 = vrot.lane.b32.xlu0 %v22333_v8, %s21202_s22  ;;  %s21206_s22 = smov 26  }
 0x916   : > { %10574 = vrot.lane.b32.xlu1 %v22214_v63, %s21204_s26  ;;  %10582 = vrot.lane.b32.xlu0 %v22284_v30, %s21204_s26 }
 0x91a   : > { %10576 = vrot.lane.b32.xlu1 %v22239_v6, %s21204_s26  ;;  %9662 = vrot.lane.b32.xlu0 %v22333_v8, %s21174_s18  ;;  %s17989_s18 = sshll.u32 %s24461_s10, 5  ;;  %s24438_s10 = smov 78  }
 0x91b   : > { %s23058_s17 = scalar_lea.vmem %s24335_s9, %s17989_s18  ;;  %s24444_s18 = smov 88  }
 0x91e   : > { %10580 = vrot.lane.b32.xlu1 %v22265_v28, %s21204_s26  ;;  %10586 = vrot.lane.b32.xlu0 %v18229_v55, %s21204_s26 }
 0x922   : > { %10588 = vrot.lane.b32.xlu1 %v10106_v43, %s21204_s26  ;;  %11035 = vrot.lane.b32.xlu0 %v22222_v2, %s21159_s14 }
 0x926   : > { %11037 = vrot.lane.b32.xlu1 %v22214_v63, %s21159_s14  ;;  %11039 = vrot.lane.b32.xlu0 %v22239_v6, %s21159_s14 }
 0x92a   : > { %10121 = vrot.lane.b32.xlu1 %v22333_v8, %s21203_s12  ;;  %11033 = vrot.lane.b32.xlu0 %v22207_v18, %s21159_s14 }
 0x92e   : > { %11041 = vrot.lane.b32.xlu1 %v22253_v24, %s21159_s14  ;;  %11045 = vrot.lane.b32.xlu0 %v22284_v30, %s21159_s14 }
 0x932   : > { %10584 = vrot.lane.b32.xlu1 %v22333_v8, %s21204_s26  ;;  %11049 = vrot.lane.b32.xlu0 %v18229_v55, %s21159_s14  ;;  %s24435_s26 = smov 52  }
 0x934   : > { %v7457_v13 = vpop.permute.xlu0 %7456  ;;  %v22417_v36 = vpop.permute.xlu1 %8280 }
 0x935   : > { %v7469_v16 = vsel %vm2536_vm2, %v7455_v51, %v7457_v13  ;;  %v8293_v39 = vsel %vm1714_vm10, %v22395_v52, %v22417_v36 }
 0x936   : > { %11043 = vrot.lane.b32.xlu1 %v22265_v28, %s21159_s14  ;;  %18144 = vmatprep.subr.msk.mxu0 %vm1106_vm11, %v7469_v16 }
 0x937   : > { %18145 = vmatpush1.msk.msra.mxu0 %vm1106_vm11, %v7468_v58 }
 0x938   : > { %v22423_v41 = vpop.permute.xlu0 %8738  ;;  %18146 = vmatmul.mubr.msk.f32.vlgmr.msra.gmra.mrb[74].mxu0 %vm24385_vm4, %v22316_v42  ;;  %v22430_v15 = vpop.permute.xlu1 %9197  ;;  %vm24398_vm4 = vmmov %vm24388_vm0 }
 0x939   : > { %7772 = vmatprep.mubr.f32.mxu0 %v21968_v7  ;;  %v8752_v58 = vsel %vm8748_vm12, %v22407_v26, %v22423_v41 }
 0x93a   : > { %11047 = vrot.lane.b32.xlu1 %v22333_v8, %s21159_s14 }
 0x93c   : > { %v7459_v0 = vpop.permute.xlu0 %7458 }
 0x93d   : > { %v7470_v3 = vsel %vm2536_vm2, %v7457_v13, %v7459_v0 }
 0x93e   : > { %11051 = vrot.lane.b32.xlu1 %v10106_v43, %s21159_s14  ;;  %s24437_s14 = smov 112  }
 0x940   : > { %v7465_v20 = vpop.permute.xlu1 %7464  ;;  %v22433_v60 = vpop.permute.xlu0 %9652 }
 0x944   : > { %v22435_v61 = vpop.permute.xlu1 %8288  ;;  %v22437_v62 = vpop.permute.xlu0 %9195 }
 0x948   : > { %v22439_v1 = vpop.permute.xlu1 %8746  ;;  %v22441_v37 = vpop.permute.xlu0 %9654 }
 0x94c   : > { %v7461_v44 = vpop.permute.xlu1 %7460  ;;  %v22443_v49 = vpop.permute.xlu0 %10111 }
 0x94d   : > { %v7471_v12 = vsel %vm2536_vm2, %v7459_v0, %v7461_v44 }
 0x94e   : > { %18147 = vmatprep.subr.msk.mxu1 %vm1106_vm11, %v7471_v12 }
 0x94f   : > { %18148 = vmatpush1.msk.msra.mxu1 %vm1106_vm11, %v7470_v3 }
 0x950   : > { %18149 = vmatmul.mubr.msk.f32.vlgmr.msra.gmra.mrb[62].mxu1 %vm24386_vm13, %v22316_v42  ;;  %19508 = vmatprep.subr.mxu1 %v21968_v7  ;;  %v22452_v31 = vpop.permute.xlu1 %9205  ;;  %v22454_v48 = vpop.permute.xlu0 %8284  ;;  %vm9207_vm13 = vcmask 760832  }
 0x951   : > { %19509 = vmatpush3.msk.msra.mxu1 %vm1106_vm11, %v7465_v20  ;;  %19510 = vmatprep.mubr.msk.f32.mxu1 %vm24387_vm3, %v21968_v7 }
 0x952   : > { %18155 = vmatprep.subr.msk.mxu1 %vm1106_vm11, %v22222_v2 }
 0x954   : > { %19511 = vmatmul.mubr.msk.f32.vlgmr.msra.gmra.mrb[64].mxu1 %vm24388_vm0, %v22316_v42  ;;  %v22463_v10 = vpop.permute.xlu1 %9650  ;;  %v22465_v11 = vpop.permute.xlu0 %8740 }
 0x955   : > { %18156 = vmatpush1.msk.msra.mxu1 %vm1106_vm11, %v22207_v18  ;;  %7934 = vmatprep.mubr.f32.mxu1 %v21968_v7  ;;  %v8753_v43 = vsel %vm8748_vm12, %v22423_v41, %v22465_v11 }
 0x956   : > { %18161 = vmatprep.subr.msk.mxu1 %vm1106_vm11, %v22265_v28 }
 0x958   : > { %18157 = vmatmul.mubr.msk.f32.vlgmr.msra.gmra.mrb[60].mxu1 %vm24389_vm7, %v22473_v14  ;;  %v22479_v2 = vpop.permute.xlu1 %9648  ;;  %v22481_v21 = vpop.permute.xlu0 %9201  ;;  %vm24399_vm7 = vmmov %vm24388_vm0 }
 0x959   : > { %18162 = vmatpush1.msk.msra.mxu1 %vm1106_vm11, %v22253_v24  ;;  %8076 = vmatprep.mubr.f32.mxu1 %v21968_v7  ;;  %v22515_v24 = vld [vmem:[%s24331_s5 + $0x2] sm:$0x1] }
 0x95a   : > { %19513 = vmatprep.subr.mxu1 %v21968_v7 }
 0x95c   : > { %18163 = vmatmul.mubr.msk.f32.vlgmr.msra.gmra.mrb[62].mxu1 %vm24390_vm15, %v22473_v14  ;;  %v22489_v18 = vpop.permute.xlu1 %9656  ;;  %v22491_v4 = vpop.permute.xlu0 %9660  ;;  %vm24401_vm15 = vmmov %vm24388_vm0 }
 0x95d   : > { %19514 = vmatpush3.msk.msra.mxu1 %vm1106_vm11, %v22269_v29  ;;  %19515 = vmatprep.mubr.msk.f32.mxu1 %vm24387_vm3, %v21968_v7 }
 0x95e   : > { %18170 = vmatprep.subr.msk.mxu1 %vm1106_vm11, %v8291_v5 }
 0x960   : > { %19516 = vmatmul.mubr.msk.f32.vlgmr.msra.gmra.mrb[64].mxu1 %vm24391_vm6, %v22473_v14  ;;  %v22506_v40 = vpop.permute.xlu1 %9664  ;;  %v22508_v54 = vpop.permute.xlu0 %10119  ;;  %vm24402_vm6 = vmmov %vm24388_vm0 }
 0x961   : > { %18171 = vmatpush1.msk.msra.mxu1 %vm1106_vm11, %v8290_v22  ;;  %8383 = vmatprep.mubr.f32.mxu1 %v21968_v7 }
 0x964   : > { %18172 = vmatmul.mubr.msk.f32.vlgmr.msra.gmra.mrb[60].mxu1 %vm24392_vm9, %v22515_v24  ;;  %v8283_v25 = vpop.permute.xlu1 %8282  ;;  %v7463_v27 = vpop.permute.xlu0 %7462  ;;  %vm24403_vm9 = vmmov %vm24388_vm0 }
 0x965   : > { %v8294_v28 = vsel %vm1714_vm10, %v22417_v36, %v8283_v25  ;;  %v7472_v29 = vsel %vm2536_vm2, %v7461_v44, %v7463_v27  ;;  %v8295_v9 = vsel %vm1714_vm10, %v8283_v25, %v22454_v48  ;;  %v7473_v33 = vsel %vm2536_vm2, %v7463_v27, %v7465_v20  ;;  %8525 = vmatprep.mubr.f32.mxu1 %v21968_v7  ;;  %vm24394_vm2 = vmmov %vm24388_vm0 }
 0x966   : > { %18176 = vmatprep.subr.msk.mxu1 %vm1106_vm11, %v8295_v9  ;;  %18150 = vmatprep.subr.msk.mxu0 %vm1106_vm11, %v7473_v33  ;;  %v9208_v36 = vsel %vm9207_vm13, %v22298_v59, %v22409_v57  ;;  %v8751_v20 = vsel %vm8748_vm12, %v22375_v19, %v22407_v26  ;;  %v9144_v59 = vld [vmem:[%s24331_s5 + $0x4] sm:$0x1]  ;;  %v10061_v33 = vld [vmem:[%s24331_s5 + $0x6] sm:$0x1] }
 0x967   : > { %18177 = vmatpush1.msk.msra.mxu1 %vm1106_vm11, %v8294_v28  ;;  %18151 = vmatpush1.msk.msra.mxu0 %vm1106_vm11, %v7472_v29 }
 0x968   : > { %18178 = vmatmul.mubr.msk.f32.vlgmr.msra.gmra.mrb[62].mxu1 %vm24393_vm14, %v22515_v24  ;;  %19518 = vmatprep.subr.mxu1 %v21968_v7  ;;  %v22533_v34 = vpop.permute.xlu1 %10109  ;;  %v22535_v23 = vpop.permute.xlu0 %10113  ;;  %vm24404_vm14 = vmmov %vm24388_vm0 }
 0x969   : > { %18152 = vmatmul.mubr.msk.f32.vlgmr.msra.gmra.mrb[76].mxu0 %vm24394_vm2, %v22316_v42  ;;  %18158 = vmatprep.subr.msk.mxu0 %vm1106_vm11, %v22239_v6  ;;  %v22574_v42 = vld [vmem:[%s24331_s5 + $0x3] sm:$0x1]  ;;  %vm24405_vm2 = vcmask 752640  }
 0x96a   : > { %19519 = vmatpush3.msk.msra.mxu1 %vm1106_vm11, %v22435_v61  ;;  %18159 = vmatpush1.msk.msra.mxu0 %vm1106_vm11, %v22214_v63  ;;  %v8749_v63 = vsel %vm8748_vm12, %v22290_v45, %v22401_v56  ;;  %v9209_v56 = vsel %vm9207_vm13, %v22409_v57, %v22381_v47  ;;  %v9667_v3 = vsel %vm24405_vm2, %v22463_v10, %v22433_v60 }
 0x96b   : > { %18185 = vmatprep.subr.msk.mxu1 %vm1106_vm11, %v8750_v35  ;;  %18164 = vmatprep.subr.msk.mxu0 %vm1106_vm11, %v22333_v8 }
 0x96c   : > { %19520 = vmatprep.mubr.msk.f32.mxu1 %vm24387_vm3, %v21968_v7  ;;  %8005 = vmatprep.mubr.f32.mxu0 %v21968_v7  ;;  %v22554_v6 = vpop.permute.xlu1 %10107  ;;  %v22556_v38 = vpop.permute.xlu0 %10125 }
 0x96d   : > { %19521 = vmatmul.mubr.msk.f32.vlgmr.msra.gmra.mrb[64].mxu1 %vm24395_vm1, %v22515_v24  ;;  %18160 = vmatmul.mubr.msk.f32.vlgmr.msra.gmra.mrb[74].mxu0 %vm24396_vm5, %v22473_v14  ;;  %vm24406_vm1 = vmmov %vm24388_vm0 }
 0x96e   : > { %18186 = vmatpush1.msk.msra.mxu1 %vm1106_vm11, %v8749_v63  ;;  %18165 = vmatpush1.msk.msra.mxu0 %vm1106_vm11, %v22284_v30  ;;  %v8292_v30 = vsel %vm1714_vm10, %v22389_v17, %v22395_v52  ;;  %vm24407_vm5 = vmmov %vm24405_vm2 }
 0x96f   : > { %18173 = vmatprep.subr.msk.mxu0 %vm1106_vm11, %v8293_v39  ;;  %8842 = vmatprep.mubr.f32.mxu1 %v21968_v7 }
 0x970   : > { %8147 = vmatprep.mubr.f32.mxu0 %v21968_v7  ;;  %v8743_v45 = vpop.permute.xlu1 %8742  ;;  %v22579_v8 = vpop.permute.xlu0 %10572 }
 0x971   : > { %18187 = vmatmul.mubr.msk.f32.vlgmr.msra.gmra.mrb[60].mxu1 %vm24397_vm8, %v22574_v42  ;;  %18166 = vmatmul.mubr.msk.f32.vlgmr.msra.gmra.mrb[76].mxu0 %vm24398_vm4, %v22473_v14  ;;  %v8754_v55 = vsel %vm8748_vm12, %v22465_v11, %v8743_v45  ;;  %v9666_v14 = vsel %vm24407_vm5, %v22479_v2, %v22463_v10  ;;  %vm24408_vm8 = vmmov %vm24388_vm0  ;;  %v9603_v10 = vld [vmem:[%s24331_s5 + $0x5] sm:$0x1] }
 0x972   : > { %18174 = vmatpush1.msk.msra.mxu0 %vm1106_vm11, %v8292_v30  ;;  %18191 = vmatprep.subr.msk.mxu1 %vm1106_vm11, %v8754_v55  ;;  %vm24409_vm4 = vmmov %vm24405_vm2 }
 0x973   : > { %18192 = vmatpush1.msk.msra.mxu1 %vm1106_vm11, %v8753_v43  ;;  %8984 = vmatprep.mubr.f32.mxu1 %v21968_v7  ;;  %vm24417_vm5 = vmmov %vm24388_vm0 }
 0x974   : > { %19523 = vmatprep.subr.mxu1 %v21968_v7  ;;  %v22598_v46 = vpop.permute.xlu1 %10115  ;;  %v8287_v51 = vpop.permute.xlu0 %8286  ;;  %8454 = vmatprep.mubr.f32.mxu0 %v21968_v7 }
 0x975   : > { %18193 = vmatmul.mubr.msk.f32.vlgmr.msra.gmra.mrb[62].mxu1 %vm24388_vm0, %v22574_v42  ;;  %v8296_v17 = vsel %vm1714_vm10, %v22454_v48, %v8287_v51  ;;  %18175 = vmatmul.mubr.msk.f32.vlgmr.msra.gmra.mrb[74].mxu0 %vm24399_vm7, %v22515_v24  ;;  %v8297_v52 = vsel %vm1714_vm10, %v8287_v51, %v22435_v61  ;;  %vm24400_vm10 = vmmov %vm24388_vm0  ;;  %v9210_v48 = vsel %vm9207_vm13, %v22381_v47, %v22437_v62 }
 0x976   : > { %19524 = vmatpush3.msk.msra.mxu1 %vm1106_vm11, %v22439_v1  ;;  %18179 = vmatprep.subr.msk.mxu0 %vm1106_vm11, %v8297_v52  ;;  %vm24411_vm7 = vmmov %vm24388_vm0 }
 0x977   : > { %18200 = vmatprep.subr.msk.mxu1 %vm1106_vm11, %v9209_v56  ;;  %19525 = vmatprep.mubr.msk.f32.mxu1 %vm24387_vm3, %v21968_v7 }
 0x978   : > { %18180 = vmatpush1.msk.msra.mxu0 %vm1106_vm11, %v8296_v17  ;;  %v9200_v13 = vpop.permute.xlu1 %9199  ;;  %v22619_v16 = vpop.permute.xlu0 %10570  ;;  %8596 = vmatprep.mubr.f32.mxu0 %v21968_v7 }
 0x979   : > { %19526 = vmatmul.mubr.msk.f32.vlgmr.msra.gmra.mrb[64].mxu1 %vm24400_vm10, %v22574_v42  ;;  %18188 = vmatprep.subr.msk.mxu0 %vm1106_vm11, %v8752_v58  ;;  %v9213_v0 = vsel %vm9207_vm13, %v9200_v13, %v22481_v21  ;;  %v9212_v19 = vsel %vm9207_vm13, %v22430_v15, %v9200_v13  ;;  %vm24412_vm10 = vmmov %vm24405_vm2 }
 0x97a   : > { %18201 = vmatpush1.msk.msra.mxu1 %vm1106_vm11, %v9208_v36  ;;  %18181 = vmatmul.mubr.msk.f32.vlgmr.msra.gmra.mrb[76].mxu0 %vm24401_vm15, %v22515_v24  ;;  %v9669_v22 = vsel %vm24412_vm10, %v22441_v37, %v22489_v18  ;;  %vm24413_vm15 = vmmov %vm24405_vm2 }
 0x97b   : > { %18189 = vmatpush1.msk.msra.mxu0 %vm1106_vm11, %v8751_v20  ;;  %18206 = vmatprep.subr.msk.mxu1 %vm1106_vm11, %v9213_v0  ;;  %v9668_v24 = vsel %vm24413_vm15, %v22433_v60, %v22441_v37  ;;  %vm24421_vm10 = vmmov %vm24388_vm0 }
 0x97c   : > { %9301 = vmatprep.mubr.f32.mxu1 %v21968_v7  ;;  %v9659_v57 = vpop.permute.xlu1 %9658  ;;  %v8745_v41 = vpop.permute.xlu0 %8744  ;;  %8913 = vmatprep.mubr.f32.mxu0 %v21968_v7  ;;  %vm24422_vm15 = vmmov %vm24388_vm0 }
 0x97d   : > { %18202 = vmatmul.mubr.msk.f32.vlgmr.msra.gmra.mrb[60].mxu1 %vm24402_vm6, %v9144_v59  ;;  %v8755_v26 = vsel %vm8748_vm12, %v8743_v45, %v8745_v41  ;;  %v8756_v61 = vsel %vm8748_vm12, %v8745_v41, %v22439_v1  ;;  %v9211_v1 = vsel %vm9207_vm13, %v22437_v62, %v22430_v15  ;;  %v9671_v5 = vsel %vm24409_vm4, %v9659_v57, %v22491_v4  ;;  %vm24419_vm4 = vmmov %vm24388_vm0 }
 0x97e   : > { %18207 = vmatpush1.msk.msra.mxu1 %vm1106_vm11, %v9212_v19  ;;  %18190 = vmatmul.mubr.msk.f32.vlgmr.msra.gmra.mrb[74].mxu0 %vm24403_vm9, %v22574_v42  ;;  %vm10127_vm6 = vcmask 490496   ;;  %vm24414_vm9 = vmmov %vm24388_vm0 }
 0x97f   : > { %18194 = vmatprep.subr.msk.mxu0 %vm1106_vm11, %v8756_v61  ;;  %9443 = vmatprep.mubr.f32.mxu1 %v21968_v7  ;;  %v10129_v37 = vsel %vm10127_vm6, %v22533_v34, %v22443_v49  ;;  %v10131_v29 = vsel %vm10127_vm6, %v22535_v23, %v22598_v46 }
 0x980   : > { %19528 = vmatprep.subr.mxu1 %v21968_v7  ;;  %18195 = vmatpush1.msk.msra.mxu0 %vm1106_vm11, %v8755_v26  ;;  %v22659_v44 = vpop.permute.xlu1 %10117  ;;  %v22661_v12 = vpop.permute.xlu0 %10578  ;;  %v10987_v26 = vld [vmem:[%s24331_s5 + $0x8] sm:$0x1] }
 0x981   : > { %18208 = vmatmul.mubr.msk.f32.vlgmr.msra.gmra.mrb[62].mxu1 %vm24404_vm14, %v9144_v59  ;;  %9055 = vmatprep.mubr.f32.mxu0 %v21968_v7  ;;  %vm24415_vm14 = vmmov %vm24388_vm0  ;;  %v10133_v9 = vsel %vm10127_vm6, %v22659_v44, %v22508_v54  ;;  %v10132_v63 = vsel %vm10127_vm6, %v22598_v46, %v22659_v44  ;;  %v10524_v46 = vld [vmem:[%s24331_s5 + $0x7] sm:$0x1] }
 0x982   : > { %19529 = vmatpush3.msk.msra.mxu1 %vm1106_vm11, %v22452_v31  ;;  %18203 = vmatprep.subr.msk.mxu0 %vm1106_vm11, %v9211_v1 }
 0x983   : > { %18215 = vmatprep.subr.msk.mxu1 %vm1106_vm11, %v9667_v3  ;;  %18196 = vmatmul.mubr.msk.f32.vlgmr.msra.gmra.mrb[76].mxu0 %vm24406_vm1, %v22574_v42  ;;  %vm24416_vm1 = vmmov %vm24405_vm2 }
 0x984   : > { %18204 = vmatpush1.msk.msra.mxu0 %vm1106_vm11, %v9210_v48  ;;  %19530 = vmatprep.mubr.msk.f32.mxu1 %vm24387_vm3, %v21968_v7  ;;  %v22683_v15 = vpop.permute.xlu1 %10123  ;;  %v9204_v11 = vpop.permute.xlu0 %9203 }
 0x985   : > { %19531 = vmatmul.mubr.msk.f32.vlgmr.msra.gmra.mrb[64].mxu1 %vm24408_vm8, %v9144_v59  ;;  %v9214_v47 = vsel %vm9207_vm13, %v22481_v21, %v9204_v11  ;;  %9372 = vmatprep.mubr.f32.mxu0 %v21968_v7  ;;  %v9215_v62 = vsel %vm9207_vm13, %v9204_v11, %v22452_v31  ;;  %vm24410_vm13 = vmmov %vm24405_vm2  ;;  %v11527_v11 = vld [vmem:[%s24334_s8] sm:$0xff] }
 0x986   : > { %18216 = vmatpush1.msk.msra.mxu1 %vm1106_vm11, %v9666_v14  ;;  %18209 = vmatprep.subr.msk.mxu0 %vm1106_vm11, %v9215_v62  ;;  %v9670_v21 = vsel %vm24410_vm13, %v22489_v18, %v9659_v57  ;;  %vm24418_vm8 = vmmov %vm24388_vm0  ;;  %v11528_v14 = vld [vmem:[%s24334_s8 + $0x8] sm:$0xff] }
 0x987   : > { %18221 = vmatprep.subr.msk.mxu1 %vm1106_vm11, %v9671_v5  ;;  %18205 = vmatmul.mubr.msk.f32.vlgmr.msra.gmra.mrb[74].mxu0 %vm24388_vm0, %v9144_v59  ;;  %vm24420_vm13 = vmmov %vm24388_vm0  ;;  %v22892_v62 = vpack.c.bf16 %v11528_v14, %v11527_v11  ;;  %v11530_v5 = vld [vmem:[%s24334_s8 + $0x18] sm:$0xff] }
 0x988   : > { %9759 = vmatprep.mubr.f32.mxu1 %v21968_v7  ;;  %18210 = vmatpush1.msk.msra.mxu0 %vm1106_vm11, %v9214_v47  ;;  %v22705_v31 = vpop.permute.xlu1 %10574  ;;  %v22707_v2 = vpop.permute.xlu0 %10582  ;;  %v11529_v47 = vld [vmem:[%s24334_s8 + $0x10] sm:$0xff] }
 0x989   : > { %18217 = vmatmul.mubr.msk.f32.vlgmr.msra.gmra.mrb[60].mxu1 %vm24411_vm7, %v9603_v10  ;;  %9514 = vmatprep.mubr.f32.mxu0 %v21968_v7  ;;  %vm10590_vm7 = vcmask 482304  }
 0x98a   : > { %18222 = vmatpush1.msk.msra.mxu1 %vm1106_vm11, %v9670_v21  ;;  %18218 = vmatprep.subr.msk.mxu0 %vm1106_vm11, %v9669_v22  ;;  %v10592_v42 = vsel %vm10590_vm7, %v22579_v8, %v22705_v31  ;;  %v10591_v30 = vsel %vm10590_vm7, %v22619_v16, %v22579_v8 }
 0x98b   : > { %18211 = vmatmul.mubr.msk.f32.vlgmr.msra.gmra.mrb[76].mxu0 %vm24414_vm9, %v9144_v59  ;;  %9901 = vmatprep.mubr.f32.mxu1 %v21968_v7  ;;  %vm24423_vm9 = vmmov %vm24388_vm0 }
 0x98c   : > { %18219 = vmatpush1.msk.msra.mxu0 %vm1106_vm11, %v9668_v24  ;;  %19533 = vmatprep.subr.mxu1 %v21968_v7  ;;  %v22725_v25 = vpop.permute.xlu1 %10576  ;;  %v9663_v18 = vpop.permute.xlu0 %9662 }
 0x98d   : > { %18223 = vmatmul.mubr.msk.f32.vlgmr.msra.gmra.mrb[62].mxu1 %vm24415_vm14, %v9603_v10  ;;  %v9672_v27 = vsel %vm24405_vm2, %v22491_v4, %v9663_v18  ;;  %9830 = vmatprep.mubr.f32.mxu0 %v21968_v7  ;;  %v9673_v60 = vsel %vm24416_vm1, %v9663_v18, %v22506_v40  ;;  %v10593_v17 = vsel %vm10590_vm7, %v22705_v31, %v22725_v25  ;;  %vm11053_vm14 = vcmask 474112   ;;  %vm24425_vm2 = vmmov %vm24388_vm0  ;;  %v22909_v31 = vld [vmem:[%s24334_s8 + $0x20] sm:$0x3] }
 0x98e   : > { %19534 = vmatpush3.msk.msra.mxu1 %vm1106_vm11, %v22506_v40  ;;  %18224 = vmatprep.subr.msk.mxu0 %vm1106_vm11, %v9673_v60  ;;  %v10128_v40 = vsel %vm10127_vm6, %v22554_v6, %v22533_v34  ;;  %v10130_v34 = vsel %vm10127_vm6, %v22443_v49, %v22535_v23  ;;  %v10136_v23 = vsel %vm10127_vm6, %v22683_v15, %v22556_v38  ;;  %vm24426_vm1 = vmmov %vm24388_vm0 }
 0x98f   : > { %18230 = vmatprep.subr.msk.mxu1 %vm1106_vm11, %v10129_v37  ;;  %18220 = vmatmul.mubr.msk.f32.vlgmr.msra.gmra.mrb[74].mxu0 %vm24417_vm5, %v9603_v10  ;;  %vm24427_vm5 = vmmov %vm24388_vm0 }
 0x990   : > { %19535 = vmatprep.mubr.msk.f32.mxu1 %vm24387_vm3, %v21968_v7  ;;  %18225 = vmatpush1.msk.msra.mxu0 %vm1106_vm11, %v9672_v27  ;;  %v10581_v4 = vpop.permute.xlu1 %10580  ;;  %v22744_v28 = vpop.permute.xlu0 %10586 }
 0x991   : > { %19536 = vmatmul.mubr.msk.f32.vlgmr.msra.gmra.mrb[64].mxu1 %vm24418_vm8, %v9603_v10  ;;  %9972 = vmatprep.mubr.f32.mxu0 %v21968_v7  ;;  %v10596_v43 = vsel %vm10590_vm7, %v10581_v4, %v22707_v2  ;;  %v10595_v52 = vsel %vm10590_vm7, %v22661_v12, %v10581_v4  ;;  %vm24428_vm8 = vmmov %vm24388_vm0 }
 0x992   : > { %18231 = vmatpush1.msk.msra.mxu1 %vm1106_vm11, %v10128_v40  ;;  %18233 = vmatprep.subr.msk.mxu0 %vm1106_vm11, %v10131_v29 }
 0x993   : > { %18236 = vmatprep.subr.msk.mxu1 %vm1106_vm11, %v10133_v9  ;;  %18226 = vmatmul.mubr.msk.f32.vlgmr.msra.gmra.mrb[76].mxu0 %vm24419_vm4, %v9603_v10  ;;  %vm24429_vm4 = vmmov %vm24388_vm0  ;;  %v22898_v10 = vpack.c.bf16 %v11530_v5, %v11529_v47  ;;  %v22969_v47 = vsub.s32 0, %v21708_v53 }
 0x994   : > { %18234 = vmatpush1.msk.msra.mxu0 %vm1106_vm11, %v10130_v34  ;;  %10222 = vmatprep.mubr.f32.mxu1 %v21968_v7  ;;  %v10589_v35 = vpop.permute.xlu1 %10588  ;;  %v22769_v6 = vpop.permute.xlu0 %11035 }
 0x995   : > { %18232 = vmatmul.mubr.msk.f32.vlgmr.msra.gmra.mrb[60].mxu1 %vm24388_vm0, %v10061_v33  ;;  %10293 = vmatprep.mubr.f32.mxu0 %v21968_v7  ;;  %v10599_v13 = vsel %vm10590_vm7, %v22744_v28, %v10589_v35 }
 0x996   : > { %18237 = vmatpush1.msk.msra.mxu1 %vm1106_vm11, %v10132_v63  ;;  %10364 = vmatprep.mubr.f32.mxu1 %v21968_v7 }
 0x997   : > { %19538 = vmatprep.subr.mxu1 %v21968_v7  ;;  %18235 = vmatmul.mubr.msk.f32.vlgmr.msra.gmra.mrb[74].mxu0 %vm24420_vm13, %v10061_v33  ;;  %vm24430_vm13 = vmmov %vm24388_vm0 }
 0x998   : > { %v11038_v49 = vpop.permute.xlu1 %11037  ;;  %10435 = vmatprep.mubr.f32.mxu0 %v21968_v7  ;;  %v11040_v39 = vpop.permute.xlu0 %11039 }
 0x999   : > { %18238 = vmatmul.mubr.msk.f32.vlgmr.msra.gmra.mrb[62].mxu1 %vm24421_vm10, %v10061_v33  ;;  %v11055_v0 = vsel %vm11053_vm14, %v22769_v6, %v11038_v49  ;;  %v11056_v57 = vsel %vm11053_vm14, %v11038_v49, %v11040_v39  ;;  %vm24432_vm10 = vmmov %vm24388_vm0 }
 0x99a   : > { %19539 = vmatpush3.msk.msra.mxu1 %vm1106_vm11, %v10136_v23  ;;  %19540 = vmatprep.mubr.msk.f32.mxu1 %vm24387_vm3, %v21968_v7 }
 0x99b   : > { %18245 = vmatprep.subr.msk.mxu1 %vm1106_vm11, %v10592_v42 }
 0x99c   : > { %v10122_v45 = vpop.permute.xlu1 %10121  ;;  %v11034_v8 = vpop.permute.xlu0 %11033 }
 0x99d   : > { %19541 = vmatmul.mubr.msk.f32.vlgmr.msra.gmra.mrb[64].mxu1 %vm24422_vm15, %v10061_v33  ;;  %v10134_v38 = vsel %vm10127_vm6, %v22508_v54, %v10122_v45  ;;  %v10135_v55 = vsel %vm10127_vm6, %v10122_v45, %v22683_v15  ;;  %v10594_v54 = vsel %vm10590_vm7, %v22725_v25, %v22661_v12  ;;  %vm24424_vm6 = vmmov %vm24388_vm0  ;;  %v11054_v41 = vsel %vm11053_vm14, %v11034_v8, %v22769_v6 }
 0x99e   : > { %18246 = vmatpush1.msk.msra.mxu1 %vm1106_vm11, %v10591_v30  ;;  %18239 = vmatprep.subr.msk.mxu0 %vm1106_vm11, %v10135_v55  ;;  %vm22927_vm15 = vcmp.lt.s32.totalorder %v4034_v50, 64 }
 0x99f   : > { %18251 = vmatprep.subr.msk.mxu1 %vm1106_vm11, %v10596_v43  ;;  %18240 = vmatpush1.msk.msra.mxu0 %vm1106_vm11, %v10134_v38 }
 0x9a0   : > { %10685 = vmatprep.mubr.f32.mxu1 %v21968_v7  ;;  %18241 = vmatmul.mubr.msk.f32.vlgmr.msra.gmra.mrb[76].mxu0 %vm24423_vm9, %v10061_v33  ;;  %v11042_v51 = vpop.permute.xlu1 %11041  ;;  %v11046_v36 = vpop.permute.xlu0 %11045  ;;  %vm11533_vm9 = vcmask 277504  }
 0x9a1   : > { %18247 = vmatmul.mubr.msk.f32.vlgmr.msra.gmra.mrb[60].mxu1 %vm24424_vm6, %v10524_v46  ;;  %18248 = vmatprep.subr.msk.mxu0 %vm1106_vm11, %v10594_v54  ;;  %v11057_v20 = vsel %vm11053_vm14, %v11040_v39, %v11042_v51  ;;  %vm12214_vm6 = vcmask 211968  }
 0x9a2   : > { %18252 = vmatpush1.msk.msra.mxu1 %vm1106_vm11, %v10595_v52  ;;  %18249 = vmatpush1.msk.msra.mxu0 %vm1106_vm11, %v10593_v17 }
 0x9a3   : > { %10756 = vmatprep.mubr.f32.mxu0 %v21968_v7  ;;  %10827 = vmatprep.mubr.f32.mxu1 %v21968_v7 }
 0x9a4   : > { %19543 = vmatprep.subr.mxu1 %v21968_v7  ;;  %18250 = vmatmul.mubr.msk.f32.vlgmr.msra.gmra.mrb[74].mxu0 %vm24425_vm2, %v10524_v46  ;;  %v10585_v56 = vpop.permute.xlu1 %10584  ;;  %v11050_v61 = vpop.permute.xlu0 %11049  ;;  %vm24443_vm2 = vcmask 80896  }
 0x9a5   : > { %18253 = vmatmul.mubr.msk.f32.vlgmr.msra.gmra.mrb[62].mxu1 %vm24426_vm1, %v10524_v46  ;;  %v10597_v16 = vsel %vm10590_vm7, %v22707_v2, %v10585_v56  ;;  %v10598_v58 = vsel %vm10590_vm7, %v10585_v56, %v22744_v28  ;;  %10898 = vmatprep.mubr.f32.mxu0 %v21968_v7  ;;  %vm24431_vm7 = vmmov %vm24388_vm0  ;;  %v21205_v2 = vmov 1966171168  }
 0x9a6   : > { %19544 = vmatpush3.msk.msra.mxu1 %vm1106_vm11, %v10599_v13  ;;  %18254 = vmatprep.subr.msk.mxu0 %vm1106_vm11, %v10598_v58  ;;  %v11461_v21 = vunpack.c.l.s4 %v21205_v2 }
 0x9a7   : > { %18260 = vmatprep.subr.msk.mxu1 %vm1106_vm11, %v11055_v0  ;;  %18255 = vmatpush1.msk.msra.mxu0 %vm1106_vm11, %v10597_v16 }
 0x9a8   : > { %19545 = vmatprep.mubr.msk.f32.mxu1 %vm24387_vm3, %v21968_v7  ;;  %18256 = vmatmul.mubr.msk.f32.vlgmr.msra.gmra.mrb[76].mxu0 %vm24427_vm5, %v10524_v46  ;;  %v11044_v59 = vpop.permute.xlu1 %11043  ;;  %v11462_v22 = vunpack.c.0.s8 %v11461_v21  ;;  %vm24447_vm5 = vmmov %vm24388_vm0 }
 0x9a9   : > { %19546 = vmatmul.mubr.msk.f32.vlgmr.msra.gmra.mrb[64].mxu1 %vm24428_vm8, %v10524_v46  ;;  %18263 = vmatprep.subr.msk.mxu0 %vm1106_vm11, %v11057_v20  ;;  %v11059_v19 = vsel %vm11053_vm14, %v11044_v59, %v11046_v36  ;;  %v11058_v12 = vsel %vm11053_vm14, %v11042_v51, %v11044_v59  ;;  %vm15229_vm8 = vcmask 228352  }
 0x9aa   : > { %18261 = vmatpush1.msk.msra.mxu1 %vm1106_vm11, %v11054_v41  ;;  %18264 = vmatpush1.msk.msra.mxu0 %vm1106_vm11, %v11056_v57  ;;  %v22919_v18 = vsub.s32 %v11462_v22, %v21708_v53 }
 0x9ab   : > { %18266 = vmatprep.subr.msk.mxu1 %vm1106_vm11, %v11059_v19  ;;  %11148 = vmatprep.mubr.f32.mxu1 %v21968_v7 }
 0x9ac   : > { %11219 = vmatprep.mubr.f32.mxu0 %v21968_v7  ;;  %v11048_v44 = vpop.permute.xlu1 %11047 }
 0x9ad   : > { %18262 = vmatmul.mubr.msk.f32.vlgmr.msra.gmra.mrb[60].mxu1 %vm24429_vm4, %v10987_v26  ;;  %18265 = vmatmul.mubr.msk.f32.vlgmr.msra.gmra.mrb[74].mxu0 %vm24388_vm0, %v10987_v26  ;;  %v11060_v1 = vsel %vm11053_vm14, %v11046_v36, %v11048_v44  ;;  %v11061_v3 = vsel %vm11053_vm14, %v11048_v44, %v11050_v61  ;;  %vm24449_vm4 = vmmov %vm24443_vm2  ;;  %vm16032_vm0 = vcmask 162816  }
 0x9ae   : > { %18267 = vmatpush1.msk.msra.mxu1 %vm1106_vm11, %v11058_v12  ;;  %18269 = vmatprep.subr.msk.mxu0 %vm1106_vm11, %v11061_v3 }
 0x9af   : > { %11290 = vmatprep.mubr.f32.mxu1 %v21968_v7  ;;  %18270 = vmatpush1.msk.msra.mxu0 %vm1106_vm11, %v11060_v1 }
 0x9b0   : > { %11361 = vmatprep.mubr.f32.mxu0 %v21968_v7  ;;  %v11052_v48 = vpop.permute.xlu1 %11051  ;;  %19548 = vmatprep.subr.mxu1 %v21968_v7 }
 0x9b1   : > { %18268 = vmatmul.mubr.msk.f32.vlgmr.msra.gmra.mrb[62].mxu1 %vm24430_vm13, %v10987_v26  ;;  %18271 = vmatmul.mubr.msk.f32.vlgmr.msra.gmra.mrb[76].mxu0 %vm24431_vm7, %v10987_v26  ;;  %v11062_v15 = vsel %vm11053_vm14, %v11050_v61, %v11052_v48  ;;  %vm24440_vm14 = vcmask 146432   ;;  %vm24452_vm13 = vmmov %vm24447_vm5  ;;  %vm16835_vm7 = vcmask 97280  }
 0x9b2   : > { %19549 = vmatpush3.msk.msra.mxu1 %vm1106_vm11, %v11062_v15  ;;  %19550 = vmatprep.mubr.msk.f32.mxu1 %vm24387_vm3, %v21968_v7  ;;  %vm24445_vm1 = vmmov %vm24440_vm14 }
 0x9b3   : > { %20545 = vmatprep.subr.bf16.mxu0 %v21153_v32  ;;  %19563 = vmatprep.mubr.msk.f32.mxu0 %vm24387_vm3, %v21968_v7 }
 0x9b4   : > { %20569 = vmatprep.subr.bf16.mxu1 %v21153_v32  ;;  %20547 = vmatpush3.bf16.msra.mxu0 %v22892_v62 }
 0x9b5   : > { %19551 = vmatmul.mubr.msk.f32.vlgmr.msra.gmra.mrb[64].mxu1 %vm24432_vm10, %v10987_v26  ;;  %20548 = vmatprep.subr.bf16.mxu0 %v21153_v32  ;;  %vm24456_vm10 = vcmask 31744  }
 0x9b6   : > { %19615 = vmatprep.mubr.msk.f32.mxu1 %vm24387_vm3, %v21968_v7  ;;  %20571 = vmatpush3.bf16.msra.mxu1 %v22892_v62 }
 0x9b7   : > { %20572 = vmatprep.subr.bf16.mxu1 %v21153_v32 }
 0x9b8   : > { %20550 = vmatpush3.bf16.msra.mxu0 %v22898_v10 }
 0x9b9   : > { %19561 = vmatprep.subr.mxu0 %v21968_v7 }
 0x9ba   : > { %20574 = vmatpush3.bf16.msra.mxu1 %v22898_v10 }
 0x9bb   : > { %19613 = vmatprep.subr.mxu1 %v21968_v7 }
 0x9bc   : > { %19562 = vmatpush3.msk.msra.mxu0 %vm1106_vm11, %v22909_v31 }
 0x9bd   : > { %20551 = vmatprep.subr.bf16.mxu0 %v21153_v32 }
 0x9be   : > { %19614 = vmatpush3.msk.msra.mxu1 %vm1106_vm11, %v22909_v31 }
 0x9bf   : > { %20581 = vmatprep.subr.bf16.mxu1 %v21153_v32 }
 0xa80   : > { %v11150_v24 = vpop.f32.mrb[60].mxu1  ;;  %v11221_v25 = vpop.f32.mrb[74].mxu0 }
 0xa81   : > { %v11152_v27 = vpop.f32.mrb[61].mxu1  ;;  %v11223_v60 = vpop.f32.mrb[75].mxu0 }
 0xa82   : > { %v11456_v37 = vcombine.low %v11150_v24, %v11152_v27  ;;  %v11457_v4 = vcombine.low %v11221_v25, %v11223_v60 }
 0xa84   : > { %v11466_v28 = vrot.slane %v11456_v37, %v22919_v18  ;;  %v11473_v40 = vrot.slane %v11457_v4, %v22919_v18  ;;  %v11292_v29 = vpop.f32.mrb[62].mxu1  ;;  %v11363_v9 = vpop.f32.mrb[76].mxu0 }
 0xa85   : > { %v11294_v33 = vpop.f32.mrb[63].mxu1  ;;  %v11365_v34 = vpop.f32.mrb[77].mxu0 }
 0xa86   : > { %v11488_v35 = vcombine.low %v11466_v28, %v11473_v40  ;;  %v11458_v6 = vcombine.low %v11292_v29, %v11294_v33  ;;  %v11459_v63 = vcombine.low %v11363_v9, %v11365_v34 }
 0xa88   : > { %v11480_v49 = vrot.slane %v11458_v6, %v22919_v18  ;;  %v11487_v23 = vrot.slane %v11459_v63, %v22919_v18  ;;  %v11434_v39 = vpop.f32.mrb[64].mxu1  ;;  %v11496_v43 = vrot.slane %v11488_v35, %v22919_v18 }
 0xa89   : > { %v11511_v42 = vrot.slane %v11434_v39, %v22919_v18  ;;  %v19552_v45 = vpop.f32.mrb[65].mxu1 }
 0xa8a   : > { %v11489_v30 = vcombine.low %v11480_v49, %v11487_v23  ;;  %v22984_v23 = vsub.s32 1, %v21708_v53 }
 0xa8b   : > { %v11518_v55 = vrot.slane %v11511_v42, %v22919_v18 }
 0xa8c   : > { %v11503_v46 = vrot.slane %v11489_v30, %v22919_v18 }
 0xa8d   : > { %11526 = vst.msk [vmem:[#allocation7 + $0x8] sm:$0x1] %vm22927_vm15, %v11518_v55 }
 0xa8e   : > { %v11504_v8 = vcombine.low %v11496_v43, %v11503_v46 }
 0xa90   : > { %11521 = vst [vmem:[#allocation7] sm:$0xff] %v11504_v8 }
 0xa97   : > { %v11532_v54 = vld [vmem:[#allocation7] sm:$0x1]  ;;  %v22937_v13 = vld [vmem:[#allocation7 + $0x1] sm:$0x1]  ;;  %v12995_v44 = vld [vmem:[#allocation7 + $0x2] sm:$0x1] }
 0xa98   : > { %v11992_v51 = vld [vmem:[#allocation7] sm:$0x3]  ;;  %19564 = vmatmul.mubr.msk.f32.vlgmr.msra.gmra.mrb[78].mxu0 %vm11533_vm9, %v11532_v54  ;;  %v12407_v58 = vmul.f32 0.25, %v22937_v13  ;;  %v12996_v12 = vmul.f32 0.25, %v12995_v44  ;;  %v22963_v1 = vld [vmem:[#allocation7 + $0x2] sm:$0x1] }
 0xa99   : > { %v11796_v17 = vld [vmem:[#allocation7] sm:$0x1]  ;;  %v11993_v52 = vmul.f32 0.25, %v11992_v51  ;;  %v12192_v16 = vld [vmem:[#allocation7 + $0x1] sm:$0x1]  ;;  %20553 = vmatpush3.bf16.msra.mxu0 %v22892_v62  ;;  %19576 = vmatprep.mubr.msk.f32.mxu0 %vm24387_vm3, %v21968_v7  ;;  %v13209_v3 = vmul.f32 0.25, %v22963_v1 }
 0xa9a   : > { %v11798_v56 = vmul.f32 0.25, %v11796_v17  ;;  %20554 = vmatprep.subr.bf16.mxu0 %v21153_v32  ;;  %v12193_v36 = vmul.f32 0.25, %v12192_v16  ;;  %v22946_v0 = vld [vmem:[#allocation7 + $0x1] sm:$0x1]  ;;  %v11611_v20 = vld [vmem:[#allocation7] sm:$0x1] }
 0xa9b   : > { %11995 = vrot.lane.b32.xlu1 %v11993_v52, %s24383_s11  ;;  %v12601_v59 = vmul.f32 0.25, %v22946_v0  ;;  %v11613_v57 = vmul.f32 0.25, %v11611_v20  ;;  %v22953_v41 = vld [vmem:[#allocation7] sm:$0x1]  ;;  %v12795_v19 = vld [vmem:[#allocation7 + $0x1] sm:$0x3] }
 0xa9c   : > { %11800 = vrot.lane.b32.xlu0 %v11798_v56, %s24383_s11  ;;  %v11716_v26 = vmul.f32 0.75, %v22953_v41  ;;  %v12796_v61 = vmul.f32 0.25, %v12795_v19  ;;  %v11990_v48 = vld [vmem:[#allocation7] sm:$0x1]  ;;  %v11797_v15 = vmul.f32 0.75, %v11796_v17  ;;  %v11612_v9 = vmul.f32 0.75, %v11611_v20 }
 0xa9d   : > { %20556 = vmatpush3.bf16.msra.mxu0 %v22898_v10  ;;  %v11991_v21 = vmul.f32 0.75, %v11990_v48  ;;  %v22973_v37 = vld [vmem:[#allocation7] sm:$0x1]  ;;  %v22979_v34 = vld [vmem:[#allocation7 + $0x2] sm:$0x1]  ;;  %v12406_v54 = vmul.f32 0.75, %v22937_v13 }
 0xa9e   : > { %19574 = vmatprep.subr.mxu0 %v21968_v7  ;;  %v12190_v4 = vld [vmem:[#allocation7] sm:$0x3]  ;;  %v11904_v33 = vmul.f32 0.75, %v22973_v37  ;;  %v13403_v45 = vmul.f32 0.25, %v22979_v34  ;;  %v13597_v43 = vld [vmem:[#allocation7 + $0x2] sm:$0x3] }
 0xa9f   : > { %12409 = vrot.lane.b32.xlu1 %v12407_v58, %s24383_s11  ;;  %v12191_v35 = vmul.f32 0.75, %v12190_v4  ;;  %v12101_v63 = vld [vmem:[#allocation7] sm:$0x3]  ;;  %v11715_v51 = vmul.f32 0.25, %v22953_v41  ;;  %v13598_v52 = vmul.f32 0.25, %v13597_v43  ;;  %v12600_v20 = vmul.f32 0.75, %v22946_v0 }
 0xaa0   : > { %12195 = vrot.lane.b32.xlu0 %v12193_v36, %s24383_s11  ;;  %v12102_v30 = vmul.f32 0.75, %v12101_v63  ;;  %v12309_v8 = vld [vmem:[#allocation7 + $0x1] sm:$0x1]  ;;  %v13797_v36 = vld [vmem:[#allocation7 + $0x3] sm:$0x1] }
 0xaa1   : > { %19575 = vmatpush3.msk.msra.mxu0 %vm1106_vm11, %v22909_v31  ;;  %v12310_v58 = vmul.f32 0.75, %v12309_v8  ;;  %v23014_v19 = vld [vmem:[#allocation7 + $0x1] sm:$0x1]  ;;  %v11903_v8 = vmul.f32 0.25, %v22973_v37 }
 0xaa2   : > { %20557 = vmatprep.subr.bf16.mxu0 %v21153_v32 }
 0xaa3   : > { %12603 = vrot.lane.b32.xlu1 %v12601_v59, %s24383_s11  ;;  %v13798_v59 = vmul.f32 0.25, %v13797_v36 }
 0xaa4   : > { %11615 = vrot.lane.b32.xlu0 %v11613_v57, %s24383_s11 }
 0xaa7   : > { %11718 = vrot.lane.b32.xlu1 %v11716_v26, %s24383_s11 }
 0xaa8   : > { %12798 = vrot.lane.b32.xlu0 %v12796_v61, %s24383_s11  ;;  %v12793_v61 = vld [vmem:[#allocation7 + $0x1] sm:$0x1] }
 0xaac   : > { %12998 = vrot.lane.b32.xlu0 %v12996_v12, %s24383_s11  ;;  %v12513_v12 = vmul.f32 0.75, %v23014_v19 }
 0xab0   : > { %13211 = vrot.lane.b32.xlu0 %v13209_v3, %s24383_s11  ;;  %v23020_v3 = vld [vmem:[#allocation7 + $0x1] sm:$0x1] }
 0xb0d   : > { %v11996_v11 = vpop.permute.xlu1 %11995 }
 0xb0e   : > { %v11801_v14 = vpop.permute.xlu0 %11800  ;;  %v11997_v5 = vrot.slane %v11996_v11, 1 }
 0xb0f   : > { %v11803_v2 = vadd.f32 %v11801_v14, %v11797_v15  ;;  %v23025_v15 = vld [vmem:[#allocation7 + $0x3] sm:$0x1]  ;;  %v12993_v14 = vld [vmem:[#allocation7 + $0x1] sm:$0x3] }
 0xb10   : > { %v11998_v22 = vsel %vm8748_vm12, %v11996_v11, %v11997_v5  ;;  %v12794_v11 = vmul.f32 0.75, %v12793_v61  ;;  %v12707_v5 = vmul.f32 0.75, %v23020_v3 }
 0xb11   : > { %v11808_v24 = vrot.slane %v11803_v2, %v22969_v47  ;;  %v12000_v25 = vadd.f32 %v11998_v22, %v11991_v21  ;;  %v12410_v27 = vpop.permute.xlu1 %12409  ;;  %v14011_v22 = vmul.f32 0.25, %v23025_v15 }
 0xb12   : > { %v12196_v60 = vpop.permute.xlu0 %12195  ;;  %v12412_v56 = vadd.f32 %v12410_v27, %v12406_v54 }
 0xb13   : > { %v12197_v28 = vrot.slane %v12196_v60, 7  ;;  %11809 = vrot.lane.b32.xlu1 %v11808_v24, %s24383_s11  ;;  %v12005_v40 = vrot.slane %v12000_v25, %v22969_v47  ;;  %v12904_v24 = vld [vmem:[#allocation7 + $0x1] sm:$0x3]  ;;  %v12994_v25 = vmul.f32 0.75, %v12993_v14 }
 0xb14   : > { %v12417_v57 = vrot.slane %v12412_v56, %v22969_v47 }
 0xb15   : > { %v12198_v29 = vsel %vm8748_vm12, %v12197_v28, %v12196_v60  ;;  %12006 = vrot.lane.b32.xlu0 %v12005_v40, %s21203_s12  ;;  %v12604_v42 = vpop.permute.xlu1 %12603  ;;  %v12905_v60 = vmul.f32 0.75, %v12904_v24  ;;  %v23039_v28 = vld [vmem:[#allocation7 + $0x3] sm:$0x1] }
 0xb16   : > { %v11616_v6 = vpop.permute.xlu0 %11615  ;;  %v12200_v39 = vadd.f32 %v12198_v29, %v12191_v35  ;;  %v12606_v13 = vadd.f32 %v12604_v42, %v12600_v20  ;;  %v13208_v35 = vmul.f32 0.75, %v22963_v1  ;;  %v23073_v20 = vld [vmem:[#allocation7 + $0x2] sm:$0x1] }
 0xb17   : > { %v11618_v49 = vadd.f32 %v11616_v6, %v11612_v9  ;;  %11906 = vrot.lane.b32.xlu1 %v11904_v33, %s24383_s11  ;;  %v14205_v9 = vmul.f32 0.25, %v23039_v28  ;;  %v13111_v33 = vld [vmem:[#allocation7 + $0x2] sm:$0x1] }
 0xb18   : > { %v12209_v55 = vrot.slane %v12200_v39, %v22984_v23  ;;  %v12205_v53 = vrot.slane %v12200_v39, %v22969_v47  ;;  %v12611_v26 = vrot.slane %v12606_v13, %v22969_v47  ;;  %v13112_v63 = vmul.f32 0.75, %v13111_v33  ;;  %v14399_v39 = vld [vmem:[#allocation7 + $0x3] sm:$0x3] }
 0xb19   : > { %19577 = vmatmul.mubr.msk.f32.vlgmr.msra.gmra.mrb[80].mxu0 %vm11533_vm9, %v11618_v49  ;;  %13405 = vrot.lane.b32.xlu0 %v13403_v45, %s24383_s11  ;;  %v11719_v46 = vpop.permute.xlu1 %11718  ;;  %v14400_v45 = vmul.f32 0.25, %v14399_v39  ;;  %v13795_v39 = vld [vmem:[#allocation7 + $0x2] sm:$0x3] }
 0xb1a   : > { %20559 = vmatpush3.bf16.msra.mxu0 %v22892_v62  ;;  %19589 = vmatprep.mubr.msk.f32.mxu0 %vm24387_vm3, %v21968_v7  ;;  %v12799_v17 = vpop.permute.xlu0 %12798  ;;  %v11721_v16 = vadd.f32 %v11719_v46, %v11715_v51 }
 0xb1b   : > { %12104 = vrot.lane.b32.xlu1 %v12102_v30, %s24383_s11  ;;  %20560 = vmatprep.subr.bf16.mxu0 %v21153_v32  ;;  %v12800_v0 = vrot.slane %v12799_v17, 1  ;;  %v14599_v30 = vld [vmem:[#allocation7 + $0x4] sm:$0x1] }
 0xb1c   : > { %v14600_v1 = vmul.f32 0.25, %v14599_v30 }
 0xb1d   : > { %12212 = vrot.lane.b32.xlu0 %v12209_v55, %s21206_s22  ;;  %v12801_v48 = vsel %vm8748_vm12, %v12799_v17, %v12800_v0  ;;  %v13402_v17 = vmul.f32 0.75, %v22979_v34  ;;  %v13315_v0 = vmul.f32 0.75, %v23073_v20 }
 0xb1e   : > { %20562 = vmatpush3.bf16.msra.mxu0 %v22898_v10  ;;  %v12999_v41 = vpop.permute.xlu0 %12998  ;;  %v12803_v2 = vadd.f32 %v12801_v48, %v12794_v11  ;;  %v12307_v11 = vld [vmem:[#allocation7] sm:$0x3] }
 0xb1f   : > { %12210 = vrot.lane.b32.xlu1 %v12205_v53, %s21206_s22  ;;  %19587 = vmatprep.subr.mxu0 %v21968_v7  ;;  %v13000_v44 = vrot.slane %v12999_v41, 7  ;;  %v12308_v24 = vmul.f32 0.25, %v12307_v11 }
 0xb20   : > { %v12808_v4 = vrot.slane %v12803_v2, %v22969_v47  ;;  %v13595_v2 = vld [vmem:[#allocation7 + $0x2] sm:$0x1] }
 0xb21   : > { %13600 = vrot.lane.b32.xlu0 %v13598_v52, %s24383_s11  ;;  %v13001_v21 = vsel %vm8748_vm12, %v13000_v44, %v12999_v41  ;;  %v23083_v41 = vld [vmem:[#allocation7 + $0x4] sm:$0x1] }
 0xb22   : > { %19588 = vmatpush3.msk.msra.mxu0 %vm1106_vm11, %v22909_v31  ;;  %v13003_v27 = vadd.f32 %v13001_v21, %v12994_v25  ;;  %v13212_v29 = vpop.permute.xlu0 %13211 }
 0xb23   : > { %19590 = vmatmul.mubr.msk.f32.vlgmr.msra.gmra.mrb[82].mxu0 %vm11533_vm9, %v11721_v16  ;;  %12312 = vrot.lane.b32.xlu1 %v12310_v58, %s24383_s11  ;;  %v13214_v6 = vadd.f32 %v13212_v29, %v13208_v35  ;;  %v12099_v16 = vld [vmem:[#allocation7] sm:$0x1] }
 0xb24   : > { %20563 = vmatprep.subr.bf16.mxu0 %v21153_v32  ;;  %19602 = vmatprep.mubr.msk.f32.mxu0 %vm24387_vm3, %v21968_v7  ;;  %v13008_v40 = vrot.slane %v13003_v27, %v22969_v47  ;;  %v13012_v49 = vrot.slane %v13003_v27, %v22984_v23 }
 0xb25   : > { %20565 = vmatpush3.bf16.msra.mxu0 %v22892_v62  ;;  %13800 = vrot.lane.b32.xlu0 %v13798_v59, %s24383_s11  ;;  %v13219_v42 = vrot.slane %v13214_v6, %v22969_v47  ;;  %v12100_v59 = vmul.f32 0.25, %v12099_v16 }
 0xb26   : > { %20566 = vmatprep.subr.bf16.mxu0 %v21153_v32 }
 0xb27   : > { %12418 = vrot.lane.b32.xlu1 %v12417_v57, %s21207_s20 }
 0xb29   : > { %20568 = vmatpush3.bf16.msra.mxu0 %v22898_v10  ;;  %12612 = vrot.lane.b32.xlu0 %v12611_v26, %s21208_s29 }
 0xb2a   : > { %19600 = vmatprep.subr.mxu0 %v21968_v7 }
 0xb2b   : > { %12515 = vrot.lane.b32.xlu1 %v12513_v12, %s24383_s11  ;;  %v14813_v12 = vmul.f32 0.25, %v23083_v41 }
 0xb2d   : > { %19601 = vmatpush3.msk.msra.mxu0 %vm1106_vm11, %v22909_v31  ;;  %12709 = vrot.lane.b32.xlu0 %v12707_v5, %s24383_s11 }
 0xb2e   : > { %20575 = vmatprep.subr.bf16.mxu0 %v21153_v32 }
 0xb2f   : > { %14013 = vrot.lane.b32.xlu1 %v14011_v22, %s24383_s11  ;;  %v23097_v22 = vld [vmem:[#allocation7 + $0x2] sm:$0x1] }
 0xb30   : > { %v13509_v33 = vmul.f32 0.75, %v23097_v22 }
 0xb31   : > { %12907 = vrot.lane.b32.xlu0 %v12905_v60, %s24383_s11 }
 0xb33   : > { %12809 = vrot.lane.b32.xlu1 %v12808_v4, %s24435_s26 }
 0xb35   : > { %13013 = vrot.lane.b32.xlu0 %v13008_v40, %s24436_s23  ;;  %v13596_v40 = vmul.f32 0.75, %v13595_v2  ;;  %v23153_v2 = vld [vmem:[#allocation7 + $0x5] sm:$0x1] }
 0xb37   : > { %14207 = vrot.lane.b32.xlu1 %v14205_v9, %s24383_s11 }
 0xb39   : > { %13114 = vrot.lane.b32.xlu0 %v13112_v63, %s24383_s11 }
 0xb3b   : > { %13015 = vrot.lane.b32.xlu1 %v13012_v49, %s24436_s23 }
 0xb3d   : > { %13220 = vrot.lane.b32.xlu0 %v13219_v42, %s24437_s14 }
 0xb3f   : > { %14402 = vrot.lane.b32.xlu1 %v14400_v45, %s24383_s11 }
 0xb41   : > { %14602 = vrot.lane.b32.xlu0 %v14600_v1, %s24383_s11  ;;  %v15007_v1 = vld [vmem:[#allocation7 + $0x4] sm:$0x3] }
 0xb6b   : > { %v11606_v55 = vpop.f32.mrb[78].mxu0 }
 0xb6c   : > { %11610 = vst.msk [vmem:[%s23058_s17] sm:$0x1] %vm22927_vm15, %v11606_v55  ;;  %v19565_v53 = vpop.f32.mrb[79].mxu0 }
 0xb6d   : > { %v13796_v53 = vmul.f32 0.75, %v13795_v39 }
 0xb85   : > { %v11810_v43 = vpop.permute.xlu1 %11809 }
 0xb86   : > { %19603 = vmatmul.mubr.msk.f32.vlgmr.msra.gmra.mrb[84].mxu0 %vm11533_vm9, %v11810_v43 }
 0xb87   : > { %20577 = vmatpush3.bf16.msra.mxu0 %v22892_v62  ;;  %19628 = vmatprep.mubr.msk.f32.mxu0 %vm24387_vm3, %v21968_v7  ;;  %v12007_v46 = vpop.permute.xlu0 %12006 }
 0xb88   : > { %20578 = vmatprep.subr.bf16.mxu0 %v21153_v32 }
 0xb89   : > { %v11907_v54 = vpop.permute.xlu1 %11906 }
 0xb8a   : > { %v11909_v51 = vadd.f32 %v11907_v54, %v11903_v8 }
 0xb8b   : > { %20580 = vmatpush3.bf16.msra.mxu0 %v22898_v10  ;;  %v13406_v56 = vpop.permute.xlu0 %13405 }
 0xb8c   : > { %v11914_v52 = vrot.slane %v11909_v51, %v22969_v47  ;;  %19626 = vmatprep.subr.mxu0 %v21968_v7  ;;  %v13408_v58 = vadd.f32 %v13406_v56, %v13402_v17  ;;  %v15008_v51 = vmul.f32 0.25, %v15007_v1  ;;  %v12512_v17 = vmul.f32 0.25, %v23014_v19  ;;  %v14397_v1 = vld [vmem:[#allocation7 + $0x3] sm:$0x1] }
 0xb8d   : > { %v12105_v36 = vpop.permute.xlu1 %12104 }
 0xb8e   : > { %v12106_v13 = vrot.slane %v12105_v36, 1  ;;  %11915 = vrot.lane.b32.xlu1 %v11914_v52, %s24383_s11  ;;  %v13413_v37 = vrot.slane %v13408_v58, %v22969_v47 }
 0xb8f   : > { %19627 = vmatpush3.msk.msra.mxu0 %vm1106_vm11, %v22909_v31  ;;  %v12213_v57 = vpop.permute.xlu0 %12212 }
 0xb90   : > { %v12107_v34 = vsel %vm8748_vm12, %v12105_v36, %v12106_v13  ;;  %19629 = vmatmul.mubr.msk.f32.vlgmr.msra.gmra.mrb[86].mxu0 %vm11533_vm9, %v12007_v46  ;;  %20587 = vmatprep.subr.bf16.mxu0 %v21153_v32  ;;  %v13706_v46 = vld [vmem:[#allocation7 + $0x2] sm:$0x3]  ;;  %v15207_v13 = vld [vmem:[#allocation7 + $0x5] sm:$0x1] }
 0xb91   : > { %v12109_v26 = vadd.f32 %v12107_v34, %v12100_v59  ;;  %20589 = vmatpush3.bf16.msra.mxu0 %v22892_v62  ;;  %v12211_v61 = vpop.permute.xlu1 %12210  ;;  %13414 = vrot.lane.b32.xlu0 %v13413_v37, %s24438_s10  ;;  %v13707_v52 = vmul.f32 0.75, %v13706_v46  ;;  %v14010_v59 = vmul.f32 0.75, %v23025_v15 }
 0xb92   : > { %13317 = vrot.lane.b32.xlu1 %v13315_v0, %s24383_s11  ;;  %20590 = vmatprep.subr.bf16.mxu0 %v21153_v32  ;;  %v12215_v4 = vsel %vm12214_vm6, %v12211_v61, %v12213_v57  ;;  %v13913_v0 = vld [vmem:[#allocation7 + $0x3] sm:$0x1] }
 0xb93   : > { %v12114_v44 = vrot.slane %v12109_v26, %v22969_v47  ;;  %19654 = vmatprep.mubr.msk.f32.mxu0 %vm24387_vm3, %v21968_v7  ;;  %v13601_v48 = vpop.permute.xlu0 %13600  ;;  %v12706_v26 = vmul.f32 0.25, %v23020_v3  ;;  %v13914_v15 = vmul.f32 0.75, %v13913_v0 }
 0xb94   : > { %v13602_v14 = vrot.slane %v13601_v48, 1 }
 0xb95   : > { %20592 = vmatpush3.bf16.msra.mxu0 %v22898_v10  ;;  %v12313_v5 = vpop.permute.xlu1 %12312  ;;  %14815 = vrot.lane.b32.xlu0 %v14813_v12, %s24383_s11 }
 0xb96   : > { %v12314_v21 = vrot.slane %v12313_v5, 7  ;;  %12115 = vrot.lane.b32.xlu1 %v12114_v44, %s21203_s12  ;;  %19652 = vmatprep.subr.mxu0 %v21968_v7  ;;  %v13603_v25 = vsel %vm8748_vm12, %v13601_v48, %v13602_v14  ;;  %s21209_s12 = smov 44   ;;  %v15208_v44 = vmul.f32 0.25, %v15207_v13  ;;  %v15810_v13 = vld [vmem:[#allocation7 + $0x5] sm:$0x3] }
 0xb97   : > { %v13801_v60 = vpop.permute.xlu0 %13800  ;;  %v13605_v6 = vadd.f32 %v13603_v25, %v13596_v40  ;;  %v15422_v40 = vmul.f32 0.25, %v23153_v2  ;;  %v15811_v0 = vmul.f32 0.25, %v15810_v13 }
 0xb98   : > { %v12315_v27 = vsel %vm8748_vm12, %v12314_v21, %v12313_v5  ;;  %v13802_v35 = vrot.slane %v13801_v60, 7  ;;  %v12902_v5 = vld [vmem:[#allocation7 + $0x1] sm:$0x1] }
 0xb99   : > { %v12317_v29 = vadd.f32 %v12315_v27, %v12308_v24  ;;  %19653 = vmatpush3.msk.msra.mxu0 %vm1106_vm11, %v22909_v31  ;;  %v12419_v9 = vpop.permute.xlu1 %12418  ;;  %v13610_v55 = vrot.slane %v13605_v6, %v22969_v47  ;;  %v14204_v24 = vmul.f32 0.75, %v23039_v28  ;;  %v23161_v27 = vld [vmem:[#allocation7 + $0x3] sm:$0x1]  ;;  %v13109_v6 = vld [vmem:[#allocation7 + $0x1] sm:$0x3] }
 0xb9a   : > { %19655 = vmatmul.mubr.msk.f32.vlgmr.msra.gmra.mrb[88].mxu0 %vm11533_vm9, %v12215_v4  ;;  %20599 = vmatprep.subr.bf16.mxu0 %v21153_v32  ;;  %v13803_v30 = vsel %vm8748_vm12, %v13802_v35, %v13801_v60  ;;  %v12903_v60 = vmul.f32 0.25, %v12902_v5  ;;  %v14117_v35 = vmul.f32 0.75, %v23161_v27 }
 0xb9b   : > { %v12322_v63 = vrot.slane %v12317_v29, %v22969_v47  ;;  %v12326_v49 = vrot.slane %v12317_v29, %v22984_v23  ;;  %13511 = vrot.lane.b32.xlu1 %v13509_v33, %s24383_s11  ;;  %20601 = vmatpush3.bf16.msra.mxu0 %v22892_v62  ;;  %v12613_v42 = vpop.permute.xlu0 %12612  ;;  %v13805_v8 = vadd.f32 %v13803_v30, %v13796_v53  ;;  %v13110_v30 = vmul.f32 0.25, %v13109_v6 }
 0xb9c   : > { %20602 = vmatprep.subr.bf16.mxu0 %v21153_v32  ;;  %19680 = vmatprep.mubr.msk.f32.mxu0 %vm24387_vm3, %v21968_v7  ;;  %v13508_v6 = vmul.f32 0.25, %v23097_v22 }
 0xb9d   : > { %v12516_v45 = vpop.permute.xlu1 %12515  ;;  %12327 = vrot.lane.b32.xlu0 %v12322_v63, %s21206_s22  ;;  %v13810_v16 = vrot.slane %v13805_v8, %v22969_v47  ;;  %v13814_v19 = vrot.slane %v13805_v8, %v22984_v23 }
 0xb9e   : > { %v12518_v58 = vadd.f32 %v12516_v45, %v12512_v17 }
 0xb9f   : > { %12329 = vrot.lane.b32.xlu1 %v12326_v49, %s21206_s22  ;;  %20604 = vmatpush3.bf16.msra.mxu0 %v22898_v10  ;;  %v12710_v43 = vpop.permute.xlu0 %12709  ;;  %s21212_s22 = smov 96  }
 0xba0   : > { %19678 = vmatprep.subr.mxu0 %v21968_v7  ;;  %v12523_v37 = vrot.slane %v12518_v58, %v22969_v47  ;;  %v12712_v12 = vadd.f32 %v12710_v43, %v12706_v26 }
 0xba1   : > { %v14014_v54 = vpop.permute.xlu1 %14013  ;;  %13611 = vrot.lane.b32.xlu0 %v13610_v55, %s21209_s12  ;;  %v23184_v55 = vld [vmem:[#allocation7 + $0x3] sm:$0x1] }
 0xba2   : > { %v14016_v61 = vadd.f32 %v14014_v54, %v14010_v59  ;;  %v12717_v21 = vrot.slane %v12712_v12, %v22969_v47  ;;  %v14398_v54 = vmul.f32 0.75, %v14397_v1  ;;  %v16010_v12 = vld [vmem:[#allocation7 + $0x6] sm:$0x1]  ;;  %v23281_v1 = vld [vmem:[#allocation7 + $0x4] sm:$0x1] }
 0xba3   : > { %15010 = vrot.lane.b32.xlu1 %v15008_v51, %s24383_s11  ;;  %19679 = vmatpush3.msk.msra.mxu0 %vm1106_vm11, %v22909_v31  ;;  %v12908_v56 = vpop.permute.xlu0 %12907  ;;  %v14311_v51 = vmul.f32 0.75, %v23184_v55 }
 0xba4   : > { %19681 = vmatmul.mubr.msk.f32.vlgmr.msra.gmra.mrb[90].mxu0 %vm11533_vm9, %v12419_v9  ;;  %20611 = vmatprep.subr.bf16.mxu0 %v21153_v32  ;;  %v12909_v48 = vrot.slane %v12908_v56, 1  ;;  %v14021_v11 = vrot.slane %v14016_v61, %v22969_v47 }
 0xba5   : > { %20613 = vmatpush3.bf16.msra.mxu0 %v22892_v62  ;;  %v12810_v36 = vpop.permute.xlu1 %12809  ;;  %13709 = vrot.lane.b32.xlu0 %v13707_v52, %s24383_s11 }
 0xba6   : > { %20614 = vmatprep.subr.bf16.mxu0 %v21153_v32  ;;  %19706 = vmatprep.mubr.msk.f32.mxu0 %vm24387_vm3, %v21968_v7  ;;  %v12910_v25 = vsel %vm8748_vm12, %v12908_v56, %v12909_v48 }
 0xba7   : > { %13815 = vrot.lane.b32.xlu1 %v13810_v16, %s21210_s27  ;;  %v23137_v34 = vpop.permute.xlu0 %13013  ;;  %v12912_v9 = vadd.f32 %v12910_v25, %v12903_v60  ;;  %v14597_v16 = vld [vmem:[#allocation7 + $0x3] sm:$0x3] }
 0xba8   : > { %v14598_v59 = vmul.f32 0.75, %v14597_v16 }
 0xba9   : > { %20616 = vmatpush3.bf16.msra.mxu0 %v22898_v10  ;;  %v14208_v57 = vpop.permute.xlu1 %14207  ;;  %13817 = vrot.lane.b32.xlu0 %v13814_v19, %s21210_s27  ;;  %v12917_v45 = vrot.slane %v12912_v9, %v22969_v47 }
 0xbaa   : > { %19704 = vmatprep.subr.mxu0 %v21968_v7  ;;  %v14210_v4 = vadd.f32 %v14208_v57, %v14204_v24  ;;  %v13314_v24 = vmul.f32 0.25, %v23073_v20 }
 0xbab   : > { %12524 = vrot.lane.b32.xlu1 %v12523_v37, %s21207_s20  ;;  %v13115_v14 = vpop.permute.xlu0 %13114  ;;  %s21213_s20 = smov 62  }
 0xbac   : > { %v13116_v29 = vrot.slane %v13115_v14, 7  ;;  %v14215_v63 = vrot.slane %v14210_v4, %v22969_v47  ;;  %v14812_v4 = vmul.f32 0.75, %v23083_v41 }
 0xbad   : > { %19705 = vmatpush3.msk.msra.mxu0 %vm1106_vm11, %v22909_v31  ;;  %15210 = vrot.lane.b32.xlu0 %v15208_v44, %s24383_s11  ;;  %v13016_v3 = vpop.permute.xlu1 %13015 }
 0xbae   : > { %19707 = vmatmul.mubr.msk.f32.vlgmr.msra.gmra.mrb[92].mxu0 %vm11533_vm9, %v12613_v42  ;;  %20623 = vmatprep.subr.bf16.mxu0 %v21153_v32  ;;  %v13117_v49 = vsel %vm8748_vm12, %v13116_v29, %v13115_v14  ;;  %v23178_v42 = vld [vmem:[#allocation7 + $0x5] sm:$0x1] }
 0xbaf   : > { %13916 = vrot.lane.b32.xlu1 %v13914_v15, %s24383_s11  ;;  %20625 = vmatpush3.bf16.msra.mxu0 %v22892_v62  ;;  %v23167_v28 = vpop.permute.xlu0 %13220  ;;  %v13119_v53 = vadd.f32 %v13117_v49, %v13110_v30  ;;  %v15616_v46 = vmul.f32 0.25, %v23178_v42  ;;  %v16011_v15 = vmul.f32 0.25, %v16010_v12  ;;  %v15116_v12 = vld [vmem:[#allocation7 + $0x4] sm:$0x3] }
 0xbb0   : > { %20626 = vmatprep.subr.bf16.mxu0 %v21153_v32  ;;  %19732 = vmatprep.mubr.msk.f32.mxu0 %vm24387_vm3, %v21968_v7 }
 0xbb1   : > { %14022 = vrot.lane.b32.xlu0 %v14021_v11, %s21211_s16  ;;  %v14403_v33 = vpop.permute.xlu1 %14402  ;;  %v13124_v52 = vrot.slane %v13119_v53, %v22969_v47  ;;  %v13128_v58 = vrot.slane %v13119_v53, %v22984_v23 }
 0xbb2   : > { %v14404_v39 = vrot.slane %v14403_v33, 1 }
 0xbb3   : > { %12718 = vrot.lane.b32.xlu1 %v12717_v21, %s21208_s29  ;;  %20628 = vmatpush3.bf16.msra.mxu0 %v22898_v10  ;;  %v14603_v43 = vpop.permute.xlu0 %14602 }
 0xbb4   : > { %19730 = vmatprep.subr.mxu0 %v21968_v7  ;;  %v14405_v8 = vsel %vm8748_vm12, %v14403_v33, %v14404_v39  ;;  %v14604_v17 = vrot.slane %v14603_v43, 7 }
 0xbb5   : > { %15424 = vrot.lane.b32.xlu0 %v15422_v40, %s24383_s11  ;;  %v14407_v56 = vadd.f32 %v14405_v8, %v14398_v54  ;;  %v14919_v8 = vmul.f32 0.75, %v23281_v1 }
 0xbb6   : > { %v14605_v19 = vsel %vm8748_vm12, %v14604_v17, %v14603_v43  ;;  %v13704_v17 = vld [vmem:[#allocation7 + $0x2] sm:$0x1] }
 0xbb7   : > { %14119 = vrot.lane.b32.xlu1 %v14117_v35, %s24383_s11  ;;  %19731 = vmatpush3.msk.msra.mxu0 %vm1106_vm11, %v22909_v31  ;;  %v14412_v37 = vrot.slane %v14407_v56, %v22969_v47  ;;  %v14607_v57 = vadd.f32 %v14605_v19, %v14598_v59  ;;  %v23264_v35 = vld [vmem:[#allocation7 + $0x6] sm:$0x1] }
 0xbb8   : > { %19733 = vmatmul.mubr.msk.f32.vlgmr.msra.gmra.mrb[94].mxu0 %vm11533_vm9, %v12810_v36  ;;  %20635 = vmatprep.subr.bf16.mxu0 %v21153_v32  ;;  %v13017_v36 = vsel %vm24440_vm14, %v23137_v34, %v13016_v3  ;;  %v14508_v34 = vld [vmem:[#allocation7 + $0x3] sm:$0x3]  ;;  %v16225_v39 = vmul.f32 0.25, %v23264_v35 }
 0xbb9   : > { %20637 = vmatpush3.bf16.msra.mxu0 %v22892_v62  ;;  %14216 = vrot.lane.b32.xlu0 %v14215_v63, %s24439_s28  ;;  %v14509_v26 = vmul.f32 0.75, %v14508_v34  ;;  %v14612_v61 = vrot.slane %v14607_v57, %v22969_v47  ;;  %v14616_v44 = vrot.slane %v14607_v57, %v22984_v23 }
 0xbba   : > { %20638 = vmatprep.subr.bf16.mxu0 %v21153_v32  ;;  %19758 = vmatprep.mubr.msk.f32.mxu0 %vm24387_vm3, %v21968_v7 }
 0xbbb   : > { %12918 = vrot.lane.b32.xlu1 %v12917_v45, %s24435_s26 }
 0xbbd   : > { %20640 = vmatpush3.bf16.msra.mxu0 %v22898_v10  ;;  %15618 = vrot.lane.b32.xlu0 %v15616_v46, %s24383_s11  ;;  %v15005_v46 = vld [vmem:[#allocation7 + $0x4] sm:$0x1] }
 0xbbe   : > { %19756 = vmatprep.subr.mxu0 %v21968_v7 }
 0xbbf   : > { %14313 = vrot.lane.b32.xlu1 %v14311_v51, %s24383_s11 }
 0xbc1   : > { %19757 = vmatpush3.msk.msra.mxu0 %vm1106_vm11, %v22909_v31  ;;  %13129 = vrot.lane.b32.xlu0 %v13124_v52, %s24436_s23  ;;  %v15006_v52 = vmul.f32 0.75, %v15005_v46 }
 0xbc2   : > { %19759 = vmatmul.mubr.msk.f32.vlgmr.msra.gmra.mrb[96].mxu0 %vm11533_vm9, %v13017_v36  ;;  %20647 = vmatprep.subr.bf16.mxu0 %v21153_v32  ;;  %v13705_v36 = vmul.f32 0.25, %v13704_v17  ;;  %v14116_v17 = vmul.f32 0.25, %v23161_v27 }
 0xbc3   : > { %13131 = vrot.lane.b32.xlu1 %v13128_v58, %s24436_s23  ;;  %20649 = vmatpush3.bf16.msra.mxu0 %v22892_v62  ;;  %s21214_s23 = smov 28  }
 0xbc4   : > { %20650 = vmatprep.subr.bf16.mxu0 %v21153_v32  ;;  %19784 = vmatprep.mubr.msk.f32.mxu0 %vm24387_vm3, %v21968_v7 }
 0xbc5   : > { %14413 = vrot.lane.b32.xlu0 %v14412_v37, %s24441_s25 }
 0xbc7   : > { %15813 = vrot.lane.b32.xlu1 %v15811_v0, %s24383_s11  ;;  %20652 = vmatpush3.bf16.msra.mxu0 %v22898_v10 }
 0xbc8   : > { %19782 = vmatprep.subr.mxu0 %v21968_v7 }
 0xbc9   : > { %14511 = vrot.lane.b32.xlu0 %v14509_v26, %s24383_s11 }
 0xbcb   : > { %14617 = vrot.lane.b32.xlu1 %v14612_v61, %s24442_s15  ;;  %19783 = vmatpush3.msk.msra.mxu0 %vm1106_vm11, %v22909_v31  ;;  %v23313_v61 = vld [vmem:[%s24334_s8 + $0x20] sm:$0x3] }
 0xbcc   : > { %19785 = vmatmul.mubr.msk.f32.vlgmr.msra.gmra.mrb[98].mxu0 %vm11533_vm9, %v23167_v28  ;;  %20659 = vmatprep.subr.bf16.mxu0 %v21153_v32  ;;  %v14715_v28 = vld [vmem:[#allocation7 + $0x4] sm:$0x1] }
 0xbcd   : > { %14619 = vrot.lane.b32.xlu0 %v14616_v44, %s24442_s15  ;;  %20661 = vmatpush3.bf16.msra.mxu0 %v22892_v62  ;;  %v14716_v41 = vmul.f32 0.75, %v14715_v28  ;;  %v15205_v44 = vld [vmem:[#allocation7 + $0x4] sm:$0x3] }
 0xbce   : > { %20662 = vmatprep.subr.bf16.mxu0 %v21153_v32  ;;  %19810 = vmatprep.mubr.msk.f32.mxu0 %vm24387_vm3, %v21968_v7 }
 0xbd1   : > { %16013 = vrot.lane.b32.xlu0 %v16011_v15, %s24383_s11  ;;  %20664 = vmatpush3.bf16.msra.mxu0 %v22898_v10 }
 0xbd2   : > { %19808 = vmatprep.subr.mxu0 %v21968_v7 }
 0xbd5   : > { %19809 = vmatpush3.msk.msra.mxu0 %vm1106_vm11, %v22909_v31 }
 0xbd6   : > { %20671 = vmatprep.subr.bf16.mxu0 %v21153_v32 }
 0xbec   : > { %v23236_v48 = vpop.f32.mrb[80].mxu0 }
 0xbed   : > { %v19578_v11 = vpop.f32.mrb[81].mxu0 }
 0xbf6   : > { %v11791_v14 = vpop.f32.mrb[82].mxu0 }
 0xbf7   : > { %11795 = vst.msk [vmem:[%s23058_s17 + $0x1] sm:$0x1] %vm22927_vm15, %v11791_v14  ;;  %v19591_v3 = vpop.f32.mrb[83].mxu0  ;;  %v15206_v14 = vmul.f32 0.75, %v15205_v44 }
 0xc00   : > { %v11916_v5 = vpop.permute.xlu1 %11915 }
 0xc01   : > { %19616 = vmatmul.mubr.msk.f32.vlgmr.msra.gmra.mrb[66].mxu1 %vm11533_vm9, %v11916_v5  ;;  %v15117_v5 = vmul.f32 0.75, %v15116_v12  ;;  %v14506_v12 = vld [vmem:[#allocation7 + $0x3] sm:$0x1] }
 0xc02   : > { %20583 = vmatpush3.bf16.msra.mxu1 %v22892_v62  ;;  %19641 = vmatprep.mubr.msk.f32.mxu1 %vm24387_vm3, %v21968_v7 }
 0xc03   : > { %v13415_v21 = vpop.permute.xlu0 %13414  ;;  %20584 = vmatprep.subr.bf16.mxu1 %v21153_v32 }
 0xc04   : > { %v13318_v25 = vpop.permute.xlu1 %13317  ;;  %19811 = vmatmul.mubr.msk.f32.vlgmr.msra.gmra.mrb[100].mxu0 %vm11533_vm9, %v13415_v21  ;;  %v23324_v21 = vld [vmem:[#allocation7 + $0x6] sm:$0x1] }
 0xc05   : > { %v13320_v60 = vadd.f32 %v13318_v25, %v13314_v24  ;;  %20673 = vmatpush3.bf16.msra.mxu0 %v22892_v62  ;;  %19836 = vmatprep.mubr.msk.f32.mxu0 %vm24387_vm3, %v21968_v7 }
 0xc06   : > { %20586 = vmatpush3.bf16.msra.mxu1 %v22898_v10  ;;  %20674 = vmatprep.subr.bf16.mxu0 %v21153_v32 }
 0xc07   : > { %v13325_v40 = vrot.slane %v13320_v60, %v22969_v47  ;;  %v14816_v29 = vpop.permute.xlu0 %14815  ;;  %19639 = vmatprep.subr.mxu1 %v21968_v7 }
 0xc08   : > { %v14818_v20 = vadd.f32 %v14816_v29, %v14812_v4  ;;  %v12116_v9 = vpop.permute.xlu1 %12115  ;;  %v13911_v4 = vld [vmem:[#allocation7 + $0x2] sm:$0x3]  ;;  %v16419_v29 = vmul.f32 0.25, %v23324_v21 }
 0xc09   : > { %13326 = vrot.lane.b32.xlu1 %v13325_v40, %s24437_s14  ;;  %20676 = vmatpush3.bf16.msra.mxu0 %v22898_v10  ;;  %s21215_s14 = smov 122  }
 0xc0a   : > { %v14823_v33 = vrot.slane %v14818_v20, %v22969_v47  ;;  %19640 = vmatpush3.msk.msra.mxu1 %vm1106_vm11, %v22909_v31  ;;  %19834 = vmatprep.subr.mxu0 %v21968_v7 }
 0xc0b   : > { %19642 = vmatmul.mubr.msk.f32.vlgmr.msra.gmra.mrb[68].mxu1 %vm11533_vm9, %v12116_v9  ;;  %20593 = vmatprep.subr.bf16.mxu1 %v21153_v32 }
 0xc0c   : > { %20595 = vmatpush3.bf16.msra.mxu1 %v22892_v62  ;;  %14824 = vrot.lane.b32.xlu0 %v14823_v33, %s21212_s22 }
 0xc0d   : > { %v13512_v63 = vpop.permute.xlu1 %13511  ;;  %14718 = vrot.lane.b32.xlu1 %v14716_v41, %s24383_s11  ;;  %20596 = vmatprep.subr.bf16.mxu1 %v21153_v32  ;;  %v13912_v41 = vmul.f32 0.25, %v13911_v4  ;;  %v23414_v4 = vld [vmem:[#allocation7 + $0x5] sm:$0x1] }
 0xc0e   : > { %v13514_v49 = vadd.f32 %v13512_v63, %v13508_v6  ;;  %19835 = vmatpush3.msk.msra.mxu0 %vm1106_vm11, %v22909_v31  ;;  %19667 = vmatprep.mubr.msk.f32.mxu1 %vm24387_vm3, %v21968_v7 }
 0xc0f   : > { %v12328_v45 = vpop.permute.xlu0 %12327  ;;  %20683 = vmatprep.subr.bf16.mxu0 %v21153_v32 }
 0xc10   : > { %v13519_v22 = vrot.slane %v13514_v49, %v22969_v47  ;;  %20598 = vmatpush3.bf16.msra.mxu1 %v22898_v10  ;;  %16227 = vrot.lane.b32.xlu0 %v16225_v39, %s24383_s11 }
 0xc11   : > { %v12330_v30 = vpop.permute.xlu1 %12329  ;;  %19665 = vmatprep.subr.mxu1 %v21968_v7 }
 0xc12   : > { %13520 = vrot.lane.b32.xlu1 %v13519_v22, %s24438_s10  ;;  %v12331_v43 = vsel %vm12214_vm6, %v12328_v45, %v12330_v30  ;;  %s21216_s10 = smov 80   ;;  %vm24457_vm6 = vmmov %vm24456_vm10 }
 0xc13   : > { %v13612_v53 = vpop.permute.xlu0 %13611 }
 0xc14   : > { %19666 = vmatpush3.msk.msra.mxu1 %vm1106_vm11, %v22909_v31  ;;  %19837 = vmatmul.mubr.msk.f32.vlgmr.msra.gmra.mrb[102].mxu0 %vm11533_vm9, %v13612_v53  ;;  %v16613_v53 = vld [vmem:[#allocation7 + $0x6] sm:$0x3] }
 0xc15   : > { %20605 = vmatprep.subr.bf16.mxu1 %v21153_v32  ;;  %v15011_v54 = vpop.permute.xlu1 %15010  ;;  %19668 = vmatmul.mubr.msk.f32.vlgmr.msra.gmra.mrb[70].mxu1 %vm11533_vm9, %v12331_v43  ;;  %v15324_v43 = vld [vmem:[#allocation7 + $0x5] sm:$0x1] }
 0xc16   : > { %v15012_v51 = vrot.slane %v15011_v54, 1  ;;  %20685 = vmatpush3.bf16.msra.mxu0 %v22892_v62  ;;  %14921 = vrot.lane.b32.xlu1 %v14919_v8, %s24383_s11  ;;  %v16614_v8 = vmul.f32 0.25, %v16613_v53  ;;  %v15919_v53 = vld [vmem:[#allocation7 + $0x5] sm:$0x3] }
 0xc17   : > { %20607 = vmatpush3.bf16.msra.mxu1 %v22892_v62  ;;  %v13710_v31 = vpop.permute.xlu0 %13709  ;;  %20686 = vmatprep.subr.bf16.mxu0 %v21153_v32 }
 0xc18   : > { %v15013_v56 = vsel %vm8748_vm12, %v15011_v54, %v15012_v51  ;;  %v13711_v16 = vrot.slane %v13710_v31, 1  ;;  %20608 = vmatprep.subr.bf16.mxu1 %v21153_v32  ;;  %19862 = vmatprep.mubr.msk.f32.mxu0 %vm24387_vm3, %v21968_v7  ;;  %v15325_v54 = vmul.f32 0.75, %v15324_v43  ;;  %v15421_v51 = vmul.f32 0.75, %v23153_v2  ;;  %v23441_v43 = vld [vmem:[#allocation7 + $0x7] sm:$0x1] }
 0xc19   : > { %v15015_v58 = vadd.f32 %v15013_v56, %v15006_v52  ;;  %v13816_v19 = vpop.permute.xlu1 %13815  ;;  %19693 = vmatprep.mubr.msk.f32.mxu1 %vm24387_vm3, %v21968_v7 }
 0xc1a   : > { %v13712_v13 = vsel %vm8748_vm12, %v13710_v31, %v13711_v16  ;;  %20688 = vmatpush3.bf16.msra.mxu0 %v22898_v10 }
 0xc1b   : > { %v15020_v37 = vrot.slane %v15015_v58, %v22969_v47  ;;  %v13714_v59 = vadd.f32 %v13712_v13, %v13705_v36  ;;  %20610 = vmatpush3.bf16.msra.mxu1 %v22898_v10  ;;  %v13818_v34 = vpop.permute.xlu0 %13817  ;;  %19860 = vmatprep.subr.mxu0 %v21968_v7  ;;  %v16813_v13 = vld [vmem:[#allocation7 + $0x7] sm:$0x1] }
 0xc1c   : > { %v13819_v57 = vsel %vm24443_vm2, %v13816_v19, %v13818_v34  ;;  %19691 = vmatprep.subr.mxu1 %v21968_v7  ;;  %v23387_v19 = vld [vmem:[#allocation7 + $0x5] sm:$0x1]  ;;  %v16814_v44 = vmul.f32 0.25, %v16813_v13 }
 0xc1d   : > { %v12525_v0 = vpop.permute.xlu1 %12524  ;;  %15021 = vrot.lane.b32.xlu0 %v15020_v37, %s21213_s20  ;;  %v13719_v26 = vrot.slane %v13714_v59, %v22969_v47  ;;  %v15615_v37 = vmul.f32 0.75, %v23178_v42  ;;  %v14310_v59 = vmul.f32 0.25, %v23184_v55 }
 0xc1e   : > { %19861 = vmatpush3.msk.msra.mxu0 %vm1106_vm11, %v23313_v61 }
 0xc1f   : > { %19692 = vmatpush3.msk.msra.mxu1 %vm1106_vm11, %v23313_v61  ;;  %19863 = vmatmul.mubr.msk.f32.vlgmr.msra.gmra.mrb[104].mxu0 %vm11533_vm9, %v13819_v57  ;;  %v15211_v15 = vpop.permute.xlu0 %15210 }
 0xc20   : > { %20695 = vmatprep.subr.bf16.mxu0 %v21153_v32  ;;  %19694 = vmatmul.mubr.msk.f32.vlgmr.msra.gmra.mrb[72].mxu1 %vm11533_vm9, %v12525_v0  ;;  %v15212_v11 = vrot.slane %v15211_v15, 7 }
 0xc21   : > { %20617 = vmatprep.subr.bf16.mxu1 %v21153_v32  ;;  %20697 = vmatpush3.bf16.msra.mxu0 %v22892_v62  ;;  %v13917_v3 = vpop.permute.xlu1 %13916 }
 0xc22   : > { %20619 = vmatpush3.bf16.msra.mxu1 %v22892_v62  ;;  %13720 = vrot.lane.b32.xlu1 %v13719_v26, %s21209_s12  ;;  %v15213_v24 = vsel %vm8748_vm12, %v15212_v11, %v15211_v15  ;;  %v13918_v25 = vrot.slane %v13917_v3, 7  ;;  %v15528_v26 = vmul.f32 0.75, %v23387_v19  ;;  %v15808_v11 = vld [vmem:[#allocation7 + $0x5] sm:$0x1]  ;;  %s21217_s12 = smov 46  }
 0xc23   : > { %v15215_v60 = vadd.f32 %v15213_v24, %v15206_v14  ;;  %15119 = vrot.lane.b32.xlu0 %v15117_v5, %s24383_s11  ;;  %20698 = vmatprep.subr.bf16.mxu0 %v21153_v32  ;;  %v14023_v40 = vpop.permute.xlu0 %14022  ;;  %v14507_v24 = vmul.f32 0.25, %v14506_v12 }
 0xc24   : > { %20620 = vmatprep.subr.bf16.mxu1 %v21153_v32  ;;  %19888 = vmatprep.mubr.msk.f32.mxu0 %vm24387_vm3, %v21968_v7  ;;  %v13919_v9 = vsel %vm8748_vm12, %v13918_v25, %v13917_v3 }
 0xc25   : > { %v15220_v20 = vrot.slane %v15215_v60, %v22969_v47  ;;  %20700 = vmatpush3.bf16.msra.mxu0 %v22898_v10  ;;  %v12719_v28 = vpop.permute.xlu1 %12718  ;;  %19719 = vmatprep.mubr.msk.f32.mxu1 %vm24387_vm3, %v21968_v7  ;;  %v15224_v33 = vrot.slane %v15215_v60, %v22984_v23  ;;  %v13921_v63 = vadd.f32 %v13919_v9, %v13912_v41 }
 0xc26   : > { %20622 = vmatpush3.bf16.msra.mxu1 %v22898_v10  ;;  %16421 = vrot.lane.b32.xlu1 %v16419_v29, %s24383_s11  ;;  %v15809_v29 = vmul.f32 0.75, %v15808_v11 }
 0xc27   : > { %19886 = vmatprep.subr.mxu0 %v21968_v7  ;;  %19717 = vmatprep.subr.mxu1 %v21968_v7  ;;  %v15425_v6 = vpop.permute.xlu0 %15424  ;;  %v13926_v45 = vrot.slane %v13921_v63, %v22969_v47  ;;  %v13930_v22 = vrot.slane %v13921_v63, %v22984_v23  ;;  %v16008_v63 = vld [vmem:[#allocation7 + $0x5] sm:$0x3] }
 0xc28   : > { %15225 = vrot.lane.b32.xlu0 %v15220_v20, %s21214_s23  ;;  %v15427_v31 = vadd.f32 %v15425_v6, %v15421_v51  ;;  %v15920_v51 = vmul.f32 0.75, %v15919_v53 }
 0xc29   : > { %19887 = vmatpush3.msk.msra.mxu0 %vm1106_vm11, %v23313_v61  ;;  %v14120_v49 = vpop.permute.xlu1 %14119 }
 0xc2a   : > { %19718 = vmatpush3.msk.msra.mxu1 %vm1106_vm11, %v23313_v61  ;;  %15227 = vrot.lane.b32.xlu1 %v15224_v33, %s21214_s23  ;;  %v14122_v56 = vadd.f32 %v14120_v49, %v14116_v17  ;;  %v15432_v27 = vrot.slane %v15427_v31, %v22969_v47  ;;  %v15722_v33 = vmul.f32 0.75, %v23414_v4  ;;  %v17222_v17 = vmul.f32 0.25, %v23441_v43 }
 0xc2b   : > { %19889 = vmatmul.mubr.msk.f32.vlgmr.msra.gmra.mrb[106].mxu0 %vm11533_vm9, %v14023_v40  ;;  %20707 = vmatprep.subr.bf16.mxu0 %v21153_v32  ;;  %v14217_v39 = vpop.permute.xlu0 %14216  ;;  %v23416_v40 = vld [vmem:[#allocation7 + $0x7] sm:$0x1] }
 0xc2c   : > { %19720 = vmatmul.mubr.msk.f32.vlgmr.msra.gmra.mrb[74].mxu1 %vm11533_vm9, %v12719_v28  ;;  %20629 = vmatprep.subr.bf16.mxu1 %v21153_v32  ;;  %v14127_v58 = vrot.slane %v14122_v56, %v22969_v47  ;;  %v17028_v41 = vmul.f32 0.25, %v23416_v40 }
 0xc2d   : > { %20709 = vmatpush3.bf16.msra.mxu0 %v22892_v62  ;;  %20631 = vmatpush3.bf16.msra.mxu1 %v22892_v62  ;;  %v12919_v30 = vpop.permute.xlu1 %12918 }
 0xc2e   : > { %13933 = vrot.lane.b32.xlu1 %v13930_v22, %s21210_s27  ;;  %13931 = vrot.lane.b32.xlu0 %v13926_v45, %s21210_s27  ;;  %s21218_s27 = smov 12  }
 0xc2f   : > { %20710 = vmatprep.subr.bf16.mxu0 %v21153_v32  ;;  %20632 = vmatprep.subr.bf16.mxu1 %v21153_v32  ;;  %v15619_v46 = vpop.permute.xlu0 %15618 }
 0xc30   : > { %19914 = vmatprep.mubr.msk.f32.mxu0 %vm24387_vm3, %v21968_v7  ;;  %19745 = vmatprep.mubr.msk.f32.mxu1 %vm24387_vm3, %v21968_v7  ;;  %v15621_v57 = vadd.f32 %v15619_v46, %v15615_v37 }
 0xc31   : > { %20712 = vmatpush3.bf16.msra.mxu0 %v22898_v10  ;;  %20634 = vmatpush3.bf16.msra.mxu1 %v22898_v10  ;;  %v14314_v52 = vpop.permute.xlu1 %14313 }
 0xc32   : > { %16616 = vrot.lane.b32.xlu1 %v16614_v8, %s24383_s11  ;;  %15327 = vrot.lane.b32.xlu0 %v15325_v54, %s24383_s11  ;;  %v14316_v0 = vadd.f32 %v14314_v52, %v14310_v59  ;;  %v15626_v3 = vrot.slane %v15621_v57, %v22969_v47  ;;  %v14713_v57 = vld [vmem:[#allocation7 + $0x3] sm:$0x3] }
 0xc33   : > { %19912 = vmatprep.subr.mxu0 %v21968_v7  ;;  %19743 = vmatprep.subr.mxu1 %v21968_v7  ;;  %v13130_v16 = vpop.permute.xlu0 %13129 }
 0xc34   : > { %v14321_v5 = vrot.slane %v14316_v0, %v22969_v47 }
 0xc35   : > { %19913 = vmatpush3.msk.msra.mxu0 %vm1106_vm11, %v23313_v61  ;;  %19744 = vmatpush3.msk.msra.mxu1 %vm1106_vm11, %v23313_v61  ;;  %v13132_v2 = vpop.permute.xlu1 %13131 }
 0xc36   : > { %19915 = vmatmul.mubr.msk.f32.vlgmr.msra.gmra.mrb[108].mxu0 %vm11533_vm9, %v14217_v39  ;;  %20719 = vmatprep.subr.bf16.mxu0 %v21153_v32  ;;  %v13133_v9 = vsel %vm24445_vm1, %v13130_v16, %v13132_v2 }
 0xc37   : > { %19746 = vmatmul.mubr.msk.f32.vlgmr.msra.gmra.mrb[76].mxu1 %vm11533_vm9, %v12919_v30  ;;  %20641 = vmatprep.subr.bf16.mxu1 %v21153_v32  ;;  %v14414_v36 = vpop.permute.xlu0 %14413  ;;  %v16009_v30 = vmul.f32 0.75, %v16008_v63 }
 0xc38   : > { %20721 = vmatpush3.bf16.msra.mxu0 %v22892_v62  ;;  %20643 = vmatpush3.bf16.msra.mxu1 %v22892_v62 }
 0xc39   : > { %14128 = vrot.lane.b32.xlu1 %v14127_v58, %s21211_s16  ;;  %15433 = vrot.lane.b32.xlu0 %v15432_v27, %s21215_s14  ;;  %v15814_v34 = vpop.permute.xlu1 %15813  ;;  %s24450_s16 = smov 106  }
 0xc3a   : > { %20722 = vmatprep.subr.bf16.mxu0 %v21153_v32  ;;  %20644 = vmatprep.subr.bf16.mxu1 %v21153_v32  ;;  %v15815_v55 = vrot.slane %v15814_v34, 1 }
 0xc3b   : > { %19940 = vmatprep.mubr.msk.f32.mxu0 %vm24387_vm3, %v21968_v7  ;;  %19771 = vmatprep.mubr.msk.f32.mxu1 %vm24387_vm3, %v21968_v7  ;;  %v14512_v42 = vpop.permute.xlu0 %14511 }
 0xc3c   : > { %20724 = vmatpush3.bf16.msra.mxu0 %v22898_v10  ;;  %20646 = vmatpush3.bf16.msra.mxu1 %v22898_v10  ;;  %v14513_v15 = vrot.slane %v14512_v42, 1  ;;  %v15816_v60 = vsel %vm8748_vm12, %v15814_v34, %v15815_v55 }
 0xc3d   : > { %15530 = vrot.lane.b32.xlu1 %v15528_v26, %s24383_s11  ;;  %16816 = vrot.lane.b32.xlu0 %v16814_v44, %s24383_s11  ;;  %v15818_v28 = vadd.f32 %v15816_v60, %v15809_v29  ;;  %v14618_v8 = vpop.permute.xlu1 %14617  ;;  %v14714_v44 = vmul.f32 0.25, %v14713_v57  ;;  %v16224_v60 = vmul.f32 0.75, %v23264_v35  ;;  %v14918_v29 = vmul.f32 0.25, %v23281_v1 }
 0xc3e   : > { %19938 = vmatprep.subr.mxu0 %v21968_v7  ;;  %19769 = vmatprep.subr.mxu1 %v21968_v7  ;;  %v14514_v14 = vsel %vm8748_vm12, %v14512_v42, %v14513_v15 }
 0xc3f   : > { %v14620_v25 = vpop.permute.xlu0 %14619  ;;  %v14516_v20 = vadd.f32 %v14514_v14, %v14507_v24  ;;  %v15823_v22 = vrot.slane %v15818_v28, %v22969_v47  ;;  %v16127_v24 = vld [vmem:[#allocation7 + $0x6] sm:$0x1] }
 0xc40   : > { %19939 = vmatpush3.msk.msra.mxu0 %vm1106_vm11, %v23313_v61  ;;  %19770 = vmatpush3.msk.msra.mxu1 %vm1106_vm11, %v23313_v61  ;;  %v14621_v54 = vsel %vm24447_vm5, %v14618_v8, %v14620_v25  ;;  %v17416_v25 = vld [vmem:[#allocation7 + $0x7] sm:$0x3] }
 0xc41   : > { %14322 = vrot.lane.b32.xlu1 %v14321_v5, %s24439_s28  ;;  %15627 = vrot.lane.b32.xlu0 %v15626_v3, %s24444_s18  ;;  %v14521_v39 = vrot.slane %v14516_v20, %v22969_v47  ;;  %s24451_s28 = smov 72  }
 0xc42   : > { %19941 = vmatmul.mubr.msk.f32.vlgmr.msra.gmra.mrb[110].mxu0 %vm11533_vm9, %v14414_v36  ;;  %20731 = vmatprep.subr.bf16.mxu0 %v21153_v32 }
 0xc43   : > { %19772 = vmatmul.mubr.msk.f32.vlgmr.msra.gmra.mrb[78].mxu1 %vm11533_vm9, %v13133_v9  ;;  %20733 = vmatpush3.bf16.msra.mxu0 %v22892_v62  ;;  %v16014_v6 = vpop.permute.xlu0 %16013 }
 0xc44   : > { %20734 = vmatprep.subr.bf16.mxu0 %v21153_v32  ;;  %v16015_v49 = vrot.slane %v16014_v6, 7  ;;  %19966 = vmatprep.mubr.msk.f32.mxu0 %vm24387_vm3, %v21968_v7 }
 0xc45   : > { %15724 = vrot.lane.b32.xlu1 %v15722_v33, %s24383_s11  ;;  %17030 = vrot.lane.b32.xlu0 %v17028_v41, %s24383_s11  ;;  %v16128_v33 = vmul.f32 0.75, %v16127_v24  ;;  %v17417_v41 = vmul.f32 0.25, %v17416_v25 }
 0xc46   : > { %v16016_v45 = vsel %vm8748_vm12, %v16015_v49, %v16014_v6  ;;  %20653 = vmatprep.subr.bf16.mxu1 %v21153_v32  ;;  %19797 = vmatprep.mubr.msk.f32.mxu1 %vm24387_vm3, %v21968_v7  ;;  %v17616_v49 = vld [vmem:[#allocation7 + $0x8] sm:$0x1] }
 0xc47   : > { %20736 = vmatpush3.bf16.msra.mxu0 %v22898_v10  ;;  %20655 = vmatpush3.bf16.msra.mxu1 %v22892_v62  ;;  %v16018_v46 = vadd.f32 %v16016_v45, %v16009_v30 }
 0xc48   : > { %19964 = vmatprep.subr.mxu0 %v21968_v7  ;;  %20656 = vmatprep.subr.bf16.mxu1 %v21153_v32 }
 0xc49   : > { %15824 = vrot.lane.b32.xlu0 %v15823_v22, %s24446_s21  ;;  %14522 = vrot.lane.b32.xlu1 %v14521_v39, %s24441_s25  ;;  %v16023_v52 = vrot.slane %v16018_v46, %v22969_v47  ;;  %v16027_v31 = vrot.slane %v16018_v46, %v22984_v23  ;;  %v23522_v39 = vld [vmem:[#allocation7 + $0x6] sm:$0x1]  ;;  %v17617_v22 = vmul.f32 0.25, %v17616_v49  ;;  %v15114_v46 = vld [vmem:[#allocation7 + $0x4] sm:$0x1]  ;;  %s24453_s25 = smov 38  }
 0xc4a   : > { %v16331_v30 = vmul.f32 0.75, %v23522_v39 }
 0xc4b   : > { %19965 = vmatpush3.msk.msra.mxu0 %vm1106_vm11, %v23313_v61  ;;  %20658 = vmatpush3.bf16.msra.mxu1 %v22898_v10 }
 0xc4c   : > { %19967 = vmatmul.mubr.msk.f32.vlgmr.msra.gmra.mrb[112].mxu0 %vm11533_vm9, %v14621_v54  ;;  %20743 = vmatprep.subr.bf16.mxu0 %v21153_v32 }
 0xc4d   : > { %15922 = vrot.lane.b32.xlu0 %v15920_v51, %s24383_s11  ;;  %17224 = vrot.lane.b32.xlu1 %v17222_v17, %s24383_s11 }
 0xc4e   : > { %20745 = vmatpush3.bf16.msra.mxu0 %v22892_v62  ;;  %19795 = vmatprep.subr.mxu1 %v21968_v7 }
 0xc4f   : > { %20746 = vmatprep.subr.bf16.mxu0 %v21153_v32  ;;  %19796 = vmatpush3.msk.msra.mxu1 %vm1106_vm11, %v23313_v61 }
 0xc50   : > { %20665 = vmatprep.subr.bf16.mxu1 %v21153_v32  ;;  %19992 = vmatprep.mubr.msk.f32.mxu0 %vm24387_vm3, %v21968_v7 }
 0xc51   : > { %16030 = vrot.lane.b32.xlu1 %v16027_v31, %s24448_s13  ;;  %16028 = vrot.lane.b32.xlu0 %v16023_v52, %s24448_s13  ;;  %v15115_v52 = vmul.f32 0.25, %v15114_v46  ;;  %v16418_v31 = vmul.f32 0.75, %v23324_v21 }
 0xc52   : > { %20748 = vmatpush3.bf16.msra.mxu0 %v22898_v10 }
 0xc53   : > { %19990 = vmatprep.subr.mxu0 %v21968_v7 }
 0xc56   : > { %19991 = vmatpush3.msk.msra.mxu0 %vm1106_vm11, %v23313_v61 }
 0xc57   : > { %20755 = vmatprep.subr.bf16.mxu0 %v21153_v32 }
 0xc59   : > { %v23472_v56 = vpop.f32.mrb[84].mxu0 }
 0xc5a   : > { %v19604_v16 = vpop.f32.mrb[85].mxu0 }
 0xc63   : > { %v23474_v2 = vpop.f32.mrb[86].mxu0 }
 0xc64   : > { %v19630_v27 = vpop.f32.mrb[87].mxu0 }
 0xc6d   : > { %v23476_v58 = vpop.f32.mrb[88].mxu0 }
 0xc6e   : > { %v19656_v36 = vpop.f32.mrb[89].mxu0 }
 0xc77   : > { %v23478_v13 = vpop.f32.mrb[90].mxu0 }
 0xc78   : > { %v19682_v37 = vpop.f32.mrb[91].mxu0 }
 0xc7b   : > { %v13327_v59 = vpop.permute.xlu1 %13326 }
 0xc7c   : > { %19798 = vmatmul.mubr.msk.f32.vlgmr.msra.gmra.mrb[80].mxu1 %vm11533_vm9, %v13327_v59 }
 0xc7d   : > { %20667 = vmatpush3.bf16.msra.mxu1 %v22892_v62  ;;  %19823 = vmatprep.mubr.msk.f32.mxu1 %vm24387_vm3, %v21968_v7 }
 0xc7e   : > { %v14825_v34 = vpop.permute.xlu0 %14824  ;;  %20668 = vmatprep.subr.bf16.mxu1 %v21153_v32 }
 0xc7f   : > { %v14719_v0 = vpop.permute.xlu1 %14718  ;;  %19993 = vmatmul.mubr.msk.f32.vlgmr.msra.gmra.mrb[114].mxu0 %vm11533_vm9, %v14825_v34 }
 0xc80   : > { %v14720_v26 = vrot.slane %v14719_v0, 7  ;;  %20757 = vmatpush3.bf16.msra.mxu0 %v22892_v62  ;;  %20018 = vmatprep.mubr.msk.f32.mxu0 %vm24387_vm3, %v21968_v7 }
 0xc81   : > { %v23489_v42 = vpop.f32.mrb[92].mxu0  ;;  %20670 = vmatpush3.bf16.msra.mxu1 %v22898_v10  ;;  %20758 = vmatprep.subr.bf16.mxu0 %v21153_v32 }
 0xc82   : > { %v14721_v55 = vsel %vm8748_vm12, %v14720_v26, %v14719_v0  ;;  %v19708_v12 = vpop.f32.mrb[93].mxu0  ;;  %19821 = vmatprep.subr.mxu1 %v21968_v7  ;;  %v16228_v5 = vpop.permute.xlu0 %16227  ;;  %v23555_v0 = vld [vmem:[#allocation7 + $0x6] sm:$0x1] }
 0xc83   : > { %v14723_v15 = vadd.f32 %v14721_v55, %v14714_v44  ;;  %v16230_v9 = vadd.f32 %v16228_v5, %v16224_v60  ;;  %v16525_v55 = vmul.f32 0.75, %v23555_v0 }
 0xc84   : > { %v13521_v11 = vpop.permute.xlu1 %13520  ;;  %20760 = vmatpush3.bf16.msra.mxu0 %v22898_v10 }
 0xc85   : > { %v14728_v14 = vrot.slane %v14723_v15, %v22969_v47  ;;  %v14732_v3 = vrot.slane %v14723_v15, %v22984_v23  ;;  %19822 = vmatpush3.msk.msra.mxu1 %vm1106_vm11, %v23313_v61  ;;  %20016 = vmatprep.subr.mxu0 %v21968_v7  ;;  %v16235_v6 = vrot.slane %v16230_v9, %v22969_v47  ;;  %v16611_v9 = vld [vmem:[#allocation7 + $0x6] sm:$0x1] }
 0xc86   : > { %19824 = vmatmul.mubr.msk.f32.vlgmr.msra.gmra.mrb[82].mxu1 %vm11533_vm9, %v13521_v11  ;;  %20677 = vmatprep.subr.bf16.mxu1 %v21153_v32 }
 0xc87   : > { %14735 = vrot.lane.b32.xlu1 %v14732_v3, %s24442_s15  ;;  %14733 = vrot.lane.b32.xlu0 %v14728_v14, %s24442_s15  ;;  %v15322_v3 = vld [vmem:[#allocation7 + $0x4] sm:$0x3] }
 0xc88   : > { %v14922_v20 = vpop.permute.xlu1 %14921  ;;  %20679 = vmatpush3.bf16.msra.mxu1 %v22892_v62  ;;  %20017 = vmatpush3.msk.msra.mxu0 %vm1106_vm11, %v23313_v61 }
 0xc89   : > { %v14924_v28 = vadd.f32 %v14922_v20, %v14918_v29  ;;  %20680 = vmatprep.subr.bf16.mxu1 %v21153_v32  ;;  %19849 = vmatprep.mubr.msk.f32.mxu1 %vm24387_vm3, %v21968_v7  ;;  %v15323_v29 = vmul.f32 0.25, %v15322_v3 }
 0xc8a   : > { %20767 = vmatprep.subr.bf16.mxu0 %v21153_v32 }
 0xc8b   : > { %v23514_v35 = vpop.f32.mrb[94].mxu0  ;;  %16130 = vrot.lane.b32.xlu0 %v16128_v33, %s24383_s11  ;;  %17419 = vrot.lane.b32.xlu1 %v17417_v41, %s24383_s11  ;;  %v14929_v63 = vrot.slane %v14924_v28, %v22969_v47  ;;  %v16612_v41 = vmul.f32 0.75, %v16611_v9 }
 0xc8c   : > { %v19734_v1 = vpop.f32.mrb[95].mxu0  ;;  %20682 = vmatpush3.bf16.msra.mxu1 %v22898_v10 }
 0xc8d   : > { %19847 = vmatprep.subr.mxu1 %v21968_v7 }
 0xc8f   : > { %v15022_v45 = vpop.permute.xlu0 %15021  ;;  %16236 = vrot.lane.b32.xlu0 %v16235_v6, %s21188_s24  ;;  %14930 = vrot.lane.b32.xlu1 %v14929_v63, %s21212_s22 }
 0xc90   : > { %20019 = vmatmul.mubr.msk.f32.vlgmr.msra.gmra.mrb[116].mxu0 %vm11533_vm9, %v15022_v45  ;;  %19848 = vmatpush3.msk.msra.mxu1 %vm1106_vm11, %v23313_v61 }
 0xc91   : > { %20769 = vmatpush3.bf16.msra.mxu0 %v22892_v62  ;;  %20689 = vmatprep.subr.bf16.mxu1 %v21153_v32 }
 0xc92   : > { %20770 = vmatprep.subr.bf16.mxu0 %v21153_v32  ;;  %20044 = vmatprep.mubr.msk.f32.mxu0 %vm24387_vm3, %v21968_v7 }
 0xc93   : > { %17619 = vrot.lane.b32.xlu0 %v17617_v22, %s24383_s11  ;;  %16333 = vrot.lane.b32.xlu1 %v16331_v30, %s24383_s11  ;;  %v16811_v22 = vld [vmem:[#allocation7 + $0x6] sm:$0x3] }
 0xc94   : > { %v13721_v53 = vpop.permute.xlu1 %13720  ;;  %v16722_v30 = vld [vmem:[#allocation7 + $0x6] sm:$0x3] }
 0xc95   : > { %19850 = vmatmul.mubr.msk.f32.vlgmr.msra.gmra.mrb[84].mxu1 %vm11533_vm9, %v13721_v53  ;;  %v15120_v8 = vpop.permute.xlu0 %15119  ;;  %v23538_v54 = vpop.f32.mrb[96].mxu0  ;;  %20772 = vmatpush3.bf16.msra.mxu0 %v22898_v10 }
 0xc96   : > { %v15121_v51 = vrot.slane %v15120_v8, 1  ;;  %v19760_v17 = vpop.f32.mrb[97].mxu0  ;;  %20691 = vmatpush3.bf16.msra.mxu1 %v22892_v62  ;;  %20042 = vmatprep.subr.mxu0 %v21968_v7 }
 0xc97   : > { %20692 = vmatprep.subr.bf16.mxu1 %v21153_v32  ;;  %19875 = vmatprep.mubr.msk.f32.mxu1 %vm24387_vm3, %v21968_v7  ;;  %v16812_v17 = vmul.f32 0.75, %v16811_v22 }
 0xc98   : > { %v15122_v16 = vsel %vm8748_vm12, %v15120_v8, %v15121_v51  ;;  %v16422_v27 = vpop.permute.xlu1 %16421 }
 0xc99   : > { %v15124_v36 = vadd.f32 %v15122_v16, %v15115_v52  ;;  %v16424_v37 = vadd.f32 %v16422_v27, %v16418_v31  ;;  %20043 = vmatpush3.msk.msra.mxu0 %vm1106_vm11, %v23313_v61  ;;  %v16723_v52 = vmul.f32 0.75, %v16722_v30 }
 0xc9a   : > { %20694 = vmatpush3.bf16.msra.mxu1 %v22898_v10  ;;  %v15226_v59 = vpop.permute.xlu0 %15225  ;;  %20779 = vmatprep.subr.bf16.mxu0 %v21153_v32 }
 0xc9b   : > { %v15129_v21 = vrot.slane %v15124_v36, %v22969_v47  ;;  %v16429_v34 = vrot.slane %v16424_v37, %v22969_v47  ;;  %19873 = vmatprep.subr.mxu1 %v21968_v7  ;;  %v15527_v37 = vmul.f32 0.25, %v23387_v19 }
 0xc9c   : > { %v15228_v57 = vpop.permute.xlu1 %15227 }
 0xc9d   : > { %v15230_v26 = vsel %vm15229_vm8, %v15226_v59, %v15228_v57  ;;  %16430 = vrot.lane.b32.xlu0 %v16429_v34, %s21216_s10  ;;  %15130 = vrot.lane.b32.xlu1 %v15129_v21, %s21213_s20  ;;  %s24454_s20 = smov 4  }
 0xc9e   : > { %20045 = vmatmul.mubr.msk.f32.vlgmr.msra.gmra.mrb[118].mxu0 %vm11533_vm9, %v15230_v26  ;;  %19874 = vmatpush3.msk.msra.mxu1 %vm1106_vm11, %v23313_v61  ;;  %v16930_v26 = vld [vmem:[#allocation7 + $0x7] sm:$0x1] }
 0xc9f   : > { %20781 = vmatpush3.bf16.msra.mxu0 %v22892_v62  ;;  %v23564_v44 = vpop.f32.mrb[98].mxu0  ;;  %20701 = vmatprep.subr.bf16.mxu1 %v21153_v32 }
 0xca0   : > { %v13934_v12 = vpop.permute.xlu1 %13933  ;;  %v13932_v15 = vpop.permute.xlu0 %13931  ;;  %20782 = vmatprep.subr.bf16.mxu0 %v21153_v32  ;;  %20070 = vmatprep.mubr.msk.f32.mxu0 %vm24387_vm3, %v21968_v7 }
 0xca1   : > { %v13935_v11 = vsel %vm24449_vm4, %v13932_v15, %v13934_v12  ;;  %16527 = vrot.lane.b32.xlu0 %v16525_v55, %s24383_s11  ;;  %v19786_v14 = vpop.f32.mrb[99].mxu0  ;;  %v15721_v55 = vmul.f32 0.25, %v23414_v4  ;;  %v17027_v12 = vmul.f32 0.75, %v23416_v40  ;;  %v17221_v4 = vmul.f32 0.75, %v23441_v43  ;;  %v15917_v40 = vld [vmem:[#allocation7 + $0x5] sm:$0x1] }
 0xca2   : > { %19876 = vmatmul.mubr.msk.f32.vlgmr.msra.gmra.mrb[86].mxu1 %vm11533_vm9, %v13935_v11  ;;  %v16931_v11 = vmul.f32 0.75, %v16930_v26  ;;  %v23649_v43 = vld [vmem:[#allocation7 + $0x7] sm:$0x1] }
 0xca3   : > { %20703 = vmatpush3.bf16.msra.mxu1 %v22892_v62  ;;  %20784 = vmatpush3.bf16.msra.mxu0 %v22898_v10 }
 0xca4   : > { %v16617_v5 = vpop.permute.xlu1 %16616  ;;  %v15328_v24 = vpop.permute.xlu0 %15327  ;;  %20704 = vmatprep.subr.bf16.mxu1 %v21153_v32  ;;  %20068 = vmatprep.subr.mxu0 %v21968_v7 }
 0xca5   : > { %v15329_v25 = vrot.slane %v15328_v24, 7  ;;  %19901 = vmatprep.mubr.msk.f32.mxu1 %vm24387_vm3, %v21968_v7  ;;  %v16618_v60 = vrot.slane %v16617_v5, 1 }
 0xca7   : > { %v15330_v20 = vsel %vm8748_vm12, %v15329_v25, %v15328_v24  ;;  %20706 = vmatpush3.bf16.msra.mxu1 %v22898_v10  ;;  %20069 = vmatpush3.msk.msra.mxu0 %vm1106_vm11, %v23313_v61  ;;  %v16619_v33 = vsel %vm8748_vm12, %v16617_v5, %v16618_v60 }
 0xca8   : > { %v15332_v28 = vadd.f32 %v15330_v20, %v15323_v29  ;;  %20791 = vmatprep.subr.bf16.mxu0 %v21153_v32  ;;  %19899 = vmatprep.subr.mxu1 %v21968_v7  ;;  %v16621_v45 = vadd.f32 %v16619_v33, %v16612_v41  ;;  %v15918_v33 = vmul.f32 0.25, %v15917_v40 }
 0xcaa   : > { %v15337_v1 = vrot.slane %v15332_v28, %v22969_v47  ;;  %v15341_v6 = vrot.slane %v15332_v28, %v22984_v23  ;;  %v16626_v51 = vrot.slane %v16621_v45, %v22969_v47 }
 0xcab   : > { %v14129_v63 = vpop.permute.xlu1 %14128  ;;  %v15434_v49 = vpop.permute.xlu0 %15433  ;;  %19900 = vmatpush3.msk.msra.mxu1 %vm1106_vm11, %v23313_v61 }
 0xcac   : > { %20071 = vmatmul.mubr.msk.f32.vlgmr.msra.gmra.mrb[120].mxu0 %vm11533_vm9, %v15434_v49  ;;  %19902 = vmatmul.mubr.msk.f32.vlgmr.msra.gmra.mrb[88].mxu1 %vm11533_vm9, %v14129_v63  ;;  %v17134_v63 = vmul.f32 0.75, %v23649_v43  ;;  %v23663_v49 = vld [vmem:[#allocation7 + $0x7] sm:$0x1] }
 0xcad   : > { %20793 = vmatpush3.bf16.msra.mxu0 %v22892_v62  ;;  %20713 = vmatprep.subr.bf16.mxu1 %v21153_v32 }
 0xcae   : > { %20715 = vmatpush3.bf16.msra.mxu1 %v22892_v62  ;;  %20794 = vmatprep.subr.bf16.mxu0 %v21153_v32 }
 0xcaf   : > { %v15531_v53 = vpop.permute.xlu1 %15530  ;;  %v16817_v46 = vpop.permute.xlu0 %16816  ;;  %15344 = vrot.lane.b32.xlu0 %v15341_v6, %s21214_s23  ;;  %15342 = vrot.lane.b32.xlu1 %v15337_v1, %s21214_s23 }
 0xcb0   : > { %v16818_v8 = vrot.slane %v16817_v46, 7  ;;  %20716 = vmatprep.subr.bf16.mxu1 %v21153_v32  ;;  %20096 = vmatprep.mubr.msk.f32.mxu0 %vm24387_vm3, %v21968_v7  ;;  %v15533_v34 = vadd.f32 %v15531_v53, %v15527_v37  ;;  %v17328_v53 = vmul.f32 0.75, %v23663_v49 }
 0xcb1   : > { %20796 = vmatpush3.bf16.msra.mxu0 %v22898_v10  ;;  %19927 = vmatprep.mubr.msk.f32.mxu1 %vm24387_vm3, %v21968_v7 }
 0xcb2   : > { %v16819_v31 = vsel %vm8748_vm12, %v16818_v8, %v16817_v46  ;;  %20718 = vmatpush3.bf16.msra.mxu1 %v22898_v10  ;;  %20094 = vmatprep.subr.mxu0 %v21968_v7  ;;  %v15538_v15 = vrot.slane %v15533_v34, %v22969_v47 }
 0xcb3   : > { %v16821_v16 = vadd.f32 %v16819_v31, %v16812_v17  ;;  %v14323_v27 = vpop.permute.xlu1 %14322  ;;  %v15628_v36 = vpop.permute.xlu0 %15627  ;;  %16725 = vrot.lane.b32.xlu0 %v16723_v52, %s24383_s11  ;;  %16627 = vrot.lane.b32.xlu1 %v16626_v51, %s21217_s12 }
 0xcb4   : > { %19925 = vmatprep.subr.mxu1 %v21968_v7 }
 0xcb5   : > { %v16826_v59 = vrot.slane %v16821_v16, %v22969_v47  ;;  %v16830_v21 = vrot.slane %v16821_v16, %v22984_v23  ;;  %20095 = vmatpush3.msk.msra.mxu0 %vm1106_vm11, %v23313_v61 }
 0xcb6   : > { %20097 = vmatmul.mubr.msk.f32.vlgmr.msra.gmra.mrb[122].mxu0 %vm11533_vm9, %v15628_v36  ;;  %20803 = vmatprep.subr.bf16.mxu0 %v21153_v32 }
 0xcb7   : > { %20805 = vmatpush3.bf16.msra.mxu0 %v22892_v62  ;;  %v15725_v57 = vpop.permute.xlu1 %15724  ;;  %19926 = vmatpush3.msk.msra.mxu1 %vm1106_vm11, %v23313_v61  ;;  %v17031_v19 = vpop.permute.xlu0 %17030 }
 0xcb8   : > { %16833 = vrot.lane.b32.xlu0 %v16830_v21, %s21218_s27  ;;  %16831 = vrot.lane.b32.xlu1 %v16826_v59, %s21218_s27  ;;  %v15727_v14 = vadd.f32 %v15725_v57, %v15721_v55  ;;  %v17033_v3 = vadd.f32 %v17031_v19, %v17027_v12 }
 0xcb9   : > { %19928 = vmatmul.mubr.msk.f32.vlgmr.msra.gmra.mrb[90].mxu1 %vm11533_vm9, %v14323_v27  ;;  %20725 = vmatprep.subr.bf16.mxu1 %v21153_v32 }
 0xcba   : > { %20727 = vmatpush3.bf16.msra.mxu1 %v22892_v62  ;;  %20806 = vmatprep.subr.bf16.mxu0 %v21153_v32  ;;  %v15732_v25 = vrot.slane %v15727_v14, %v22969_v47  ;;  %v17038_v60 = vrot.slane %v17033_v3, %v22969_v47 }
 0xcbb   : > { %20808 = vmatpush3.bf16.msra.mxu0 %v22898_v10  ;;  %v14523_v5 = vpop.permute.xlu1 %14522  ;;  %v15825_v24 = vpop.permute.xlu0 %15824  ;;  %20728 = vmatprep.subr.bf16.mxu1 %v21153_v32 }
 0xcbc   : > { %16933 = vrot.lane.b32.xlu0 %v16931_v11, %s24383_s11  ;;  %15539 = vrot.lane.b32.xlu1 %v15538_v15, %s21215_s14  ;;  %v16125_v15 = vld [vmem:[#allocation7 + $0x5] sm:$0x3] }
 0xcbd   : > { %20120 = vmatprep.subr.mxu0 %v21968_v7  ;;  %20122 = vmatprep.mubr.msk.f32.mxu0 %vm24387_vm3, %v21968_v7 }
 0xcbe   : > { %20730 = vmatpush3.bf16.msra.mxu1 %v22898_v10  ;;  %19953 = vmatprep.mubr.msk.f32.mxu1 %vm24387_vm3, %v21968_v7 }
 0xcbf   : > { %20121 = vmatpush3.msk.msra.mxu0 %vm1106_vm11, %v23313_v61  ;;  %v17225_v29 = vpop.permute.xlu1 %17224  ;;  %v15923_v20 = vpop.permute.xlu0 %15922  ;;  %19951 = vmatprep.subr.mxu1 %v21968_v7 }
 0xcc0   : > { %v17227_v9 = vadd.f32 %v17225_v29, %v17221_v4  ;;  %v15924_v28 = vrot.slane %v15923_v20, 1  ;;  %20123 = vmatmul.mubr.msk.f32.vlgmr.msra.gmra.mrb[124].mxu0 %vm11533_vm9, %v15825_v24  ;;  %20815 = vmatprep.subr.bf16.mxu0 %v21153_v32 }
 0xcc1   : > { %15733 = vrot.lane.b32.xlu0 %v15732_v25, %s24444_s18  ;;  %17039 = vrot.lane.b32.xlu1 %v17038_v60, %s24450_s16  ;;  %v16126_v25 = vmul.f32 0.25, %v16125_v15  ;;  %v17414_v60 = vld [vmem:[#allocation7 + $0x7] sm:$0x1] }
 0xcc2   : > { %v17232_v41 = vrot.slane %v17227_v9, %v22969_v47  ;;  %v15925_v1 = vsel %vm8748_vm12, %v15923_v20, %v15924_v28  ;;  %20817 = vmatpush3.bf16.msra.mxu0 %v22892_v62  ;;  %19952 = vmatpush3.msk.msra.mxu1 %vm1106_vm11, %v23313_v61 }
 0xcc3   : > { %v15927_v6 = vadd.f32 %v15925_v1, %v15918_v33  ;;  %19954 = vmatmul.mubr.msk.f32.vlgmr.msra.gmra.mrb[92].mxu1 %vm11533_vm9, %v14523_v5  ;;  %20818 = vmatprep.subr.bf16.mxu0 %v21153_v32  ;;  %v16031_v22 = vpop.permute.xlu1 %16030  ;;  %v16029_v30 = vpop.permute.xlu0 %16028 }
 0xcc4   : > { %20148 = vmatprep.mubr.msk.f32.mxu0 %vm24387_vm3, %v21968_v7  ;;  %20737 = vmatprep.subr.bf16.mxu1 %v21153_v32  ;;  %v16033_v46 = vsel %vm16032_vm0, %v16029_v30, %v16031_v22  ;;  %v17614_v22 = vld [vmem:[#allocation7 + $0x7] sm:$0x3] }
 0xcc5   : > { %v15932_v45 = vrot.slane %v15927_v6, %v22969_v47  ;;  %17136 = vrot.lane.b32.xlu1 %v17134_v63, %s24383_s11  ;;  %17233 = vrot.lane.b32.xlu0 %v17232_v41, %s24451_s28  ;;  %v17415_v41 = vmul.f32 0.75, %v17414_v60  ;;  %v16524_v60 = vmul.f32 0.25, %v23555_v0 }
 0xcc6   : > { %20820 = vmatpush3.bf16.msra.mxu0 %v22898_v10  ;;  %20739 = vmatpush3.bf16.msra.mxu1 %v22892_v62 }
 0xcc7   : > { %20146 = vmatprep.subr.mxu0 %v21968_v7  ;;  %20740 = vmatprep.subr.bf16.mxu1 %v21153_v32 }
 0xcc8   : > { %19979 = vmatprep.mubr.msk.f32.mxu1 %vm24387_vm3, %v21968_v7 }
 0xcc9   : > { %15933 = vrot.lane.b32.xlu1 %v15932_v45, %s24446_s21  ;;  %17330 = vrot.lane.b32.xlu0 %v17328_v53, %s24383_s11  ;;  %v17525_v53 = vld [vmem:[#allocation7 + $0x7] sm:$0x3] }
 0xcca   : > { %20147 = vmatpush3.msk.msra.mxu0 %vm1106_vm11, %v23313_v61  ;;  %20742 = vmatpush3.bf16.msra.mxu1 %v22898_v10 }
 0xccb   : > { %20149 = vmatmul.mubr.msk.f32.vlgmr.msra.gmra.mrb[126].mxu0 %vm11533_vm9, %v16033_v46  ;;  %19977 = vmatprep.subr.mxu1 %v21968_v7 }
 0xccc   : > { %20827 = vmatprep.subr.bf16.mxu0 %v21153_v32  ;;  %20174 = vmatprep.mubr.msk.f32.mxu0 %vm24387_vm3, %v21968_v7 }
 0xccd   : > { %20829 = vmatpush3.bf16.msra.mxu0 %v22892_v62 }
 0xcce   : > { %19978 = vmatpush3.msk.msra.mxu1 %vm1106_vm11, %v23313_v61  ;;  %20830 = vmatprep.subr.bf16.mxu0 %v21153_v32 }
 0xccf   : > { %20749 = vmatprep.subr.bf16.mxu1 %v21153_v32 }
 0xcd1   : > { %20832 = vmatpush3.bf16.msra.mxu0 %v22898_v10 }
 0xcd2   : > { %20172 = vmatprep.subr.mxu0 %v21968_v7 }
 0xcd4   : > { %v11985_v8 = vpop.f32.mrb[66].mxu1 }
 0xcd5   : > { %11989 = vst.msk [vmem:[%s23058_s17 + $0x2] sm:$0x1] %vm22927_vm15, %v11985_v8  ;;  %v19617_v51 = vpop.f32.mrb[67].mxu1  ;;  %20173 = vmatpush3.msk.msra.mxu0 %vm1106_vm11, %v23313_v61  ;;  %v17615_v8 = vmul.f32 0.75, %v17614_v22 }
 0xcd6   : > { %20839 = vmatprep.subr.bf16.mxu0 %v21153_v32 }
 0xcd7   : > { %v23700_v17 = vpop.f32.mrb[100].mxu0 }
 0xcd8   : > { %v19812_v52 = vpop.f32.mrb[101].mxu0 }
 0xcd9   : > { %v17526_v52 = vmul.f32 0.75, %v17525_v53  ;;  %v16720_v53 = vld [vmem:[#allocation7 + $0x6] sm:$0x1] }
 0xcde   : > { %v12185_v31 = vpop.f32.mrb[68].mxu1 }
 0xcdf   : > { %12189 = vst.msk [vmem:[%s23058_s17 + $0x3] sm:$0x1] %vm22927_vm15, %v12185_v31  ;;  %v19643_v16 = vpop.f32.mrb[69].mxu1 }
 0xce7   : > { %v23705_v27 = vpop.f32.mrb[102].mxu0 }
 0xce8   : > { %v12400_v36 = vpop.f32.mrb[70].mxu1  ;;  %v19838_v37 = vpop.f32.mrb[103].mxu0 }
 0xce9   : > { %12404 = vst.msk [vmem:[%s23058_s17 + $0x4] sm:$0x1] %vm22927_vm15, %v12400_v36  ;;  %v19669_v59 = vpop.f32.mrb[71].mxu1  ;;  %v17828_v37 = vld [vmem:[#allocation7 + $0x8] sm:$0x1] }
 0xcea   : > { %v17829_v15 = vmul.f32 0.75, %v17828_v37 }
 0xcf2   : > { %v23710_v21 = vpop.f32.mrb[104].mxu0 }
 0xcf3   : > { %v12594_v34 = vpop.f32.mrb[72].mxu1  ;;  %v19864_v57 = vpop.f32.mrb[105].mxu0 }
 0xcf4   : > { %12598 = vst.msk [vmem:[%s23058_s17 + $0x5] sm:$0x1] %vm22927_vm15, %v12594_v34  ;;  %v19695_v19 = vpop.f32.mrb[73].mxu1  ;;  %v16330_v34 = vmul.f32 0.25, %v23522_v39 }
 0xcf9   : > { %v14736_v26 = vpop.permute.xlu1 %14735  ;;  %v14734_v55 = vpop.permute.xlu0 %14733 }
 0xcfa   : > { %v14737_v12 = vsel %vm24452_vm13, %v14734_v55, %v14736_v26 }
 0xcfb   : > { %19980 = vmatmul.mubr.msk.f32.vlgmr.msra.gmra.mrb[94].mxu1 %vm11533_vm9, %v14737_v12  ;;  %v23765_v12 = vld [vmem:[%s24334_s8 + $0x20] sm:$0x3] }
 0xcfc   : > { %20751 = vmatpush3.bf16.msra.mxu1 %v22892_v62  ;;  %20005 = vmatprep.mubr.msk.f32.mxu1 %vm24387_vm3, %v21968_v7 }
 0xcfd   : > { %v16131_v11 = vpop.permute.xlu0 %16130  ;;  %v17420_v14 = vpop.permute.xlu1 %17419  ;;  %20752 = vmatprep.subr.bf16.mxu1 %v21153_v32 }
 0xcfe   : > { %v23721_v3 = vpop.f32.mrb[106].mxu0  ;;  %v16132_v5 = vrot.slane %v16131_v11, 7  ;;  %v17421_v24 = vrot.slane %v17420_v14, 1 }
 0xcff   : > { %v12788_v4 = vpop.f32.mrb[74].mxu1  ;;  %v19890_v40 = vpop.f32.mrb[107].mxu0 }
 0xd00   : > { %12792 = vst.msk [vmem:[%s23058_s17 + $0x6] sm:$0x1] %vm22927_vm15, %v12788_v4  ;;  %v19721_v29 = vpop.f32.mrb[75].mxu1  ;;  %v16133_v20 = vsel %vm8748_vm12, %v16132_v5, %v16131_v11  ;;  %20754 = vmatpush3.bf16.msra.mxu1 %v22898_v10  ;;  %v17422_v28 = vsel %vm8748_vm12, %v17420_v14, %v17421_v24  ;;  %v17830_v11 = vmul.f32 0.25, %v17828_v37  ;;  %v17732_v14 = vld [vmem:[#allocation7 + $0x8] sm:$0x1] }
 0xd01   : > { %v16135_v9 = vadd.f32 %v16133_v20, %v16126_v25  ;;  %v16237_v33 = vpop.permute.xlu0 %16236  ;;  %20003 = vmatprep.subr.mxu1 %v21968_v7  ;;  %v14931_v63 = vpop.permute.xlu1 %14930  ;;  %v17424_v45 = vadd.f32 %v17422_v28, %v17415_v41  ;;  %v17733_v40 = vmul.f32 0.75, %v17732_v14 }
 0xd02   : > { %20175 = vmatmul.mubr.msk.f32.vlgmr.msra.gmra.mrb[128].mxu0 %vm11533_vm9, %v16237_v33  ;;  %v17831_v25 = vadd.f32 %v17830_v11, %v17829_v15 }
 0xd03   : > { %v16140_v1 = vrot.slane %v16135_v9, %v22969_v47  ;;  %v16144_v6 = vrot.slane %v16135_v9, %v22984_v23  ;;  %20841 = vmatpush3.bf16.msra.mxu0 %v22892_v62  ;;  %20200 = vmatprep.mubr.msk.f32.mxu0 %vm24387_vm3, %v21968_v7 }
 0xd04   : > { %20004 = vmatpush3.msk.msra.mxu1 %vm1106_vm11, %v23313_v61  ;;  %20842 = vmatprep.subr.bf16.mxu0 %v21153_v32  ;;  %v17429_v61 = vrot.slane %v17424_v45, %v22969_v47  ;;  %v17836_v9 = vrot.slane %v17831_v25, %v22969_v47 }
 0xd05   : > { %20006 = vmatmul.mubr.msk.f32.vlgmr.msra.gmra.mrb[96].mxu1 %vm11533_vm9, %v14931_v63  ;;  %20761 = vmatprep.subr.bf16.mxu1 %v21153_v32  ;;  %v17620_v30 = vpop.permute.xlu0 %17619  ;;  %v16334_v36 = vpop.permute.xlu1 %16333 }
 0xd06   : > { %16147 = vrot.lane.b32.xlu0 %v16144_v6, %s24448_s13  ;;  %v17621_v46 = vrot.slane %v17620_v30, 7  ;;  %16145 = vrot.lane.b32.xlu1 %v16140_v1, %s24448_s13  ;;  %v16336_v39 = vadd.f32 %v16334_v36, %v16330_v34  ;;  %v16928_v34 = vld [vmem:[#allocation7 + $0x6] sm:$0x3] }
 0xd07   : > { %20763 = vmatpush3.bf16.msra.mxu1 %v22892_v62  ;;  %20844 = vmatpush3.bf16.msra.mxu0 %v22898_v10 }
 0xd08   : > { %v17622_v51 = vsel %vm8748_vm12, %v17621_v46, %v17620_v30  ;;  %20764 = vmatprep.subr.bf16.mxu1 %v21153_v32  ;;  %20198 = vmatprep.subr.mxu0 %v21968_v7  ;;  %v16341_v4 = vrot.slane %v16336_v39, %v22969_v47  ;;  %v16929_v39 = vmul.f32 0.25, %v16928_v34 }
 0xd09   : > { %v23749_v31 = vpop.f32.mrb[108].mxu0  ;;  %v17624_v16 = vadd.f32 %v17622_v51, %v17615_v8  ;;  %20031 = vmatprep.mubr.msk.f32.mxu1 %vm24387_vm3, %v21968_v7  ;;  %v16721_v51 = vmul.f32 0.25, %v16720_v53 }
 0xd0a   : > { %v19916_v59 = vpop.f32.mrb[109].mxu0  ;;  %v12988_v57 = vpop.f32.mrb[76].mxu1  ;;  %17528 = vrot.lane.b32.xlu0 %v17526_v52, %s24383_s11  ;;  %17430 = vrot.lane.b32.xlu1 %v17429_v61, %s24453_s25 }
 0xd0b   : > { %v17629_v19 = vrot.slane %v17624_v16, %v22969_v47  ;;  %v17633_v26 = vrot.slane %v17624_v16, %v22984_v23  ;;  %12992 = vst.msk [vmem:[%s23058_s17 + $0x7] sm:$0x1] %vm22927_vm15, %v12988_v57  ;;  %v19747_v55 = vpop.f32.mrb[77].mxu1  ;;  %20766 = vmatpush3.bf16.msra.mxu1 %v22898_v10  ;;  %20199 = vmatpush3.msk.msra.mxu0 %vm1106_vm11, %v23765_v12 }
 0xd0c   : > { %20029 = vmatprep.subr.mxu1 %v21968_v7  ;;  %20851 = vmatprep.subr.bf16.mxu0 %v21153_v32 }
 0xd0e   : > { %17636 = vrot.lane.b32.xlu0 %v17633_v26, %s24454_s20  ;;  %17634 = vrot.lane.b32.xlu1 %v17629_v19, %s24454_s20 }
 0xd0f   : > { %v16431_v5 = vpop.permute.xlu0 %16430  ;;  %v15131_v24 = vpop.permute.xlu1 %15130  ;;  %20030 = vmatpush3.msk.msra.mxu1 %vm1106_vm11, %v23765_v12 }
 0xd10   : > { %20201 = vmatmul.mubr.msk.f32.vlgmr.msra.gmra.mrb[130].mxu0 %vm11533_vm9, %v16431_v5  ;;  %20032 = vmatmul.mubr.msk.f32.vlgmr.msra.gmra.mrb[98].mxu1 %vm11533_vm9, %v15131_v24 }
 0xd11   : > { %20773 = vmatprep.subr.bf16.mxu1 %v21153_v32  ;;  %20853 = vmatpush3.bf16.msra.mxu0 %v22892_v62 }
 0xd12   : > { %17735 = vrot.lane.b32.xlu0 %v17733_v40, %s24383_s11  ;;  %16342 = vrot.lane.b32.xlu1 %v16341_v4, %s21188_s24  ;;  %s24455_s24 = smov 98   ;;  %v17133_v40 = vmul.f32 0.25, %v23649_v43  ;;  %v17327_v43 = vmul.f32 0.25, %v23663_v49 }
 0xd13   : > { %v16528_v29 = vpop.permute.xlu0 %16527  ;;  %20775 = vmatpush3.bf16.msra.mxu1 %v22892_v62  ;;  %20854 = vmatprep.subr.bf16.mxu0 %v21153_v32 }
 0xd14   : > { %v16530_v20 = vadd.f32 %v16528_v29, %v16524_v60  ;;  %20776 = vmatprep.subr.bf16.mxu1 %v21153_v32  ;;  %20057 = vmatprep.mubr.msk.f32.mxu1 %vm24387_vm3, %v21968_v7 }
 0xd15   : > { %v23789_v28 = vpop.f32.mrb[110].mxu0  ;;  %20856 = vmatpush3.bf16.msra.mxu0 %v22898_v10  ;;  %20226 = vmatprep.mubr.msk.f32.mxu0 %vm24387_vm3, %v21968_v7 }
 0xd16   : > { %v13202_v0 = vpop.f32.mrb[78].mxu1  ;;  %v19942_v33 = vpop.f32.mrb[111].mxu0  ;;  %v16535_v41 = vrot.slane %v16530_v20, %v22969_v47  ;;  %17837 = vrot.lane.b32.xlu1 %v17836_v9, %s24455_s24  ;;  %20224 = vmatprep.subr.mxu0 %v21968_v7 }
 0xd17   : > { %13206 = vst.msk [vmem:[%s23058_s17 + $0x8] sm:$0x1] %vm22927_vm15, %v13202_v0  ;;  %v19773_v1 = vpop.f32.mrb[79].mxu1  ;;  %20778 = vmatpush3.bf16.msra.mxu1 %v22898_v10 }
 0xd18   : > { %16536 = vrot.lane.b32.xlu0 %v16535_v41, %s21216_s10  ;;  %20055 = vmatprep.subr.mxu1 %v21968_v7 }
 0xd19   : > { %20225 = vmatpush3.msk.msra.mxu0 %vm1106_vm11, %v23765_v12 }
 0xd1a   : > { %20863 = vmatprep.subr.bf16.mxu0 %v21153_v32 }
 0xd1b   : > { %20056 = vmatpush3.msk.msra.mxu1 %vm1106_vm11, %v23765_v12 }
 0xd1c   : > { %20785 = vmatprep.subr.bf16.mxu1 %v21153_v32 }
 0xd1f   : > { %v23809_v6 = vpop.f32.mrb[112].mxu0 }
 0xd20   : > { %v19968_v63 = vpop.f32.mrb[113].mxu0 }
 0xd21   : > { %v15345_v45 = vpop.permute.xlu0 %15344  ;;  %v15343_v22 = vpop.permute.xlu1 %15342 }
 0xd22   : > { %v15346_v30 = vsel %vm15229_vm8, %v15343_v22, %v15345_v45 }
 0xd23   : > { %20058 = vmatmul.mubr.msk.f32.vlgmr.msra.gmra.mrb[100].mxu1 %vm11533_vm9, %v15346_v30 }
 0xd24   : > { %20787 = vmatpush3.bf16.msra.mxu1 %v22892_v62  ;;  %20083 = vmatprep.mubr.msk.f32.mxu1 %vm24387_vm3, %v21968_v7 }
 0xd25   : > { %v16726_v46 = vpop.permute.xlu0 %16725  ;;  %v16628_v8 = vpop.permute.xlu1 %16627  ;;  %20788 = vmatprep.subr.bf16.mxu1 %v21153_v32 }
 0xd26   : > { %v16727_v61 = vrot.slane %v16726_v46, 1  ;;  %20227 = vmatmul.mubr.msk.f32.vlgmr.msra.gmra.mrb[132].mxu0 %vm11533_vm9, %v16628_v8 }
 0xd27   : > { %20865 = vmatpush3.bf16.msra.mxu0 %v22892_v62  ;;  %20252 = vmatprep.mubr.msk.f32.mxu0 %vm24387_vm3, %v21968_v7 }
 0xd28   : > { %v16728_v52 = vsel %vm8748_vm12, %v16726_v46, %v16727_v61  ;;  %20790 = vmatpush3.bf16.msra.mxu1 %v22898_v10  ;;  %20866 = vmatprep.subr.bf16.mxu0 %v21153_v32 }
 0xd29   : > { %v16730_v16 = vadd.f32 %v16728_v52, %v16721_v51  ;;  %20081 = vmatprep.subr.mxu1 %v21968_v7 }
 0xd2a   : > { %v16834_v36 = vpop.permute.xlu0 %16833  ;;  %v16832_v37 = vpop.permute.xlu1 %16831 }
 0xd2b   : > { %v16735_v59 = vrot.slane %v16730_v16, %v22969_v47  ;;  %20868 = vmatpush3.bf16.msra.mxu0 %v22898_v10  ;;  %v16836_v26 = vsel %vm16835_vm7, %v16832_v37, %v16834_v36 }
 0xd2c   : > { %20082 = vmatpush3.msk.msra.mxu1 %vm1106_vm11, %v23765_v12  ;;  %20250 = vmatprep.subr.mxu0 %v21968_v7 }
 0xd2d   : > { %16736 = vrot.lane.b32.xlu1 %v16735_v59, %s21217_s12  ;;  %20797 = vmatprep.subr.bf16.mxu1 %v21153_v32 }
 0xd2e   : > { %v16934_v57 = vpop.permute.xlu0 %16933  ;;  %v15540_v19 = vpop.permute.xlu1 %15539 }
 0xd2f   : > { %v16935_v55 = vrot.slane %v16934_v57, 7  ;;  %20084 = vmatmul.mubr.msk.f32.vlgmr.msra.gmra.mrb[102].mxu1 %vm11533_vm9, %v15540_v19  ;;  %20251 = vmatpush3.msk.msra.mxu0 %vm1106_vm11, %v23765_v12 }
 0xd30   : > { %20799 = vmatpush3.bf16.msra.mxu1 %v22892_v62  ;;  %20253 = vmatmul.mubr.msk.f32.vlgmr.msra.gmra.mrb[134].mxu0 %vm11533_vm9, %v16836_v26 }
 0xd31   : > { %v16936_v15 = vsel %vm8748_vm12, %v16935_v55, %v16934_v57  ;;  %20875 = vmatprep.subr.bf16.mxu0 %v21153_v32  ;;  %20800 = vmatprep.subr.bf16.mxu1 %v21153_v32  ;;  %v17523_v57 = vld [vmem:[#allocation7 + $0x7] sm:$0x1] }
 0xd32   : > { %v16938_v11 = vadd.f32 %v16936_v15, %v16929_v39  ;;  %20877 = vmatpush3.bf16.msra.mxu0 %v22892_v62  ;;  %20109 = vmatprep.mubr.msk.f32.mxu1 %vm24387_vm3, %v21968_v7  ;;  %v17524_v39 = vmul.f32 0.25, %v17523_v57 }
 0xd33   : > { %v15734_v14 = vpop.permute.xlu0 %15733  ;;  %v17040_v5 = vpop.permute.xlu1 %17039  ;;  %20878 = vmatprep.subr.bf16.mxu0 %v21153_v32  ;;  %20278 = vmatprep.mubr.msk.f32.mxu0 %vm24387_vm3, %v21968_v7 }
 0xd34   : > { %v16943_v24 = vrot.slane %v16938_v11, %v22969_v47  ;;  %v16947_v4 = vrot.slane %v16938_v11, %v22984_v23  ;;  %20802 = vmatpush3.bf16.msra.mxu1 %v22898_v10 }
 0xd35   : > { %20107 = vmatprep.subr.mxu1 %v21968_v7 }
 0xd36   : > { %20880 = vmatpush3.bf16.msra.mxu0 %v22898_v10  ;;  %16948 = vrot.lane.b32.xlu0 %v16943_v24, %s21218_s27 }
 0xd37   : > { %16950 = vrot.lane.b32.xlu1 %v16947_v4, %s21218_s27  ;;  %v17137_v25 = vpop.permute.xlu1 %17136  ;;  %v17234_v60 = vpop.permute.xlu0 %17233  ;;  %20276 = vmatprep.subr.mxu0 %v21968_v7 }
 0xd38   : > { %v17139_v29 = vadd.f32 %v17137_v25, %v17133_v40  ;;  %20108 = vmatpush3.msk.msra.mxu1 %vm1106_vm11, %v23765_v12 }
 0xd39   : > { %20110 = vmatmul.mubr.msk.f32.vlgmr.msra.gmra.mrb[104].mxu1 %vm11533_vm9, %v15734_v14  ;;  %20809 = vmatprep.subr.bf16.mxu1 %v21153_v32 }
 0xd3a   : > { %v17144_v20 = vrot.slane %v17139_v29, %v22969_v47  ;;  %20811 = vmatpush3.bf16.msra.mxu1 %v22892_v62  ;;  %20277 = vmatpush3.msk.msra.mxu0 %vm1106_vm11, %v23765_v12  ;;  %v17730_v29 = vld [vmem:[#allocation7 + $0x7] sm:$0x3] }
 0xd3b   : > { %20279 = vmatmul.mubr.msk.f32.vlgmr.msra.gmra.mrb[136].mxu0 %vm11533_vm9, %v17040_v5  ;;  %20887 = vmatprep.subr.bf16.mxu0 %v21153_v32  ;;  %v17331_v9 = vpop.permute.xlu0 %17330  ;;  %v15934_v49 = vpop.permute.xlu1 %15933 }
 0xd3c   : > { %v17333_v0 = vadd.f32 %v17331_v9, %v17327_v43  ;;  %20889 = vmatpush3.bf16.msra.mxu0 %v22892_v62  ;;  %17145 = vrot.lane.b32.xlu0 %v17144_v20, %s24450_s16 }
 0xd3d   : > { %20812 = vmatprep.subr.bf16.mxu1 %v21153_v32  ;;  %20890 = vmatprep.subr.bf16.mxu0 %v21153_v32 }
 0xd3e   : > { %v17338_v33 = vrot.slane %v17333_v0, %v22969_v47  ;;  %20814 = vmatpush3.bf16.msra.mxu1 %v22898_v10  ;;  %20135 = vmatprep.mubr.msk.f32.mxu1 %vm24387_vm3, %v21968_v7 }
 0xd3f   : > { %20133 = vmatprep.subr.mxu1 %v21968_v7  ;;  %20304 = vmatprep.mubr.msk.f32.mxu0 %vm24387_vm3, %v21968_v7 }
 0xd40   : > { %20892 = vmatpush3.bf16.msra.mxu0 %v22898_v10  ;;  %17339 = vrot.lane.b32.xlu1 %v17338_v33, %s24451_s28  ;;  %v17731_v33 = vmul.f32 0.25, %v17730_v29  ;;  %v14297_v29 = vrot.slane %v23749_v31, %v22919_v18 }
 0xd41   : > { %20302 = vmatprep.subr.mxu0 %v21968_v7 }
 0xd42   : > { %20134 = vmatpush3.msk.msra.mxu1 %vm1106_vm11, %v23765_v12 }
 0xd43   : > { %20136 = vmatmul.mubr.msk.f32.vlgmr.msra.gmra.mrb[106].mxu1 %vm11533_vm9, %v15934_v49  ;;  %20821 = vmatprep.subr.bf16.mxu1 %v21153_v32 }
 0xd44   : > { %20303 = vmatpush3.msk.msra.mxu0 %vm1106_vm11, %v23765_v12  ;;  %20823 = vmatpush3.bf16.msra.mxu1 %v22892_v62 }
 0xd45   : > { %20305 = vmatmul.mubr.msk.f32.vlgmr.msra.gmra.mrb[138].mxu0 %vm11533_vm9, %v17234_v60  ;;  %20899 = vmatprep.subr.bf16.mxu0 %v21153_v32 }
 0xd46   : > { %20901 = vmatpush3.bf16.msra.mxu0 %v22892_v62  ;;  %20824 = vmatprep.subr.bf16.mxu1 %v21153_v32 }
 0xd47   : > { %20902 = vmatprep.subr.bf16.mxu0 %v21153_v32  ;;  %20161 = vmatprep.mubr.msk.f32.mxu1 %vm24387_vm3, %v21968_v7 }
 0xd48   : > { %20826 = vmatpush3.bf16.msra.mxu1 %v22898_v10  ;;  %20330 = vmatprep.mubr.msk.f32.mxu0 %vm24387_vm3, %v21968_v7 }
 0xd49   : > { %20159 = vmatprep.subr.mxu1 %v21968_v7 }
 0xd4a   : > { %20904 = vmatpush3.bf16.msra.mxu0 %v22898_v10 }
 0xd4b   : > { %20328 = vmatprep.subr.mxu0 %v21968_v7 }
 0xd4c   : > { %20160 = vmatpush3.msk.msra.mxu1 %vm1106_vm11, %v23765_v12 }
 0xd4d   : > { %20833 = vmatprep.subr.bf16.mxu1 %v21153_v32 }
 0xd4e   : > { %20329 = vmatpush3.msk.msra.mxu0 %vm1106_vm11, %v23765_v12 }
 0xd4f   : > { %v13396_v41 = vpop.f32.mrb[80].mxu1  ;;  %20911 = vmatprep.subr.bf16.mxu0 %v21153_v32 }
 0xd50   : > { %13400 = vst.msk [vmem:[%s23058_s17 + $0x9] sm:$0x1] %vm22927_vm15, %v13396_v41  ;;  %v19799_v1 = vpop.f32.mrb[81].mxu1 }
 0xd52   : > { %v23910_v63 = vpop.f32.mrb[114].mxu0 }
 0xd53   : > { %v19994_v45 = vpop.f32.mrb[115].mxu0 }
 0xd59   : > { %v13590_v22 = vpop.f32.mrb[82].mxu1 }
 0xd5a   : > { %13594 = vst.msk [vmem:[%s23058_s17 + $0xa] sm:$0x1] %vm22927_vm15, %v13590_v22  ;;  %v19825_v30 = vpop.f32.mrb[83].mxu1  ;;  %v11699_v22 = vrot.slane %v23236_v48, %v22919_v18 }
 0xd63   : > { %v23915_v53 = vpop.f32.mrb[116].mxu0 }
 0xd64   : > { %v20020_v46 = vpop.f32.mrb[117].mxu0 }
 0xd68   : > { %v13790_v8 = vpop.f32.mrb[84].mxu1 }
 0xd69   : > { %13794 = vst.msk [vmem:[%s23058_s17 + $0xb] sm:$0x1] %vm22927_vm15, %v13790_v8  ;;  %v19851_v61 = vpop.f32.mrb[85].mxu1  ;;  %v11890_v8 = vrot.slane %v23472_v56, %v22919_v18 }
 0xd6b   : > { %v11897_v56 = vrot.slane %v11890_v8, %v22919_v18 }
 0xd71   : > { %v23920_v51 = vpop.f32.mrb[118].mxu0 }
 0xd72   : > { %v20046_v52 = vpop.f32.mrb[119].mxu0 }
 0xd75   : > { %v14004_v16 = vpop.f32.mrb[86].mxu1 }
 0xd76   : > { %14008 = vst.msk [vmem:[%s23058_s17 + $0xc] sm:$0x1] %vm22927_vm15, %v14004_v16  ;;  %v19877_v36 = vpop.f32.mrb[87].mxu1  ;;  %v12295_v16 = vrot.slane %v23476_v58, %v22919_v18  ;;  %v12499_v58 = vrot.slane %v23478_v13, %v22919_v18 }
 0xd78   : > { %v16148_v37 = vpop.permute.xlu0 %16147  ;;  %v16146_v59 = vpop.permute.xlu1 %16145  ;;  %v12506_v13 = vrot.slane %v12499_v58, %v22919_v18 }
 0xd79   : > { %v16149_v34 = vsel %vm16032_vm0, %v16146_v59, %v16148_v37  ;;  %v12302_v59 = vrot.slane %v12295_v16, %v22919_v18 }
 0xd7a   : > { %20162 = vmatmul.mubr.msk.f32.vlgmr.msra.gmra.mrb[108].mxu1 %vm11533_vm9, %v16149_v34  ;;  %v12693_v34 = vrot.slane %v23489_v42, %v22919_v18 }
 0xd7b   : > { %20835 = vmatpush3.bf16.msra.mxu1 %v22892_v62  ;;  %20187 = vmatprep.mubr.msk.f32.mxu1 %vm24387_vm3, %v21968_v7 }
 0xd7c   : > { %v17529_v19 = vpop.permute.xlu0 %17528  ;;  %v17431_v26 = vpop.permute.xlu1 %17430  ;;  %20836 = vmatprep.subr.bf16.mxu1 %v21153_v32  ;;  %v12700_v42 = vrot.slane %v12693_v34, %v22919_v18 }
 0xd7d   : > { %v17530_v55 = vrot.slane %v17529_v19, 1  ;;  %20331 = vmatmul.mubr.msk.f32.vlgmr.msra.gmra.mrb[140].mxu0 %vm11533_vm9, %v17431_v26  ;;  %v12890_v26 = vrot.slane %v23514_v35, %v22919_v18  ;;  %v13301_v35 = vrot.slane %v23564_v44, %v22919_v18  ;;  %v13692_v44 = vrot.slane %v23705_v27, %v22919_v18 }
 0xd7e   : > { %20913 = vmatpush3.bf16.msra.mxu0 %v22892_v62  ;;  %20356 = vmatprep.mubr.msk.f32.mxu0 %vm24387_vm3, %v21968_v7  ;;  %v14103_v27 = vrot.slane %v23721_v3, %v22919_v18  ;;  %v14494_v3 = vrot.slane %v23789_v28, %v22919_v18 }
 0xd7f   : > { %v23935_v15 = vpop.f32.mrb[120].mxu0  ;;  %v17531_v11 = vsel %vm8748_vm12, %v17529_v19, %v17530_v55  ;;  %v14198_v14 = vpop.f32.mrb[88].mxu1  ;;  %20838 = vmatpush3.bf16.msra.mxu1 %v22898_v10  ;;  %20914 = vmatprep.subr.bf16.mxu0 %v21153_v32 }
 0xd80   : > { %v20072_v5 = vpop.f32.mrb[121].mxu0  ;;  %v17533_v24 = vadd.f32 %v17531_v11, %v17524_v39  ;;  %14202 = vst.msk [vmem:[%s23058_s17 + $0xd] sm:$0x1] %vm22927_vm15, %v14198_v14  ;;  %v19903_v4 = vpop.f32.mrb[89].mxu1  ;;  %20185 = vmatprep.subr.mxu1 %v21968_v7  ;;  %v13097_v39 = vrot.slane %v23538_v54, %v22919_v18  ;;  %v12897_v11 = vrot.slane %v12890_v26, %v22919_v18 }
 0xd81   : > { %v17637_v40 = vpop.permute.xlu0 %17636  ;;  %v17635_v25 = vpop.permute.xlu1 %17634  ;;  %v13495_v5 = vrot.slane %v23700_v17, %v22919_v18  ;;  %v13899_v17 = vrot.slane %v23710_v21, %v22919_v18  ;;  %v14501_v28 = vrot.slane %v14494_v3, %v22919_v18 }
 0xd82   : > { %v17538_v60 = vrot.slane %v17533_v24, %v22969_v47  ;;  %20916 = vmatpush3.bf16.msra.mxu0 %v22898_v10  ;;  %v17638_v9 = vsel %vm24456_vm10, %v17635_v25, %v17637_v40  ;;  %v13104_v14 = vrot.slane %v13097_v39, %v22919_v18  ;;  %v13308_v24 = vrot.slane %v13301_v35, %v22919_v18 }
 0xd83   : > { %20186 = vmatpush3.msk.msra.mxu1 %vm1106_vm11, %v23765_v12  ;;  %20354 = vmatprep.subr.mxu0 %v21968_v7  ;;  %v13502_v25 = vrot.slane %v13495_v5, %v22919_v18  ;;  %v13906_v21 = vrot.slane %v13899_v17, %v22919_v18 }
 0xd84   : > { %17539 = vrot.lane.b32.xlu0 %v17538_v60, %s24453_s25  ;;  %20845 = vmatprep.subr.bf16.mxu1 %v21153_v32  ;;  %v13699_v60 = vrot.slane %v13692_v44, %v22919_v18 }
 0xd85   : > { %v17736_v20 = vpop.permute.xlu0 %17735  ;;  %v16343_v43 = vpop.permute.xlu1 %16342 }
 0xd86   : > { %v17737_v0 = vrot.slane %v17736_v20, 7  ;;  %20188 = vmatmul.mubr.msk.f32.vlgmr.msra.gmra.mrb[110].mxu1 %vm11533_vm9, %v16343_v43  ;;  %20355 = vmatpush3.msk.msra.mxu0 %vm1106_vm11, %v23765_v12  ;;  %v14304_v43 = vrot.slane %v14297_v29, %v22919_v18 }
 0xd87   : > { %20847 = vmatpush3.bf16.msra.mxu1 %v22892_v62  ;;  %20357 = vmatmul.mubr.msk.f32.vlgmr.msra.gmra.mrb[142].mxu0 %vm11533_vm9, %v17638_v9  ;;  %v14701_v9 = vrot.slane %v23809_v6, %v22919_v18 }
 0xd88   : > { %v17738_v49 = vsel %vm8748_vm12, %v17737_v0, %v17736_v20  ;;  %20923 = vmatprep.subr.bf16.mxu0 %v21153_v32  ;;  %20848 = vmatprep.subr.bf16.mxu1 %v21153_v32  ;;  %v14110_v20 = vrot.slane %v14103_v27, %v22919_v18  ;;  %vm11710_vm12 = vcmp.ge.s32.totalorder %v4034_v50, 64 }
 0xd89   : > { %v23960_v41 = vpop.f32.mrb[122].mxu0  ;;  %v17740_v1 = vadd.f32 %v17738_v49, %v17731_v33  ;;  %20925 = vmatpush3.bf16.msra.mxu0 %v22892_v62  ;;  %20213 = vmatprep.mubr.msk.f32.mxu1 %vm24387_vm3, %v21968_v7  ;;  %v17838_v36 = vpop.permute.xlu1 %17837  ;;  %v14905_v49 = vrot.slane %v23910_v63, %v22919_v18  ;;  %v14708_v6 = vrot.slane %v14701_v9, %v22919_v18 }
 0xd8a   : > { %v20098_v45 = vpop.f32.mrb[123].mxu0  ;;  %20926 = vmatprep.subr.bf16.mxu0 %v21153_v32  ;;  %20382 = vmatprep.mubr.msk.f32.mxu0 %vm24387_vm3, %v21968_v7  ;;  %v16537_v48 = vpop.permute.xlu0 %16536 }
 0xd8b   : > { %v17745_v30 = vrot.slane %v17740_v1, %v22969_v47  ;;  %v17749_v46 = vrot.slane %v17740_v1, %v22984_v23  ;;  %20850 = vmatpush3.bf16.msra.mxu1 %v22898_v10  ;;  %v11706_v47 = vrot.slane %v11699_v22, %v22919_v18  ;;  %v12087_v23 = vrot.slane %v23474_v2, %v22919_v18 }
 0xd8c   : > { %v14392_v61 = vpop.f32.mrb[90].mxu1  ;;  %20211 = vmatprep.subr.mxu1 %v21968_v7  ;;  %v15102_v1 = vrot.slane %v23915_v53, %v22919_v18  ;;  %v14912_v63 = vrot.slane %v14905_v49, %v22919_v18  ;;  %v15310_v22 = vrot.slane %v23920_v51, %v22919_v18  ;;  %v15514_v53 = vrot.slane %v23935_v15, %v22919_v18 }
 0xd8d   : > { %14396 = vst.msk [vmem:[%s23058_s17 + $0xe] sm:$0x1] %vm22927_vm15, %v14392_v61  ;;  %v19929_v52 = vpop.f32.mrb[91].mxu1  ;;  %20928 = vmatpush3.bf16.msra.mxu0 %v22898_v10  ;;  %17750 = vrot.lane.b32.xlu1 %v17745_v30, %s24454_s20  ;;  %v12094_v2 = vrot.slane %v12087_v23, %v22919_v18 }
 0xd8e   : > { %17752 = vrot.lane.b32.xlu0 %v17749_v46, %s24454_s20  ;;  %20380 = vmatprep.subr.mxu0 %v21968_v7  ;;  %v15109_v45 = vrot.slane %v15102_v1, %v22919_v18  ;;  %v15317_v30 = vrot.slane %v15310_v22, %v22919_v18  ;;  %v15708_v46 = vrot.slane %v23960_v41, %v22919_v18 }
 0xd8f   : > { %20212 = vmatpush3.msk.msra.mxu1 %vm1106_vm11, %v23765_v12  ;;  %v15521_v51 = vrot.slane %v15514_v53, %v22919_v18 }
 0xd90   : > { %20214 = vmatmul.mubr.msk.f32.vlgmr.msra.gmra.mrb[112].mxu1 %vm11533_vm9, %v16537_v48  ;;  %20857 = vmatprep.subr.bf16.mxu1 %v21153_v32  ;;  %v15715_v41 = vrot.slane %v15708_v46, %v22919_v18 }
 0xd91   : > { %20381 = vmatpush3.msk.msra.mxu0 %vm1106_vm11, %v23765_v12  ;;  %11707 = vrot.lane.b32.xlu1 %v11706_v47, %s21201_s19 }
 0xd92   : > { %11898 = vrot.lane.b32.xlu0 %v11897_v56, %s21201_s19  ;;  %20383 = vmatmul.mubr.msk.f32.vlgmr.msra.gmra.mrb[144].mxu0 %vm11533_vm9, %v17838_v36 }
 0xd93   : > { %v24001_v37 = vpop.f32.mrb[124].mxu0  ;;  %20859 = vmatpush3.bf16.msra.mxu1 %v22892_v62  ;;  %20239 = vmatprep.mubr.msk.f32.mxu1 %vm24387_vm3, %v21968_v7 }
 0xd94   : > { %v20124_v57 = vpop.f32.mrb[125].mxu0  ;;  %20860 = vmatprep.subr.bf16.mxu1 %v21153_v32  ;;  %v15905_v15 = vrot.slane %v24001_v37, %v22919_v18 }
 0xd95   : > { %12095 = vrot.lane.b32.xlu1 %v12094_v2, %s21201_s19 }
 0xd96   : > { %v14592_v19 = vpop.f32.mrb[92].mxu1  ;;  %12303 = vrot.lane.b32.xlu0 %v12302_v59, %s21201_s19  ;;  %v15912_v52 = vrot.slane %v15905_v15, %v22919_v18 }
 0xd97   : > { %14596 = vst.msk [vmem:[%s23058_s17 + $0xf] sm:$0x1] %vm22927_vm15, %v14592_v19  ;;  %v19955_v55 = vpop.f32.mrb[93].mxu1  ;;  %20862 = vmatpush3.bf16.msra.mxu1 %v22898_v10 }
 0xd98   : > { %20237 = vmatprep.subr.mxu1 %v21968_v7 }
 0xd99   : > { %12507 = vrot.lane.b32.xlu1 %v12506_v13, %s21201_s19 }
 0xd9a   : > { %12701 = vrot.lane.b32.xlu0 %v12700_v42, %s21201_s19 }
 0xd9b   : > { %20238 = vmatpush3.msk.msra.mxu1 %vm1106_vm11, %v23765_v12 }
 0xd9c   : > { %20869 = vmatprep.subr.bf16.mxu1 %v21153_v32 }
 0xd9d   : > { %12898 = vrot.lane.b32.xlu1 %v12897_v11, %s21201_s19 }
 0xd9e   : > { %v24035_v54 = vpop.f32.mrb[126].mxu0  ;;  %13105 = vrot.lane.b32.xlu0 %v13104_v14, %s21201_s19 }
 0xd9f   : > { %v20150_v4 = vpop.f32.mrb[127].mxu0  ;;  %v16737_v40 = vpop.permute.xlu1 %16736  ;;  %v16113_v61 = vrot.slane %v24035_v54, %v22919_v18 }
 0xda0   : > { %20240 = vmatmul.mubr.msk.f32.vlgmr.msra.gmra.mrb[114].mxu1 %vm11533_vm9, %v16737_v40 }
 0xda1   : > { %20871 = vmatpush3.bf16.msra.mxu1 %v22892_v62  ;;  %13309 = vrot.lane.b32.xlu1 %v13308_v24, %s21201_s19  ;;  %v16120_v47 = vrot.slane %v16113_v61, %v22919_v18 }
 0xda2   : > { %20872 = vmatprep.subr.bf16.mxu1 %v21153_v32  ;;  %13503 = vrot.lane.b32.xlu0 %v13502_v25, %s21201_s19 }
 0xda3   : > { %20265 = vmatprep.mubr.msk.f32.mxu1 %vm24387_vm3, %v21968_v7 }
 0xda5   : > { %20874 = vmatpush3.bf16.msra.mxu1 %v22898_v10  ;;  %13700 = vrot.lane.b32.xlu1 %v13699_v60, %s21201_s19 }
 0xda6   : > { %20263 = vmatprep.subr.mxu1 %v21968_v7  ;;  %13907 = vrot.lane.b32.xlu0 %v13906_v21, %s21201_s19 }
 0xda8   : > { %v16949_v0 = vpop.permute.xlu0 %16948 }
 0xda9   : > { %v16951_v31 = vpop.permute.xlu1 %16950  ;;  %20264 = vmatpush3.msk.msra.mxu1 %vm1106_vm11, %v23765_v12  ;;  %14111 = vrot.lane.b32.xlu1 %v14110_v20, %s21201_s19 }
 0xdaa   : > { %v16952_v33 = vsel %vm16835_vm7, %v16949_v0, %v16951_v31  ;;  %20881 = vmatprep.subr.bf16.mxu1 %v21153_v32  ;;  %14305 = vrot.lane.b32.xlu0 %v14304_v43, %s21201_s19 }
 0xdab   : > { %20266 = vmatmul.mubr.msk.f32.vlgmr.msra.gmra.mrb[116].mxu1 %vm11533_vm9, %v16952_v33 }
 0xdac   : > { %20883 = vmatpush3.bf16.msra.mxu1 %v22892_v62  ;;  %20291 = vmatprep.mubr.msk.f32.mxu1 %vm24387_vm3, %v21968_v7 }
 0xdad   : > { %20884 = vmatprep.subr.bf16.mxu1 %v21153_v32  ;;  %14502 = vrot.lane.b32.xlu1 %v14501_v28, %s21201_s19 }
 0xdae   : > { %14709 = vrot.lane.b32.xlu0 %v14708_v6, %s21201_s19  ;;  %v17146_v8 = vpop.permute.xlu0 %17145 }
 0xdb0   : > { %20886 = vmatpush3.bf16.msra.mxu1 %v22898_v10 }
 0xdb1   : > { %20289 = vmatprep.subr.mxu1 %v21968_v7  ;;  %14913 = vrot.lane.b32.xlu1 %v14912_v63, %s21201_s19 }
 0xdb2   : > { %15110 = vrot.lane.b32.xlu0 %v15109_v45, %s21201_s19  ;;  %v17340_v23 = vpop.permute.xlu1 %17339 }
 0xdb4   : > { %20290 = vmatpush3.msk.msra.mxu1 %vm1106_vm11, %v23765_v12 }
 0xdb5   : > { %20292 = vmatmul.mubr.msk.f32.vlgmr.msra.gmra.mrb[118].mxu1 %vm11533_vm9, %v17146_v8  ;;  %20893 = vmatprep.subr.bf16.mxu1 %v21153_v32 }
 0xdb6   : > { %20895 = vmatpush3.bf16.msra.mxu1 %v22892_v62  ;;  %15318 = vrot.lane.b32.xlu1 %v15317_v30, %s21201_s19 }
 0xdb7   : > { %20896 = vmatprep.subr.bf16.mxu1 %v21153_v32  ;;  %15522 = vrot.lane.b32.xlu0 %v15521_v51, %s21201_s19 }
 0xdb8   : > { %20317 = vmatprep.mubr.msk.f32.mxu1 %vm24387_vm3, %v21968_v7 }
 0xdba   : > { %20898 = vmatpush3.bf16.msra.mxu1 %v22898_v10  ;;  %15716 = vrot.lane.b32.xlu1 %v15715_v41, %s21201_s19 }
 0xdbb   : > { %20315 = vmatprep.subr.mxu1 %v21968_v7  ;;  %15913 = vrot.lane.b32.xlu0 %v15912_v52, %s21201_s19 }
 0xdbe   : > { %20316 = vmatpush3.msk.msra.mxu1 %vm1106_vm11, %v23765_v12  ;;  %16121 = vrot.lane.b32.xlu1 %v16120_v47, %s21201_s19 }
 0xdbf   : > { %20318 = vmatmul.mubr.msk.f32.vlgmr.msra.gmra.mrb[120].mxu1 %vm11533_vm9, %v17340_v23  ;;  %20905 = vmatprep.subr.bf16.mxu1 %v21153_v32 }
 0xdc0   : > { %20907 = vmatpush3.bf16.msra.mxu1 %v22892_v62  ;;  %20343 = vmatprep.mubr.msk.f32.mxu1 %vm24387_vm3, %v21968_v7 }
 0xdc1   : > { %20908 = vmatprep.subr.bf16.mxu1 %v21153_v32 }
 0xdc4   : > { %20910 = vmatpush3.bf16.msra.mxu1 %v22898_v10 }
 0xdc5   : > { %20341 = vmatprep.subr.mxu1 %v21968_v7 }
 0xdc8   : > { %20342 = vmatpush3.msk.msra.mxu1 %vm1106_vm11, %v23765_v12 }
 0xdc9   : > { %20917 = vmatprep.subr.bf16.mxu1 %v21153_v32 }
 0xdce   : > { %v14806_v48 = vpop.f32.mrb[94].mxu1 }
 0xdcf   : > { %14810 = vst.msk [vmem:[%s23058_s17 + $0x10] sm:$0x1] %vm22927_vm15, %v14806_v48  ;;  %v19981_v56 = vpop.f32.mrb[95].mxu1 }
 0xdd5   : > { %v16306_v16 = vpop.f32.mrb[128].mxu0 }
 0xdd6   : > { %v16317_v36 = vrot.slane %v16306_v16, %v22919_v18  ;;  %v20176_v2 = vpop.f32.mrb[129].mxu0 }
 0xdd8   : > { %v16324_v58 = vrot.slane %v16317_v36, %v22919_v18  ;;  %v15000_v37 = vpop.f32.mrb[96].mxu1 }
 0xdd9   : > { %15004 = vst.msk [vmem:[%s23058_s17 + $0x11] sm:$0x1] %vm22927_vm15, %v15000_v37  ;;  %v20007_v59 = vpop.f32.mrb[97].mxu1 }
 0xdda   : > { %16325 = vrot.lane.b32.xlu0 %v16324_v58, %s21201_s19 }
 0xde3   : > { %v16500_v34 = vpop.f32.mrb[130].mxu0  ;;  %v15200_v57 = vpop.f32.mrb[98].mxu1 }
 0xde4   : > { %v16511_v19 = vrot.slane %v16500_v34, %v22919_v18  ;;  %15204 = vst.msk [vmem:[%s23058_s17 + $0x12] sm:$0x1] %vm22927_vm15, %v15200_v57  ;;  %v20202_v13 = vpop.f32.mrb[131].mxu0  ;;  %v20033_v26 = vpop.f32.mrb[99].mxu1 }
 0xde6   : > { %v16518_v55 = vrot.slane %v16511_v19, %v22919_v18 }
 0xde8   : > { %16519 = vrot.lane.b32.xlu1 %v16518_v55, %s21201_s19 }
 0xdf6   : > { %v15415_v42 = vpop.f32.mrb[100].mxu1  ;;  %v17540_v39 = vpop.permute.xlu0 %17539 }
 0xdf7   : > { %15419 = vst.msk [vmem:[%s23058_s17 + $0x13] sm:$0x1] %vm22927_vm15, %v15415_v42  ;;  %v20059_v11 = vpop.f32.mrb[101].mxu1  ;;  %20344 = vmatmul.mubr.msk.f32.vlgmr.msra.gmra.mrb[122].mxu1 %vm11533_vm9, %v17540_v39 }
 0xdf8   : > { %20919 = vmatpush3.bf16.msra.mxu1 %v22892_v62  ;;  %20369 = vmatprep.mubr.msk.f32.mxu1 %vm24387_vm3, %v21968_v7  ;;  %vm11711_vm3 = vcmp.lt.s32.totalorder %v4034_v50, 128 }
 0xdf9   : > { %v16697_v35 = vpop.f32.mrb[132].mxu0  ;;  %20920 = vmatprep.subr.bf16.mxu1 %v21153_v32  ;;  %vm24169_vm14 = vmand %vm11710_vm12, %vm11711_vm3 }
 0xdfa   : > { %v16708_v14 = vrot.slane %v16697_v35, %v22919_v18  ;;  %v20228_v5 = vpop.f32.mrb[133].mxu0 }
 0xdfc   : > { %v16715_v54 = vrot.slane %v16708_v14, %v22919_v18  ;;  %20922 = vmatpush3.bf16.msra.mxu1 %v22898_v10 }
 0xdfd   : > { %20367 = vmatprep.subr.mxu1 %v21968_v7 }
 0xdfe   : > { %16716 = vrot.lane.b32.xlu0 %v16715_v54, %s21201_s19 }
 0xdff   : > { %v17751_v62 = vpop.permute.xlu1 %17750 }
 0xe00   : > { %v17753_v32 = vpop.permute.xlu0 %17752  ;;  %20368 = vmatpush3.msk.msra.mxu1 %vm1106_vm11, %v23765_v12 }
 0xe01   : > { %v17754_v24 = vsel %vm24457_vm6, %v17751_v62, %v17753_v32 }
 0xe02   : > { %v15609_v44 = vpop.f32.mrb[102].mxu1  ;;  %20370 = vmatmul.mubr.msk.f32.vlgmr.msra.gmra.mrb[124].mxu1 %vm11533_vm9, %v17754_v24 }
 0xe03   : > { %15613 = vst.msk [vmem:[%s23058_s17 + $0x14] sm:$0x1] %vm22927_vm15, %v15609_v44  ;;  %v20085_v50 = vpop.f32.mrb[103].mxu1  ;;  %v16905_v10 = vpop.f32.mrb[134].mxu0 }
 0xe04   : > { %v16916_v4 = vrot.slane %v16905_v10, %v22919_v18  ;;  %v20254_v12 = vpop.f32.mrb[135].mxu0  ;;  %v11899_v40 = vpop.permute.xlu0 %11898 }
 0xe05   : > { %11901 = vst.msk [vmem:[%s23058_s17 + $0x1] sm:$0x1] %vm24169_vm14, %v11899_v40  ;;  %v11708_v25 = vpop.permute.xlu1 %11707 }
 0xe06   : > { %v16923_v17 = vrot.slane %v16916_v4, %v22919_v18  ;;  %11713 = vst.msk [vmem:[%s23058_s17] sm:$0x1] %vm24169_vm14, %v11708_v25 }
 0xe08   : > { %16924 = vrot.lane.b32.xlu1 %v16923_v17, %s21201_s19  ;;  %v12304_v60 = vpop.permute.xlu0 %12303 }
 0xe09   : > { %12306 = vst.msk [vmem:[%s23058_s17 + $0x3] sm:$0x1] %vm24169_vm14, %v12304_v60  ;;  %v12096_v27 = vpop.permute.xlu1 %12095 }
 0xe0a   : > { %12098 = vst.msk [vmem:[%s23058_s17 + $0x2] sm:$0x1] %vm24169_vm14, %v12096_v27 }
 0xe0c   : > { %v15803_v21 = vpop.f32.mrb[104].mxu1  ;;  %v12702_v29 = vpop.permute.xlu0 %12701 }
 0xe0d   : > { %15807 = vst.msk [vmem:[%s23058_s17 + $0x15] sm:$0x1] %vm22927_vm15, %v15803_v21  ;;  %v20111_v20 = vpop.f32.mrb[105].mxu1  ;;  %v12508_v3 = vpop.permute.xlu1 %12507 }
 0xe0e   : > { %12704 = vst.msk [vmem:[%s23058_s17 + $0x5] sm:$0x1] %vm24169_vm14, %v12702_v29  ;;  %v17109_v43 = vpop.f32.mrb[136].mxu0  ;;  %12510 = vst.msk [vmem:[%s23058_s17 + $0x4] sm:$0x1] %vm24169_vm14, %v12508_v3 }
 0xe0f   : > { %v17120_v9 = vrot.slane %v17109_v43, %v22919_v18  ;;  %v20280_v0 = vpop.f32.mrb[137].mxu0 }
 0xe10   : > { %v13106_v31 = vpop.permute.xlu0 %13105 }
 0xe11   : > { %v17127_v33 = vrot.slane %v17120_v9, %v22919_v18  ;;  %13108 = vst.msk [vmem:[%s23058_s17 + $0x7] sm:$0x1] %vm24169_vm14, %v13106_v31  ;;  %v12899_v28 = vpop.permute.xlu1 %12898 }
 0xe12   : > { %12901 = vst.msk [vmem:[%s23058_s17 + $0x6] sm:$0x1] %vm24169_vm14, %v12899_v28 }
 0xe13   : > { %17128 = vrot.lane.b32.xlu0 %v17127_v33, %s21201_s19 }
 0xe14   : > { %v13504_v49 = vpop.permute.xlu0 %13503 }
 0xe15   : > { %13506 = vst.msk [vmem:[%s23058_s17 + $0x9] sm:$0x1] %vm24169_vm14, %v13504_v49  ;;  %v13310_v6 = vpop.permute.xlu1 %13309 }
 0xe16   : > { %v16003_v1 = vpop.f32.mrb[106].mxu1  ;;  %13312 = vst.msk [vmem:[%s23058_s17 + $0x8] sm:$0x1] %vm24169_vm14, %v13310_v6 }
 0xe17   : > { %16007 = vst.msk [vmem:[%s23058_s17 + $0x16] sm:$0x1] %vm22927_vm15, %v16003_v1  ;;  %v20137_v63 = vpop.f32.mrb[107].mxu1 }
 0xe18   : > { %v17303_v45 = vpop.f32.mrb[138].mxu0  ;;  %v13908_v22 = vpop.permute.xlu0 %13907 }
 0xe19   : > { %v17314_v53 = vrot.slane %v17303_v45, %v22919_v18  ;;  %v20306_v30 = vpop.f32.mrb[139].mxu0  ;;  %13910 = vst.msk [vmem:[%s23058_s17 + $0xb] sm:$0x1] %vm24169_vm14, %v13908_v22  ;;  %v13701_v46 = vpop.permute.xlu1 %13700 }
 0xe1a   : > { %13703 = vst.msk [vmem:[%s23058_s17 + $0xa] sm:$0x1] %vm24169_vm14, %v13701_v46 }
 0xe1b   : > { %v17321_v8 = vrot.slane %v17314_v53, %v22919_v18 }
 0xe1c   : > { %v14306_v51 = vpop.permute.xlu0 %14305 }
 0xe1d   : > { %17322 = vrot.lane.b32.xlu1 %v17321_v8, %s21201_s19  ;;  %14308 = vst.msk [vmem:[%s23058_s17 + $0xd] sm:$0x1] %vm24169_vm14, %v14306_v51  ;;  %v14112_v15 = vpop.permute.xlu1 %14111 }
 0xe1e   : > { %14114 = vst.msk [vmem:[%s23058_s17 + $0xc] sm:$0x1] %vm24169_vm14, %v14112_v15 }
 0xe20   : > { %v14710_v41 = vpop.permute.xlu0 %14709 }
 0xe21   : > { %14712 = vst.msk [vmem:[%s23058_s17 + $0xf] sm:$0x1] %vm24169_vm14, %v14710_v41  ;;  %v14503_v61 = vpop.permute.xlu1 %14502 }
 0xe22   : > { %14505 = vst.msk [vmem:[%s23058_s17 + $0xe] sm:$0x1] %vm24169_vm14, %v14503_v61 }
 0xe24   : > { %v15111_v52 = vpop.permute.xlu0 %15110 }
 0xe25   : > { %15113 = vst.msk [vmem:[%s23058_s17 + $0x11] sm:$0x1] %vm24169_vm14, %v15111_v52  ;;  %v14914_v47 = vpop.permute.xlu1 %14913 }
 0xe26   : > { %14916 = vst.msk [vmem:[%s23058_s17 + $0x10] sm:$0x1] %vm24169_vm14, %v14914_v47 }
 0xe29   : > { %v15523_v23 = vpop.permute.xlu0 %15522  ;;  %v15319_v48 = vpop.permute.xlu1 %15318 }
 0xe2a   : > { %15525 = vst.msk [vmem:[%s23058_s17 + $0x13] sm:$0x1] %vm24169_vm14, %v15523_v23  ;;  %15321 = vst.msk [vmem:[%s23058_s17 + $0x12] sm:$0x1] %vm24169_vm14, %v15319_v48 }
 0xe2d   : > { %v15914_v56 = vpop.permute.xlu0 %15913  ;;  %v15717_v16 = vpop.permute.xlu1 %15716 }
 0xe2e   : > { %15916 = vst.msk [vmem:[%s23058_s17 + $0x15] sm:$0x1] %vm24169_vm14, %v15914_v56  ;;  %15719 = vst.msk [vmem:[%s23058_s17 + $0x14] sm:$0x1] %vm24169_vm14, %v15717_v16 }
 0xe31   : > { %v16122_v36 = vpop.permute.xlu1 %16121 }
 0xe32   : > { %16124 = vst.msk [vmem:[%s23058_s17 + $0x16] sm:$0x1] %vm24169_vm14, %v16122_v36 }
 0xe4c   : > { %v16326_v2 = vpop.permute.xlu0 %16325 }
 0xe4d   : > { %v16218_v58 = vpop.f32.mrb[108].mxu1 }
 0xe4e   : > { %16222 = vst.msk [vmem:[%s23058_s17 + $0x17] sm:$0x1] %vm22927_vm15, %v16218_v58  ;;  %v20163_v37 = vpop.f32.mrb[109].mxu1 }
 0xe4f   : > { %16328 = vst.msk [vmem:[%s23058_s17 + $0x17] sm:$0x1] %vm24169_vm14, %v16326_v2 }
 0xe50   : > { %v17500_v59 = vpop.f32.mrb[140].mxu0 }
 0xe51   : > { %v17511_v34 = vrot.slane %v17500_v59, %v22919_v18  ;;  %v20332_v57 = vpop.f32.mrb[141].mxu0 }
 0xe53   : > { %v17518_v19 = vrot.slane %v17511_v34, %v22919_v18 }
 0xe55   : > { %17519 = vrot.lane.b32.xlu0 %v17518_v19, %s21201_s19 }
 0xe59   : > { %v16412_v13 = vpop.f32.mrb[110].mxu1 }
 0xe5a   : > { %v16520_v26 = vpop.permute.xlu1 %16519  ;;  %16416 = vst.msk [vmem:[%s23058_s17 + $0x18] sm:$0x1] %vm22927_vm15, %v16412_v13  ;;  %v20189_v55 = vpop.f32.mrb[111].mxu1 }
 0xe5b   : > { %16522 = vst.msk [vmem:[%s23058_s17 + $0x18] sm:$0x1] %vm24169_vm14, %v16520_v26  ;;  %v17707_v42 = vpop.f32.mrb[142].mxu0 }
 0xe5c   : > { %v17718_v39 = vrot.slane %v17707_v42, %v22919_v18  ;;  %v20358_v11 = vpop.f32.mrb[143].mxu0 }
 0xe5e   : > { %v17725_v35 = vrot.slane %v17718_v39, %v22919_v18 }
 0xe60   : > { %17726 = vrot.lane.b32.xlu1 %v17725_v35, %s21201_s19 }
 0xe63   : > { %v16606_v14 = vpop.f32.mrb[112].mxu1 }
 0xe64   : > { %16610 = vst.msk [vmem:[%s23058_s17 + $0x19] sm:$0x1] %vm22927_vm15, %v16606_v14  ;;  %v20215_v5 = vpop.f32.mrb[113].mxu1 }
 0xe65   : > { %v17907_v54 = vpop.f32.mrb[144].mxu0 }
 0xe66   : > { %v17918_v62 = vrot.slane %v17907_v54, %v22919_v18  ;;  %v20384_v32 = vpop.f32.mrb[145].mxu0 }
 0xe68   : > { %v17925_v24 = vrot.slane %v17918_v62, %v22919_v18 }
 0xe6a   : > { %17926 = vrot.lane.b32.xlu0 %v17925_v24, %s21201_s19 }
 0xe70   : > { %v16717_v44 = vpop.permute.xlu0 %16716 }
 0xe71   : > { %16719 = vst.msk [vmem:[%s23058_s17 + $0x19] sm:$0x1] %vm24169_vm14, %v16717_v44 }
 0xe73   : > { %v16806_v50 = vpop.f32.mrb[114].mxu1 }
 0xe74   : > { %16810 = vst.msk [vmem:[%s23058_s17 + $0x1a] sm:$0x1] %vm22927_vm15, %v16806_v50  ;;  %v20241_v10 = vpop.f32.mrb[115].mxu1 }
 0xe7a   : > { %v16925_v4 = vpop.permute.xlu1 %16924 }
 0xe7b   : > { %16927 = vst.msk [vmem:[%s23058_s17 + $0x1a] sm:$0x1] %vm24169_vm14, %v16925_v4 }
 0xe7e   : > { %v17021_v12 = vpop.f32.mrb[116].mxu1 }
 0xe7f   : > { %17025 = vst.msk [vmem:[%s23058_s17 + $0x1b] sm:$0x1] %vm22927_vm15, %v17021_v12  ;;  %v20267_v18 = vpop.f32.mrb[117].mxu1 }
 0xe85   : > { %v17129_v40 = vpop.permute.xlu0 %17128 }
 0xe86   : > { %17131 = vst.msk [vmem:[%s23058_s17 + $0x1b] sm:$0x1] %vm24169_vm14, %v17129_v40 }
 0xe88   : > { %v17215_v25 = vpop.f32.mrb[118].mxu1 }
 0xe89   : > { %17219 = vst.msk [vmem:[%s23058_s17 + $0x1c] sm:$0x1] %vm22927_vm15, %v17215_v25  ;;  %v20293_v17 = vpop.f32.mrb[119].mxu1 }
 0xe8f   : > { %v17323_v60 = vpop.permute.xlu1 %17322 }
 0xe90   : > { %17325 = vst.msk [vmem:[%s23058_s17 + $0x1c] sm:$0x1] %vm24169_vm14, %v17323_v60 }
 0xe92   : > { %v17409_v27 = vpop.f32.mrb[120].mxu1 }
 0xe93   : > { %17413 = vst.msk [vmem:[%s23058_s17 + $0x1d] sm:$0x1] %vm22927_vm15, %v17409_v27  ;;  %v20319_v21 = vpop.f32.mrb[121].mxu1 }
 0xec7   : > { %v17520_v29 = vpop.permute.xlu0 %17519 }
 0xec8   : > { %17522 = vst.msk [vmem:[%s23058_s17 + $0x1d] sm:$0x1] %vm24169_vm14, %v17520_v29 }
 0xeca   : > { %v17609_v20 = vpop.f32.mrb[122].mxu1 }
 0xecb   : > { %17613 = vst.msk [vmem:[%s23058_s17 + $0x1e] sm:$0x1] %vm22927_vm15, %v17609_v20  ;;  %v20345_v3 = vpop.f32.mrb[123].mxu1 }
 0xed2   : > { %v17727_v43 = vpop.permute.xlu1 %17726 }
 0xed3   : > { %17729 = vst.msk [vmem:[%s23058_s17 + $0x1e] sm:$0x1] %vm24169_vm14, %v17727_v43 }
 0xed5   : > { %v17823_v9 = vpop.f32.mrb[124].mxu1 }
 0xed6   : > { %17827 = vst.msk [vmem:[%s23058_s17 + $0x1f] sm:$0x1] %vm22927_vm15, %v17823_v9  ;;  %v20371_v0 = vpop.f32.mrb[125].mxu1 }
 0xedc   : > { %v17927_v31 = vpop.permute.xlu0 %17926 }
 0xedd   : > { %17929 = vst.msk [vmem:[%s23058_s17 + $0x1f] sm:$0x1] %vm24169_vm14, %v17927_v31 }
 0xede PF: > { %s19_s30 = sadd.s32 1, %s21132_s30  }
 0xedf   : > { %p16_p4 = scmp.ge.s32.totalorder %s19_s30, 4  }
 0xee1   :  { %18 = sbr.rel (!%p16_p4) target bundleno = 1 (0x1), region = 86 }

</bundles_post_ra>
